<compile_context>
chip_gen: v6e
topology: v6e:2x2x1
jax: 0.10.0
libtpu: 0.0.40
codegen_flags: <defaults>
</compile_context>

<pallas_src>
import functools

import jax
import jax.numpy as jnp
from jax.experimental import pallas as pl
from jax.experimental.pallas import tpu as pltpu

_VMEM_LIMIT = 32 * 1024 * 1024


def _round_up(x, m):
    return ((x + m - 1) // m) * m


# ------------------------------ tiled GEMM ---------------------------------
# y = epilogue( prologue(x) @ w )
#   prologue (optional): per-K-channel affine  x*scale + shift   (fused BatchNorm)
#   epilogue (optional): + bias (per-N), ReLU, + residual (per-tile)

def _gemm_kernel(*refs, relu, has_affine, has_bias, has_res):
    it = iter(refs)
    x_ref = next(it)
    w_ref = next(it)
    s_ref = next(it) if has_affine else None
    t_ref = next(it) if has_affine else None
    b_ref = next(it) if has_bias else None
    r_ref = next(it) if has_res else None
    o_ref = next(it)
    acc_ref = next(it)

    @pl.when(pl.program_id(2) == 0)
    def _init():
        acc_ref[...] = jnp.zeros_like(acc_ref)

    x = x_ref[...]
    if has_affine:
        # Fused BatchNorm: (x - mean) * inv_std * gamma + beta  ==  x*scale + shift
        x = (x.astype(jnp.float32) * s_ref[...] + t_ref[...]).astype(jnp.bfloat16)
    acc_ref[...] += jnp.dot(x, w_ref[...], preferred_element_type=jnp.float32)

    @pl.when(pl.program_id(2) == pl.num_programs(2) - 1)
    def _finalize():
        y = acc_ref[...]
        if has_bias:
            y = y + b_ref[...]
        if relu:
            y = jnp.maximum(y, 0.0)
        if has_res:
            y = y + r_ref[...].astype(jnp.float32)
        o_ref[...] = y.astype(o_ref.dtype)


def gemm(x, w, *, scale=None, shift=None, bias=None, residual=None, relu=False,
         out_dtype=jnp.bfloat16):
    """Tiled bf16 MXU GEMM with optional fused BN prologue / bias / ReLU / residual."""
    M, K = x.shape
    _, N = w.shape

    tm = min(512, _round_up(M, 16))        # 16: bf16 sublane packing granularity
    tk = min(512, _round_up(K, 128))
    tn = min(256, _round_up(N, 128))
    Mp, Kp, Np = _round_up(M, tm), _round_up(K, tk), _round_up(N, tn)

    xb = jnp.pad(x.astype(jnp.bfloat16), ((0, Mp - M), (0, Kp - K)))
    wb = jnp.pad(w.astype(jnp.bfloat16), ((0, Kp - K), (0, Np - N)))

    has_affine = scale is not None
    has_bias = bias is not None
    has_res = residual is not None

    in_specs = [pl.BlockSpec((tm, tk), lambda i, j, k: (i, k)),
                pl.BlockSpec((tk, tn), lambda i, j, k: (k, j))]
    args = [xb, wb]
    if has_affine:
        sc = jnp.pad(scale.reshape(1, K).astype(jnp.float32),
                     ((0, 0), (0, Kp - K)), constant_values=1.0)
        sh = jnp.pad(shift.reshape(1, K).astype(jnp.float32),
                     ((0, 0), (0, Kp - K)))
        in_specs += [pl.BlockSpec((1, tk), lambda i, j, k: (0, k)),
                     pl.BlockSpec((1, tk), lambda i, j, k: (0, k))]
        args += [sc, sh]
    if has_bias:
        bb = jnp.pad(bias.reshape(1, N).astype(jnp.float32), ((0, 0), (0, Np - N)))
        in_specs.append(pl.BlockSpec((1, tn), lambda i, j, k: (0, j)))
        args.append(bb)
    if has_res:
        rb = jnp.pad(residual.astype(jnp.bfloat16), ((0, Mp - M), (0, Np - N)))
        in_specs.append(pl.BlockSpec((tm, tn), lambda i, j, k: (i, j)))
        args.append(rb)

    cost = pl.CostEstimate(
        flops=int(2 * Mp * Np * Kp),
        transcendentals=0,
        bytes_accessed=int(2 * (Mp * Kp + Kp * Np + 2 * Mp * Np)))

    out = pl.pallas_call(
        functools.partial(_gemm_kernel, relu=relu, has_affine=has_affine,
                          has_bias=has_bias, has_res=has_res),
        out_shape=jax.ShapeDtypeStruct((Mp, Np), out_dtype),
        grid=(Mp // tm, Np // tn, Kp // tk),
        in_specs=in_specs,
        out_specs=pl.BlockSpec((tm, tn), lambda i, j, k: (i, j)),
        scratch_shapes=[pltpu.VMEM((tm, tn), jnp.float32)],
        compiler_params=pltpu.CompilerParams(
            dimension_semantics=("parallel", "parallel", "arbitrary"),
            vmem_limit_bytes=_VMEM_LIMIT),
        cost_estimate=cost,
    )(*args)
    return out[:M, :N]


# ------------------------- BatchNorm (train mode) ---------------------------

def _bn_stats_kernel(x_ref, sum_ref, sq_ref):
    @pl.when(pl.program_id(0) == 0)
    def _init():
        sum_ref[...] = jnp.zeros_like(sum_ref)
        sq_ref[...] = jnp.zeros_like(sq_ref)

    x = x_ref[...].astype(jnp.float32)
    sum_ref[...] += jnp.sum(x, axis=0, keepdims=True)
    sq_ref[...] += jnp.sum(x * x, axis=0, keepdims=True)


def bn_scale_shift(x2d, gamma, beta, eps=1e-5):
    """Per-channel batch stats over the M axis, folded into (scale, shift)."""
    M, C = x2d.shape
    tm = min(1024, _round_up(M, 16))
    Mp = _round_up(M, tm)
    xb = jnp.pad(x2d.astype(jnp.bfloat16), ((0, Mp - M), (0, 0)))

    sums, sqs = pl.pallas_call(
        _bn_stats_kernel,
        out_shape=(jax.ShapeDtypeStruct((1, C), jnp.float32),
                   jax.ShapeDtypeStruct((1, C), jnp.float32)),
        grid=(Mp // tm,),
        in_specs=[pl.BlockSpec((tm, C), lambda i: (i, 0))],
        out_specs=(pl.BlockSpec((1, C), lambda i: (0, 0)),
                   pl.BlockSpec((1, C), lambda i: (0, 0))),
        compiler_params=pltpu.CompilerParams(
            dimension_semantics=("arbitrary",),
            vmem_limit_bytes=_VMEM_LIMIT),
    )(xb)

    mean = sums / M
    var = jnp.maximum(sqs / M - mean * mean, 0.0)         # biased variance
    inv = jax.lax.rsqrt(var + eps)
    scale = gamma.reshape(1, C).astype(jnp.float32) * inv
    shift = beta.reshape(1, C).astype(jnp.float32) - mean * scale
    return scale, shift                                   # each (1, C) f32


def _affine_kernel(x_ref, s_ref, t_ref, o_ref):
    o_ref[...] = (x_ref[...].astype(jnp.float32) * s_ref[...]
                  + t_ref[...]).astype(o_ref.dtype)


def affine_apply(x2d, scale, shift):
    """Standalone per-channel affine (used where BN can't be fused into a GEMM)."""
    M, C = x2d.shape
    tm = min(1024, _round_up(M, 16))
    Mp = _round_up(M, tm)
    xb = jnp.pad(x2d.astype(jnp.bfloat16), ((0, Mp - M), (0, 0)))
    y = pl.pallas_call(
        _affine_kernel,
        out_shape=jax.ShapeDtypeStruct((Mp, C), jnp.bfloat16),
        grid=(Mp // tm,),
        in_specs=[pl.BlockSpec((tm, C), lambda i: (i, 0)),
                  pl.BlockSpec((1, C), lambda i: (0, 0)),
                  pl.BlockSpec((1, C), lambda i: (0, 0))],
        out_specs=pl.BlockSpec((tm, C), lambda i: (i, 0)),
        compiler_params=pltpu.CompilerParams(
            dimension_semantics=("parallel",),
            vmem_limit_bytes=_VMEM_LIMIT),
    )(xb, scale, shift)
    return y[:M]


# --------------------------- depthwise 7x7 conv -----------------------------

def _dwconv_kernel(x_ref, w_ref, o_ref, *, K, H, W):
    x = x_ref[...].astype(jnp.float32)        # (1, H+K-1, W+K-1, C)
    w = w_ref[...]                            # (K*K, C) f32
    acc = jnp.zeros(o_ref.shape, jnp.float32)
    for kh in range(K):                       # unrolled K*K taps (VPU MACs)
        for kw in range(K):
            acc = acc + x[:, kh:kh + H, kw:kw + W, :] * w[kh * K + kw:kh * K + kw + 1, :]
    o_ref[...] = acc.astype(o_ref.dtype)


def dwconv_same(x, w_kkc):
    """Depthwise KxK conv, stride 1, 'same' padding, gridded over batch."""
    B, H, W, C = x.shape
    K = w_kkc.shape[0]
    p = K // 2
    xp = jnp.pad(x.astype(jnp.bfloat16), ((0, 0), (p, p), (p, p), (0, 0)))
    Hp, Wp = H + 2 * p, W + 2 * p
    return pl.pallas_call(
        functools.partial(_dwconv_kernel, K=K, H=H, W=W),
        out_shape=jax.ShapeDtypeStruct((B, H, W, C), jnp.bfloat16),
        grid=(B,),
        in_specs=[pl.BlockSpec((1, Hp, Wp, C), lambda b: (b, 0, 0, 0)),
                  pl.BlockSpec((K * K, C), lambda b: (0, 0))],
        out_specs=pl.BlockSpec((1, H, W, C), lambda b: (b, 0, 0, 0)),
        compiler_params=pltpu.CompilerParams(
            dimension_semantics=("parallel",),
            vmem_limit_bytes=_VMEM_LIMIT),
    )(xp, w_kkc.reshape(K * K, C).astype(jnp.float32))


# ------------------------------ global pooling ------------------------------

def _avgpool_kernel(x_ref, o_ref):
    o_ref[...] = jnp.mean(x_ref[...].astype(jnp.float32), axis=1)


def global_avgpool(x):
    """AdaptiveAvgPool2d((1,1)) + flatten: NHWC -> (B, C).  Final-stage only: tiny."""
    B, H, W, C = x.shape
    return pl.pallas_call(
        _avgpool_kernel,
        out_shape=jax.ShapeDtypeStruct((B, C), jnp.float32),
        in_specs=[pl.BlockSpec(memory_space=pltpu.MemorySpace.VMEM)],
        out_specs=pl.BlockSpec(memory_space=pltpu.MemorySpace.VMEM),
    )(x.reshape(B, H * W, C))


# --------------------------- composite operators ----------------------------

def conv2d_nhwc(x, w_oikk, b, stride, padding):
    """Strided Conv2d via im2col (taps in (kh,kw,cin) order, no extra transpose)
    + tiled Pallas GEMM with fused bias.  x: NHWC bf16, w: (Cout,Cin,KH,KW)."""
    B, H, W, Cin = x.shape
    Cout, _, KH, KW = w_oikk.shape
    OH = (H + 2 * padding - KH) // stride + 1
    OW = (W + 2 * padding - KW) // stride + 1
    xp = jnp.pad(x.astype(jnp.bfloat16),
                 ((0, 0), (padding, padding), (padding, padding), (0, 0)))
    # TODO(synk): accumulate the KH*KW taps inside the GEMM kernel instead of
    # materializing the im2col patch tensor in HBM (KH*KW x blow-up for the stem).
    cols = []
    for kh in range(KH):
        for kw in range(KW):
            cols.append(xp[:, kh:kh + stride * OH:stride,
                           kw:kw + stride * OW:stride, :])
    patches = jnp.concatenate(cols, axis=-1)               # (B,OH,OW,KH*KW*Cin)
    patches = patches.reshape(B * OH * OW, KH * KW * Cin)
    # weight to (kh, kw, cin, cout) so its flattened K order matches the patches
    wmat = jnp.transpose(w_oikk, (2, 3, 1, 0)).reshape(KH * KW * Cin, Cout)
    y = gemm(patches, wmat, bias=b)
    return y.reshape(B, OH, OW, Cout)


def metaformer_block(x, p):
    """x = x + SepConv(BN(x));  x = x + Mlp(BN(x)).  BN fused into pw1/fc1
    prologue, residual adds fused into pw2/fc2 epilogue."""
    B, H, W, C = x.shape
    M = B * H * W
    x2 = x.reshape(M, C)

    # token mixer: BN -> pwconv1 + ReLU -> 7x7 depthwise -> pwconv2 (+ residual)
    s1, t1 = bn_scale_shift(x2, p['n1_g'], p['n1_b'])
    h = gemm(x2, p['pw1'], scale=s1, shift=t1, relu=True)        # (M, 2C)
    Cm = p['pw1'].shape[1]
    h = dwconv_same(h.reshape(B, H, W, Cm), p['dw'])
    x2 = gemm(h.reshape(M, Cm), p['pw2'], residual=x2)           # (M, C)

    # MLP: BN -> fc1 + ReLU -> fc2 (+ residual)
    s2, t2 = bn_scale_shift(x2, p['n2_g'], p['n2_b'])
    h = gemm(x2, p['fc1'], scale=s2, shift=t2, relu=True)        # (M, 4C)
    x2 = gemm(h, p['fc2'], residual=x2)                          # (M, C)

    return x2.reshape(B, H, W, C)


def downsample(x, d):
    if 'pre_g' in d:                                             # pre_norm (BN)
        B, H, W, C = x.shape
        x2 = x.reshape(B * H * W, C)
        s, t = bn_scale_shift(x2, d['pre_g'], d['pre_b'])
        x = affine_apply(x2, s, t).reshape(B, H, W, C)
    x = conv2d_nhwc(x, d['w'], d['b'], stride=d['s'], padding=d['p'])
    if 'post_g' in d:                                            # post_norm (BN)
        B, H, W, C = x.shape
        x2 = x.reshape(B * H * W, C)
        s, t = bn_scale_shift(x2, d['post_g'], d['post_b'])
        x = affine_apply(x2, s, t).reshape(B, H, W, C)
    return x


def metaformer_forward(params, x_nchw):
    x = jnp.transpose(x_nchw, (0, 2, 3, 1)).astype(jnp.bfloat16)  # NCHW -> NHWC
    for i, stage in enumerate(params['stages']):
        x = downsample(x, params['downsample'][i])
        for blk in stage:
            x = metaformer_block(x, blk)
    pooled = global_avgpool(x)                                    # (B, C) f32
    return gemm(pooled, params['head_w'], bias=params['head_b'],
                out_dtype=jnp.float32)                            # (B, classes)


# ------------------------------ parameter init ------------------------------

def _trunc_normal(key, shape, std=0.02):
    return std * jax.random.truncated_normal(key, -2.0, 2.0, shape, jnp.float32)


def init_params(key, inplanes, embedding_planes, block_nums, num_classes):
    keys = iter(jax.random.split(key, 4096))
    nk = lambda: next(keys)
    params = {'downsample': [], 'stages': []}
    down_planes = [inplanes] + list(embedding_planes)
    for i in range(len(block_nums)):
        if i == 0:
            k, s, pad = 7, 4, 2
        else:
            k, s, pad = 3, 2, 1
        cin, cout = down_planes[i], down_planes[i + 1]
        d = {'w': _trunc_normal(nk(), (cout, cin, k, k)),
             'b': jnp.zeros((cout,), jnp.float32),
             'k': k, 's': s, 'p': pad}
        if i == 0:   # post_norm only on the stem
            d['post_g'] = jnp.ones((cout,), jnp.float32)
            d['post_b'] = jnp.zeros((cout,), jnp.float32)
        else:        # pre_norm on later downsamplings
            d['pre_g'] = jnp.ones((cin,), jnp.float32)
            d['pre_b'] = jnp.zeros((cin,), jnp.float32)
        params['downsample'].append(d)

        C = embedding_planes[i]
        stage = []
        for _ in range(block_nums[i]):
            blk = {
                'n1_g': jnp.ones((C,), jnp.float32),
                'n1_b': jnp.zeros((C,), jnp.float32),
                'pw1': _trunc_normal(nk(), (C, 2 * C)),      # Linear C -> 2C
                'dw': _trunc_normal(nk(), (7, 7, 2 * C)),    # depthwise 7x7
                'pw2': _trunc_normal(nk(), (2 * C, C)),      # Linear 2C -> C
                'n2_g': jnp.ones((C,), jnp.float32),
                'n2_b': jnp.zeros((C,), jnp.float32),
                'fc1': _trunc_normal(nk(), (C, 4 * C)),      # Mlp fc1
                'fc2': _trunc_normal(nk(), (4 * C, C)),      # Mlp fc2
            }
            stage.append(blk)
        params['stages'].append(stage)

    params['head_w'] = _trunc_normal(nk(), (embedding_planes[-1], num_classes))
    params['head_b'] = jnp.zeros((num_classes,), jnp.float32)
    return params


# ---------------------------------- driver ----------------------------------

if __name__ == "__main__":
    key = jax.random.PRNGKey(0)
    kx, kp = jax.random.split(key)

    # Small but structurally faithful config (4 stages, stride-4 stem then /2).
    inplanes = 3
    embedding_planes = [16, 32, 64, 128]
    block_nums = [1, 1, 2, 1]
    num_classes = 10

    x = jax.random.normal(kx, (2, inplanes, 16, 16), jnp.float32)   # NCHW input
    params = init_params(kp, inplanes, embedding_planes, block_nums, num_classes)

    fwd = jax.jit(functools.partial(metaformer_forward, params))
    out = jax.block_until_ready(fwd(x))

    assert out.shape == (2, num_classes), out.shape
    assert bool(jnp.all(jnp.isfinite(out)))
    print("KERNEL_OK")
</pallas_src>

<mosaic_0001>
module attributes {stable_mosaic.version = 11 : i64} {
  func.func @_bn_stats_kernel(%arg0: i32, %arg1: memref<32x16xbf16, #tpu.memory_space<vmem>>, %arg2: memref<1x16xf32, #tpu.memory_space<vmem>>, %arg3: memref<1x16xf32, #tpu.memory_space<vmem>>) attributes {dimension_semantics = [#tpu.dimension_semantics<arbitrary>], iteration_bounds = array<i64: 1>, scalar_prefetch = 0 : i64, scratch_operands = 0 : i64, tpu.core_type = #tpu.core_type<tc>, window_params = [{transform_indices = @transform_0, window_bounds = array<i64: 32, 16>}, {pipeline_mode = #tpu.pipeline_mode<synchronous>, transform_indices = @transform_1, window_bounds = array<i64: 1, 16>}, {pipeline_mode = #tpu.pipeline_mode<synchronous>, transform_indices = @transform_2, window_bounds = array<i64: 1, 16>}]} {
    %c0_i32 = arith.constant 0 : i32
    %0 = arith.cmpi eq, %arg0, %c0_i32 : i32
    %1 = arith.extui %0 : i1 to i32
    %c0_i32_0 = arith.constant 0 : i32
    %2 = arith.cmpi ne, %1, %c0_i32_0 : i32
    scf.if %2 {
      %cst_11 = arith.constant 0.000000e+00 : f32
      %16 = vector.broadcast %cst_11 : f32 to vector<1x16xf32>
      %c0_12 = arith.constant 0 : index
      %c0_13 = arith.constant 0 : index
      %17 = vector.load %arg2[%c0_12, %c0_13] : memref<1x16xf32, #tpu.memory_space<vmem>>, vector<1x16xf32>
      tpu.vector_store %arg2[%c0_12, %c0_13], %16 {strides = array<i32>} : memref<1x16xf32, #tpu.memory_space<vmem>>, vector<1x16xf32>,
      %cst_14 = arith.constant 0.000000e+00 : f32
      %18 = vector.broadcast %cst_14 : f32 to vector<1x16xf32>
      %c0_15 = arith.constant 0 : index
      %c0_16 = arith.constant 0 : index
      %19 = vector.load %arg3[%c0_15, %c0_16] : memref<1x16xf32, #tpu.memory_space<vmem>>, vector<1x16xf32>
      tpu.vector_store %arg3[%c0_15, %c0_16], %18 {strides = array<i32>} : memref<1x16xf32, #tpu.memory_space<vmem>>, vector<1x16xf32>,
    } else {
    }
    %c0 = arith.constant 0 : index
    %c0_1 = arith.constant 0 : index
    %3 = vector.load %arg1[%c0, %c0_1] : memref<32x16xbf16, #tpu.memory_space<vmem>>, vector<32x16xbf16>
    %4 = arith.extf %3 : vector<32x16xbf16> to vector<32x16xf32>
    %c0_2 = arith.constant 0 : index
    %c0_3 = arith.constant 0 : index
    %5 = vector.load %arg2[%c0_2, %c0_3] : memref<1x16xf32, #tpu.memory_space<vmem>>, vector<1x16xf32>
    %cst = arith.constant dense<0.000000e+00> : vector<16xf32>
    %6 = vector.multi_reduction <add>, %4, %cst [0] : vector<32x16xf32> to vector<16xf32>
    %7 = vector.shape_cast %6 : vector<16xf32> to vector<1x16xf32>
    %8 = arith.addf %5, %7 : vector<1x16xf32>
    %c0_4 = arith.constant 0 : index
    %c0_5 = arith.constant 0 : index
    %9 = vector.load %arg2[%c0_4, %c0_5] : memref<1x16xf32, #tpu.memory_space<vmem>>, vector<1x16xf32>
    tpu.vector_store %arg2[%c0_4, %c0_5], %8 {strides = array<i32>} : memref<1x16xf32, #tpu.memory_space<vmem>>, vector<1x16xf32>,
    %c0_6 = arith.constant 0 : index
    %c0_7 = arith.constant 0 : index
    %10 = vector.load %arg3[%c0_6, %c0_7] : memref<1x16xf32, #tpu.memory_space<vmem>>, vector<1x16xf32>
    %11 = arith.mulf %4, %4 : vector<32x16xf32>
    %cst_8 = arith.constant dense<0.000000e+00> : vector<16xf32>
    %12 = vector.multi_reduction <add>, %11, %cst_8 [0] : vector<32x16xf32> to vector<16xf32>
    %13 = vector.shape_cast %12 : vector<16xf32> to vector<1x16xf32>
    %14 = arith.addf %10, %13 : vector<1x16xf32>
    %c0_9 = arith.constant 0 : index
    %c0_10 = arith.constant 0 : index
    %15 = vector.load %arg3[%c0_9, %c0_10] : memref<1x16xf32, #tpu.memory_space<vmem>>, vector<1x16xf32>
    tpu.vector_store %arg3[%c0_9, %c0_10], %14 {strides = array<i32>} : memref<1x16xf32, #tpu.memory_space<vmem>>, vector<1x16xf32>,
    return
  }
  func.func @transform_0(%arg0: i32) -> (i32, i32) {
    %c0_i32 = arith.constant 0 : i32
    %c0_i32_0 = arith.constant 0 : i32
    return %arg0, %c0_i32 : i32, i32
  }
  func.func @transform_1(%arg0: i32) -> (i32, i32) {
    %c0_i32 = arith.constant 0 : i32
    %c0_i32_0 = arith.constant 0 : i32
    %c0_i32_1 = arith.constant 0 : i32
    return %c0_i32, %c0_i32_0 : i32, i32
  }
  func.func @transform_2(%arg0: i32) -> (i32, i32) {
    %c0_i32 = arith.constant 0 : i32
    %c0_i32_0 = arith.constant 0 : i32
    %c0_i32_1 = arith.constant 0 : i32
    return %c0_i32, %c0_i32_0 : i32, i32
  }
}

module attributes {stable_mosaic.version = 11 : i64} {
  func.func @_gemm_kernel(%arg0: i32, %arg1: i32, %arg2: i32, %arg3: memref<32x256xbf16, #tpu.memory_space<vmem>>, %arg4: memref<256x128xbf16, #tpu.memory_space<vmem>>, %arg5: memref<1x128xf32, #tpu.memory_space<vmem>>, %arg6: memref<32x128xbf16, #tpu.memory_space<vmem>>, %arg7: memref<32x128xf32, #tpu.memory_space<vmem>>) attributes {dimension_semantics = [#tpu.dimension_semantics<parallel>, #tpu.dimension_semantics<parallel>, #tpu.dimension_semantics<arbitrary>], iteration_bounds = array<i64: 1, 1, 1>, scalar_prefetch = 0 : i64, scratch_operands = 1 : i64, tpu.core_type = #tpu.core_type<tc>, window_params = [{transform_indices = @transform_0, window_bounds = array<i64: 32, 256>}, {transform_indices = @transform_1, window_bounds = array<i64: 256, 128>}, {transform_indices = @transform_2, window_bounds = array<i64: 1, 128>}, {transform_indices = @transform_3, window_bounds = array<i64: 32, 128>}]} {
    %c0_i32 = arith.constant 0 : i32
    %0 = arith.cmpi eq, %arg2, %c0_i32 : i32
    %1 = arith.extui %0 : i1 to i32
    %c0_i32_0 = arith.constant 0 : i32
    %2 = arith.cmpi ne, %1, %c0_i32_0 : i32
    scf.if %2 {
      %cst_10 = arith.constant 0.000000e+00 : f32
      %12 = vector.broadcast %cst_10 : f32 to vector<32x128xf32>
      %c0_11 = arith.constant 0 : index
      %c0_12 = arith.constant 0 : index
      %13 = vector.load %arg7[%c0_11, %c0_12] : memref<32x128xf32, #tpu.memory_space<vmem>>, vector<32x128xf32>
      tpu.vector_store %arg7[%c0_11, %c0_12], %12 {strides = array<i32>} : memref<32x128xf32, #tpu.memory_space<vmem>>, vector<32x128xf32>,
    } else {
    }
    %c0 = arith.constant 0 : index
    %c0_1 = arith.constant 0 : index
    %3 = vector.load %arg3[%c0, %c0_1] : memref<32x256xbf16, #tpu.memory_space<vmem>>, vector<32x256xbf16>
    %c0_2 = arith.constant 0 : index
    %c0_3 = arith.constant 0 : index
    %4 = vector.load %arg7[%c0_2, %c0_3] : memref<32x128xf32, #tpu.memory_space<vmem>>, vector<32x128xf32>
    %c0_4 = arith.constant 0 : index
    %c0_5 = arith.constant 0 : index
    %5 = vector.load %arg4[%c0_4, %c0_5] : memref<256x128xbf16, #tpu.memory_space<vmem>>, vector<256x128xbf16>
    %cst = arith.constant dense<0.000000e+00> : vector<32x128xf32>
    %6 = tpu.matmul %3, %5, %cst {dimension_numbers = #tpu.dot_dimension_numbers<[1], [0], [0], [1], [0, 0, 1, 1], [], []>} : vector<32x256xbf16>, vector<256x128xbf16>, vector<32x128xf32> -> vector<32x128xf32>
    %7 = arith.addf %4, %6 : vector<32x128xf32>
    %c0_6 = arith.constant 0 : index
    %c0_7 = arith.constant 0 : index
    %8 = vector.load %arg7[%c0_6, %c0_7] : memref<32x128xf32, #tpu.memory_space<vmem>>, vector<32x128xf32>
    tpu.vector_store %arg7[%c0_6, %c0_7], %7 {strides = array<i32>} : memref<32x128xf32, #tpu.memory_space<vmem>>, vector<32x128xf32>,
    %c0_i32_8 = arith.constant 0 : i32
    %9 = arith.cmpi eq, %arg2, %c0_i32_8 : i32
    %10 = arith.extui %9 : i1 to i32
    %c0_i32_9 = arith.constant 0 : i32
    %11 = arith.cmpi ne, %10, %c0_i32_9 : i32
    scf.if %11 {
      %c0_10 = arith.constant 0 : index
      %c0_11 = arith.constant 0 : index
      %12 = vector.load %arg7[%c0_10, %c0_11] : memref<32x128xf32, #tpu.memory_space<vmem>>, vector<32x128xf32>
      %c0_12 = arith.constant 0 : index
      %c0_13 = arith.constant 0 : index
      %13 = vector.load %arg5[%c0_12, %c0_13] : memref<1x128xf32, #tpu.memory_space<vmem>>, vector<1x128xf32>
      %14 = vector.broadcast %13 : vector<1x128xf32> to vector<32x128xf32>
      %15 = arith.addf %12, %14 : vector<32x128xf32>
      %16 = arith.truncf %15 : vector<32x128xf32> to vector<32x128xbf16>
      %c0_14 = arith.constant 0 : index
      %c0_15 = arith.constant 0 : index
      %17 = vector.load %arg6[%c0_14, %c0_15] : memref<32x128xbf16, #tpu.memory_space<vmem>>, vector<32x128xbf16>
      tpu.vector_store %arg6[%c0_14, %c0_15], %16 {strides = array<i32>} : memref<32x128xbf16, #tpu.memory_space<vmem>>, vector<32x128xbf16>,
    } else {
    }
    return
  }
  func.func @transform_0(%arg0: i32, %arg1: i32, %arg2: i32) -> (i32, i32) {
    %c0_i32 = arith.constant 0 : i32
    return %arg0, %arg2 : i32, i32
  }
  func.func @transform_1(%arg0: i32, %arg1: i32, %arg2: i32) -> (i32, i32) {
    %c0_i32 = arith.constant 0 : i32
    return %arg2, %arg1 : i32, i32
  }
  func.func @transform_2(%arg0: i32, %arg1: i32, %arg2: i32) -> (i32, i32) {
    %c0_i32 = arith.constant 0 : i32
    %c0_i32_0 = arith.constant 0 : i32
    return %c0_i32, %arg1 : i32, i32
  }
  func.func @transform_3(%arg0: i32, %arg1: i32, %arg2: i32) -> (i32, i32) {
    %c0_i32 = arith.constant 0 : i32
    return %arg0, %arg1 : i32, i32
  }
}

module attributes {stable_mosaic.version = 11 : i64} {
  func.func @_affine_kernel(%arg0: i32, %arg1: memref<32x16xbf16, #tpu.memory_space<vmem>>, %arg2: memref<1x16xf32, #tpu.memory_space<vmem>>, %arg3: memref<1x16xf32, #tpu.memory_space<vmem>>, %arg4: memref<32x16xbf16, #tpu.memory_space<vmem>>) attributes {dimension_semantics = [#tpu.dimension_semantics<parallel>], iteration_bounds = array<i64: 1>, scalar_prefetch = 0 : i64, scratch_operands = 0 : i64, tpu.core_type = #tpu.core_type<tc>, window_params = [{transform_indices = @transform_0, window_bounds = array<i64: 32, 16>}, {pipeline_mode = #tpu.pipeline_mode<synchronous>, transform_indices = @transform_1, window_bounds = array<i64: 1, 16>}, {pipeline_mode = #tpu.pipeline_mode<synchronous>, transform_indices = @transform_2, window_bounds = array<i64: 1, 16>}, {transform_indices = @transform_3, window_bounds = array<i64: 32, 16>}]} {
    %c0 = arith.constant 0 : index
    %c0_0 = arith.constant 0 : index
    %0 = vector.load %arg1[%c0, %c0_0] : memref<32x16xbf16, #tpu.memory_space<vmem>>, vector<32x16xbf16>
    %1 = arith.extf %0 : vector<32x16xbf16> to vector<32x16xf32>
    %c0_1 = arith.constant 0 : index
    %c0_2 = arith.constant 0 : index
    %2 = vector.load %arg2[%c0_1, %c0_2] : memref<1x16xf32, #tpu.memory_space<vmem>>, vector<1x16xf32>
    %3 = vector.broadcast %2 : vector<1x16xf32> to vector<32x16xf32>
    %4 = arith.mulf %1, %3 : vector<32x16xf32>
    %c0_3 = arith.constant 0 : index
    %c0_4 = arith.constant 0 : index
    %5 = vector.load %arg3[%c0_3, %c0_4] : memref<1x16xf32, #tpu.memory_space<vmem>>, vector<1x16xf32>
    %6 = vector.broadcast %5 : vector<1x16xf32> to vector<32x16xf32>
    %7 = arith.addf %4, %6 : vector<32x16xf32>
    %8 = arith.truncf %7 : vector<32x16xf32> to vector<32x16xbf16>
    %c0_5 = arith.constant 0 : index
    %c0_6 = arith.constant 0 : index
    %9 = vector.load %arg4[%c0_5, %c0_6] : memref<32x16xbf16, #tpu.memory_space<vmem>>, vector<32x16xbf16>
    tpu.vector_store %arg4[%c0_5, %c0_6], %8 {strides = array<i32>} : memref<32x16xbf16, #tpu.memory_space<vmem>>, vector<32x16xbf16>,
    return
  }
  func.func @transform_0(%arg0: i32) -> (i32, i32) {
    %c0_i32 = arith.constant 0 : i32
    %c0_i32_0 = arith.constant 0 : i32
    return %arg0, %c0_i32 : i32, i32
  }
  func.func @transform_1(%arg0: i32) -> (i32, i32) {
    %c0_i32 = arith.constant 0 : i32
    %c0_i32_0 = arith.constant 0 : i32
    %c0_i32_1 = arith.constant 0 : i32
    return %c0_i32, %c0_i32_0 : i32, i32
  }
  func.func @transform_2(%arg0: i32) -> (i32, i32) {
    %c0_i32 = arith.constant 0 : i32
    %c0_i32_0 = arith.constant 0 : i32
    %c0_i32_1 = arith.constant 0 : i32
    return %c0_i32, %c0_i32_0 : i32, i32
  }
  func.func @transform_3(%arg0: i32) -> (i32, i32) {
    %c0_i32 = arith.constant 0 : i32
    %c0_i32_0 = arith.constant 0 : i32
    return %arg0, %c0_i32 : i32, i32
  }
}

module attributes {stable_mosaic.version = 11 : i64} {
  func.func @_gemm_kernel(%arg0: i32, %arg1: i32, %arg2: i32, %arg3: memref<32x128xbf16, #tpu.memory_space<vmem>>, %arg4: memref<128x128xbf16, #tpu.memory_space<vmem>>, %arg5: memref<1x128xf32, #tpu.memory_space<vmem>>, %arg6: memref<1x128xf32, #tpu.memory_space<vmem>>, %arg7: memref<32x128xbf16, #tpu.memory_space<vmem>>, %arg8: memref<32x128xf32, #tpu.memory_space<vmem>>) attributes {dimension_semantics = [#tpu.dimension_semantics<parallel>, #tpu.dimension_semantics<parallel>, #tpu.dimension_semantics<arbitrary>], iteration_bounds = array<i64: 1, 1, 1>, scalar_prefetch = 0 : i64, scratch_operands = 1 : i64, tpu.core_type = #tpu.core_type<tc>, window_params = [{transform_indices = @transform_0, window_bounds = array<i64: 32, 128>}, {transform_indices = @transform_1, window_bounds = array<i64: 128, 128>}, {transform_indices = @transform_2, window_bounds = array<i64: 1, 128>}, {transform_indices = @transform_3, window_bounds = array<i64: 1, 128>}, {transform_indices = @transform_4, window_bounds = array<i64: 32, 128>}]} {
    %c0_i32 = arith.constant 0 : i32
    %0 = arith.cmpi eq, %arg2, %c0_i32 : i32
    %1 = arith.extui %0 : i1 to i32
    %c0_i32_0 = arith.constant 0 : i32
    %2 = arith.cmpi ne, %1, %c0_i32_0 : i32
    scf.if %2 {
      %cst_14 = arith.constant 0.000000e+00 : f32
      %20 = vector.broadcast %cst_14 : f32 to vector<32x128xf32>
      %c0_15 = arith.constant 0 : index
      %c0_16 = arith.constant 0 : index
      %21 = vector.load %arg8[%c0_15, %c0_16] : memref<32x128xf32, #tpu.memory_space<vmem>>, vector<32x128xf32>
      tpu.vector_store %arg8[%c0_15, %c0_16], %20 {strides = array<i32>} : memref<32x128xf32, #tpu.memory_space<vmem>>, vector<32x128xf32>,
    } else {
    }
    %c0 = arith.constant 0 : index
    %c0_1 = arith.constant 0 : index
    %3 = vector.load %arg3[%c0, %c0_1] : memref<32x128xbf16, #tpu.memory_space<vmem>>, vector<32x128xbf16>
    %4 = arith.extf %3 : vector<32x128xbf16> to vector<32x128xf32>
    %c0_2 = arith.constant 0 : index
    %c0_3 = arith.constant 0 : index
    %5 = vector.load %arg5[%c0_2, %c0_3] : memref<1x128xf32, #tpu.memory_space<vmem>>, vector<1x128xf32>
    %6 = vector.broadcast %5 : vector<1x128xf32> to vector<32x128xf32>
    %7 = arith.mulf %4, %6 : vector<32x128xf32>
    %c0_4 = arith.constant 0 : index
    %c0_5 = arith.constant 0 : index
    %8 = vector.load %arg6[%c0_4, %c0_5] : memref<1x128xf32, #tpu.memory_space<vmem>>, vector<1x128xf32>
    %9 = vector.broadcast %8 : vector<1x128xf32> to vector<32x128xf32>
    %10 = arith.addf %7, %9 : vector<32x128xf32>
    %11 = arith.truncf %10 : vector<32x128xf32> to vector<32x128xbf16>
    %c0_6 = arith.constant 0 : index
    %c0_7 = arith.constant 0 : index
    %12 = vector.load %arg8[%c0_6, %c0_7] : memref<32x128xf32, #tpu.memory_space<vmem>>, vector<32x128xf32>
    %c0_8 = arith.constant 0 : index
    %c0_9 = arith.constant 0 : index
    %13 = vector.load %arg4[%c0_8, %c0_9] : memref<128x128xbf16, #tpu.memory_space<vmem>>, vector<128x128xbf16>
    %cst = arith.constant dense<0.000000e+00> : vector<32x128xf32>
    %14 = tpu.matmul %11, %13, %cst {dimension_numbers = #tpu.dot_dimension_numbers<[1], [0], [0], [1], [0, 0, 1, 1], [], []>} : vector<32x128xbf16>, vector<128x128xbf16>, vector<32x128xf32> -> vector<32x128xf32>
    %15 = arith.addf %12, %14 : vector<32x128xf32>
    %c0_10 = arith.constant 0 : index
    %c0_11 = arith.constant 0 : index
    %16 = vector.load %arg8[%c0_10, %c0_11] : memref<32x128xf32, #tpu.memory_space<vmem>>, vector<32x128xf32>
    tpu.vector_store %arg8[%c0_10, %c0_11], %15 {strides = array<i32>} : memref<32x128xf32, #tpu.memory_space<vmem>>, vector<32x128xf32>,
    %c0_i32_12 = arith.constant 0 : i32
    %17 = arith.cmpi eq, %arg2, %c0_i32_12 : i32
    %18 = arith.extui %17 : i1 to i32
    %c0_i32_13 = arith.constant 0 : i32
    %19 = arith.cmpi ne, %18, %c0_i32_13 : i32
    scf.if %19 {
      %c0_14 = arith.constant 0 : index
      %c0_15 = arith.constant 0 : index
      %20 = vector.load %arg8[%c0_14, %c0_15] : memref<32x128xf32, #tpu.memory_space<vmem>>, vector<32x128xf32>
      %cst_16 = arith.constant 0.000000e+00 : f32
      %21 = vector.broadcast %cst_16 : f32 to vector<32x128xf32>
      %22 = arith.maximumf %20, %21 : vector<32x128xf32>
      %23 = arith.truncf %22 : vector<32x128xf32> to vector<32x128xbf16>
      %c0_17 = arith.constant 0 : index
      %c0_18 = arith.constant 0 : index
      %24 = vector.load %arg7[%c0_17, %c0_18] : memref<32x128xbf16, #tpu.memory_space<vmem>>, vector<32x128xbf16>
      tpu.vector_store %arg7[%c0_17, %c0_18], %23 {strides = array<i32>} : memref<32x128xbf16, #tpu.memory_space<vmem>>, vector<32x128xbf16>,
    } else {
    }
    return
  }
  func.func @transform_0(%arg0: i32, %arg1: i32, %arg2: i32) -> (i32, i32) {
    %c0_i32 = arith.constant 0 : i32
    return %arg0, %arg2 : i32, i32
  }
  func.func @transform_1(%arg0: i32, %arg1: i32, %arg2: i32) -> (i32, i32) {
    %c0_i32 = arith.constant 0 : i32
    return %arg2, %arg1 : i32, i32
  }
  func.func @transform_2(%arg0: i32, %arg1: i32, %arg2: i32) -> (i32, i32) {
    %c0_i32 = arith.constant 0 : i32
    %c0_i32_0 = arith.constant 0 : i32
    return %c0_i32, %arg2 : i32, i32
  }
  func.func @transform_3(%arg0: i32, %arg1: i32, %arg2: i32) -> (i32, i32) {
    %c0_i32 = arith.constant 0 : i32
    %c0_i32_0 = arith.constant 0 : i32
    return %c0_i32, %arg2 : i32, i32
  }
  func.func @transform_4(%arg0: i32, %arg1: i32, %arg2: i32) -> (i32, i32) {
    %c0_i32 = arith.constant 0 : i32
    return %arg0, %arg1 : i32, i32
  }
}

module attributes {stable_mosaic.version = 11 : i64} {
  func.func @_gemm_kernel(%arg0: i32, %arg1: i32, %arg2: i32, %arg3: memref<32x128xbf16, #tpu.memory_space<vmem>>, %arg4: memref<128x128xbf16, #tpu.memory_space<vmem>>, %arg5: memref<32x128xbf16, #tpu.memory_space<vmem>>, %arg6: memref<32x128xbf16, #tpu.memory_space<vmem>>, %arg7: memref<32x128xf32, #tpu.memory_space<vmem>>) attributes {dimension_semantics = [#tpu.dimension_semantics<parallel>, #tpu.dimension_semantics<parallel>, #tpu.dimension_semantics<arbitrary>], iteration_bounds = array<i64: 1, 1, 1>, scalar_prefetch = 0 : i64, scratch_operands = 1 : i64, tpu.core_type = #tpu.core_type<tc>, window_params = [{transform_indices = @transform_0, window_bounds = array<i64: 32, 128>}, {transform_indices = @transform_1, window_bounds = array<i64: 128, 128>}, {transform_indices = @transform_2, window_bounds = array<i64: 32, 128>}, {transform_indices = @transform_3, window_bounds = array<i64: 32, 128>}]} {
    %c0_i32 = arith.constant 0 : i32
    %0 = arith.cmpi eq, %arg2, %c0_i32 : i32
    %1 = arith.extui %0 : i1 to i32
    %c0_i32_0 = arith.constant 0 : i32
    %2 = arith.cmpi ne, %1, %c0_i32_0 : i32
    scf.if %2 {
      %cst_10 = arith.constant 0.000000e+00 : f32
      %12 = vector.broadcast %cst_10 : f32 to vector<32x128xf32>
      %c0_11 = arith.constant 0 : index
      %c0_12 = arith.constant 0 : index
      %13 = vector.load %arg7[%c0_11, %c0_12] : memref<32x128xf32, #tpu.memory_space<vmem>>, vector<32x128xf32>
      tpu.vector_store %arg7[%c0_11, %c0_12], %12 {strides = array<i32>} : memref<32x128xf32, #tpu.memory_space<vmem>>, vector<32x128xf32>,
    } else {
    }
    %c0 = arith.constant 0 : index
    %c0_1 = arith.constant 0 : index
    %3 = vector.load %arg3[%c0, %c0_1] : memref<32x128xbf16, #tpu.memory_space<vmem>>, vector<32x128xbf16>
    %c0_2 = arith.constant 0 : index
    %c0_3 = arith.constant 0 : index
    %4 = vector.load %arg7[%c0_2, %c0_3] : memref<32x128xf32, #tpu.memory_space<vmem>>, vector<32x128xf32>
    %c0_4 = arith.constant 0 : index
    %c0_5 = arith.constant 0 : index
    %5 = vector.load %arg4[%c0_4, %c0_5] : memref<128x128xbf16, #tpu.memory_space<vmem>>, vector<128x128xbf16>
    %cst = arith.constant dense<0.000000e+00> : vector<32x128xf32>
    %6 = tpu.matmul %3, %5, %cst {dimension_numbers = #tpu.dot_dimension_numbers<[1], [0], [0], [1], [0, 0, 1, 1], [], []>} : vector<32x128xbf16>, vector<128x128xbf16>, vector<32x128xf32> -> vector<32x128xf32>
    %7 = arith.addf %4, %6 : vector<32x128xf32>
    %c0_6 = arith.constant 0 : index
    %c0_7 = arith.constant 0 : index
    %8 = vector.load %arg7[%c0_6, %c0_7] : memref<32x128xf32, #tpu.memory_space<vmem>>, vector<32x128xf32>
    tpu.vector_store %arg7[%c0_6, %c0_7], %7 {strides = array<i32>} : memref<32x128xf32, #tpu.memory_space<vmem>>, vector<32x128xf32>,
    %c0_i32_8 = arith.constant 0 : i32
    %9 = arith.cmpi eq, %arg2, %c0_i32_8 : i32
    %10 = arith.extui %9 : i1 to i32
    %c0_i32_9 = arith.constant 0 : i32
    %11 = arith.cmpi ne, %10, %c0_i32_9 : i32
    scf.if %11 {
      %c0_10 = arith.constant 0 : index
      %c0_11 = arith.constant 0 : index
      %12 = vector.load %arg7[%c0_10, %c0_11] : memref<32x128xf32, #tpu.memory_space<vmem>>, vector<32x128xf32>
      %c0_12 = arith.constant 0 : index
      %c0_13 = arith.constant 0 : index
      %13 = vector.load %arg5[%c0_12, %c0_13] : memref<32x128xbf16, #tpu.memory_space<vmem>>, vector<32x128xbf16>
      %14 = arith.extf %13 : vector<32x128xbf16> to vector<32x128xf32>
      %15 = arith.addf %12, %14 : vector<32x128xf32>
      %16 = arith.truncf %15 : vector<32x128xf32> to vector<32x128xbf16>
      %c0_14 = arith.constant 0 : index
      %c0_15 = arith.constant 0 : index
      %17 = vector.load %arg6[%c0_14, %c0_15] : memref<32x128xbf16, #tpu.memory_space<vmem>>, vector<32x128xbf16>
      tpu.vector_store %arg6[%c0_14, %c0_15], %16 {strides = array<i32>} : memref<32x128xbf16, #tpu.memory_space<vmem>>, vector<32x128xbf16>,
    } else {
    }
    return
  }
  func.func @transform_0(%arg0: i32, %arg1: i32, %arg2: i32) -> (i32, i32) {
    %c0_i32 = arith.constant 0 : i32
    return %arg0, %arg2 : i32, i32
  }
  func.func @transform_1(%arg0: i32, %arg1: i32, %arg2: i32) -> (i32, i32) {
    %c0_i32 = arith.constant 0 : i32
    return %arg2, %arg1 : i32, i32
  }
  func.func @transform_2(%arg0: i32, %arg1: i32, %arg2: i32) -> (i32, i32) {
    %c0_i32 = arith.constant 0 : i32
    return %arg0, %arg1 : i32, i32
  }
  func.func @transform_3(%arg0: i32, %arg1: i32, %arg2: i32) -> (i32, i32) {
    %c0_i32 = arith.constant 0 : i32
    return %arg0, %arg1 : i32, i32
  }
}

module attributes {stable_mosaic.version = 11 : i64} {
  func.func @_dwconv_kernel(%arg0: i32, %arg1: memref<1x10x10x32xbf16, #tpu.memory_space<vmem>>, %arg2: memref<49x32xf32, #tpu.memory_space<vmem>>, %arg3: memref<1x4x4x32xbf16, #tpu.memory_space<vmem>>) attributes {dimension_semantics = [#tpu.dimension_semantics<parallel>], iteration_bounds = array<i64: 2>, scalar_prefetch = 0 : i64, scratch_operands = 0 : i64, tpu.core_type = #tpu.core_type<tc>, window_params = [{transform_indices = @transform_0, window_bounds = array<i64: 1, 10, 10, 32>}, {pipeline_mode = #tpu.pipeline_mode<synchronous>, transform_indices = @transform_1, window_bounds = array<i64: 49, 32>}, {transform_indices = @transform_2, window_bounds = array<i64: 1, 4, 4, 32>}]} {
    %c0 = arith.constant 0 : index
    %c0_0 = arith.constant 0 : index
    %c0_1 = arith.constant 0 : index
    %c0_2 = arith.constant 0 : index
    %0 = vector.load %arg1[%c0, %c0_0, %c0_1, %c0_2] : memref<1x10x10x32xbf16, #tpu.memory_space<vmem>>, vector<1x10x10x32xbf16>
    %1 = arith.extf %0 : vector<1x10x10x32xbf16> to vector<1x10x10x32xf32>
    %c0_3 = arith.constant 0 : index
    %c0_4 = arith.constant 0 : index
    %2 = vector.load %arg2[%c0_3, %c0_4] : memref<49x32xf32, #tpu.memory_space<vmem>>, vector<49x32xf32>
    %cst = arith.constant 0.000000e+00 : f32
    %3 = vector.broadcast %cst : f32 to vector<1x4x4x32xf32>
    %4 = vector.extract_strided_slice %1 {offsets = [0, 0, 0, 0], sizes = [1, 4, 4, 32], strides = [1, 1, 1, 1]} : vector<1x10x10x32xf32> to vector<1x4x4x32xf32>
    %5 = vector.extract_strided_slice %2 {offsets = [0, 0], sizes = [1, 32], strides = [1, 1]} : vector<49x32xf32> to vector<1x32xf32>
    %6 = vector.shape_cast %5 : vector<1x32xf32> to vector<1x1x1x32xf32>
    %7 = vector.broadcast %6 : vector<1x1x1x32xf32> to vector<1x4x4x32xf32>
    %8 = arith.mulf %4, %7 : vector<1x4x4x32xf32>
    %9 = arith.addf %3, %8 : vector<1x4x4x32xf32>
    %10 = vector.extract_strided_slice %1 {offsets = [0, 0, 1, 0], sizes = [1, 4, 4, 32], strides = [1, 1, 1, 1]} : vector<1x10x10x32xf32> to vector<1x4x4x32xf32>
    %11 = vector.extract_strided_slice %2 {offsets = [1, 0], sizes = [1, 32], strides = [1, 1]} : vector<49x32xf32> to vector<1x32xf32>
    %12 = vector.shape_cast %11 : vector<1x32xf32> to vector<1x1x1x32xf32>
    %13 = vector.broadcast %12 : vector<1x1x1x32xf32> to vector<1x4x4x32xf32>
    %14 = arith.mulf %10, %13 : vector<1x4x4x32xf32>
    %15 = arith.addf %9, %14 : vector<1x4x4x32xf32>
    %16 = vector.extract_strided_slice %1 {offsets = [0, 0, 2, 0], sizes = [1, 4, 4, 32], strides = [1, 1, 1, 1]} : vector<1x10x10x32xf32> to vector<1x4x4x32xf32>
    %17 = vector.extract_strided_slice %2 {offsets = [2, 0], sizes = [1, 32], strides = [1, 1]} : vector<49x32xf32> to vector<1x32xf32>
    %18 = vector.shape_cast %17 : vector<1x32xf32> to vector<1x1x1x32xf32>
    %19 = vector.broadcast %18 : vector<1x1x1x32xf32> to vector<1x4x4x32xf32>
    %20 = arith.mulf %16, %19 : vector<1x4x4x32xf32>
    %21 = arith.addf %15, %20 : vector<1x4x4x32xf32>
    %22 = vector.extract_strided_slice %1 {offsets = [0, 0, 3, 0], sizes = [1, 4, 4, 32], strides = [1, 1, 1, 1]} : vector<1x10x10x32xf32> to vector<1x4x4x32xf32>
    %23 = vector.extract_strided_slice %2 {offsets = [3, 0], sizes = [1, 32], strides = [1, 1]} : vector<49x32xf32> to vector<1x32xf32>
    %24 = vector.shape_cast %23 : vector<1x32xf32> to vector<1x1x1x32xf32>
    %25 = vector.broadcast %24 : vector<1x1x1x32xf32> to vector<1x4x4x32xf32>
    %26 = arith.mulf %22, %25 : vector<1x4x4x32xf32>
    %27 = arith.addf %21, %26 : vector<1x4x4x32xf32>
    %28 = vector.extract_strided_slice %1 {offsets = [0, 0, 4, 0], sizes = [1, 4, 4, 32], strides = [1, 1, 1, 1]} : vector<1x10x10x32xf32> to vector<1x4x4x32xf32>
    %29 = vector.extract_strided_slice %2 {offsets = [4, 0], sizes = [1, 32], strides = [1, 1]} : vector<49x32xf32> to vector<1x32xf32>
    %30 = vector.shape_cast %29 : vector<1x32xf32> to vector<1x1x1x32xf32>
    %31 = vector.broadcast %30 : vector<1x1x1x32xf32> to vector<1x4x4x32xf32>
    %32 = arith.mulf %28, %31 : vector<1x4x4x32xf32>
    %33 = arith.addf %27, %32 : vector<1x4x4x32xf32>
    %34 = vector.extract_strided_slice %1 {offsets = [0, 0, 5, 0], sizes = [1, 4, 4, 32], strides = [1, 1, 1, 1]} : vector<1x10x10x32xf32> to vector<1x4x4x32xf32>
    %35 = vector.extract_strided_slice %2 {offsets = [5, 0], sizes = [1, 32], strides = [1, 1]} : vector<49x32xf32> to vector<1x32xf32>
    %36 = vector.shape_cast %35 : vector<1x32xf32> to vector<1x1x1x32xf32>
    %37 = vector.broadcast %36 : vector<1x1x1x32xf32> to vector<1x4x4x32xf32>
    %38 = arith.mulf %34, %37 : vector<1x4x4x32xf32>
    %39 = arith.addf %33, %38 : vector<1x4x4x32xf32>
    %40 = vector.extract_strided_slice %1 {offsets = [0, 0, 6, 0], sizes = [1, 4, 4, 32], strides = [1, 1, 1, 1]} : vector<1x10x10x32xf32> to vector<1x4x4x32xf32>
    %41 = vector.extract_strided_slice %2 {offsets = [6, 0], sizes = [1, 32], strides = [1, 1]} : vector<49x32xf32> to vector<1x32xf32>
    %42 = vector.shape_cast %41 : vector<1x32xf32> to vector<1x1x1x32xf32>
    %43 = vector.broadcast %42 : vector<1x1x1x32xf32> to vector<1x4x4x32xf32>
    %44 = arith.mulf %40, %43 : vector<1x4x4x32xf32>
    %45 = arith.addf %39, %44 : vector<1x4x4x32xf32>
    %46 = vector.extract_strided_slice %1 {offsets = [0, 1, 0, 0], sizes = [1, 4, 4, 32], strides = [1, 1, 1, 1]} : vector<1x10x10x32xf32> to vector<1x4x4x32xf32>
    %47 = vector.extract_strided_slice %2 {offsets = [7, 0], sizes = [1, 32], strides = [1, 1]} : vector<49x32xf32> to vector<1x32xf32>
    %48 = vector.shape_cast %47 : vector<1x32xf32> to vector<1x1x1x32xf32>
    %49 = vector.broadcast %48 : vector<1x1x1x32xf32> to vector<1x4x4x32xf32>
    %50 = arith.mulf %46, %49 : vector<1x4x4x32xf32>
    %51 = arith.addf %45, %50 : vector<1x4x4x32xf32>
    %52 = vector.extract_strided_slice %1 {offsets = [0, 1, 1, 0], sizes = [1, 4, 4, 32], strides = [1, 1, 1, 1]} : vector<1x10x10x32xf32> to vector<1x4x4x32xf32>
    %53 = vector.extract_strided_slice %2 {offsets = [8, 0], sizes = [1, 32], strides = [1, 1]} : vector<49x32xf32> to vector<1x32xf32>
    %54 = vector.shape_cast %53 : vector<1x32xf32> to vector<1x1x1x32xf32>
    %55 = vector.broadcast %54 : vector<1x1x1x32xf32> to vector<1x4x4x32xf32>
    %56 = arith.mulf %52, %55 : vector<1x4x4x32xf32>
    %57 = arith.addf %51, %56 : vector<1x4x4x32xf32>
    %58 = vector.extract_strided_slice %1 {offsets = [0, 1, 2, 0], sizes = [1, 4, 4, 32], strides = [1, 1, 1, 1]} : vector<1x10x10x32xf32> to vector<1x4x4x32xf32>
    %59 = vector.extract_strided_slice %2 {offsets = [9, 0], sizes = [1, 32], strides = [1, 1]} : vector<49x32xf32> to vector<1x32xf32>
    %60 = vector.shape_cast %59 : vector<1x32xf32> to vector<1x1x1x32xf32>
    %61 = vector.broadcast %60 : vector<1x1x1x32xf32> to vector<1x4x4x32xf32>
    %62 = arith.mulf %58, %61 : vector<1x4x4x32xf32>
    %63 = arith.addf %57, %62 : vector<1x4x4x32xf32>
    %64 = vector.extract_strided_slice %1 {offsets = [0, 1, 3, 0], sizes = [1, 4, 4, 32], strides = [1, 1, 1, 1]} : vector<1x10x10x32xf32> to vector<1x4x4x32xf32>
    %65 = vector.extract_strided_slice %2 {offsets = [10, 0], sizes = [1, 32], strides = [1, 1]} : vector<49x32xf32> to vector<1x32xf32>
    %66 = vector.shape_cast %65 : vector<1x32xf32> to vector<1x1x1x32xf32>
    %67 = vector.broadcast %66 : vector<1x1x1x32xf32> to vector<1x4x4x32xf32>
    %68 = arith.mulf %64, %67 : vector<1x4x4x32xf32>
    %69 = arith.addf %63, %68 : vector<1x4x4x32xf32>
    %70 = vector.extract_strided_slice %1 {offsets = [0, 1, 4, 0], sizes = [1, 4, 4, 32], strides = [1, 1, 1, 1]} : vector<1x10x10x32xf32> to vector<1x4x4x32xf32>
    %71 = vector.extract_strided_slice %2 {offsets = [11, 0], sizes = [1, 32], strides = [1, 1]} : vector<49x32xf32> to vector<1x32xf32>
    %72 = vector.shape_cast %71 : vector<1x32xf32> to vector<1x1x1x32xf32>
    %73 = vector.broadcast %72 : vector<1x1x1x32xf32> to vector<1x4x4x32xf32>
    %74 = arith.mulf %70, %73 : vector<1x4x4x32xf32>
    %75 = arith.addf %69, %74 : vector<1x4x4x32xf32>
    %76 = vector.extract_strided_slice %1 {offsets = [0, 1, 5, 0], sizes = [1, 4, 4, 32], strides = [1, 1, 1, 1]} : vector<1x10x10x32xf32> to vector<1x4x4x32xf32>
    %77 = vector.extract_strided_slice %2 {offsets = [12, 0], sizes = [1, 32], strides = [1, 1]} : vector<49x32xf32> to vector<1x32xf32>
    %78 = vector.shape_cast %77 : vector<1x32xf32> to vector<1x1x1x32xf32>
    %79 = vector.broadcast %78 : vector<1x1x1x32xf32> to vector<1x4x4x32xf32>
    %80 = arith.mulf %76, %79 : vector<1x4x4x32xf32>
    %81 = arith.addf %75, %80 : vector<1x4x4x32xf32>
    %82 = vector.extract_strided_slice %1 {offsets = [0, 1, 6, 0], sizes = [1, 4, 4, 32], strides = [1, 1, 1, 1]} : vector<1x10x10x32xf32> to vector<1x4x4x32xf32>
    %83 = vector.extract_strided_slice %2 {offsets = [13, 0], sizes = [1, 32], strides = [1, 1]} : vector<49x32xf32> to vector<1x32xf32>
    %84 = vector.shape_cast %83 : vector<1x32xf32> to vector<1x1x1x32xf32>
    %85 = vector.broadcast %84 : vector<1x1x1x32xf32> to vector<1x4x4x32xf32>
    %86 = arith.mulf %82, %85 : vector<1x4x4x32xf32>
    %87 = arith.addf %81, %86 : vector<1x4x4x32xf32>
    %88 = vector.extract_strided_slice %1 {offsets = [0, 2, 0, 0], sizes = [1, 4, 4, 32], strides = [1, 1, 1, 1]} : vector<1x10x10x32xf32> to vector<1x4x4x32xf32>
    %89 = vector.extract_strided_slice %2 {offsets = [14, 0], sizes = [1, 32], strides = [1, 1]} : vector<49x32xf32> to vector<1x32xf32>
    %90 = vector.shape_cast %89 : vector<1x32xf32> to vector<1x1x1x32xf32>
    %91 = vector.broadcast %90 : vector<1x1x1x32xf32> to vector<1x4x4x32xf32>
    %92 = arith.mulf %88, %91 : vector<1x4x4x32xf32>
    %93 = arith.addf %87, %92 : vector<1x4x4x32xf32>
    %94 = vector.extract_strided_slice %1 {offsets = [0, 2, 1, 0], sizes = [1, 4, 4, 32], strides = [1, 1, 1, 1]} : vector<1x10x10x32xf32> to vector<1x4x4x32xf32>
    %95 = vector.extract_strided_slice %2 {offsets = [15, 0], sizes = [1, 32], strides = [1, 1]} : vector<49x32xf32> to vector<1x32xf32>
    %96 = vector.shape_cast %95 : vector<1x32xf32> to vector<1x1x1x32xf32>
    %97 = vector.broadcast %96 : vector<1x1x1x32xf32> to vector<1x4x4x32xf32>
    %98 = arith.mulf %94, %97 : vector<1x4x4x32xf32>
    %99 = arith.addf %93, %98 : vector<1x4x4x32xf32>
    %100 = vector.extract_strided_slice %1 {offsets = [0, 2, 2, 0], sizes = [1, 4, 4, 32], strides = [1, 1, 1, 1]} : vector<1x10x10x32xf32> to vector<1x4x4x32xf32>
    %101 = vector.extract_strided_slice %2 {offsets = [16, 0], sizes = [1, 32], strides = [1, 1]} : vector<49x32xf32> to vector<1x32xf32>
    %102 = vector.shape_cast %101 : vector<1x32xf32> to vector<1x1x1x32xf32>
    %103 = vector.broadcast %102 : vector<1x1x1x32xf32> to vector<1x4x4x32xf32>
    %104 = arith.mulf %100, %103 : vector<1x4x4x32xf32>
    %105 = arith.addf %99, %104 : vector<1x4x4x32xf32>
    %106 = vector.extract_strided_slice %1 {offsets = [0, 2, 3, 0], sizes = [1, 4, 4, 32], strides = [1, 1, 1, 1]} : vector<1x10x10x32xf32> to vector<1x4x4x32xf32>
    %107 = vector.extract_strided_slice %2 {offsets = [17, 0], sizes = [1, 32], strides = [1, 1]} : vector<49x32xf32> to vector<1x32xf32>
    %108 = vector.shape_cast %107 : vector<1x32xf32> to vector<1x1x1x32xf32>
    %109 = vector.broadcast %108 : vector<1x1x1x32xf32> to vector<1x4x4x32xf32>
    %110 = arith.mulf %106, %109 : vector<1x4x4x32xf32>
    %111 = arith.addf %105, %110 : vector<1x4x4x32xf32>
    %112 = vector.extract_strided_slice %1 {offsets = [0, 2, 4, 0], sizes = [1, 4, 4, 32], strides = [1, 1, 1, 1]} : vector<1x10x10x32xf32> to vector<1x4x4x32xf32>
    %113 = vector.extract_strided_slice %2 {offsets = [18, 0], sizes = [1, 32], strides = [1, 1]} : vector<49x32xf32> to vector<1x32xf32>
    %114 = vector.shape_cast %113 : vector<1x32xf32> to vector<1x1x1x32xf32>
    %115 = vector.broadcast %114 : vector<1x1x1x32xf32> to vector<1x4x4x32xf32>
    %116 = arith.mulf %112, %115 : vector<1x4x4x32xf32>
    %117 = arith.addf %111, %116 : vector<1x4x4x32xf32>
    %118 = vector.extract_strided_slice %1 {offsets = [0, 2, 5, 0], sizes = [1, 4, 4, 32], strides = [1, 1, 1, 1]} : vector<1x10x10x32xf32> to vector<1x4x4x32xf32>
    %119 = vector.extract_strided_slice %2 {offsets = [19, 0], sizes = [1, 32], strides = [1, 1]} : vector<49x32xf32> to vector<1x32xf32>
    %120 = vector.shape_cast %119 : vector<1x32xf32> to vector<1x1x1x32xf32>
    %121 = vector.broadcast %120 : vector<1x1x1x32xf32> to vector<1x4x4x32xf32>
    %122 = arith.mulf %118, %121 : vector<1x4x4x32xf32>
    %123 = arith.addf %117, %122 : vector<1x4x4x32xf32>
    %124 = vector.extract_strided_slice %1 {offsets = [0, 2, 6, 0], sizes = [1, 4, 4, 32], strides = [1, 1, 1, 1]} : vector<1x10x10x32xf32> to vector<1x4x4x32xf32>
    %125 = vector.extract_strided_slice %2 {offsets = [20, 0], sizes = [1, 32], strides = [1, 1]} : vector<49x32xf32> to vector<1x32xf32>
    %126 = vector.shape_cast %125 : vector<1x32xf32> to vector<1x1x1x32xf32>
    %127 = vector.broadcast %126 : vector<1x1x1x32xf32> to vector<1x4x4x32xf32>
    %128 = arith.mulf %124, %127 : vector<1x4x4x32xf32>
    %129 = arith.addf %123, %128 : vector<1x4x4x32xf32>
    %130 = vector.extract_strided_slice %1 {offsets = [0, 3, 0, 0], sizes = [1, 4, 4, 32], strides = [1, 1, 1, 1]} : vector<1x10x10x32xf32> to vector<1x4x4x32xf32>
    %131 = vector.extract_strided_slice %2 {offsets = [21, 0], sizes = [1, 32], strides = [1, 1]} : vector<49x32xf32> to vector<1x32xf32>
    %132 = vector.shape_cast %131 : vector<1x32xf32> to vector<1x1x1x32xf32>
    %133 = vector.broadcast %132 : vector<1x1x1x32xf32> to vector<1x4x4x32xf32>
    %134 = arith.mulf %130, %133 : vector<1x4x4x32xf32>
    %135 = arith.addf %129, %134 : vector<1x4x4x32xf32>
    %136 = vector.extract_strided_slice %1 {offsets = [0, 3, 1, 0], sizes = [1, 4, 4, 32], strides = [1, 1, 1, 1]} : vector<1x10x10x32xf32> to vector<1x4x4x32xf32>
    %137 = vector.extract_strided_slice %2 {offsets = [22, 0], sizes = [1, 32], strides = [1, 1]} : vector<49x32xf32> to vector<1x32xf32>
    %138 = vector.shape_cast %137 : vector<1x32xf32> to vector<1x1x1x32xf32>
    %139 = vector.broadcast %138 : vector<1x1x1x32xf32> to vector<1x4x4x32xf32>
    %140 = arith.mulf %136, %139 : vector<1x4x4x32xf32>
    %141 = arith.addf %135, %140 : vector<1x4x4x32xf32>
    %142 = vector.extract_strided_slice %1 {offsets = [0, 3, 2, 0], sizes = [1, 4, 4, 32], strides = [1, 1, 1, 1]} : vector<1x10x10x32xf32> to vector<1x4x4x32xf32>
    %143 = vector.extract_strided_slice %2 {offsets = [23, 0], sizes = [1, 32], strides = [1, 1]} : vector<49x32xf32> to vector<1x32xf32>
    %144 = vector.shape_cast %143 : vector<1x32xf32> to vector<1x1x1x32xf32>
    %145 = vector.broadcast %144 : vector<1x1x1x32xf32> to vector<1x4x4x32xf32>
    %146 = arith.mulf %142, %145 : vector<1x4x4x32xf32>
    %147 = arith.addf %141, %146 : vector<1x4x4x32xf32>
    %148 = vector.extract_strided_slice %1 {offsets = [0, 3, 3, 0], sizes = [1, 4, 4, 32], strides = [1, 1, 1, 1]} : vector<1x10x10x32xf32> to vector<1x4x4x32xf32>
    %149 = vector.extract_strided_slice %2 {offsets = [24, 0], sizes = [1, 32], strides = [1, 1]} : vector<49x32xf32> to vector<1x32xf32>
    %150 = vector.shape_cast %149 : vector<1x32xf32> to vector<1x1x1x32xf32>
    %151 = vector.broadcast %150 : vector<1x1x1x32xf32> to vector<1x4x4x32xf32>
    %152 = arith.mulf %148, %151 : vector<1x4x4x32xf32>
    %153 = arith.addf %147, %152 : vector<1x4x4x32xf32>
    %154 = vector.extract_strided_slice %1 {offsets = [0, 3, 4, 0], sizes = [1, 4, 4, 32], strides = [1, 1, 1, 1]} : vector<1x10x10x32xf32> to vector<1x4x4x32xf32>
    %155 = vector.extract_strided_slice %2 {offsets = [25, 0], sizes = [1, 32], strides = [1, 1]} : vector<49x32xf32> to vector<1x32xf32>
    %156 = vector.shape_cast %155 : vector<1x32xf32> to vector<1x1x1x32xf32>
    %157 = vector.broadcast %156 : vector<1x1x1x32xf32> to vector<1x4x4x32xf32>
    %158 = arith.mulf %154, %157 : vector<1x4x4x32xf32>
    %159 = arith.addf %153, %158 : vector<1x4x4x32xf32>
    %160 = vector.extract_strided_slice %1 {offsets = [0, 3, 5, 0], sizes = [1, 4, 4, 32], strides = [1, 1, 1, 1]} : vector<1x10x10x32xf32> to vector<1x4x4x32xf32>
    %161 = vector.extract_strided_slice %2 {offsets = [26, 0], sizes = [1, 32], strides = [1, 1]} : vector<49x32xf32> to vector<1x32xf32>
    %162 = vector.shape_cast %161 : vector<1x32xf32> to vector<1x1x1x32xf32>
    %163 = vector.broadcast %162 : vector<1x1x1x32xf32> to vector<1x4x4x32xf32>
    %164 = arith.mulf %160, %163 : vector<1x4x4x32xf32>
    %165 = arith.addf %159, %164 : vector<1x4x4x32xf32>
    %166 = vector.extract_strided_slice %1 {offsets = [0, 3, 6, 0], sizes = [1, 4, 4, 32], strides = [1, 1, 1, 1]} : vector<1x10x10x32xf32> to vector<1x4x4x32xf32>
    %167 = vector.extract_strided_slice %2 {offsets = [27, 0], sizes = [1, 32], strides = [1, 1]} : vector<49x32xf32> to vector<1x32xf32>
    %168 = vector.shape_cast %167 : vector<1x32xf32> to vector<1x1x1x32xf32>
    %169 = vector.broadcast %168 : vector<1x1x1x32xf32> to vector<1x4x4x32xf32>
    %170 = arith.mulf %166, %169 : vector<1x4x4x32xf32>
    %171 = arith.addf %165, %170 : vector<1x4x4x32xf32>
    %172 = vector.extract_strided_slice %1 {offsets = [0, 4, 0, 0], sizes = [1, 4, 4, 32], strides = [1, 1, 1, 1]} : vector<1x10x10x32xf32> to vector<1x4x4x32xf32>
    %173 = vector.extract_strided_slice %2 {offsets = [28, 0], sizes = [1, 32], strides = [1, 1]} : vector<49x32xf32> to vector<1x32xf32>
    %174 = vector.shape_cast %173 : vector<1x32xf32> to vector<1x1x1x32xf32>
    %175 = vector.broadcast %174 : vector<1x1x1x32xf32> to vector<1x4x4x32xf32>
    %176 = arith.mulf %172, %175 : vector<1x4x4x32xf32>
    %177 = arith.addf %171, %176 : vector<1x4x4x32xf32>
    %178 = vector.extract_strided_slice %1 {offsets = [0, 4, 1, 0], sizes = [1, 4, 4, 32], strides = [1, 1, 1, 1]} : vector<1x10x10x32xf32> to vector<1x4x4x32xf32>
    %179 = vector.extract_strided_slice %2 {offsets = [29, 0], sizes = [1, 32], strides = [1, 1]} : vector<49x32xf32> to vector<1x32xf32>
    %180 = vector.shape_cast %179 : vector<1x32xf32> to vector<1x1x1x32xf32>
    %181 = vector.broadcast %180 : vector<1x1x1x32xf32> to vector<1x4x4x32xf32>
    %182 = arith.mulf %178, %181 : vector<1x4x4x32xf32>
    %183 = arith.addf %177, %182 : vector<1x4x4x32xf32>
    %184 = vector.extract_strided_slice %1 {offsets = [0, 4, 2, 0], sizes = [1, 4, 4, 32], strides = [1, 1, 1, 1]} : vector<1x10x10x32xf32> to vector<1x4x4x32xf32>
    %185 = vector.extract_strided_slice %2 {offsets = [30, 0], sizes = [1, 32], strides = [1, 1]} : vector<49x32xf32> to vector<1x32xf32>
    %186 = vector.shape_cast %185 : vector<1x32xf32> to vector<1x1x1x32xf32>
    %187 = vector.broadcast %186 : vector<1x1x1x32xf32> to vector<1x4x4x32xf32>
    %188 = arith.mulf %184, %187 : vector<1x4x4x32xf32>
    %189 = arith.addf %183, %188 : vector<1x4x4x32xf32>
    %190 = vector.extract_strided_slice %1 {offsets = [0, 4, 3, 0], sizes = [1, 4, 4, 32], strides = [1, 1, 1, 1]} : vector<1x10x10x32xf32> to vector<1x4x4x32xf32>
    %191 = vector.extract_strided_slice %2 {offsets = [31, 0], sizes = [1, 32], strides = [1, 1]} : vector<49x32xf32> to vector<1x32xf32>
    %192 = vector.shape_cast %191 : vector<1x32xf32> to vector<1x1x1x32xf32>
    %193 = vector.broadcast %192 : vector<1x1x1x32xf32> to vector<1x4x4x32xf32>
    %194 = arith.mulf %190, %193 : vector<1x4x4x32xf32>
    %195 = arith.addf %189, %194 : vector<1x4x4x32xf32>
    %196 = vector.extract_strided_slice %1 {offsets = [0, 4, 4, 0], sizes = [1, 4, 4, 32], strides = [1, 1, 1, 1]} : vector<1x10x10x32xf32> to vector<1x4x4x32xf32>
    %197 = vector.extract_strided_slice %2 {offsets = [32, 0], sizes = [1, 32], strides = [1, 1]} : vector<49x32xf32> to vector<1x32xf32>
    %198 = vector.shape_cast %197 : vector<1x32xf32> to vector<1x1x1x32xf32>
    %199 = vector.broadcast %198 : vector<1x1x1x32xf32> to vector<1x4x4x32xf32>
    %200 = arith.mulf %196, %199 : vector<1x4x4x32xf32>
    %201 = arith.addf %195, %200 : vector<1x4x4x32xf32>
    %202 = vector.extract_strided_slice %1 {offsets = [0, 4, 5, 0], sizes = [1, 4, 4, 32], strides = [1, 1, 1, 1]} : vector<1x10x10x32xf32> to vector<1x4x4x32xf32>
    %203 = vector.extract_strided_slice %2 {offsets = [33, 0], sizes = [1, 32], strides = [1, 1]} : vector<49x32xf32> to vector<1x32xf32>
    %204 = vector.shape_cast %203 : vector<1x32xf32> to vector<1x1x1x32xf32>
    %205 = vector.broadcast %204 : vector<1x1x1x32xf32> to vector<1x4x4x32xf32>
    %206 = arith.mulf %202, %205 : vector<1x4x4x32xf32>
    %207 = arith.addf %201, %206 : vector<1x4x4x32xf32>
    %208 = vector.extract_strided_slice %1 {offsets = [0, 4, 6, 0], sizes = [1, 4, 4, 32], strides = [1, 1, 1, 1]} : vector<1x10x10x32xf32> to vector<1x4x4x32xf32>
    %209 = vector.extract_strided_slice %2 {offsets = [34, 0], sizes = [1, 32], strides = [1, 1]} : vector<49x32xf32> to vector<1x32xf32>
    %210 = vector.shape_cast %209 : vector<1x32xf32> to vector<1x1x1x32xf32>
    %211 = vector.broadcast %210 : vector<1x1x1x32xf32> to vector<1x4x4x32xf32>
    %212 = arith.mulf %208, %211 : vector<1x4x4x32xf32>
    %213 = arith.addf %207, %212 : vector<1x4x4x32xf32>
    %214 = vector.extract_strided_slice %1 {offsets = [0, 5, 0, 0], sizes = [1, 4, 4, 32], strides = [1, 1, 1, 1]} : vector<1x10x10x32xf32> to vector<1x4x4x32xf32>
    %215 = vector.extract_strided_slice %2 {offsets = [35, 0], sizes = [1, 32], strides = [1, 1]} : vector<49x32xf32> to vector<1x32xf32>
    %216 = vector.shape_cast %215 : vector<1x32xf32> to vector<1x1x1x32xf32>
    %217 = vector.broadcast %216 : vector<1x1x1x32xf32> to vector<1x4x4x32xf32>
    %218 = arith.mulf %214, %217 : vector<1x4x4x32xf32>
    %219 = arith.addf %213, %218 : vector<1x4x4x32xf32>
    %220 = vector.extract_strided_slice %1 {offsets = [0, 5, 1, 0], sizes = [1, 4, 4, 32], strides = [1, 1, 1, 1]} : vector<1x10x10x32xf32> to vector<1x4x4x32xf32>
    %221 = vector.extract_strided_slice %2 {offsets = [36, 0], sizes = [1, 32], strides = [1, 1]} : vector<49x32xf32> to vector<1x32xf32>
    %222 = vector.shape_cast %221 : vector<1x32xf32> to vector<1x1x1x32xf32>
    %223 = vector.broadcast %222 : vector<1x1x1x32xf32> to vector<1x4x4x32xf32>
    %224 = arith.mulf %220, %223 : vector<1x4x4x32xf32>
    %225 = arith.addf %219, %224 : vector<1x4x4x32xf32>
    %226 = vector.extract_strided_slice %1 {offsets = [0, 5, 2, 0], sizes = [1, 4, 4, 32], strides = [1, 1, 1, 1]} : vector<1x10x10x32xf32> to vector<1x4x4x32xf32>
    %227 = vector.extract_strided_slice %2 {offsets = [37, 0], sizes = [1, 32], strides = [1, 1]} : vector<49x32xf32> to vector<1x32xf32>
    %228 = vector.shape_cast %227 : vector<1x32xf32> to vector<1x1x1x32xf32>
    %229 = vector.broadcast %228 : vector<1x1x1x32xf32> to vector<1x4x4x32xf32>
    %230 = arith.mulf %226, %229 : vector<1x4x4x32xf32>
    %231 = arith.addf %225, %230 : vector<1x4x4x32xf32>
    %232 = vector.extract_strided_slice %1 {offsets = [0, 5, 3, 0], sizes = [1, 4, 4, 32], strides = [1, 1, 1, 1]} : vector<1x10x10x32xf32> to vector<1x4x4x32xf32>
    %233 = vector.extract_strided_slice %2 {offsets = [38, 0], sizes = [1, 32], strides = [1, 1]} : vector<49x32xf32> to vector<1x32xf32>
    %234 = vector.shape_cast %233 : vector<1x32xf32> to vector<1x1x1x32xf32>
    %235 = vector.broadcast %234 : vector<1x1x1x32xf32> to vector<1x4x4x32xf32>
    %236 = arith.mulf %232, %235 : vector<1x4x4x32xf32>
    %237 = arith.addf %231, %236 : vector<1x4x4x32xf32>
    %238 = vector.extract_strided_slice %1 {offsets = [0, 5, 4, 0], sizes = [1, 4, 4, 32], strides = [1, 1, 1, 1]} : vector<1x10x10x32xf32> to vector<1x4x4x32xf32>
    %239 = vector.extract_strided_slice %2 {offsets = [39, 0], sizes = [1, 32], strides = [1, 1]} : vector<49x32xf32> to vector<1x32xf32>
    %240 = vector.shape_cast %239 : vector<1x32xf32> to vector<1x1x1x32xf32>
    %241 = vector.broadcast %240 : vector<1x1x1x32xf32> to vector<1x4x4x32xf32>
    %242 = arith.mulf %238, %241 : vector<1x4x4x32xf32>
    %243 = arith.addf %237, %242 : vector<1x4x4x32xf32>
    %244 = vector.extract_strided_slice %1 {offsets = [0, 5, 5, 0], sizes = [1, 4, 4, 32], strides = [1, 1, 1, 1]} : vector<1x10x10x32xf32> to vector<1x4x4x32xf32>
    %245 = vector.extract_strided_slice %2 {offsets = [40, 0], sizes = [1, 32], strides = [1, 1]} : vector<49x32xf32> to vector<1x32xf32>
    %246 = vector.shape_cast %245 : vector<1x32xf32> to vector<1x1x1x32xf32>
    %247 = vector.broadcast %246 : vector<1x1x1x32xf32> to vector<1x4x4x32xf32>
    %248 = arith.mulf %244, %247 : vector<1x4x4x32xf32>
    %249 = arith.addf %243, %248 : vector<1x4x4x32xf32>
    %250 = vector.extract_strided_slice %1 {offsets = [0, 5, 6, 0], sizes = [1, 4, 4, 32], strides = [1, 1, 1, 1]} : vector<1x10x10x32xf32> to vector<1x4x4x32xf32>
    %251 = vector.extract_strided_slice %2 {offsets = [41, 0], sizes = [1, 32], strides = [1, 1]} : vector<49x32xf32> to vector<1x32xf32>
    %252 = vector.shape_cast %251 : vector<1x32xf32> to vector<1x1x1x32xf32>
    %253 = vector.broadcast %252 : vector<1x1x1x32xf32> to vector<1x4x4x32xf32>
    %254 = arith.mulf %250, %253 : vector<1x4x4x32xf32>
    %255 = arith.addf %249, %254 : vector<1x4x4x32xf32>
    %256 = vector.extract_strided_slice %1 {offsets = [0, 6, 0, 0], sizes = [1, 4, 4, 32], strides = [1, 1, 1, 1]} : vector<1x10x10x32xf32> to vector<1x4x4x32xf32>
    %257 = vector.extract_strided_slice %2 {offsets = [42, 0], sizes = [1, 32], strides = [1, 1]} : vector<49x32xf32> to vector<1x32xf32>
    %258 = vector.shape_cast %257 : vector<1x32xf32> to vector<1x1x1x32xf32>
    %259 = vector.broadcast %258 : vector<1x1x1x32xf32> to vector<1x4x4x32xf32>
    %260 = arith.mulf %256, %259 : vector<1x4x4x32xf32>
    %261 = arith.addf %255, %260 : vector<1x4x4x32xf32>
    %262 = vector.extract_strided_slice %1 {offsets = [0, 6, 1, 0], sizes = [1, 4, 4, 32], strides = [1, 1, 1, 1]} : vector<1x10x10x32xf32> to vector<1x4x4x32xf32>
    %263 = vector.extract_strided_slice %2 {offsets = [43, 0], sizes = [1, 32], strides = [1, 1]} : vector<49x32xf32> to vector<1x32xf32>
    %264 = vector.shape_cast %263 : vector<1x32xf32> to vector<1x1x1x32xf32>
    %265 = vector.broadcast %264 : vector<1x1x1x32xf32> to vector<1x4x4x32xf32>
    %266 = arith.mulf %262, %265 : vector<1x4x4x32xf32>
    %267 = arith.addf %261, %266 : vector<1x4x4x32xf32>
    %268 = vector.extract_strided_slice %1 {offsets = [0, 6, 2, 0], sizes = [1, 4, 4, 32], strides = [1, 1, 1, 1]} : vector<1x10x10x32xf32> to vector<1x4x4x32xf32>
    %269 = vector.extract_strided_slice %2 {offsets = [44, 0], sizes = [1, 32], strides = [1, 1]} : vector<49x32xf32> to vector<1x32xf32>
    %270 = vector.shape_cast %269 : vector<1x32xf32> to vector<1x1x1x32xf32>
    %271 = vector.broadcast %270 : vector<1x1x1x32xf32> to vector<1x4x4x32xf32>
    %272 = arith.mulf %268, %271 : vector<1x4x4x32xf32>
    %273 = arith.addf %267, %272 : vector<1x4x4x32xf32>
    %274 = vector.extract_strided_slice %1 {offsets = [0, 6, 3, 0], sizes = [1, 4, 4, 32], strides = [1, 1, 1, 1]} : vector<1x10x10x32xf32> to vector<1x4x4x32xf32>
    %275 = vector.extract_strided_slice %2 {offsets = [45, 0], sizes = [1, 32], strides = [1, 1]} : vector<49x32xf32> to vector<1x32xf32>
    %276 = vector.shape_cast %275 : vector<1x32xf32> to vector<1x1x1x32xf32>
    %277 = vector.broadcast %276 : vector<1x1x1x32xf32> to vector<1x4x4x32xf32>
    %278 = arith.mulf %274, %277 : vector<1x4x4x32xf32>
    %279 = arith.addf %273, %278 : vector<1x4x4x32xf32>
    %280 = vector.extract_strided_slice %1 {offsets = [0, 6, 4, 0], sizes = [1, 4, 4, 32], strides = [1, 1, 1, 1]} : vector<1x10x10x32xf32> to vector<1x4x4x32xf32>
    %281 = vector.extract_strided_slice %2 {offsets = [46, 0], sizes = [1, 32], strides = [1, 1]} : vector<49x32xf32> to vector<1x32xf32>
    %282 = vector.shape_cast %281 : vector<1x32xf32> to vector<1x1x1x32xf32>
    %283 = vector.broadcast %282 : vector<1x1x1x32xf32> to vector<1x4x4x32xf32>
    %284 = arith.mulf %280, %283 : vector<1x4x4x32xf32>
    %285 = arith.addf %279, %284 : vector<1x4x4x32xf32>
    %286 = vector.extract_strided_slice %1 {offsets = [0, 6, 5, 0], sizes = [1, 4, 4, 32], strides = [1, 1, 1, 1]} : vector<1x10x10x32xf32> to vector<1x4x4x32xf32>
    %287 = vector.extract_strided_slice %2 {offsets = [47, 0], sizes = [1, 32], strides = [1, 1]} : vector<49x32xf32> to vector<1x32xf32>
    %288 = vector.shape_cast %287 : vector<1x32xf32> to vector<1x1x1x32xf32>
    %289 = vector.broadcast %288 : vector<1x1x1x32xf32> to vector<1x4x4x32xf32>
    %290 = arith.mulf %286, %289 : vector<1x4x4x32xf32>
    %291 = arith.addf %285, %290 : vector<1x4x4x32xf32>
    %292 = vector.extract_strided_slice %1 {offsets = [0, 6, 6, 0], sizes = [1, 4, 4, 32], strides = [1, 1, 1, 1]} : vector<1x10x10x32xf32> to vector<1x4x4x32xf32>
    %293 = vector.extract_strided_slice %2 {offsets = [48, 0], sizes = [1, 32], strides = [1, 1]} : vector<49x32xf32> to vector<1x32xf32>
    %294 = vector.shape_cast %293 : vector<1x32xf32> to vector<1x1x1x32xf32>
    %295 = vector.broadcast %294 : vector<1x1x1x32xf32> to vector<1x4x4x32xf32>
    %296 = arith.mulf %292, %295 : vector<1x4x4x32xf32>
    %297 = arith.addf %291, %296 : vector<1x4x4x32xf32>
    %298 = arith.truncf %297 : vector<1x4x4x32xf32> to vector<1x4x4x32xbf16>
    %c0_5 = arith.constant 0 : index
    %c0_6 = arith.constant 0 : index
    %c0_7 = arith.constant 0 : index
    %c0_8 = arith.constant 0 : index
    %299 = vector.load %arg3[%c0_5, %c0_6, %c0_7, %c0_8] : memref<1x4x4x32xbf16, #tpu.memory_space<vmem>>, vector<1x4x4x32xbf16>
    tpu.vector_store %arg3[%c0_5, %c0_6, %c0_7, %c0_8], %298 {strides = array<i32>} : memref<1x4x4x32xbf16, #tpu.memory_space<vmem>>, vector<1x4x4x32xbf16>,
    return
  }
  func.func @transform_0(%arg0: i32) -> (i32, i32, i32, i32) {
    %c0_i32 = arith.constant 0 : i32
    %c0_i32_0 = arith.constant 0 : i32
    %c0_i32_1 = arith.constant 0 : i32
    %c0_i32_2 = arith.constant 0 : i32
    return %arg0, %c0_i32, %c0_i32_0, %c0_i32_1 : i32, i32, i32, i32
  }
  func.func @transform_1(%arg0: i32) -> (i32, i32) {
    %c0_i32 = arith.constant 0 : i32
    %c0_i32_0 = arith.constant 0 : i32
    %c0_i32_1 = arith.constant 0 : i32
    return %c0_i32, %c0_i32_0 : i32, i32
  }
  func.func @transform_2(%arg0: i32) -> (i32, i32, i32, i32) {
    %c0_i32 = arith.constant 0 : i32
    %c0_i32_0 = arith.constant 0 : i32
    %c0_i32_1 = arith.constant 0 : i32
    %c0_i32_2 = arith.constant 0 : i32
    return %arg0, %c0_i32, %c0_i32_0, %c0_i32_1 : i32, i32, i32, i32
  }
}

module attributes {stable_mosaic.version = 11 : i64} {
  func.func @_gemm_kernel(%arg0: i32, %arg1: i32, %arg2: i32, %arg3: memref<16x256xbf16, #tpu.memory_space<vmem>>, %arg4: memref<256x128xbf16, #tpu.memory_space<vmem>>, %arg5: memref<1x128xf32, #tpu.memory_space<vmem>>, %arg6: memref<16x128xbf16, #tpu.memory_space<vmem>>, %arg7: memref<16x128xf32, #tpu.memory_space<vmem>>) attributes {dimension_semantics = [#tpu.dimension_semantics<parallel>, #tpu.dimension_semantics<parallel>, #tpu.dimension_semantics<arbitrary>], iteration_bounds = array<i64: 1, 1, 1>, scalar_prefetch = 0 : i64, scratch_operands = 1 : i64, tpu.core_type = #tpu.core_type<tc>, window_params = [{transform_indices = @transform_0, window_bounds = array<i64: 16, 256>}, {transform_indices = @transform_1, window_bounds = array<i64: 256, 128>}, {transform_indices = @transform_2, window_bounds = array<i64: 1, 128>}, {transform_indices = @transform_3, window_bounds = array<i64: 16, 128>}]} {
    %c0_i32 = arith.constant 0 : i32
    %0 = arith.cmpi eq, %arg2, %c0_i32 : i32
    %1 = arith.extui %0 : i1 to i32
    %c0_i32_0 = arith.constant 0 : i32
    %2 = arith.cmpi ne, %1, %c0_i32_0 : i32
    scf.if %2 {
      %cst_10 = arith.constant 0.000000e+00 : f32
      %12 = vector.broadcast %cst_10 : f32 to vector<16x128xf32>
      %c0_11 = arith.constant 0 : index
      %c0_12 = arith.constant 0 : index
      %13 = vector.load %arg7[%c0_11, %c0_12] : memref<16x128xf32, #tpu.memory_space<vmem>>, vector<16x128xf32>
      tpu.vector_store %arg7[%c0_11, %c0_12], %12 {strides = array<i32>} : memref<16x128xf32, #tpu.memory_space<vmem>>, vector<16x128xf32>,
    } else {
    }
    %c0 = arith.constant 0 : index
    %c0_1 = arith.constant 0 : index
    %3 = vector.load %arg3[%c0, %c0_1] : memref<16x256xbf16, #tpu.memory_space<vmem>>, vector<16x256xbf16>
    %c0_2 = arith.constant 0 : index
    %c0_3 = arith.constant 0 : index
    %4 = vector.load %arg7[%c0_2, %c0_3] : memref<16x128xf32, #tpu.memory_space<vmem>>, vector<16x128xf32>
    %c0_4 = arith.constant 0 : index
    %c0_5 = arith.constant 0 : index
    %5 = vector.load %arg4[%c0_4, %c0_5] : memref<256x128xbf16, #tpu.memory_space<vmem>>, vector<256x128xbf16>
    %cst = arith.constant dense<0.000000e+00> : vector<16x128xf32>
    %6 = tpu.matmul %3, %5, %cst {dimension_numbers = #tpu.dot_dimension_numbers<[1], [0], [0], [1], [0, 0, 1, 1], [], []>} : vector<16x256xbf16>, vector<256x128xbf16>, vector<16x128xf32> -> vector<16x128xf32>
    %7 = arith.addf %4, %6 : vector<16x128xf32>
    %c0_6 = arith.constant 0 : index
    %c0_7 = arith.constant 0 : index
    %8 = vector.load %arg7[%c0_6, %c0_7] : memref<16x128xf32, #tpu.memory_space<vmem>>, vector<16x128xf32>
    tpu.vector_store %arg7[%c0_6, %c0_7], %7 {strides = array<i32>} : memref<16x128xf32, #tpu.memory_space<vmem>>, vector<16x128xf32>,
    %c0_i32_8 = arith.constant 0 : i32
    %9 = arith.cmpi eq, %arg2, %c0_i32_8 : i32
    %10 = arith.extui %9 : i1 to i32
    %c0_i32_9 = arith.constant 0 : i32
    %11 = arith.cmpi ne, %10, %c0_i32_9 : i32
    scf.if %11 {
      %c0_10 = arith.constant 0 : index
      %c0_11 = arith.constant 0 : index
      %12 = vector.load %arg7[%c0_10, %c0_11] : memref<16x128xf32, #tpu.memory_space<vmem>>, vector<16x128xf32>
      %c0_12 = arith.constant 0 : index
      %c0_13 = arith.constant 0 : index
      %13 = vector.load %arg5[%c0_12, %c0_13] : memref<1x128xf32, #tpu.memory_space<vmem>>, vector<1x128xf32>
      %14 = vector.broadcast %13 : vector<1x128xf32> to vector<16x128xf32>
      %15 = arith.addf %12, %14 : vector<16x128xf32>
      %16 = arith.truncf %15 : vector<16x128xf32> to vector<16x128xbf16>
      %c0_14 = arith.constant 0 : index
      %c0_15 = arith.constant 0 : index
      %17 = vector.load %arg6[%c0_14, %c0_15] : memref<16x128xbf16, #tpu.memory_space<vmem>>, vector<16x128xbf16>
      tpu.vector_store %arg6[%c0_14, %c0_15], %16 {strides = array<i32>} : memref<16x128xbf16, #tpu.memory_space<vmem>>, vector<16x128xbf16>,
    } else {
    }
    return
  }
  func.func @transform_0(%arg0: i32, %arg1: i32, %arg2: i32) -> (i32, i32) {
    %c0_i32 = arith.constant 0 : i32
    return %arg0, %arg2 : i32, i32
  }
  func.func @transform_1(%arg0: i32, %arg1: i32, %arg2: i32) -> (i32, i32) {
    %c0_i32 = arith.constant 0 : i32
    return %arg2, %arg1 : i32, i32
  }
  func.func @transform_2(%arg0: i32, %arg1: i32, %arg2: i32) -> (i32, i32) {
    %c0_i32 = arith.constant 0 : i32
    %c0_i32_0 = arith.constant 0 : i32
    return %c0_i32, %arg1 : i32, i32
  }
  func.func @transform_3(%arg0: i32, %arg1: i32, %arg2: i32) -> (i32, i32) {
    %c0_i32 = arith.constant 0 : i32
    return %arg0, %arg1 : i32, i32
  }
}

module attributes {stable_mosaic.version = 11 : i64} {
  func.func @_bn_stats_kernel(%arg0: i32, %arg1: memref<16x32xbf16, #tpu.memory_space<vmem>>, %arg2: memref<1x32xf32, #tpu.memory_space<vmem>>, %arg3: memref<1x32xf32, #tpu.memory_space<vmem>>) attributes {dimension_semantics = [#tpu.dimension_semantics<arbitrary>], iteration_bounds = array<i64: 1>, scalar_prefetch = 0 : i64, scratch_operands = 0 : i64, tpu.core_type = #tpu.core_type<tc>, window_params = [{transform_indices = @transform_0, window_bounds = array<i64: 16, 32>}, {pipeline_mode = #tpu.pipeline_mode<synchronous>, transform_indices = @transform_1, window_bounds = array<i64: 1, 32>}, {pipeline_mode = #tpu.pipeline_mode<synchronous>, transform_indices = @transform_2, window_bounds = array<i64: 1, 32>}]} {
    %c0_i32 = arith.constant 0 : i32
    %0 = arith.cmpi eq, %arg0, %c0_i32 : i32
    %1 = arith.extui %0 : i1 to i32
    %c0_i32_0 = arith.constant 0 : i32
    %2 = arith.cmpi ne, %1, %c0_i32_0 : i32
    scf.if %2 {
      %cst_11 = arith.constant 0.000000e+00 : f32
      %16 = vector.broadcast %cst_11 : f32 to vector<1x32xf32>
      %c0_12 = arith.constant 0 : index
      %c0_13 = arith.constant 0 : index
      %17 = vector.load %arg2[%c0_12, %c0_13] : memref<1x32xf32, #tpu.memory_space<vmem>>, vector<1x32xf32>
      tpu.vector_store %arg2[%c0_12, %c0_13], %16 {strides = array<i32>} : memref<1x32xf32, #tpu.memory_space<vmem>>, vector<1x32xf32>,
      %cst_14 = arith.constant 0.000000e+00 : f32
      %18 = vector.broadcast %cst_14 : f32 to vector<1x32xf32>
      %c0_15 = arith.constant 0 : index
      %c0_16 = arith.constant 0 : index
      %19 = vector.load %arg3[%c0_15, %c0_16] : memref<1x32xf32, #tpu.memory_space<vmem>>, vector<1x32xf32>
      tpu.vector_store %arg3[%c0_15, %c0_16], %18 {strides = array<i32>} : memref<1x32xf32, #tpu.memory_space<vmem>>, vector<1x32xf32>,
    } else {
    }
    %c0 = arith.constant 0 : index
    %c0_1 = arith.constant 0 : index
    %3 = vector.load %arg1[%c0, %c0_1] : memref<16x32xbf16, #tpu.memory_space<vmem>>, vector<16x32xbf16>
    %4 = arith.extf %3 : vector<16x32xbf16> to vector<16x32xf32>
    %c0_2 = arith.constant 0 : index
    %c0_3 = arith.constant 0 : index
    %5 = vector.load %arg2[%c0_2, %c0_3] : memref<1x32xf32, #tpu.memory_space<vmem>>, vector<1x32xf32>
    %cst = arith.constant dense<0.000000e+00> : vector<32xf32>
    %6 = vector.multi_reduction <add>, %4, %cst [0] : vector<16x32xf32> to vector<32xf32>
    %7 = vector.shape_cast %6 : vector<32xf32> to vector<1x32xf32>
    %8 = arith.addf %5, %7 : vector<1x32xf32>
    %c0_4 = arith.constant 0 : index
    %c0_5 = arith.constant 0 : index
    %9 = vector.load %arg2[%c0_4, %c0_5] : memref<1x32xf32, #tpu.memory_space<vmem>>, vector<1x32xf32>
    tpu.vector_store %arg2[%c0_4, %c0_5], %8 {strides = array<i32>} : memref<1x32xf32, #tpu.memory_space<vmem>>, vector<1x32xf32>,
    %c0_6 = arith.constant 0 : index
    %c0_7 = arith.constant 0 : index
    %10 = vector.load %arg3[%c0_6, %c0_7] : memref<1x32xf32, #tpu.memory_space<vmem>>, vector<1x32xf32>
    %11 = arith.mulf %4, %4 : vector<16x32xf32>
    %cst_8 = arith.constant dense<0.000000e+00> : vector<32xf32>
    %12 = vector.multi_reduction <add>, %11, %cst_8 [0] : vector<16x32xf32> to vector<32xf32>
    %13 = vector.shape_cast %12 : vector<32xf32> to vector<1x32xf32>
    %14 = arith.addf %10, %13 : vector<1x32xf32>
    %c0_9 = arith.constant 0 : index
    %c0_10 = arith.constant 0 : index
    %15 = vector.load %arg3[%c0_9, %c0_10] : memref<1x32xf32, #tpu.memory_space<vmem>>, vector<1x32xf32>
    tpu.vector_store %arg3[%c0_9, %c0_10], %14 {strides = array<i32>} : memref<1x32xf32, #tpu.memory_space<vmem>>, vector<1x32xf32>,
    return
  }
  func.func @transform_0(%arg0: i32) -> (i32, i32) {
    %c0_i32 = arith.constant 0 : i32
    %c0_i32_0 = arith.constant 0 : i32
    return %arg0, %c0_i32 : i32, i32
  }
  func.func @transform_1(%arg0: i32) -> (i32, i32) {
    %c0_i32 = arith.constant 0 : i32
    %c0_i32_0 = arith.constant 0 : i32
    %c0_i32_1 = arith.constant 0 : i32
    return %c0_i32, %c0_i32_0 : i32, i32
  }
  func.func @transform_2(%arg0: i32) -> (i32, i32) {
    %c0_i32 = arith.constant 0 : i32
    %c0_i32_0 = arith.constant 0 : i32
    %c0_i32_1 = arith.constant 0 : i32
    return %c0_i32, %c0_i32_0 : i32, i32
  }
}

module attributes {stable_mosaic.version = 11 : i64} {
  func.func @_gemm_kernel(%arg0: i32, %arg1: i32, %arg2: i32, %arg3: memref<16x128xbf16, #tpu.memory_space<vmem>>, %arg4: memref<128x128xbf16, #tpu.memory_space<vmem>>, %arg5: memref<1x128xf32, #tpu.memory_space<vmem>>, %arg6: memref<1x128xf32, #tpu.memory_space<vmem>>, %arg7: memref<16x128xbf16, #tpu.memory_space<vmem>>, %arg8: memref<16x128xf32, #tpu.memory_space<vmem>>) attributes {dimension_semantics = [#tpu.dimension_semantics<parallel>, #tpu.dimension_semantics<parallel>, #tpu.dimension_semantics<arbitrary>], iteration_bounds = array<i64: 1, 1, 1>, scalar_prefetch = 0 : i64, scratch_operands = 1 : i64, tpu.core_type = #tpu.core_type<tc>, window_params = [{transform_indices = @transform_0, window_bounds = array<i64: 16, 128>}, {transform_indices = @transform_1, window_bounds = array<i64: 128, 128>}, {transform_indices = @transform_2, window_bounds = array<i64: 1, 128>}, {transform_indices = @transform_3, window_bounds = array<i64: 1, 128>}, {transform_indices = @transform_4, window_bounds = array<i64: 16, 128>}]} {
    %c0_i32 = arith.constant 0 : i32
    %0 = arith.cmpi eq, %arg2, %c0_i32 : i32
    %1 = arith.extui %0 : i1 to i32
    %c0_i32_0 = arith.constant 0 : i32
    %2 = arith.cmpi ne, %1, %c0_i32_0 : i32
    scf.if %2 {
      %cst_14 = arith.constant 0.000000e+00 : f32
      %20 = vector.broadcast %cst_14 : f32 to vector<16x128xf32>
      %c0_15 = arith.constant 0 : index
      %c0_16 = arith.constant 0 : index
      %21 = vector.load %arg8[%c0_15, %c0_16] : memref<16x128xf32, #tpu.memory_space<vmem>>, vector<16x128xf32>
      tpu.vector_store %arg8[%c0_15, %c0_16], %20 {strides = array<i32>} : memref<16x128xf32, #tpu.memory_space<vmem>>, vector<16x128xf32>,
    } else {
    }
    %c0 = arith.constant 0 : index
    %c0_1 = arith.constant 0 : index
    %3 = vector.load %arg3[%c0, %c0_1] : memref<16x128xbf16, #tpu.memory_space<vmem>>, vector<16x128xbf16>
    %4 = arith.extf %3 : vector<16x128xbf16> to vector<16x128xf32>
    %c0_2 = arith.constant 0 : index
    %c0_3 = arith.constant 0 : index
    %5 = vector.load %arg5[%c0_2, %c0_3] : memref<1x128xf32, #tpu.memory_space<vmem>>, vector<1x128xf32>
    %6 = vector.broadcast %5 : vector<1x128xf32> to vector<16x128xf32>
    %7 = arith.mulf %4, %6 : vector<16x128xf32>
    %c0_4 = arith.constant 0 : index
    %c0_5 = arith.constant 0 : index
    %8 = vector.load %arg6[%c0_4, %c0_5] : memref<1x128xf32, #tpu.memory_space<vmem>>, vector<1x128xf32>
    %9 = vector.broadcast %8 : vector<1x128xf32> to vector<16x128xf32>
    %10 = arith.addf %7, %9 : vector<16x128xf32>
    %11 = arith.truncf %10 : vector<16x128xf32> to vector<16x128xbf16>
    %c0_6 = arith.constant 0 : index
    %c0_7 = arith.constant 0 : index
    %12 = vector.load %arg8[%c0_6, %c0_7] : memref<16x128xf32, #tpu.memory_space<vmem>>, vector<16x128xf32>
    %c0_8 = arith.constant 0 : index
    %c0_9 = arith.constant 0 : index
    %13 = vector.load %arg4[%c0_8, %c0_9] : memref<128x128xbf16, #tpu.memory_space<vmem>>, vector<128x128xbf16>
    %cst = arith.constant dense<0.000000e+00> : vector<16x128xf32>
    %14 = tpu.matmul %11, %13, %cst {dimension_numbers = #tpu.dot_dimension_numbers<[1], [0], [0], [1], [0, 0, 1, 1], [], []>} : vector<16x128xbf16>, vector<128x128xbf16>, vector<16x128xf32> -> vector<16x128xf32>
    %15 = arith.addf %12, %14 : vector<16x128xf32>
    %c0_10 = arith.constant 0 : index
    %c0_11 = arith.constant 0 : index
    %16 = vector.load %arg8[%c0_10, %c0_11] : memref<16x128xf32, #tpu.memory_space<vmem>>, vector<16x128xf32>
    tpu.vector_store %arg8[%c0_10, %c0_11], %15 {strides = array<i32>} : memref<16x128xf32, #tpu.memory_space<vmem>>, vector<16x128xf32>,
    %c0_i32_12 = arith.constant 0 : i32
    %17 = arith.cmpi eq, %arg2, %c0_i32_12 : i32
    %18 = arith.extui %17 : i1 to i32
    %c0_i32_13 = arith.constant 0 : i32
    %19 = arith.cmpi ne, %18, %c0_i32_13 : i32
    scf.if %19 {
      %c0_14 = arith.constant 0 : index
      %c0_15 = arith.constant 0 : index
      %20 = vector.load %arg8[%c0_14, %c0_15] : memref<16x128xf32, #tpu.memory_space<vmem>>, vector<16x128xf32>
      %cst_16 = arith.constant 0.000000e+00 : f32
      %21 = vector.broadcast %cst_16 : f32 to vector<16x128xf32>
      %22 = arith.maximumf %20, %21 : vector<16x128xf32>
      %23 = arith.truncf %22 : vector<16x128xf32> to vector<16x128xbf16>
      %c0_17 = arith.constant 0 : index
      %c0_18 = arith.constant 0 : index
      %24 = vector.load %arg7[%c0_17, %c0_18] : memref<16x128xbf16, #tpu.memory_space<vmem>>, vector<16x128xbf16>
      tpu.vector_store %arg7[%c0_17, %c0_18], %23 {strides = array<i32>} : memref<16x128xbf16, #tpu.memory_space<vmem>>, vector<16x128xbf16>,
    } else {
    }
    return
  }
  func.func @transform_0(%arg0: i32, %arg1: i32, %arg2: i32) -> (i32, i32) {
    %c0_i32 = arith.constant 0 : i32
    return %arg0, %arg2 : i32, i32
  }
  func.func @transform_1(%arg0: i32, %arg1: i32, %arg2: i32) -> (i32, i32) {
    %c0_i32 = arith.constant 0 : i32
    return %arg2, %arg1 : i32, i32
  }
  func.func @transform_2(%arg0: i32, %arg1: i32, %arg2: i32) -> (i32, i32) {
    %c0_i32 = arith.constant 0 : i32
    %c0_i32_0 = arith.constant 0 : i32
    return %c0_i32, %arg2 : i32, i32
  }
  func.func @transform_3(%arg0: i32, %arg1: i32, %arg2: i32) -> (i32, i32) {
    %c0_i32 = arith.constant 0 : i32
    %c0_i32_0 = arith.constant 0 : i32
    return %c0_i32, %arg2 : i32, i32
  }
  func.func @transform_4(%arg0: i32, %arg1: i32, %arg2: i32) -> (i32, i32) {
    %c0_i32 = arith.constant 0 : i32
    return %arg0, %arg1 : i32, i32
  }
}

module attributes {stable_mosaic.version = 11 : i64} {
  func.func @_affine_kernel(%arg0: i32, %arg1: memref<16x32xbf16, #tpu.memory_space<vmem>>, %arg2: memref<1x32xf32, #tpu.memory_space<vmem>>, %arg3: memref<1x32xf32, #tpu.memory_space<vmem>>, %arg4: memref<16x32xbf16, #tpu.memory_space<vmem>>) attributes {dimension_semantics = [#tpu.dimension_semantics<parallel>], iteration_bounds = array<i64: 1>, scalar_prefetch = 0 : i64, scratch_operands = 0 : i64, tpu.core_type = #tpu.core_type<tc>, window_params = [{transform_indices = @transform_0, window_bounds = array<i64: 16, 32>}, {pipeline_mode = #tpu.pipeline_mode<synchronous>, transform_indices = @transform_1, window_bounds = array<i64: 1, 32>}, {pipeline_mode = #tpu.pipeline_mode<synchronous>, transform_indices = @transform_2, window_bounds = array<i64: 1, 32>}, {transform_indices = @transform_3, window_bounds = array<i64: 16, 32>}]} {
    %c0 = arith.constant 0 : index
    %c0_0 = arith.constant 0 : index
    %0 = vector.load %arg1[%c0, %c0_0] : memref<16x32xbf16, #tpu.memory_space<vmem>>, vector<16x32xbf16>
    %1 = arith.extf %0 : vector<16x32xbf16> to vector<16x32xf32>
    %c0_1 = arith.constant 0 : index
    %c0_2 = arith.constant 0 : index
    %2 = vector.load %arg2[%c0_1, %c0_2] : memref<1x32xf32, #tpu.memory_space<vmem>>, vector<1x32xf32>
    %3 = vector.broadcast %2 : vector<1x32xf32> to vector<16x32xf32>
    %4 = arith.mulf %1, %3 : vector<16x32xf32>
    %c0_3 = arith.constant 0 : index
    %c0_4 = arith.constant 0 : index
    %5 = vector.load %arg3[%c0_3, %c0_4] : memref<1x32xf32, #tpu.memory_space<vmem>>, vector<1x32xf32>
    %6 = vector.broadcast %5 : vector<1x32xf32> to vector<16x32xf32>
    %7 = arith.addf %4, %6 : vector<16x32xf32>
    %8 = arith.truncf %7 : vector<16x32xf32> to vector<16x32xbf16>
    %c0_5 = arith.constant 0 : index
    %c0_6 = arith.constant 0 : index
    %9 = vector.load %arg4[%c0_5, %c0_6] : memref<16x32xbf16, #tpu.memory_space<vmem>>, vector<16x32xbf16>
    tpu.vector_store %arg4[%c0_5, %c0_6], %8 {strides = array<i32>} : memref<16x32xbf16, #tpu.memory_space<vmem>>, vector<16x32xbf16>,
    return
  }
  func.func @transform_0(%arg0: i32) -> (i32, i32) {
    %c0_i32 = arith.constant 0 : i32
    %c0_i32_0 = arith.constant 0 : i32
    return %arg0, %c0_i32 : i32, i32
  }
  func.func @transform_1(%arg0: i32) -> (i32, i32) {
    %c0_i32 = arith.constant 0 : i32
    %c0_i32_0 = arith.constant 0 : i32
    %c0_i32_1 = arith.constant 0 : i32
    return %c0_i32, %c0_i32_0 : i32, i32
  }
  func.func @transform_2(%arg0: i32) -> (i32, i32) {
    %c0_i32 = arith.constant 0 : i32
    %c0_i32_0 = arith.constant 0 : i32
    %c0_i32_1 = arith.constant 0 : i32
    return %c0_i32, %c0_i32_0 : i32, i32
  }
  func.func @transform_3(%arg0: i32) -> (i32, i32) {
    %c0_i32 = arith.constant 0 : i32
    %c0_i32_0 = arith.constant 0 : i32
    return %arg0, %c0_i32 : i32, i32
  }
}

module attributes {stable_mosaic.version = 11 : i64} {
  func.func @_gemm_kernel(%arg0: i32, %arg1: i32, %arg2: i32, %arg3: memref<16x128xbf16, #tpu.memory_space<vmem>>, %arg4: memref<128x128xbf16, #tpu.memory_space<vmem>>, %arg5: memref<16x128xbf16, #tpu.memory_space<vmem>>, %arg6: memref<16x128xbf16, #tpu.memory_space<vmem>>, %arg7: memref<16x128xf32, #tpu.memory_space<vmem>>) attributes {dimension_semantics = [#tpu.dimension_semantics<parallel>, #tpu.dimension_semantics<parallel>, #tpu.dimension_semantics<arbitrary>], iteration_bounds = array<i64: 1, 1, 1>, scalar_prefetch = 0 : i64, scratch_operands = 1 : i64, tpu.core_type = #tpu.core_type<tc>, window_params = [{transform_indices = @transform_0, window_bounds = array<i64: 16, 128>}, {transform_indices = @transform_1, window_bounds = array<i64: 128, 128>}, {transform_indices = @transform_2, window_bounds = array<i64: 16, 128>}, {transform_indices = @transform_3, window_bounds = array<i64: 16, 128>}]} {
    %c0_i32 = arith.constant 0 : i32
    %0 = arith.cmpi eq, %arg2, %c0_i32 : i32
    %1 = arith.extui %0 : i1 to i32
    %c0_i32_0 = arith.constant 0 : i32
    %2 = arith.cmpi ne, %1, %c0_i32_0 : i32
    scf.if %2 {
      %cst_10 = arith.constant 0.000000e+00 : f32
      %12 = vector.broadcast %cst_10 : f32 to vector<16x128xf32>
      %c0_11 = arith.constant 0 : index
      %c0_12 = arith.constant 0 : index
      %13 = vector.load %arg7[%c0_11, %c0_12] : memref<16x128xf32, #tpu.memory_space<vmem>>, vector<16x128xf32>
      tpu.vector_store %arg7[%c0_11, %c0_12], %12 {strides = array<i32>} : memref<16x128xf32, #tpu.memory_space<vmem>>, vector<16x128xf32>,
    } else {
    }
    %c0 = arith.constant 0 : index
    %c0_1 = arith.constant 0 : index
    %3 = vector.load %arg3[%c0, %c0_1] : memref<16x128xbf16, #tpu.memory_space<vmem>>, vector<16x128xbf16>
    %c0_2 = arith.constant 0 : index
    %c0_3 = arith.constant 0 : index
    %4 = vector.load %arg7[%c0_2, %c0_3] : memref<16x128xf32, #tpu.memory_space<vmem>>, vector<16x128xf32>
    %c0_4 = arith.constant 0 : index
    %c0_5 = arith.constant 0 : index
    %5 = vector.load %arg4[%c0_4, %c0_5] : memref<128x128xbf16, #tpu.memory_space<vmem>>, vector<128x128xbf16>
    %cst = arith.constant dense<0.000000e+00> : vector<16x128xf32>
    %6 = tpu.matmul %3, %5, %cst {dimension_numbers = #tpu.dot_dimension_numbers<[1], [0], [0], [1], [0, 0, 1, 1], [], []>} : vector<16x128xbf16>, vector<128x128xbf16>, vector<16x128xf32> -> vector<16x128xf32>
    %7 = arith.addf %4, %6 : vector<16x128xf32>
    %c0_6 = arith.constant 0 : index
    %c0_7 = arith.constant 0 : index
    %8 = vector.load %arg7[%c0_6, %c0_7] : memref<16x128xf32, #tpu.memory_space<vmem>>, vector<16x128xf32>
    tpu.vector_store %arg7[%c0_6, %c0_7], %7 {strides = array<i32>} : memref<16x128xf32, #tpu.memory_space<vmem>>, vector<16x128xf32>,
    %c0_i32_8 = arith.constant 0 : i32
    %9 = arith.cmpi eq, %arg2, %c0_i32_8 : i32
    %10 = arith.extui %9 : i1 to i32
    %c0_i32_9 = arith.constant 0 : i32
    %11 = arith.cmpi ne, %10, %c0_i32_9 : i32
    scf.if %11 {
      %c0_10 = arith.constant 0 : index
      %c0_11 = arith.constant 0 : index
      %12 = vector.load %arg7[%c0_10, %c0_11] : memref<16x128xf32, #tpu.memory_space<vmem>>, vector<16x128xf32>
      %c0_12 = arith.constant 0 : index
      %c0_13 = arith.constant 0 : index
      %13 = vector.load %arg5[%c0_12, %c0_13] : memref<16x128xbf16, #tpu.memory_space<vmem>>, vector<16x128xbf16>
      %14 = arith.extf %13 : vector<16x128xbf16> to vector<16x128xf32>
      %15 = arith.addf %12, %14 : vector<16x128xf32>
      %16 = arith.truncf %15 : vector<16x128xf32> to vector<16x128xbf16>
      %c0_14 = arith.constant 0 : index
      %c0_15 = arith.constant 0 : index
      %17 = vector.load %arg6[%c0_14, %c0_15] : memref<16x128xbf16, #tpu.memory_space<vmem>>, vector<16x128xbf16>
      tpu.vector_store %arg6[%c0_14, %c0_15], %16 {strides = array<i32>} : memref<16x128xbf16, #tpu.memory_space<vmem>>, vector<16x128xbf16>,
    } else {
    }
    return
  }
  func.func @transform_0(%arg0: i32, %arg1: i32, %arg2: i32) -> (i32, i32) {
    %c0_i32 = arith.constant 0 : i32
    return %arg0, %arg2 : i32, i32
  }
  func.func @transform_1(%arg0: i32, %arg1: i32, %arg2: i32) -> (i32, i32) {
    %c0_i32 = arith.constant 0 : i32
    return %arg2, %arg1 : i32, i32
  }
  func.func @transform_2(%arg0: i32, %arg1: i32, %arg2: i32) -> (i32, i32) {
    %c0_i32 = arith.constant 0 : i32
    return %arg0, %arg1 : i32, i32
  }
  func.func @transform_3(%arg0: i32, %arg1: i32, %arg2: i32) -> (i32, i32) {
    %c0_i32 = arith.constant 0 : i32
    return %arg0, %arg1 : i32, i32
  }
}

module attributes {stable_mosaic.version = 11 : i64} {
  func.func @_dwconv_kernel(%arg0: i32, %arg1: memref<1x8x8x64xbf16, #tpu.memory_space<vmem>>, %arg2: memref<49x64xf32, #tpu.memory_space<vmem>>, %arg3: memref<1x2x2x64xbf16, #tpu.memory_space<vmem>>) attributes {dimension_semantics = [#tpu.dimension_semantics<parallel>], iteration_bounds = array<i64: 2>, scalar_prefetch = 0 : i64, scratch_operands = 0 : i64, tpu.core_type = #tpu.core_type<tc>, window_params = [{transform_indices = @transform_0, window_bounds = array<i64: 1, 8, 8, 64>}, {pipeline_mode = #tpu.pipeline_mode<synchronous>, transform_indices = @transform_1, window_bounds = array<i64: 49, 64>}, {transform_indices = @transform_2, window_bounds = array<i64: 1, 2, 2, 64>}]} {
    %c0 = arith.constant 0 : index
    %c0_0 = arith.constant 0 : index
    %c0_1 = arith.constant 0 : index
    %c0_2 = arith.constant 0 : index
    %0 = vector.load %arg1[%c0, %c0_0, %c0_1, %c0_2] : memref<1x8x8x64xbf16, #tpu.memory_space<vmem>>, vector<1x8x8x64xbf16>
    %1 = arith.extf %0 : vector<1x8x8x64xbf16> to vector<1x8x8x64xf32>
    %c0_3 = arith.constant 0 : index
    %c0_4 = arith.constant 0 : index
    %2 = vector.load %arg2[%c0_3, %c0_4] : memref<49x64xf32, #tpu.memory_space<vmem>>, vector<49x64xf32>
    %cst = arith.constant 0.000000e+00 : f32
    %3 = vector.broadcast %cst : f32 to vector<1x2x2x64xf32>
    %4 = vector.extract_strided_slice %1 {offsets = [0, 0, 0, 0], sizes = [1, 2, 2, 64], strides = [1, 1, 1, 1]} : vector<1x8x8x64xf32> to vector<1x2x2x64xf32>
    %5 = vector.extract_strided_slice %2 {offsets = [0, 0], sizes = [1, 64], strides = [1, 1]} : vector<49x64xf32> to vector<1x64xf32>
    %6 = vector.shape_cast %5 : vector<1x64xf32> to vector<1x1x1x64xf32>
    %7 = vector.broadcast %6 : vector<1x1x1x64xf32> to vector<1x2x2x64xf32>
    %8 = arith.mulf %4, %7 : vector<1x2x2x64xf32>
    %9 = arith.addf %3, %8 : vector<1x2x2x64xf32>
    %10 = vector.extract_strided_slice %1 {offsets = [0, 0, 1, 0], sizes = [1, 2, 2, 64], strides = [1, 1, 1, 1]} : vector<1x8x8x64xf32> to vector<1x2x2x64xf32>
    %11 = vector.extract_strided_slice %2 {offsets = [1, 0], sizes = [1, 64], strides = [1, 1]} : vector<49x64xf32> to vector<1x64xf32>
    %12 = vector.shape_cast %11 : vector<1x64xf32> to vector<1x1x1x64xf32>
    %13 = vector.broadcast %12 : vector<1x1x1x64xf32> to vector<1x2x2x64xf32>
    %14 = arith.mulf %10, %13 : vector<1x2x2x64xf32>
    %15 = arith.addf %9, %14 : vector<1x2x2x64xf32>
    %16 = vector.extract_strided_slice %1 {offsets = [0, 0, 2, 0], sizes = [1, 2, 2, 64], strides = [1, 1, 1, 1]} : vector<1x8x8x64xf32> to vector<1x2x2x64xf32>
    %17 = vector.extract_strided_slice %2 {offsets = [2, 0], sizes = [1, 64], strides = [1, 1]} : vector<49x64xf32> to vector<1x64xf32>
    %18 = vector.shape_cast %17 : vector<1x64xf32> to vector<1x1x1x64xf32>
    %19 = vector.broadcast %18 : vector<1x1x1x64xf32> to vector<1x2x2x64xf32>
    %20 = arith.mulf %16, %19 : vector<1x2x2x64xf32>
    %21 = arith.addf %15, %20 : vector<1x2x2x64xf32>
    %22 = vector.extract_strided_slice %1 {offsets = [0, 0, 3, 0], sizes = [1, 2, 2, 64], strides = [1, 1, 1, 1]} : vector<1x8x8x64xf32> to vector<1x2x2x64xf32>
    %23 = vector.extract_strided_slice %2 {offsets = [3, 0], sizes = [1, 64], strides = [1, 1]} : vector<49x64xf32> to vector<1x64xf32>
    %24 = vector.shape_cast %23 : vector<1x64xf32> to vector<1x1x1x64xf32>
    %25 = vector.broadcast %24 : vector<1x1x1x64xf32> to vector<1x2x2x64xf32>
    %26 = arith.mulf %22, %25 : vector<1x2x2x64xf32>
    %27 = arith.addf %21, %26 : vector<1x2x2x64xf32>
    %28 = vector.extract_strided_slice %1 {offsets = [0, 0, 4, 0], sizes = [1, 2, 2, 64], strides = [1, 1, 1, 1]} : vector<1x8x8x64xf32> to vector<1x2x2x64xf32>
    %29 = vector.extract_strided_slice %2 {offsets = [4, 0], sizes = [1, 64], strides = [1, 1]} : vector<49x64xf32> to vector<1x64xf32>
    %30 = vector.shape_cast %29 : vector<1x64xf32> to vector<1x1x1x64xf32>
    %31 = vector.broadcast %30 : vector<1x1x1x64xf32> to vector<1x2x2x64xf32>
    %32 = arith.mulf %28, %31 : vector<1x2x2x64xf32>
    %33 = arith.addf %27, %32 : vector<1x2x2x64xf32>
    %34 = vector.extract_strided_slice %1 {offsets = [0, 0, 5, 0], sizes = [1, 2, 2, 64], strides = [1, 1, 1, 1]} : vector<1x8x8x64xf32> to vector<1x2x2x64xf32>
    %35 = vector.extract_strided_slice %2 {offsets = [5, 0], sizes = [1, 64], strides = [1, 1]} : vector<49x64xf32> to vector<1x64xf32>
    %36 = vector.shape_cast %35 : vector<1x64xf32> to vector<1x1x1x64xf32>
    %37 = vector.broadcast %36 : vector<1x1x1x64xf32> to vector<1x2x2x64xf32>
    %38 = arith.mulf %34, %37 : vector<1x2x2x64xf32>
    %39 = arith.addf %33, %38 : vector<1x2x2x64xf32>
    %40 = vector.extract_strided_slice %1 {offsets = [0, 0, 6, 0], sizes = [1, 2, 2, 64], strides = [1, 1, 1, 1]} : vector<1x8x8x64xf32> to vector<1x2x2x64xf32>
    %41 = vector.extract_strided_slice %2 {offsets = [6, 0], sizes = [1, 64], strides = [1, 1]} : vector<49x64xf32> to vector<1x64xf32>
    %42 = vector.shape_cast %41 : vector<1x64xf32> to vector<1x1x1x64xf32>
    %43 = vector.broadcast %42 : vector<1x1x1x64xf32> to vector<1x2x2x64xf32>
    %44 = arith.mulf %40, %43 : vector<1x2x2x64xf32>
    %45 = arith.addf %39, %44 : vector<1x2x2x64xf32>
    %46 = vector.extract_strided_slice %1 {offsets = [0, 1, 0, 0], sizes = [1, 2, 2, 64], strides = [1, 1, 1, 1]} : vector<1x8x8x64xf32> to vector<1x2x2x64xf32>
    %47 = vector.extract_strided_slice %2 {offsets = [7, 0], sizes = [1, 64], strides = [1, 1]} : vector<49x64xf32> to vector<1x64xf32>
    %48 = vector.shape_cast %47 : vector<1x64xf32> to vector<1x1x1x64xf32>
    %49 = vector.broadcast %48 : vector<1x1x1x64xf32> to vector<1x2x2x64xf32>
    %50 = arith.mulf %46, %49 : vector<1x2x2x64xf32>
    %51 = arith.addf %45, %50 : vector<1x2x2x64xf32>
    %52 = vector.extract_strided_slice %1 {offsets = [0, 1, 1, 0], sizes = [1, 2, 2, 64], strides = [1, 1, 1, 1]} : vector<1x8x8x64xf32> to vector<1x2x2x64xf32>
    %53 = vector.extract_strided_slice %2 {offsets = [8, 0], sizes = [1, 64], strides = [1, 1]} : vector<49x64xf32> to vector<1x64xf32>
    %54 = vector.shape_cast %53 : vector<1x64xf32> to vector<1x1x1x64xf32>
    %55 = vector.broadcast %54 : vector<1x1x1x64xf32> to vector<1x2x2x64xf32>
    %56 = arith.mulf %52, %55 : vector<1x2x2x64xf32>
    %57 = arith.addf %51, %56 : vector<1x2x2x64xf32>
    %58 = vector.extract_strided_slice %1 {offsets = [0, 1, 2, 0], sizes = [1, 2, 2, 64], strides = [1, 1, 1, 1]} : vector<1x8x8x64xf32> to vector<1x2x2x64xf32>
    %59 = vector.extract_strided_slice %2 {offsets = [9, 0], sizes = [1, 64], strides = [1, 1]} : vector<49x64xf32> to vector<1x64xf32>
    %60 = vector.shape_cast %59 : vector<1x64xf32> to vector<1x1x1x64xf32>
    %61 = vector.broadcast %60 : vector<1x1x1x64xf32> to vector<1x2x2x64xf32>
    %62 = arith.mulf %58, %61 : vector<1x2x2x64xf32>
    %63 = arith.addf %57, %62 : vector<1x2x2x64xf32>
    %64 = vector.extract_strided_slice %1 {offsets = [0, 1, 3, 0], sizes = [1, 2, 2, 64], strides = [1, 1, 1, 1]} : vector<1x8x8x64xf32> to vector<1x2x2x64xf32>
    %65 = vector.extract_strided_slice %2 {offsets = [10, 0], sizes = [1, 64], strides = [1, 1]} : vector<49x64xf32> to vector<1x64xf32>
    %66 = vector.shape_cast %65 : vector<1x64xf32> to vector<1x1x1x64xf32>
    %67 = vector.broadcast %66 : vector<1x1x1x64xf32> to vector<1x2x2x64xf32>
    %68 = arith.mulf %64, %67 : vector<1x2x2x64xf32>
    %69 = arith.addf %63, %68 : vector<1x2x2x64xf32>
    %70 = vector.extract_strided_slice %1 {offsets = [0, 1, 4, 0], sizes = [1, 2, 2, 64], strides = [1, 1, 1, 1]} : vector<1x8x8x64xf32> to vector<1x2x2x64xf32>
    %71 = vector.extract_strided_slice %2 {offsets = [11, 0], sizes = [1, 64], strides = [1, 1]} : vector<49x64xf32> to vector<1x64xf32>
    %72 = vector.shape_cast %71 : vector<1x64xf32> to vector<1x1x1x64xf32>
    %73 = vector.broadcast %72 : vector<1x1x1x64xf32> to vector<1x2x2x64xf32>
    %74 = arith.mulf %70, %73 : vector<1x2x2x64xf32>
    %75 = arith.addf %69, %74 : vector<1x2x2x64xf32>
    %76 = vector.extract_strided_slice %1 {offsets = [0, 1, 5, 0], sizes = [1, 2, 2, 64], strides = [1, 1, 1, 1]} : vector<1x8x8x64xf32> to vector<1x2x2x64xf32>
    %77 = vector.extract_strided_slice %2 {offsets = [12, 0], sizes = [1, 64], strides = [1, 1]} : vector<49x64xf32> to vector<1x64xf32>
    %78 = vector.shape_cast %77 : vector<1x64xf32> to vector<1x1x1x64xf32>
    %79 = vector.broadcast %78 : vector<1x1x1x64xf32> to vector<1x2x2x64xf32>
    %80 = arith.mulf %76, %79 : vector<1x2x2x64xf32>
    %81 = arith.addf %75, %80 : vector<1x2x2x64xf32>
    %82 = vector.extract_strided_slice %1 {offsets = [0, 1, 6, 0], sizes = [1, 2, 2, 64], strides = [1, 1, 1, 1]} : vector<1x8x8x64xf32> to vector<1x2x2x64xf32>
    %83 = vector.extract_strided_slice %2 {offsets = [13, 0], sizes = [1, 64], strides = [1, 1]} : vector<49x64xf32> to vector<1x64xf32>
    %84 = vector.shape_cast %83 : vector<1x64xf32> to vector<1x1x1x64xf32>
    %85 = vector.broadcast %84 : vector<1x1x1x64xf32> to vector<1x2x2x64xf32>
    %86 = arith.mulf %82, %85 : vector<1x2x2x64xf32>
    %87 = arith.addf %81, %86 : vector<1x2x2x64xf32>
    %88 = vector.extract_strided_slice %1 {offsets = [0, 2, 0, 0], sizes = [1, 2, 2, 64], strides = [1, 1, 1, 1]} : vector<1x8x8x64xf32> to vector<1x2x2x64xf32>
    %89 = vector.extract_strided_slice %2 {offsets = [14, 0], sizes = [1, 64], strides = [1, 1]} : vector<49x64xf32> to vector<1x64xf32>
    %90 = vector.shape_cast %89 : vector<1x64xf32> to vector<1x1x1x64xf32>
    %91 = vector.broadcast %90 : vector<1x1x1x64xf32> to vector<1x2x2x64xf32>
    %92 = arith.mulf %88, %91 : vector<1x2x2x64xf32>
    %93 = arith.addf %87, %92 : vector<1x2x2x64xf32>
    %94 = vector.extract_strided_slice %1 {offsets = [0, 2, 1, 0], sizes = [1, 2, 2, 64], strides = [1, 1, 1, 1]} : vector<1x8x8x64xf32> to vector<1x2x2x64xf32>
    %95 = vector.extract_strided_slice %2 {offsets = [15, 0], sizes = [1, 64], strides = [1, 1]} : vector<49x64xf32> to vector<1x64xf32>
    %96 = vector.shape_cast %95 : vector<1x64xf32> to vector<1x1x1x64xf32>
    %97 = vector.broadcast %96 : vector<1x1x1x64xf32> to vector<1x2x2x64xf32>
    %98 = arith.mulf %94, %97 : vector<1x2x2x64xf32>
    %99 = arith.addf %93, %98 : vector<1x2x2x64xf32>
    %100 = vector.extract_strided_slice %1 {offsets = [0, 2, 2, 0], sizes = [1, 2, 2, 64], strides = [1, 1, 1, 1]} : vector<1x8x8x64xf32> to vector<1x2x2x64xf32>
    %101 = vector.extract_strided_slice %2 {offsets = [16, 0], sizes = [1, 64], strides = [1, 1]} : vector<49x64xf32> to vector<1x64xf32>
    %102 = vector.shape_cast %101 : vector<1x64xf32> to vector<1x1x1x64xf32>
    %103 = vector.broadcast %102 : vector<1x1x1x64xf32> to vector<1x2x2x64xf32>
    %104 = arith.mulf %100, %103 : vector<1x2x2x64xf32>
    %105 = arith.addf %99, %104 : vector<1x2x2x64xf32>
    %106 = vector.extract_strided_slice %1 {offsets = [0, 2, 3, 0], sizes = [1, 2, 2, 64], strides = [1, 1, 1, 1]} : vector<1x8x8x64xf32> to vector<1x2x2x64xf32>
    %107 = vector.extract_strided_slice %2 {offsets = [17, 0], sizes = [1, 64], strides = [1, 1]} : vector<49x64xf32> to vector<1x64xf32>
    %108 = vector.shape_cast %107 : vector<1x64xf32> to vector<1x1x1x64xf32>
    %109 = vector.broadcast %108 : vector<1x1x1x64xf32> to vector<1x2x2x64xf32>
    %110 = arith.mulf %106, %109 : vector<1x2x2x64xf32>
    %111 = arith.addf %105, %110 : vector<1x2x2x64xf32>
    %112 = vector.extract_strided_slice %1 {offsets = [0, 2, 4, 0], sizes = [1, 2, 2, 64], strides = [1, 1, 1, 1]} : vector<1x8x8x64xf32> to vector<1x2x2x64xf32>
    %113 = vector.extract_strided_slice %2 {offsets = [18, 0], sizes = [1, 64], strides = [1, 1]} : vector<49x64xf32> to vector<1x64xf32>
    %114 = vector.shape_cast %113 : vector<1x64xf32> to vector<1x1x1x64xf32>
    %115 = vector.broadcast %114 : vector<1x1x1x64xf32> to vector<1x2x2x64xf32>
    %116 = arith.mulf %112, %115 : vector<1x2x2x64xf32>
    %117 = arith.addf %111, %116 : vector<1x2x2x64xf32>
    %118 = vector.extract_strided_slice %1 {offsets = [0, 2, 5, 0], sizes = [1, 2, 2, 64], strides = [1, 1, 1, 1]} : vector<1x8x8x64xf32> to vector<1x2x2x64xf32>
    %119 = vector.extract_strided_slice %2 {offsets = [19, 0], sizes = [1, 64], strides = [1, 1]} : vector<49x64xf32> to vector<1x64xf32>
    %120 = vector.shape_cast %119 : vector<1x64xf32> to vector<1x1x1x64xf32>
    %121 = vector.broadcast %120 : vector<1x1x1x64xf32> to vector<1x2x2x64xf32>
    %122 = arith.mulf %118, %121 : vector<1x2x2x64xf32>
    %123 = arith.addf %117, %122 : vector<1x2x2x64xf32>
    %124 = vector.extract_strided_slice %1 {offsets = [0, 2, 6, 0], sizes = [1, 2, 2, 64], strides = [1, 1, 1, 1]} : vector<1x8x8x64xf32> to vector<1x2x2x64xf32>
    %125 = vector.extract_strided_slice %2 {offsets = [20, 0], sizes = [1, 64], strides = [1, 1]} : vector<49x64xf32> to vector<1x64xf32>
    %126 = vector.shape_cast %125 : vector<1x64xf32> to vector<1x1x1x64xf32>
    %127 = vector.broadcast %126 : vector<1x1x1x64xf32> to vector<1x2x2x64xf32>
    %128 = arith.mulf %124, %127 : vector<1x2x2x64xf32>
    %129 = arith.addf %123, %128 : vector<1x2x2x64xf32>
    %130 = vector.extract_strided_slice %1 {offsets = [0, 3, 0, 0], sizes = [1, 2, 2, 64], strides = [1, 1, 1, 1]} : vector<1x8x8x64xf32> to vector<1x2x2x64xf32>
    %131 = vector.extract_strided_slice %2 {offsets = [21, 0], sizes = [1, 64], strides = [1, 1]} : vector<49x64xf32> to vector<1x64xf32>
    %132 = vector.shape_cast %131 : vector<1x64xf32> to vector<1x1x1x64xf32>
    %133 = vector.broadcast %132 : vector<1x1x1x64xf32> to vector<1x2x2x64xf32>
    %134 = arith.mulf %130, %133 : vector<1x2x2x64xf32>
    %135 = arith.addf %129, %134 : vector<1x2x2x64xf32>
    %136 = vector.extract_strided_slice %1 {offsets = [0, 3, 1, 0], sizes = [1, 2, 2, 64], strides = [1, 1, 1, 1]} : vector<1x8x8x64xf32> to vector<1x2x2x64xf32>
    %137 = vector.extract_strided_slice %2 {offsets = [22, 0], sizes = [1, 64], strides = [1, 1]} : vector<49x64xf32> to vector<1x64xf32>
    %138 = vector.shape_cast %137 : vector<1x64xf32> to vector<1x1x1x64xf32>
    %139 = vector.broadcast %138 : vector<1x1x1x64xf32> to vector<1x2x2x64xf32>
    %140 = arith.mulf %136, %139 : vector<1x2x2x64xf32>
    %141 = arith.addf %135, %140 : vector<1x2x2x64xf32>
    %142 = vector.extract_strided_slice %1 {offsets = [0, 3, 2, 0], sizes = [1, 2, 2, 64], strides = [1, 1, 1, 1]} : vector<1x8x8x64xf32> to vector<1x2x2x64xf32>
    %143 = vector.extract_strided_slice %2 {offsets = [23, 0], sizes = [1, 64], strides = [1, 1]} : vector<49x64xf32> to vector<1x64xf32>
    %144 = vector.shape_cast %143 : vector<1x64xf32> to vector<1x1x1x64xf32>
    %145 = vector.broadcast %144 : vector<1x1x1x64xf32> to vector<1x2x2x64xf32>
    %146 = arith.mulf %142, %145 : vector<1x2x2x64xf32>
    %147 = arith.addf %141, %146 : vector<1x2x2x64xf32>
    %148 = vector.extract_strided_slice %1 {offsets = [0, 3, 3, 0], sizes = [1, 2, 2, 64], strides = [1, 1, 1, 1]} : vector<1x8x8x64xf32> to vector<1x2x2x64xf32>
    %149 = vector.extract_strided_slice %2 {offsets = [24, 0], sizes = [1, 64], strides = [1, 1]} : vector<49x64xf32> to vector<1x64xf32>
    %150 = vector.shape_cast %149 : vector<1x64xf32> to vector<1x1x1x64xf32>
    %151 = vector.broadcast %150 : vector<1x1x1x64xf32> to vector<1x2x2x64xf32>
    %152 = arith.mulf %148, %151 : vector<1x2x2x64xf32>
    %153 = arith.addf %147, %152 : vector<1x2x2x64xf32>
    %154 = vector.extract_strided_slice %1 {offsets = [0, 3, 4, 0], sizes = [1, 2, 2, 64], strides = [1, 1, 1, 1]} : vector<1x8x8x64xf32> to vector<1x2x2x64xf32>
    %155 = vector.extract_strided_slice %2 {offsets = [25, 0], sizes = [1, 64], strides = [1, 1]} : vector<49x64xf32> to vector<1x64xf32>
    %156 = vector.shape_cast %155 : vector<1x64xf32> to vector<1x1x1x64xf32>
    %157 = vector.broadcast %156 : vector<1x1x1x64xf32> to vector<1x2x2x64xf32>
    %158 = arith.mulf %154, %157 : vector<1x2x2x64xf32>
    %159 = arith.addf %153, %158 : vector<1x2x2x64xf32>
    %160 = vector.extract_strided_slice %1 {offsets = [0, 3, 5, 0], sizes = [1, 2, 2, 64], strides = [1, 1, 1, 1]} : vector<1x8x8x64xf32> to vector<1x2x2x64xf32>
    %161 = vector.extract_strided_slice %2 {offsets = [26, 0], sizes = [1, 64], strides = [1, 1]} : vector<49x64xf32> to vector<1x64xf32>
    %162 = vector.shape_cast %161 : vector<1x64xf32> to vector<1x1x1x64xf32>
    %163 = vector.broadcast %162 : vector<1x1x1x64xf32> to vector<1x2x2x64xf32>
    %164 = arith.mulf %160, %163 : vector<1x2x2x64xf32>
    %165 = arith.addf %159, %164 : vector<1x2x2x64xf32>
    %166 = vector.extract_strided_slice %1 {offsets = [0, 3, 6, 0], sizes = [1, 2, 2, 64], strides = [1, 1, 1, 1]} : vector<1x8x8x64xf32> to vector<1x2x2x64xf32>
    %167 = vector.extract_strided_slice %2 {offsets = [27, 0], sizes = [1, 64], strides = [1, 1]} : vector<49x64xf32> to vector<1x64xf32>
    %168 = vector.shape_cast %167 : vector<1x64xf32> to vector<1x1x1x64xf32>
    %169 = vector.broadcast %168 : vector<1x1x1x64xf32> to vector<1x2x2x64xf32>
    %170 = arith.mulf %166, %169 : vector<1x2x2x64xf32>
    %171 = arith.addf %165, %170 : vector<1x2x2x64xf32>
    %172 = vector.extract_strided_slice %1 {offsets = [0, 4, 0, 0], sizes = [1, 2, 2, 64], strides = [1, 1, 1, 1]} : vector<1x8x8x64xf32> to vector<1x2x2x64xf32>
    %173 = vector.extract_strided_slice %2 {offsets = [28, 0], sizes = [1, 64], strides = [1, 1]} : vector<49x64xf32> to vector<1x64xf32>
    %174 = vector.shape_cast %173 : vector<1x64xf32> to vector<1x1x1x64xf32>
    %175 = vector.broadcast %174 : vector<1x1x1x64xf32> to vector<1x2x2x64xf32>
    %176 = arith.mulf %172, %175 : vector<1x2x2x64xf32>
    %177 = arith.addf %171, %176 : vector<1x2x2x64xf32>
    %178 = vector.extract_strided_slice %1 {offsets = [0, 4, 1, 0], sizes = [1, 2, 2, 64], strides = [1, 1, 1, 1]} : vector<1x8x8x64xf32> to vector<1x2x2x64xf32>
    %179 = vector.extract_strided_slice %2 {offsets = [29, 0], sizes = [1, 64], strides = [1, 1]} : vector<49x64xf32> to vector<1x64xf32>
    %180 = vector.shape_cast %179 : vector<1x64xf32> to vector<1x1x1x64xf32>
    %181 = vector.broadcast %180 : vector<1x1x1x64xf32> to vector<1x2x2x64xf32>
    %182 = arith.mulf %178, %181 : vector<1x2x2x64xf32>
    %183 = arith.addf %177, %182 : vector<1x2x2x64xf32>
    %184 = vector.extract_strided_slice %1 {offsets = [0, 4, 2, 0], sizes = [1, 2, 2, 64], strides = [1, 1, 1, 1]} : vector<1x8x8x64xf32> to vector<1x2x2x64xf32>
    %185 = vector.extract_strided_slice %2 {offsets = [30, 0], sizes = [1, 64], strides = [1, 1]} : vector<49x64xf32> to vector<1x64xf32>
    %186 = vector.shape_cast %185 : vector<1x64xf32> to vector<1x1x1x64xf32>
    %187 = vector.broadcast %186 : vector<1x1x1x64xf32> to vector<1x2x2x64xf32>
    %188 = arith.mulf %184, %187 : vector<1x2x2x64xf32>
    %189 = arith.addf %183, %188 : vector<1x2x2x64xf32>
    %190 = vector.extract_strided_slice %1 {offsets = [0, 4, 3, 0], sizes = [1, 2, 2, 64], strides = [1, 1, 1, 1]} : vector<1x8x8x64xf32> to vector<1x2x2x64xf32>
    %191 = vector.extract_strided_slice %2 {offsets = [31, 0], sizes = [1, 64], strides = [1, 1]} : vector<49x64xf32> to vector<1x64xf32>
    %192 = vector.shape_cast %191 : vector<1x64xf32> to vector<1x1x1x64xf32>
    %193 = vector.broadcast %192 : vector<1x1x1x64xf32> to vector<1x2x2x64xf32>
    %194 = arith.mulf %190, %193 : vector<1x2x2x64xf32>
    %195 = arith.addf %189, %194 : vector<1x2x2x64xf32>
    %196 = vector.extract_strided_slice %1 {offsets = [0, 4, 4, 0], sizes = [1, 2, 2, 64], strides = [1, 1, 1, 1]} : vector<1x8x8x64xf32> to vector<1x2x2x64xf32>
    %197 = vector.extract_strided_slice %2 {offsets = [32, 0], sizes = [1, 64], strides = [1, 1]} : vector<49x64xf32> to vector<1x64xf32>
    %198 = vector.shape_cast %197 : vector<1x64xf32> to vector<1x1x1x64xf32>
    %199 = vector.broadcast %198 : vector<1x1x1x64xf32> to vector<1x2x2x64xf32>
    %200 = arith.mulf %196, %199 : vector<1x2x2x64xf32>
    %201 = arith.addf %195, %200 : vector<1x2x2x64xf32>
    %202 = vector.extract_strided_slice %1 {offsets = [0, 4, 5, 0], sizes = [1, 2, 2, 64], strides = [1, 1, 1, 1]} : vector<1x8x8x64xf32> to vector<1x2x2x64xf32>
    %203 = vector.extract_strided_slice %2 {offsets = [33, 0], sizes = [1, 64], strides = [1, 1]} : vector<49x64xf32> to vector<1x64xf32>
    %204 = vector.shape_cast %203 : vector<1x64xf32> to vector<1x1x1x64xf32>
    %205 = vector.broadcast %204 : vector<1x1x1x64xf32> to vector<1x2x2x64xf32>
    %206 = arith.mulf %202, %205 : vector<1x2x2x64xf32>
    %207 = arith.addf %201, %206 : vector<1x2x2x64xf32>
    %208 = vector.extract_strided_slice %1 {offsets = [0, 4, 6, 0], sizes = [1, 2, 2, 64], strides = [1, 1, 1, 1]} : vector<1x8x8x64xf32> to vector<1x2x2x64xf32>
    %209 = vector.extract_strided_slice %2 {offsets = [34, 0], sizes = [1, 64], strides = [1, 1]} : vector<49x64xf32> to vector<1x64xf32>
    %210 = vector.shape_cast %209 : vector<1x64xf32> to vector<1x1x1x64xf32>
    %211 = vector.broadcast %210 : vector<1x1x1x64xf32> to vector<1x2x2x64xf32>
    %212 = arith.mulf %208, %211 : vector<1x2x2x64xf32>
    %213 = arith.addf %207, %212 : vector<1x2x2x64xf32>
    %214 = vector.extract_strided_slice %1 {offsets = [0, 5, 0, 0], sizes = [1, 2, 2, 64], strides = [1, 1, 1, 1]} : vector<1x8x8x64xf32> to vector<1x2x2x64xf32>
    %215 = vector.extract_strided_slice %2 {offsets = [35, 0], sizes = [1, 64], strides = [1, 1]} : vector<49x64xf32> to vector<1x64xf32>
    %216 = vector.shape_cast %215 : vector<1x64xf32> to vector<1x1x1x64xf32>
    %217 = vector.broadcast %216 : vector<1x1x1x64xf32> to vector<1x2x2x64xf32>
    %218 = arith.mulf %214, %217 : vector<1x2x2x64xf32>
    %219 = arith.addf %213, %218 : vector<1x2x2x64xf32>
    %220 = vector.extract_strided_slice %1 {offsets = [0, 5, 1, 0], sizes = [1, 2, 2, 64], strides = [1, 1, 1, 1]} : vector<1x8x8x64xf32> to vector<1x2x2x64xf32>
    %221 = vector.extract_strided_slice %2 {offsets = [36, 0], sizes = [1, 64], strides = [1, 1]} : vector<49x64xf32> to vector<1x64xf32>
    %222 = vector.shape_cast %221 : vector<1x64xf32> to vector<1x1x1x64xf32>
    %223 = vector.broadcast %222 : vector<1x1x1x64xf32> to vector<1x2x2x64xf32>
    %224 = arith.mulf %220, %223 : vector<1x2x2x64xf32>
    %225 = arith.addf %219, %224 : vector<1x2x2x64xf32>
    %226 = vector.extract_strided_slice %1 {offsets = [0, 5, 2, 0], sizes = [1, 2, 2, 64], strides = [1, 1, 1, 1]} : vector<1x8x8x64xf32> to vector<1x2x2x64xf32>
    %227 = vector.extract_strided_slice %2 {offsets = [37, 0], sizes = [1, 64], strides = [1, 1]} : vector<49x64xf32> to vector<1x64xf32>
    %228 = vector.shape_cast %227 : vector<1x64xf32> to vector<1x1x1x64xf32>
    %229 = vector.broadcast %228 : vector<1x1x1x64xf32> to vector<1x2x2x64xf32>
    %230 = arith.mulf %226, %229 : vector<1x2x2x64xf32>
    %231 = arith.addf %225, %230 : vector<1x2x2x64xf32>
    %232 = vector.extract_strided_slice %1 {offsets = [0, 5, 3, 0], sizes = [1, 2, 2, 64], strides = [1, 1, 1, 1]} : vector<1x8x8x64xf32> to vector<1x2x2x64xf32>
    %233 = vector.extract_strided_slice %2 {offsets = [38, 0], sizes = [1, 64], strides = [1, 1]} : vector<49x64xf32> to vector<1x64xf32>
    %234 = vector.shape_cast %233 : vector<1x64xf32> to vector<1x1x1x64xf32>
    %235 = vector.broadcast %234 : vector<1x1x1x64xf32> to vector<1x2x2x64xf32>
    %236 = arith.mulf %232, %235 : vector<1x2x2x64xf32>
    %237 = arith.addf %231, %236 : vector<1x2x2x64xf32>
    %238 = vector.extract_strided_slice %1 {offsets = [0, 5, 4, 0], sizes = [1, 2, 2, 64], strides = [1, 1, 1, 1]} : vector<1x8x8x64xf32> to vector<1x2x2x64xf32>
    %239 = vector.extract_strided_slice %2 {offsets = [39, 0], sizes = [1, 64], strides = [1, 1]} : vector<49x64xf32> to vector<1x64xf32>
    %240 = vector.shape_cast %239 : vector<1x64xf32> to vector<1x1x1x64xf32>
    %241 = vector.broadcast %240 : vector<1x1x1x64xf32> to vector<1x2x2x64xf32>
    %242 = arith.mulf %238, %241 : vector<1x2x2x64xf32>
    %243 = arith.addf %237, %242 : vector<1x2x2x64xf32>
    %244 = vector.extract_strided_slice %1 {offsets = [0, 5, 5, 0], sizes = [1, 2, 2, 64], strides = [1, 1, 1, 1]} : vector<1x8x8x64xf32> to vector<1x2x2x64xf32>
    %245 = vector.extract_strided_slice %2 {offsets = [40, 0], sizes = [1, 64], strides = [1, 1]} : vector<49x64xf32> to vector<1x64xf32>
    %246 = vector.shape_cast %245 : vector<1x64xf32> to vector<1x1x1x64xf32>
    %247 = vector.broadcast %246 : vector<1x1x1x64xf32> to vector<1x2x2x64xf32>
    %248 = arith.mulf %244, %247 : vector<1x2x2x64xf32>
    %249 = arith.addf %243, %248 : vector<1x2x2x64xf32>
    %250 = vector.extract_strided_slice %1 {offsets = [0, 5, 6, 0], sizes = [1, 2, 2, 64], strides = [1, 1, 1, 1]} : vector<1x8x8x64xf32> to vector<1x2x2x64xf32>
    %251 = vector.extract_strided_slice %2 {offsets = [41, 0], sizes = [1, 64], strides = [1, 1]} : vector<49x64xf32> to vector<1x64xf32>
    %252 = vector.shape_cast %251 : vector<1x64xf32> to vector<1x1x1x64xf32>
    %253 = vector.broadcast %252 : vector<1x1x1x64xf32> to vector<1x2x2x64xf32>
    %254 = arith.mulf %250, %253 : vector<1x2x2x64xf32>
    %255 = arith.addf %249, %254 : vector<1x2x2x64xf32>
    %256 = vector.extract_strided_slice %1 {offsets = [0, 6, 0, 0], sizes = [1, 2, 2, 64], strides = [1, 1, 1, 1]} : vector<1x8x8x64xf32> to vector<1x2x2x64xf32>
    %257 = vector.extract_strided_slice %2 {offsets = [42, 0], sizes = [1, 64], strides = [1, 1]} : vector<49x64xf32> to vector<1x64xf32>
    %258 = vector.shape_cast %257 : vector<1x64xf32> to vector<1x1x1x64xf32>
    %259 = vector.broadcast %258 : vector<1x1x1x64xf32> to vector<1x2x2x64xf32>
    %260 = arith.mulf %256, %259 : vector<1x2x2x64xf32>
    %261 = arith.addf %255, %260 : vector<1x2x2x64xf32>
    %262 = vector.extract_strided_slice %1 {offsets = [0, 6, 1, 0], sizes = [1, 2, 2, 64], strides = [1, 1, 1, 1]} : vector<1x8x8x64xf32> to vector<1x2x2x64xf32>
    %263 = vector.extract_strided_slice %2 {offsets = [43, 0], sizes = [1, 64], strides = [1, 1]} : vector<49x64xf32> to vector<1x64xf32>
    %264 = vector.shape_cast %263 : vector<1x64xf32> to vector<1x1x1x64xf32>
    %265 = vector.broadcast %264 : vector<1x1x1x64xf32> to vector<1x2x2x64xf32>
    %266 = arith.mulf %262, %265 : vector<1x2x2x64xf32>
    %267 = arith.addf %261, %266 : vector<1x2x2x64xf32>
    %268 = vector.extract_strided_slice %1 {offsets = [0, 6, 2, 0], sizes = [1, 2, 2, 64], strides = [1, 1, 1, 1]} : vector<1x8x8x64xf32> to vector<1x2x2x64xf32>
    %269 = vector.extract_strided_slice %2 {offsets = [44, 0], sizes = [1, 64], strides = [1, 1]} : vector<49x64xf32> to vector<1x64xf32>
    %270 = vector.shape_cast %269 : vector<1x64xf32> to vector<1x1x1x64xf32>
    %271 = vector.broadcast %270 : vector<1x1x1x64xf32> to vector<1x2x2x64xf32>
    %272 = arith.mulf %268, %271 : vector<1x2x2x64xf32>
    %273 = arith.addf %267, %272 : vector<1x2x2x64xf32>
    %274 = vector.extract_strided_slice %1 {offsets = [0, 6, 3, 0], sizes = [1, 2, 2, 64], strides = [1, 1, 1, 1]} : vector<1x8x8x64xf32> to vector<1x2x2x64xf32>
    %275 = vector.extract_strided_slice %2 {offsets = [45, 0], sizes = [1, 64], strides = [1, 1]} : vector<49x64xf32> to vector<1x64xf32>
    %276 = vector.shape_cast %275 : vector<1x64xf32> to vector<1x1x1x64xf32>
    %277 = vector.broadcast %276 : vector<1x1x1x64xf32> to vector<1x2x2x64xf32>
    %278 = arith.mulf %274, %277 : vector<1x2x2x64xf32>
    %279 = arith.addf %273, %278 : vector<1x2x2x64xf32>
    %280 = vector.extract_strided_slice %1 {offsets = [0, 6, 4, 0], sizes = [1, 2, 2, 64], strides = [1, 1, 1, 1]} : vector<1x8x8x64xf32> to vector<1x2x2x64xf32>
    %281 = vector.extract_strided_slice %2 {offsets = [46, 0], sizes = [1, 64], strides = [1, 1]} : vector<49x64xf32> to vector<1x64xf32>
    %282 = vector.shape_cast %281 : vector<1x64xf32> to vector<1x1x1x64xf32>
    %283 = vector.broadcast %282 : vector<1x1x1x64xf32> to vector<1x2x2x64xf32>
    %284 = arith.mulf %280, %283 : vector<1x2x2x64xf32>
    %285 = arith.addf %279, %284 : vector<1x2x2x64xf32>
    %286 = vector.extract_strided_slice %1 {offsets = [0, 6, 5, 0], sizes = [1, 2, 2, 64], strides = [1, 1, 1, 1]} : vector<1x8x8x64xf32> to vector<1x2x2x64xf32>
    %287 = vector.extract_strided_slice %2 {offsets = [47, 0], sizes = [1, 64], strides = [1, 1]} : vector<49x64xf32> to vector<1x64xf32>
    %288 = vector.shape_cast %287 : vector<1x64xf32> to vector<1x1x1x64xf32>
    %289 = vector.broadcast %288 : vector<1x1x1x64xf32> to vector<1x2x2x64xf32>
    %290 = arith.mulf %286, %289 : vector<1x2x2x64xf32>
    %291 = arith.addf %285, %290 : vector<1x2x2x64xf32>
    %292 = vector.extract_strided_slice %1 {offsets = [0, 6, 6, 0], sizes = [1, 2, 2, 64], strides = [1, 1, 1, 1]} : vector<1x8x8x64xf32> to vector<1x2x2x64xf32>
    %293 = vector.extract_strided_slice %2 {offsets = [48, 0], sizes = [1, 64], strides = [1, 1]} : vector<49x64xf32> to vector<1x64xf32>
    %294 = vector.shape_cast %293 : vector<1x64xf32> to vector<1x1x1x64xf32>
    %295 = vector.broadcast %294 : vector<1x1x1x64xf32> to vector<1x2x2x64xf32>
    %296 = arith.mulf %292, %295 : vector<1x2x2x64xf32>
    %297 = arith.addf %291, %296 : vector<1x2x2x64xf32>
    %298 = arith.truncf %297 : vector<1x2x2x64xf32> to vector<1x2x2x64xbf16>
    %c0_5 = arith.constant 0 : index
    %c0_6 = arith.constant 0 : index
    %c0_7 = arith.constant 0 : index
    %c0_8 = arith.constant 0 : index
    %299 = vector.load %arg3[%c0_5, %c0_6, %c0_7, %c0_8] : memref<1x2x2x64xbf16, #tpu.memory_space<vmem>>, vector<1x2x2x64xbf16>
    tpu.vector_store %arg3[%c0_5, %c0_6, %c0_7, %c0_8], %298 {strides = array<i32>} : memref<1x2x2x64xbf16, #tpu.memory_space<vmem>>, vector<1x2x2x64xbf16>,
    return
  }
  func.func @transform_0(%arg0: i32) -> (i32, i32, i32, i32) {
    %c0_i32 = arith.constant 0 : i32
    %c0_i32_0 = arith.constant 0 : i32
    %c0_i32_1 = arith.constant 0 : i32
    %c0_i32_2 = arith.constant 0 : i32
    return %arg0, %c0_i32, %c0_i32_0, %c0_i32_1 : i32, i32, i32, i32
  }
  func.func @transform_1(%arg0: i32) -> (i32, i32) {
    %c0_i32 = arith.constant 0 : i32
    %c0_i32_0 = arith.constant 0 : i32
    %c0_i32_1 = arith.constant 0 : i32
    return %c0_i32, %c0_i32_0 : i32, i32
  }
  func.func @transform_2(%arg0: i32) -> (i32, i32, i32, i32) {
    %c0_i32 = arith.constant 0 : i32
    %c0_i32_0 = arith.constant 0 : i32
    %c0_i32_1 = arith.constant 0 : i32
    %c0_i32_2 = arith.constant 0 : i32
    return %arg0, %c0_i32, %c0_i32_0, %c0_i32_1 : i32, i32, i32, i32
  }
}

module attributes {stable_mosaic.version = 11 : i64} {
  func.func @_gemm_kernel(%arg0: i32, %arg1: i32, %arg2: i32, %arg3: memref<16x384xbf16, #tpu.memory_space<vmem>>, %arg4: memref<384x128xbf16, #tpu.memory_space<vmem>>, %arg5: memref<1x128xf32, #tpu.memory_space<vmem>>, %arg6: memref<16x128xbf16, #tpu.memory_space<vmem>>, %arg7: memref<16x128xf32, #tpu.memory_space<vmem>>) attributes {dimension_semantics = [#tpu.dimension_semantics<parallel>, #tpu.dimension_semantics<parallel>, #tpu.dimension_semantics<arbitrary>], iteration_bounds = array<i64: 1, 1, 1>, scalar_prefetch = 0 : i64, scratch_operands = 1 : i64, tpu.core_type = #tpu.core_type<tc>, window_params = [{transform_indices = @transform_0, window_bounds = array<i64: 16, 384>}, {transform_indices = @transform_1, window_bounds = array<i64: 384, 128>}, {transform_indices = @transform_2, window_bounds = array<i64: 1, 128>}, {transform_indices = @transform_3, window_bounds = array<i64: 16, 128>}]} {
    %c0_i32 = arith.constant 0 : i32
    %0 = arith.cmpi eq, %arg2, %c0_i32 : i32
    %1 = arith.extui %0 : i1 to i32
    %c0_i32_0 = arith.constant 0 : i32
    %2 = arith.cmpi ne, %1, %c0_i32_0 : i32
    scf.if %2 {
      %cst_10 = arith.constant 0.000000e+00 : f32
      %12 = vector.broadcast %cst_10 : f32 to vector<16x128xf32>
      %c0_11 = arith.constant 0 : index
      %c0_12 = arith.constant 0 : index
      %13 = vector.load %arg7[%c0_11, %c0_12] : memref<16x128xf32, #tpu.memory_space<vmem>>, vector<16x128xf32>
      tpu.vector_store %arg7[%c0_11, %c0_12], %12 {strides = array<i32>} : memref<16x128xf32, #tpu.memory_space<vmem>>, vector<16x128xf32>,
    } else {
    }
    %c0 = arith.constant 0 : index
    %c0_1 = arith.constant 0 : index
    %3 = vector.load %arg3[%c0, %c0_1] : memref<16x384xbf16, #tpu.memory_space<vmem>>, vector<16x384xbf16>
    %c0_2 = arith.constant 0 : index
    %c0_3 = arith.constant 0 : index
    %4 = vector.load %arg7[%c0_2, %c0_3] : memref<16x128xf32, #tpu.memory_space<vmem>>, vector<16x128xf32>
    %c0_4 = arith.constant 0 : index
    %c0_5 = arith.constant 0 : index
    %5 = vector.load %arg4[%c0_4, %c0_5] : memref<384x128xbf16, #tpu.memory_space<vmem>>, vector<384x128xbf16>
    %cst = arith.constant dense<0.000000e+00> : vector<16x128xf32>
    %6 = tpu.matmul %3, %5, %cst {dimension_numbers = #tpu.dot_dimension_numbers<[1], [0], [0], [1], [0, 0, 1, 1], [], []>} : vector<16x384xbf16>, vector<384x128xbf16>, vector<16x128xf32> -> vector<16x128xf32>
    %7 = arith.addf %4, %6 : vector<16x128xf32>
    %c0_6 = arith.constant 0 : index
    %c0_7 = arith.constant 0 : index
    %8 = vector.load %arg7[%c0_6, %c0_7] : memref<16x128xf32, #tpu.memory_space<vmem>>, vector<16x128xf32>
    tpu.vector_store %arg7[%c0_6, %c0_7], %7 {strides = array<i32>} : memref<16x128xf32, #tpu.memory_space<vmem>>, vector<16x128xf32>,
    %c0_i32_8 = arith.constant 0 : i32
    %9 = arith.cmpi eq, %arg2, %c0_i32_8 : i32
    %10 = arith.extui %9 : i1 to i32
    %c0_i32_9 = arith.constant 0 : i32
    %11 = arith.cmpi ne, %10, %c0_i32_9 : i32
    scf.if %11 {
      %c0_10 = arith.constant 0 : index
      %c0_11 = arith.constant 0 : index
      %12 = vector.load %arg7[%c0_10, %c0_11] : memref<16x128xf32, #tpu.memory_space<vmem>>, vector<16x128xf32>
      %c0_12 = arith.constant 0 : index
      %c0_13 = arith.constant 0 : index
      %13 = vector.load %arg5[%c0_12, %c0_13] : memref<1x128xf32, #tpu.memory_space<vmem>>, vector<1x128xf32>
      %14 = vector.broadcast %13 : vector<1x128xf32> to vector<16x128xf32>
      %15 = arith.addf %12, %14 : vector<16x128xf32>
      %16 = arith.truncf %15 : vector<16x128xf32> to vector<16x128xbf16>
      %c0_14 = arith.constant 0 : index
      %c0_15 = arith.constant 0 : index
      %17 = vector.load %arg6[%c0_14, %c0_15] : memref<16x128xbf16, #tpu.memory_space<vmem>>, vector<16x128xbf16>
      tpu.vector_store %arg6[%c0_14, %c0_15], %16 {strides = array<i32>} : memref<16x128xbf16, #tpu.memory_space<vmem>>, vector<16x128xbf16>,
    } else {
    }
    return
  }
  func.func @transform_0(%arg0: i32, %arg1: i32, %arg2: i32) -> (i32, i32) {
    %c0_i32 = arith.constant 0 : i32
    return %arg0, %arg2 : i32, i32
  }
  func.func @transform_1(%arg0: i32, %arg1: i32, %arg2: i32) -> (i32, i32) {
    %c0_i32 = arith.constant 0 : i32
    return %arg2, %arg1 : i32, i32
  }
  func.func @transform_2(%arg0: i32, %arg1: i32, %arg2: i32) -> (i32, i32) {
    %c0_i32 = arith.constant 0 : i32
    %c0_i32_0 = arith.constant 0 : i32
    return %c0_i32, %arg1 : i32, i32
  }
  func.func @transform_3(%arg0: i32, %arg1: i32, %arg2: i32) -> (i32, i32) {
    %c0_i32 = arith.constant 0 : i32
    return %arg0, %arg1 : i32, i32
  }
}

module attributes {stable_mosaic.version = 11 : i64} {
  func.func @_bn_stats_kernel(%arg0: i32, %arg1: memref<16x64xbf16, #tpu.memory_space<vmem>>, %arg2: memref<1x64xf32, #tpu.memory_space<vmem>>, %arg3: memref<1x64xf32, #tpu.memory_space<vmem>>) attributes {dimension_semantics = [#tpu.dimension_semantics<arbitrary>], iteration_bounds = array<i64: 1>, scalar_prefetch = 0 : i64, scratch_operands = 0 : i64, tpu.core_type = #tpu.core_type<tc>, window_params = [{transform_indices = @transform_0, window_bounds = array<i64: 16, 64>}, {pipeline_mode = #tpu.pipeline_mode<synchronous>, transform_indices = @transform_1, window_bounds = array<i64: 1, 64>}, {pipeline_mode = #tpu.pipeline_mode<synchronous>, transform_indices = @transform_2, window_bounds = array<i64: 1, 64>}]} {
    %c0_i32 = arith.constant 0 : i32
    %0 = arith.cmpi eq, %arg0, %c0_i32 : i32
    %1 = arith.extui %0 : i1 to i32
    %c0_i32_0 = arith.constant 0 : i32
    %2 = arith.cmpi ne, %1, %c0_i32_0 : i32
    scf.if %2 {
      %cst_11 = arith.constant 0.000000e+00 : f32
      %16 = vector.broadcast %cst_11 : f32 to vector<1x64xf32>
      %c0_12 = arith.constant 0 : index
      %c0_13 = arith.constant 0 : index
      %17 = vector.load %arg2[%c0_12, %c0_13] : memref<1x64xf32, #tpu.memory_space<vmem>>, vector<1x64xf32>
      tpu.vector_store %arg2[%c0_12, %c0_13], %16 {strides = array<i32>} : memref<1x64xf32, #tpu.memory_space<vmem>>, vector<1x64xf32>,
      %cst_14 = arith.constant 0.000000e+00 : f32
      %18 = vector.broadcast %cst_14 : f32 to vector<1x64xf32>
      %c0_15 = arith.constant 0 : index
      %c0_16 = arith.constant 0 : index
      %19 = vector.load %arg3[%c0_15, %c0_16] : memref<1x64xf32, #tpu.memory_space<vmem>>, vector<1x64xf32>
      tpu.vector_store %arg3[%c0_15, %c0_16], %18 {strides = array<i32>} : memref<1x64xf32, #tpu.memory_space<vmem>>, vector<1x64xf32>,
    } else {
    }
    %c0 = arith.constant 0 : index
    %c0_1 = arith.constant 0 : index
    %3 = vector.load %arg1[%c0, %c0_1] : memref<16x64xbf16, #tpu.memory_space<vmem>>, vector<16x64xbf16>
    %4 = arith.extf %3 : vector<16x64xbf16> to vector<16x64xf32>
    %c0_2 = arith.constant 0 : index
    %c0_3 = arith.constant 0 : index
    %5 = vector.load %arg2[%c0_2, %c0_3] : memref<1x64xf32, #tpu.memory_space<vmem>>, vector<1x64xf32>
    %cst = arith.constant dense<0.000000e+00> : vector<64xf32>
    %6 = vector.multi_reduction <add>, %4, %cst [0] : vector<16x64xf32> to vector<64xf32>
    %7 = vector.shape_cast %6 : vector<64xf32> to vector<1x64xf32>
    %8 = arith.addf %5, %7 : vector<1x64xf32>
    %c0_4 = arith.constant 0 : index
    %c0_5 = arith.constant 0 : index
    %9 = vector.load %arg2[%c0_4, %c0_5] : memref<1x64xf32, #tpu.memory_space<vmem>>, vector<1x64xf32>
    tpu.vector_store %arg2[%c0_4, %c0_5], %8 {strides = array<i32>} : memref<1x64xf32, #tpu.memory_space<vmem>>, vector<1x64xf32>,
    %c0_6 = arith.constant 0 : index
    %c0_7 = arith.constant 0 : index
    %10 = vector.load %arg3[%c0_6, %c0_7] : memref<1x64xf32, #tpu.memory_space<vmem>>, vector<1x64xf32>
    %11 = arith.mulf %4, %4 : vector<16x64xf32>
    %cst_8 = arith.constant dense<0.000000e+00> : vector<64xf32>
    %12 = vector.multi_reduction <add>, %11, %cst_8 [0] : vector<16x64xf32> to vector<64xf32>
    %13 = vector.shape_cast %12 : vector<64xf32> to vector<1x64xf32>
    %14 = arith.addf %10, %13 : vector<1x64xf32>
    %c0_9 = arith.constant 0 : index
    %c0_10 = arith.constant 0 : index
    %15 = vector.load %arg3[%c0_9, %c0_10] : memref<1x64xf32, #tpu.memory_space<vmem>>, vector<1x64xf32>
    tpu.vector_store %arg3[%c0_9, %c0_10], %14 {strides = array<i32>} : memref<1x64xf32, #tpu.memory_space<vmem>>, vector<1x64xf32>,
    return
  }
  func.func @transform_0(%arg0: i32) -> (i32, i32) {
    %c0_i32 = arith.constant 0 : i32
    %c0_i32_0 = arith.constant 0 : i32
    return %arg0, %c0_i32 : i32, i32
  }
  func.func @transform_1(%arg0: i32) -> (i32, i32) {
    %c0_i32 = arith.constant 0 : i32
    %c0_i32_0 = arith.constant 0 : i32
    %c0_i32_1 = arith.constant 0 : i32
    return %c0_i32, %c0_i32_0 : i32, i32
  }
  func.func @transform_2(%arg0: i32) -> (i32, i32) {
    %c0_i32 = arith.constant 0 : i32
    %c0_i32_0 = arith.constant 0 : i32
    %c0_i32_1 = arith.constant 0 : i32
    return %c0_i32, %c0_i32_0 : i32, i32
  }
}

module attributes {stable_mosaic.version = 11 : i64} {
  func.func @_dwconv_kernel(%arg0: i32, %arg1: memref<1x7x7x128xbf16, #tpu.memory_space<vmem>>, %arg2: memref<49x128xf32, #tpu.memory_space<vmem>>, %arg3: memref<1x1x1x128xbf16, #tpu.memory_space<vmem>>) attributes {dimension_semantics = [#tpu.dimension_semantics<parallel>], iteration_bounds = array<i64: 2>, scalar_prefetch = 0 : i64, scratch_operands = 0 : i64, tpu.core_type = #tpu.core_type<tc>, window_params = [{transform_indices = @transform_0, window_bounds = array<i64: 1, 7, 7, 128>}, {pipeline_mode = #tpu.pipeline_mode<synchronous>, transform_indices = @transform_1, window_bounds = array<i64: 49, 128>}, {transform_indices = @transform_2, window_bounds = array<i64: 1, 1, 1, 128>}]} {
    %c0 = arith.constant 0 : index
    %c0_0 = arith.constant 0 : index
    %c0_1 = arith.constant 0 : index
    %c0_2 = arith.constant 0 : index
    %0 = vector.load %arg1[%c0, %c0_0, %c0_1, %c0_2] : memref<1x7x7x128xbf16, #tpu.memory_space<vmem>>, vector<1x7x7x128xbf16>
    %1 = arith.extf %0 : vector<1x7x7x128xbf16> to vector<1x7x7x128xf32>
    %c0_3 = arith.constant 0 : index
    %c0_4 = arith.constant 0 : index
    %2 = vector.load %arg2[%c0_3, %c0_4] : memref<49x128xf32, #tpu.memory_space<vmem>>, vector<49x128xf32>
    %cst = arith.constant 0.000000e+00 : f32
    %3 = vector.broadcast %cst : f32 to vector<1x1x1x128xf32>
    %4 = vector.extract_strided_slice %1 {offsets = [0, 0, 0, 0], sizes = [1, 1, 1, 128], strides = [1, 1, 1, 1]} : vector<1x7x7x128xf32> to vector<1x1x1x128xf32>
    %5 = vector.extract_strided_slice %2 {offsets = [0, 0], sizes = [1, 128], strides = [1, 1]} : vector<49x128xf32> to vector<1x128xf32>
    %6 = vector.shape_cast %5 : vector<1x128xf32> to vector<1x1x1x128xf32>
    %7 = arith.mulf %4, %6 : vector<1x1x1x128xf32>
    %8 = arith.addf %3, %7 : vector<1x1x1x128xf32>
    %9 = vector.extract_strided_slice %1 {offsets = [0, 0, 1, 0], sizes = [1, 1, 1, 128], strides = [1, 1, 1, 1]} : vector<1x7x7x128xf32> to vector<1x1x1x128xf32>
    %10 = vector.extract_strided_slice %2 {offsets = [1, 0], sizes = [1, 128], strides = [1, 1]} : vector<49x128xf32> to vector<1x128xf32>
    %11 = vector.shape_cast %10 : vector<1x128xf32> to vector<1x1x1x128xf32>
    %12 = arith.mulf %9, %11 : vector<1x1x1x128xf32>
    %13 = arith.addf %8, %12 : vector<1x1x1x128xf32>
    %14 = vector.extract_strided_slice %1 {offsets = [0, 0, 2, 0], sizes = [1, 1, 1, 128], strides = [1, 1, 1, 1]} : vector<1x7x7x128xf32> to vector<1x1x1x128xf32>
    %15 = vector.extract_strided_slice %2 {offsets = [2, 0], sizes = [1, 128], strides = [1, 1]} : vector<49x128xf32> to vector<1x128xf32>
    %16 = vector.shape_cast %15 : vector<1x128xf32> to vector<1x1x1x128xf32>
    %17 = arith.mulf %14, %16 : vector<1x1x1x128xf32>
    %18 = arith.addf %13, %17 : vector<1x1x1x128xf32>
    %19 = vector.extract_strided_slice %1 {offsets = [0, 0, 3, 0], sizes = [1, 1, 1, 128], strides = [1, 1, 1, 1]} : vector<1x7x7x128xf32> to vector<1x1x1x128xf32>
    %20 = vector.extract_strided_slice %2 {offsets = [3, 0], sizes = [1, 128], strides = [1, 1]} : vector<49x128xf32> to vector<1x128xf32>
    %21 = vector.shape_cast %20 : vector<1x128xf32> to vector<1x1x1x128xf32>
    %22 = arith.mulf %19, %21 : vector<1x1x1x128xf32>
    %23 = arith.addf %18, %22 : vector<1x1x1x128xf32>
    %24 = vector.extract_strided_slice %1 {offsets = [0, 0, 4, 0], sizes = [1, 1, 1, 128], strides = [1, 1, 1, 1]} : vector<1x7x7x128xf32> to vector<1x1x1x128xf32>
    %25 = vector.extract_strided_slice %2 {offsets = [4, 0], sizes = [1, 128], strides = [1, 1]} : vector<49x128xf32> to vector<1x128xf32>
    %26 = vector.shape_cast %25 : vector<1x128xf32> to vector<1x1x1x128xf32>
    %27 = arith.mulf %24, %26 : vector<1x1x1x128xf32>
    %28 = arith.addf %23, %27 : vector<1x1x1x128xf32>
    %29 = vector.extract_strided_slice %1 {offsets = [0, 0, 5, 0], sizes = [1, 1, 1, 128], strides = [1, 1, 1, 1]} : vector<1x7x7x128xf32> to vector<1x1x1x128xf32>
    %30 = vector.extract_strided_slice %2 {offsets = [5, 0], sizes = [1, 128], strides = [1, 1]} : vector<49x128xf32> to vector<1x128xf32>
    %31 = vector.shape_cast %30 : vector<1x128xf32> to vector<1x1x1x128xf32>
    %32 = arith.mulf %29, %31 : vector<1x1x1x128xf32>
    %33 = arith.addf %28, %32 : vector<1x1x1x128xf32>
    %34 = vector.extract_strided_slice %1 {offsets = [0, 0, 6, 0], sizes = [1, 1, 1, 128], strides = [1, 1, 1, 1]} : vector<1x7x7x128xf32> to vector<1x1x1x128xf32>
    %35 = vector.extract_strided_slice %2 {offsets = [6, 0], sizes = [1, 128], strides = [1, 1]} : vector<49x128xf32> to vector<1x128xf32>
    %36 = vector.shape_cast %35 : vector<1x128xf32> to vector<1x1x1x128xf32>
    %37 = arith.mulf %34, %36 : vector<1x1x1x128xf32>
    %38 = arith.addf %33, %37 : vector<1x1x1x128xf32>
    %39 = vector.extract_strided_slice %1 {offsets = [0, 1, 0, 0], sizes = [1, 1, 1, 128], strides = [1, 1, 1, 1]} : vector<1x7x7x128xf32> to vector<1x1x1x128xf32>
    %40 = vector.extract_strided_slice %2 {offsets = [7, 0], sizes = [1, 128], strides = [1, 1]} : vector<49x128xf32> to vector<1x128xf32>
    %41 = vector.shape_cast %40 : vector<1x128xf32> to vector<1x1x1x128xf32>
    %42 = arith.mulf %39, %41 : vector<1x1x1x128xf32>
    %43 = arith.addf %38, %42 : vector<1x1x1x128xf32>
    %44 = vector.extract_strided_slice %1 {offsets = [0, 1, 1, 0], sizes = [1, 1, 1, 128], strides = [1, 1, 1, 1]} : vector<1x7x7x128xf32> to vector<1x1x1x128xf32>
    %45 = vector.extract_strided_slice %2 {offsets = [8, 0], sizes = [1, 128], strides = [1, 1]} : vector<49x128xf32> to vector<1x128xf32>
    %46 = vector.shape_cast %45 : vector<1x128xf32> to vector<1x1x1x128xf32>
    %47 = arith.mulf %44, %46 : vector<1x1x1x128xf32>
    %48 = arith.addf %43, %47 : vector<1x1x1x128xf32>
    %49 = vector.extract_strided_slice %1 {offsets = [0, 1, 2, 0], sizes = [1, 1, 1, 128], strides = [1, 1, 1, 1]} : vector<1x7x7x128xf32> to vector<1x1x1x128xf32>
    %50 = vector.extract_strided_slice %2 {offsets = [9, 0], sizes = [1, 128], strides = [1, 1]} : vector<49x128xf32> to vector<1x128xf32>
    %51 = vector.shape_cast %50 : vector<1x128xf32> to vector<1x1x1x128xf32>
    %52 = arith.mulf %49, %51 : vector<1x1x1x128xf32>
    %53 = arith.addf %48, %52 : vector<1x1x1x128xf32>
    %54 = vector.extract_strided_slice %1 {offsets = [0, 1, 3, 0], sizes = [1, 1, 1, 128], strides = [1, 1, 1, 1]} : vector<1x7x7x128xf32> to vector<1x1x1x128xf32>
    %55 = vector.extract_strided_slice %2 {offsets = [10, 0], sizes = [1, 128], strides = [1, 1]} : vector<49x128xf32> to vector<1x128xf32>
    %56 = vector.shape_cast %55 : vector<1x128xf32> to vector<1x1x1x128xf32>
    %57 = arith.mulf %54, %56 : vector<1x1x1x128xf32>
    %58 = arith.addf %53, %57 : vector<1x1x1x128xf32>
    %59 = vector.extract_strided_slice %1 {offsets = [0, 1, 4, 0], sizes = [1, 1, 1, 128], strides = [1, 1, 1, 1]} : vector<1x7x7x128xf32> to vector<1x1x1x128xf32>
    %60 = vector.extract_strided_slice %2 {offsets = [11, 0], sizes = [1, 128], strides = [1, 1]} : vector<49x128xf32> to vector<1x128xf32>
    %61 = vector.shape_cast %60 : vector<1x128xf32> to vector<1x1x1x128xf32>
    %62 = arith.mulf %59, %61 : vector<1x1x1x128xf32>
    %63 = arith.addf %58, %62 : vector<1x1x1x128xf32>
    %64 = vector.extract_strided_slice %1 {offsets = [0, 1, 5, 0], sizes = [1, 1, 1, 128], strides = [1, 1, 1, 1]} : vector<1x7x7x128xf32> to vector<1x1x1x128xf32>
    %65 = vector.extract_strided_slice %2 {offsets = [12, 0], sizes = [1, 128], strides = [1, 1]} : vector<49x128xf32> to vector<1x128xf32>
    %66 = vector.shape_cast %65 : vector<1x128xf32> to vector<1x1x1x128xf32>
    %67 = arith.mulf %64, %66 : vector<1x1x1x128xf32>
    %68 = arith.addf %63, %67 : vector<1x1x1x128xf32>
    %69 = vector.extract_strided_slice %1 {offsets = [0, 1, 6, 0], sizes = [1, 1, 1, 128], strides = [1, 1, 1, 1]} : vector<1x7x7x128xf32> to vector<1x1x1x128xf32>
    %70 = vector.extract_strided_slice %2 {offsets = [13, 0], sizes = [1, 128], strides = [1, 1]} : vector<49x128xf32> to vector<1x128xf32>
    %71 = vector.shape_cast %70 : vector<1x128xf32> to vector<1x1x1x128xf32>
    %72 = arith.mulf %69, %71 : vector<1x1x1x128xf32>
    %73 = arith.addf %68, %72 : vector<1x1x1x128xf32>
    %74 = vector.extract_strided_slice %1 {offsets = [0, 2, 0, 0], sizes = [1, 1, 1, 128], strides = [1, 1, 1, 1]} : vector<1x7x7x128xf32> to vector<1x1x1x128xf32>
    %75 = vector.extract_strided_slice %2 {offsets = [14, 0], sizes = [1, 128], strides = [1, 1]} : vector<49x128xf32> to vector<1x128xf32>
    %76 = vector.shape_cast %75 : vector<1x128xf32> to vector<1x1x1x128xf32>
    %77 = arith.mulf %74, %76 : vector<1x1x1x128xf32>
    %78 = arith.addf %73, %77 : vector<1x1x1x128xf32>
    %79 = vector.extract_strided_slice %1 {offsets = [0, 2, 1, 0], sizes = [1, 1, 1, 128], strides = [1, 1, 1, 1]} : vector<1x7x7x128xf32> to vector<1x1x1x128xf32>
    %80 = vector.extract_strided_slice %2 {offsets = [15, 0], sizes = [1, 128], strides = [1, 1]} : vector<49x128xf32> to vector<1x128xf32>
    %81 = vector.shape_cast %80 : vector<1x128xf32> to vector<1x1x1x128xf32>
    %82 = arith.mulf %79, %81 : vector<1x1x1x128xf32>
    %83 = arith.addf %78, %82 : vector<1x1x1x128xf32>
    %84 = vector.extract_strided_slice %1 {offsets = [0, 2, 2, 0], sizes = [1, 1, 1, 128], strides = [1, 1, 1, 1]} : vector<1x7x7x128xf32> to vector<1x1x1x128xf32>
    %85 = vector.extract_strided_slice %2 {offsets = [16, 0], sizes = [1, 128], strides = [1, 1]} : vector<49x128xf32> to vector<1x128xf32>
    %86 = vector.shape_cast %85 : vector<1x128xf32> to vector<1x1x1x128xf32>
    %87 = arith.mulf %84, %86 : vector<1x1x1x128xf32>
    %88 = arith.addf %83, %87 : vector<1x1x1x128xf32>
    %89 = vector.extract_strided_slice %1 {offsets = [0, 2, 3, 0], sizes = [1, 1, 1, 128], strides = [1, 1, 1, 1]} : vector<1x7x7x128xf32> to vector<1x1x1x128xf32>
    %90 = vector.extract_strided_slice %2 {offsets = [17, 0], sizes = [1, 128], strides = [1, 1]} : vector<49x128xf32> to vector<1x128xf32>
    %91 = vector.shape_cast %90 : vector<1x128xf32> to vector<1x1x1x128xf32>
    %92 = arith.mulf %89, %91 : vector<1x1x1x128xf32>
    %93 = arith.addf %88, %92 : vector<1x1x1x128xf32>
    %94 = vector.extract_strided_slice %1 {offsets = [0, 2, 4, 0], sizes = [1, 1, 1, 128], strides = [1, 1, 1, 1]} : vector<1x7x7x128xf32> to vector<1x1x1x128xf32>
    %95 = vector.extract_strided_slice %2 {offsets = [18, 0], sizes = [1, 128], strides = [1, 1]} : vector<49x128xf32> to vector<1x128xf32>
    %96 = vector.shape_cast %95 : vector<1x128xf32> to vector<1x1x1x128xf32>
    %97 = arith.mulf %94, %96 : vector<1x1x1x128xf32>
    %98 = arith.addf %93, %97 : vector<1x1x1x128xf32>
    %99 = vector.extract_strided_slice %1 {offsets = [0, 2, 5, 0], sizes = [1, 1, 1, 128], strides = [1, 1, 1, 1]} : vector<1x7x7x128xf32> to vector<1x1x1x128xf32>
    %100 = vector.extract_strided_slice %2 {offsets = [19, 0], sizes = [1, 128], strides = [1, 1]} : vector<49x128xf32> to vector<1x128xf32>
    %101 = vector.shape_cast %100 : vector<1x128xf32> to vector<1x1x1x128xf32>
    %102 = arith.mulf %99, %101 : vector<1x1x1x128xf32>
    %103 = arith.addf %98, %102 : vector<1x1x1x128xf32>
    %104 = vector.extract_strided_slice %1 {offsets = [0, 2, 6, 0], sizes = [1, 1, 1, 128], strides = [1, 1, 1, 1]} : vector<1x7x7x128xf32> to vector<1x1x1x128xf32>
    %105 = vector.extract_strided_slice %2 {offsets = [20, 0], sizes = [1, 128], strides = [1, 1]} : vector<49x128xf32> to vector<1x128xf32>
    %106 = vector.shape_cast %105 : vector<1x128xf32> to vector<1x1x1x128xf32>
    %107 = arith.mulf %104, %106 : vector<1x1x1x128xf32>
    %108 = arith.addf %103, %107 : vector<1x1x1x128xf32>
    %109 = vector.extract_strided_slice %1 {offsets = [0, 3, 0, 0], sizes = [1, 1, 1, 128], strides = [1, 1, 1, 1]} : vector<1x7x7x128xf32> to vector<1x1x1x128xf32>
    %110 = vector.extract_strided_slice %2 {offsets = [21, 0], sizes = [1, 128], strides = [1, 1]} : vector<49x128xf32> to vector<1x128xf32>
    %111 = vector.shape_cast %110 : vector<1x128xf32> to vector<1x1x1x128xf32>
    %112 = arith.mulf %109, %111 : vector<1x1x1x128xf32>
    %113 = arith.addf %108, %112 : vector<1x1x1x128xf32>
    %114 = vector.extract_strided_slice %1 {offsets = [0, 3, 1, 0], sizes = [1, 1, 1, 128], strides = [1, 1, 1, 1]} : vector<1x7x7x128xf32> to vector<1x1x1x128xf32>
    %115 = vector.extract_strided_slice %2 {offsets = [22, 0], sizes = [1, 128], strides = [1, 1]} : vector<49x128xf32> to vector<1x128xf32>
    %116 = vector.shape_cast %115 : vector<1x128xf32> to vector<1x1x1x128xf32>
    %117 = arith.mulf %114, %116 : vector<1x1x1x128xf32>
    %118 = arith.addf %113, %117 : vector<1x1x1x128xf32>
    %119 = vector.extract_strided_slice %1 {offsets = [0, 3, 2, 0], sizes = [1, 1, 1, 128], strides = [1, 1, 1, 1]} : vector<1x7x7x128xf32> to vector<1x1x1x128xf32>
    %120 = vector.extract_strided_slice %2 {offsets = [23, 0], sizes = [1, 128], strides = [1, 1]} : vector<49x128xf32> to vector<1x128xf32>
    %121 = vector.shape_cast %120 : vector<1x128xf32> to vector<1x1x1x128xf32>
    %122 = arith.mulf %119, %121 : vector<1x1x1x128xf32>
    %123 = arith.addf %118, %122 : vector<1x1x1x128xf32>
    %124 = vector.extract_strided_slice %1 {offsets = [0, 3, 3, 0], sizes = [1, 1, 1, 128], strides = [1, 1, 1, 1]} : vector<1x7x7x128xf32> to vector<1x1x1x128xf32>
    %125 = vector.extract_strided_slice %2 {offsets = [24, 0], sizes = [1, 128], strides = [1, 1]} : vector<49x128xf32> to vector<1x128xf32>
    %126 = vector.shape_cast %125 : vector<1x128xf32> to vector<1x1x1x128xf32>
    %127 = arith.mulf %124, %126 : vector<1x1x1x128xf32>
    %128 = arith.addf %123, %127 : vector<1x1x1x128xf32>
    %129 = vector.extract_strided_slice %1 {offsets = [0, 3, 4, 0], sizes = [1, 1, 1, 128], strides = [1, 1, 1, 1]} : vector<1x7x7x128xf32> to vector<1x1x1x128xf32>
    %130 = vector.extract_strided_slice %2 {offsets = [25, 0], sizes = [1, 128], strides = [1, 1]} : vector<49x128xf32> to vector<1x128xf32>
    %131 = vector.shape_cast %130 : vector<1x128xf32> to vector<1x1x1x128xf32>
    %132 = arith.mulf %129, %131 : vector<1x1x1x128xf32>
    %133 = arith.addf %128, %132 : vector<1x1x1x128xf32>
    %134 = vector.extract_strided_slice %1 {offsets = [0, 3, 5, 0], sizes = [1, 1, 1, 128], strides = [1, 1, 1, 1]} : vector<1x7x7x128xf32> to vector<1x1x1x128xf32>
    %135 = vector.extract_strided_slice %2 {offsets = [26, 0], sizes = [1, 128], strides = [1, 1]} : vector<49x128xf32> to vector<1x128xf32>
    %136 = vector.shape_cast %135 : vector<1x128xf32> to vector<1x1x1x128xf32>
    %137 = arith.mulf %134, %136 : vector<1x1x1x128xf32>
    %138 = arith.addf %133, %137 : vector<1x1x1x128xf32>
    %139 = vector.extract_strided_slice %1 {offsets = [0, 3, 6, 0], sizes = [1, 1, 1, 128], strides = [1, 1, 1, 1]} : vector<1x7x7x128xf32> to vector<1x1x1x128xf32>
    %140 = vector.extract_strided_slice %2 {offsets = [27, 0], sizes = [1, 128], strides = [1, 1]} : vector<49x128xf32> to vector<1x128xf32>
    %141 = vector.shape_cast %140 : vector<1x128xf32> to vector<1x1x1x128xf32>
    %142 = arith.mulf %139, %141 : vector<1x1x1x128xf32>
    %143 = arith.addf %138, %142 : vector<1x1x1x128xf32>
    %144 = vector.extract_strided_slice %1 {offsets = [0, 4, 0, 0], sizes = [1, 1, 1, 128], strides = [1, 1, 1, 1]} : vector<1x7x7x128xf32> to vector<1x1x1x128xf32>
    %145 = vector.extract_strided_slice %2 {offsets = [28, 0], sizes = [1, 128], strides = [1, 1]} : vector<49x128xf32> to vector<1x128xf32>
    %146 = vector.shape_cast %145 : vector<1x128xf32> to vector<1x1x1x128xf32>
    %147 = arith.mulf %144, %146 : vector<1x1x1x128xf32>
    %148 = arith.addf %143, %147 : vector<1x1x1x128xf32>
    %149 = vector.extract_strided_slice %1 {offsets = [0, 4, 1, 0], sizes = [1, 1, 1, 128], strides = [1, 1, 1, 1]} : vector<1x7x7x128xf32> to vector<1x1x1x128xf32>
    %150 = vector.extract_strided_slice %2 {offsets = [29, 0], sizes = [1, 128], strides = [1, 1]} : vector<49x128xf32> to vector<1x128xf32>
    %151 = vector.shape_cast %150 : vector<1x128xf32> to vector<1x1x1x128xf32>
    %152 = arith.mulf %149, %151 : vector<1x1x1x128xf32>
    %153 = arith.addf %148, %152 : vector<1x1x1x128xf32>
    %154 = vector.extract_strided_slice %1 {offsets = [0, 4, 2, 0], sizes = [1, 1, 1, 128], strides = [1, 1, 1, 1]} : vector<1x7x7x128xf32> to vector<1x1x1x128xf32>
    %155 = vector.extract_strided_slice %2 {offsets = [30, 0], sizes = [1, 128], strides = [1, 1]} : vector<49x128xf32> to vector<1x128xf32>
    %156 = vector.shape_cast %155 : vector<1x128xf32> to vector<1x1x1x128xf32>
    %157 = arith.mulf %154, %156 : vector<1x1x1x128xf32>
    %158 = arith.addf %153, %157 : vector<1x1x1x128xf32>
    %159 = vector.extract_strided_slice %1 {offsets = [0, 4, 3, 0], sizes = [1, 1, 1, 128], strides = [1, 1, 1, 1]} : vector<1x7x7x128xf32> to vector<1x1x1x128xf32>
    %160 = vector.extract_strided_slice %2 {offsets = [31, 0], sizes = [1, 128], strides = [1, 1]} : vector<49x128xf32> to vector<1x128xf32>
    %161 = vector.shape_cast %160 : vector<1x128xf32> to vector<1x1x1x128xf32>
    %162 = arith.mulf %159, %161 : vector<1x1x1x128xf32>
    %163 = arith.addf %158, %162 : vector<1x1x1x128xf32>
    %164 = vector.extract_strided_slice %1 {offsets = [0, 4, 4, 0], sizes = [1, 1, 1, 128], strides = [1, 1, 1, 1]} : vector<1x7x7x128xf32> to vector<1x1x1x128xf32>
    %165 = vector.extract_strided_slice %2 {offsets = [32, 0], sizes = [1, 128], strides = [1, 1]} : vector<49x128xf32> to vector<1x128xf32>
    %166 = vector.shape_cast %165 : vector<1x128xf32> to vector<1x1x1x128xf32>
    %167 = arith.mulf %164, %166 : vector<1x1x1x128xf32>
    %168 = arith.addf %163, %167 : vector<1x1x1x128xf32>
    %169 = vector.extract_strided_slice %1 {offsets = [0, 4, 5, 0], sizes = [1, 1, 1, 128], strides = [1, 1, 1, 1]} : vector<1x7x7x128xf32> to vector<1x1x1x128xf32>
    %170 = vector.extract_strided_slice %2 {offsets = [33, 0], sizes = [1, 128], strides = [1, 1]} : vector<49x128xf32> to vector<1x128xf32>
    %171 = vector.shape_cast %170 : vector<1x128xf32> to vector<1x1x1x128xf32>
    %172 = arith.mulf %169, %171 : vector<1x1x1x128xf32>
    %173 = arith.addf %168, %172 : vector<1x1x1x128xf32>
    %174 = vector.extract_strided_slice %1 {offsets = [0, 4, 6, 0], sizes = [1, 1, 1, 128], strides = [1, 1, 1, 1]} : vector<1x7x7x128xf32> to vector<1x1x1x128xf32>
    %175 = vector.extract_strided_slice %2 {offsets = [34, 0], sizes = [1, 128], strides = [1, 1]} : vector<49x128xf32> to vector<1x128xf32>
    %176 = vector.shape_cast %175 : vector<1x128xf32> to vector<1x1x1x128xf32>
    %177 = arith.mulf %174, %176 : vector<1x1x1x128xf32>
    %178 = arith.addf %173, %177 : vector<1x1x1x128xf32>
    %179 = vector.extract_strided_slice %1 {offsets = [0, 5, 0, 0], sizes = [1, 1, 1, 128], strides = [1, 1, 1, 1]} : vector<1x7x7x128xf32> to vector<1x1x1x128xf32>
    %180 = vector.extract_strided_slice %2 {offsets = [35, 0], sizes = [1, 128], strides = [1, 1]} : vector<49x128xf32> to vector<1x128xf32>
    %181 = vector.shape_cast %180 : vector<1x128xf32> to vector<1x1x1x128xf32>
    %182 = arith.mulf %179, %181 : vector<1x1x1x128xf32>
    %183 = arith.addf %178, %182 : vector<1x1x1x128xf32>
    %184 = vector.extract_strided_slice %1 {offsets = [0, 5, 1, 0], sizes = [1, 1, 1, 128], strides = [1, 1, 1, 1]} : vector<1x7x7x128xf32> to vector<1x1x1x128xf32>
    %185 = vector.extract_strided_slice %2 {offsets = [36, 0], sizes = [1, 128], strides = [1, 1]} : vector<49x128xf32> to vector<1x128xf32>
    %186 = vector.shape_cast %185 : vector<1x128xf32> to vector<1x1x1x128xf32>
    %187 = arith.mulf %184, %186 : vector<1x1x1x128xf32>
    %188 = arith.addf %183, %187 : vector<1x1x1x128xf32>
    %189 = vector.extract_strided_slice %1 {offsets = [0, 5, 2, 0], sizes = [1, 1, 1, 128], strides = [1, 1, 1, 1]} : vector<1x7x7x128xf32> to vector<1x1x1x128xf32>
    %190 = vector.extract_strided_slice %2 {offsets = [37, 0], sizes = [1, 128], strides = [1, 1]} : vector<49x128xf32> to vector<1x128xf32>
    %191 = vector.shape_cast %190 : vector<1x128xf32> to vector<1x1x1x128xf32>
    %192 = arith.mulf %189, %191 : vector<1x1x1x128xf32>
    %193 = arith.addf %188, %192 : vector<1x1x1x128xf32>
    %194 = vector.extract_strided_slice %1 {offsets = [0, 5, 3, 0], sizes = [1, 1, 1, 128], strides = [1, 1, 1, 1]} : vector<1x7x7x128xf32> to vector<1x1x1x128xf32>
    %195 = vector.extract_strided_slice %2 {offsets = [38, 0], sizes = [1, 128], strides = [1, 1]} : vector<49x128xf32> to vector<1x128xf32>
    %196 = vector.shape_cast %195 : vector<1x128xf32> to vector<1x1x1x128xf32>
    %197 = arith.mulf %194, %196 : vector<1x1x1x128xf32>
    %198 = arith.addf %193, %197 : vector<1x1x1x128xf32>
    %199 = vector.extract_strided_slice %1 {offsets = [0, 5, 4, 0], sizes = [1, 1, 1, 128], strides = [1, 1, 1, 1]} : vector<1x7x7x128xf32> to vector<1x1x1x128xf32>
    %200 = vector.extract_strided_slice %2 {offsets = [39, 0], sizes = [1, 128], strides = [1, 1]} : vector<49x128xf32> to vector<1x128xf32>
    %201 = vector.shape_cast %200 : vector<1x128xf32> to vector<1x1x1x128xf32>
    %202 = arith.mulf %199, %201 : vector<1x1x1x128xf32>
    %203 = arith.addf %198, %202 : vector<1x1x1x128xf32>
    %204 = vector.extract_strided_slice %1 {offsets = [0, 5, 5, 0], sizes = [1, 1, 1, 128], strides = [1, 1, 1, 1]} : vector<1x7x7x128xf32> to vector<1x1x1x128xf32>
    %205 = vector.extract_strided_slice %2 {offsets = [40, 0], sizes = [1, 128], strides = [1, 1]} : vector<49x128xf32> to vector<1x128xf32>
    %206 = vector.shape_cast %205 : vector<1x128xf32> to vector<1x1x1x128xf32>
    %207 = arith.mulf %204, %206 : vector<1x1x1x128xf32>
    %208 = arith.addf %203, %207 : vector<1x1x1x128xf32>
    %209 = vector.extract_strided_slice %1 {offsets = [0, 5, 6, 0], sizes = [1, 1, 1, 128], strides = [1, 1, 1, 1]} : vector<1x7x7x128xf32> to vector<1x1x1x128xf32>
    %210 = vector.extract_strided_slice %2 {offsets = [41, 0], sizes = [1, 128], strides = [1, 1]} : vector<49x128xf32> to vector<1x128xf32>
    %211 = vector.shape_cast %210 : vector<1x128xf32> to vector<1x1x1x128xf32>
    %212 = arith.mulf %209, %211 : vector<1x1x1x128xf32>
    %213 = arith.addf %208, %212 : vector<1x1x1x128xf32>
    %214 = vector.extract_strided_slice %1 {offsets = [0, 6, 0, 0], sizes = [1, 1, 1, 128], strides = [1, 1, 1, 1]} : vector<1x7x7x128xf32> to vector<1x1x1x128xf32>
    %215 = vector.extract_strided_slice %2 {offsets = [42, 0], sizes = [1, 128], strides = [1, 1]} : vector<49x128xf32> to vector<1x128xf32>
    %216 = vector.shape_cast %215 : vector<1x128xf32> to vector<1x1x1x128xf32>
    %217 = arith.mulf %214, %216 : vector<1x1x1x128xf32>
    %218 = arith.addf %213, %217 : vector<1x1x1x128xf32>
    %219 = vector.extract_strided_slice %1 {offsets = [0, 6, 1, 0], sizes = [1, 1, 1, 128], strides = [1, 1, 1, 1]} : vector<1x7x7x128xf32> to vector<1x1x1x128xf32>
    %220 = vector.extract_strided_slice %2 {offsets = [43, 0], sizes = [1, 128], strides = [1, 1]} : vector<49x128xf32> to vector<1x128xf32>
    %221 = vector.shape_cast %220 : vector<1x128xf32> to vector<1x1x1x128xf32>
    %222 = arith.mulf %219, %221 : vector<1x1x1x128xf32>
    %223 = arith.addf %218, %222 : vector<1x1x1x128xf32>
    %224 = vector.extract_strided_slice %1 {offsets = [0, 6, 2, 0], sizes = [1, 1, 1, 128], strides = [1, 1, 1, 1]} : vector<1x7x7x128xf32> to vector<1x1x1x128xf32>
    %225 = vector.extract_strided_slice %2 {offsets = [44, 0], sizes = [1, 128], strides = [1, 1]} : vector<49x128xf32> to vector<1x128xf32>
    %226 = vector.shape_cast %225 : vector<1x128xf32> to vector<1x1x1x128xf32>
    %227 = arith.mulf %224, %226 : vector<1x1x1x128xf32>
    %228 = arith.addf %223, %227 : vector<1x1x1x128xf32>
    %229 = vector.extract_strided_slice %1 {offsets = [0, 6, 3, 0], sizes = [1, 1, 1, 128], strides = [1, 1, 1, 1]} : vector<1x7x7x128xf32> to vector<1x1x1x128xf32>
    %230 = vector.extract_strided_slice %2 {offsets = [45, 0], sizes = [1, 128], strides = [1, 1]} : vector<49x128xf32> to vector<1x128xf32>
    %231 = vector.shape_cast %230 : vector<1x128xf32> to vector<1x1x1x128xf32>
    %232 = arith.mulf %229, %231 : vector<1x1x1x128xf32>
    %233 = arith.addf %228, %232 : vector<1x1x1x128xf32>
    %234 = vector.extract_strided_slice %1 {offsets = [0, 6, 4, 0], sizes = [1, 1, 1, 128], strides = [1, 1, 1, 1]} : vector<1x7x7x128xf32> to vector<1x1x1x128xf32>
    %235 = vector.extract_strided_slice %2 {offsets = [46, 0], sizes = [1, 128], strides = [1, 1]} : vector<49x128xf32> to vector<1x128xf32>
    %236 = vector.shape_cast %235 : vector<1x128xf32> to vector<1x1x1x128xf32>
    %237 = arith.mulf %234, %236 : vector<1x1x1x128xf32>
    %238 = arith.addf %233, %237 : vector<1x1x1x128xf32>
    %239 = vector.extract_strided_slice %1 {offsets = [0, 6, 5, 0], sizes = [1, 1, 1, 128], strides = [1, 1, 1, 1]} : vector<1x7x7x128xf32> to vector<1x1x1x128xf32>
    %240 = vector.extract_strided_slice %2 {offsets = [47, 0], sizes = [1, 128], strides = [1, 1]} : vector<49x128xf32> to vector<1x128xf32>
    %241 = vector.shape_cast %240 : vector<1x128xf32> to vector<1x1x1x128xf32>
    %242 = arith.mulf %239, %241 : vector<1x1x1x128xf32>
    %243 = arith.addf %238, %242 : vector<1x1x1x128xf32>
    %244 = vector.extract_strided_slice %1 {offsets = [0, 6, 6, 0], sizes = [1, 1, 1, 128], strides = [1, 1, 1, 1]} : vector<1x7x7x128xf32> to vector<1x1x1x128xf32>
    %245 = vector.extract_strided_slice %2 {offsets = [48, 0], sizes = [1, 128], strides = [1, 1]} : vector<49x128xf32> to vector<1x128xf32>
    %246 = vector.shape_cast %245 : vector<1x128xf32> to vector<1x1x1x128xf32>
    %247 = arith.mulf %244, %246 : vector<1x1x1x128xf32>
    %248 = arith.addf %243, %247 : vector<1x1x1x128xf32>
    %249 = arith.truncf %248 : vector<1x1x1x128xf32> to vector<1x1x1x128xbf16>
    %c0_5 = arith.constant 0 : index
    %c0_6 = arith.constant 0 : index
    %c0_7 = arith.constant 0 : index
    %c0_8 = arith.constant 0 : index
    %250 = vector.load %arg3[%c0_5, %c0_6, %c0_7, %c0_8] : memref<1x1x1x128xbf16, #tpu.memory_space<vmem>>, vector<1x1x1x128xbf16>
    tpu.vector_store %arg3[%c0_5, %c0_6, %c0_7, %c0_8], %249 {strides = array<i32>} : memref<1x1x1x128xbf16, #tpu.memory_space<vmem>>, vector<1x1x1x128xbf16>,
    return
  }
  func.func @transform_0(%arg0: i32) -> (i32, i32, i32, i32) {
    %c0_i32 = arith.constant 0 : i32
    %c0_i32_0 = arith.constant 0 : i32
    %c0_i32_1 = arith.constant 0 : i32
    %c0_i32_2 = arith.constant 0 : i32
    return %arg0, %c0_i32, %c0_i32_0, %c0_i32_1 : i32, i32, i32, i32
  }
  func.func @transform_1(%arg0: i32) -> (i32, i32) {
    %c0_i32 = arith.constant 0 : i32
    %c0_i32_0 = arith.constant 0 : i32
    %c0_i32_1 = arith.constant 0 : i32
    return %c0_i32, %c0_i32_0 : i32, i32
  }
  func.func @transform_2(%arg0: i32) -> (i32, i32, i32, i32) {
    %c0_i32 = arith.constant 0 : i32
    %c0_i32_0 = arith.constant 0 : i32
    %c0_i32_1 = arith.constant 0 : i32
    %c0_i32_2 = arith.constant 0 : i32
    return %arg0, %c0_i32, %c0_i32_0, %c0_i32_1 : i32, i32, i32, i32
  }
}

module attributes {stable_mosaic.version = 11 : i64} {
  func.func @_affine_kernel(%arg0: i32, %arg1: memref<16x64xbf16, #tpu.memory_space<vmem>>, %arg2: memref<1x64xf32, #tpu.memory_space<vmem>>, %arg3: memref<1x64xf32, #tpu.memory_space<vmem>>, %arg4: memref<16x64xbf16, #tpu.memory_space<vmem>>) attributes {dimension_semantics = [#tpu.dimension_semantics<parallel>], iteration_bounds = array<i64: 1>, scalar_prefetch = 0 : i64, scratch_operands = 0 : i64, tpu.core_type = #tpu.core_type<tc>, window_params = [{transform_indices = @transform_0, window_bounds = array<i64: 16, 64>}, {pipeline_mode = #tpu.pipeline_mode<synchronous>, transform_indices = @transform_1, window_bounds = array<i64: 1, 64>}, {pipeline_mode = #tpu.pipeline_mode<synchronous>, transform_indices = @transform_2, window_bounds = array<i64: 1, 64>}, {transform_indices = @transform_3, window_bounds = array<i64: 16, 64>}]} {
    %c0 = arith.constant 0 : index
    %c0_0 = arith.constant 0 : index
    %0 = vector.load %arg1[%c0, %c0_0] : memref<16x64xbf16, #tpu.memory_space<vmem>>, vector<16x64xbf16>
    %1 = arith.extf %0 : vector<16x64xbf16> to vector<16x64xf32>
    %c0_1 = arith.constant 0 : index
    %c0_2 = arith.constant 0 : index
    %2 = vector.load %arg2[%c0_1, %c0_2] : memref<1x64xf32, #tpu.memory_space<vmem>>, vector<1x64xf32>
    %3 = vector.broadcast %2 : vector<1x64xf32> to vector<16x64xf32>
    %4 = arith.mulf %1, %3 : vector<16x64xf32>
    %c0_3 = arith.constant 0 : index
    %c0_4 = arith.constant 0 : index
    %5 = vector.load %arg3[%c0_3, %c0_4] : memref<1x64xf32, #tpu.memory_space<vmem>>, vector<1x64xf32>
    %6 = vector.broadcast %5 : vector<1x64xf32> to vector<16x64xf32>
    %7 = arith.addf %4, %6 : vector<16x64xf32>
    %8 = arith.truncf %7 : vector<16x64xf32> to vector<16x64xbf16>
    %c0_5 = arith.constant 0 : index
    %c0_6 = arith.constant 0 : index
    %9 = vector.load %arg4[%c0_5, %c0_6] : memref<16x64xbf16, #tpu.memory_space<vmem>>, vector<16x64xbf16>
    tpu.vector_store %arg4[%c0_5, %c0_6], %8 {strides = array<i32>} : memref<16x64xbf16, #tpu.memory_space<vmem>>, vector<16x64xbf16>,
    return
  }
  func.func @transform_0(%arg0: i32) -> (i32, i32) {
    %c0_i32 = arith.constant 0 : i32
    %c0_i32_0 = arith.constant 0 : i32
    return %arg0, %c0_i32 : i32, i32
  }
  func.func @transform_1(%arg0: i32) -> (i32, i32) {
    %c0_i32 = arith.constant 0 : i32
    %c0_i32_0 = arith.constant 0 : i32
    %c0_i32_1 = arith.constant 0 : i32
    return %c0_i32, %c0_i32_0 : i32, i32
  }
  func.func @transform_2(%arg0: i32) -> (i32, i32) {
    %c0_i32 = arith.constant 0 : i32
    %c0_i32_0 = arith.constant 0 : i32
    %c0_i32_1 = arith.constant 0 : i32
    return %c0_i32, %c0_i32_0 : i32, i32
  }
  func.func @transform_3(%arg0: i32) -> (i32, i32) {
    %c0_i32 = arith.constant 0 : i32
    %c0_i32_0 = arith.constant 0 : i32
    return %arg0, %c0_i32 : i32, i32
  }
}

module attributes {stable_mosaic.version = 11 : i64} {
  func.func @_gemm_kernel(%arg0: i32, %arg1: i32, %arg2: i32, %arg3: memref<16x128xbf16, #tpu.memory_space<vmem>>, %arg4: memref<128x256xbf16, #tpu.memory_space<vmem>>, %arg5: memref<1x128xf32, #tpu.memory_space<vmem>>, %arg6: memref<1x128xf32, #tpu.memory_space<vmem>>, %arg7: memref<16x256xbf16, #tpu.memory_space<vmem>>, %arg8: memref<16x256xf32, #tpu.memory_space<vmem>>) attributes {dimension_semantics = [#tpu.dimension_semantics<parallel>, #tpu.dimension_semantics<parallel>, #tpu.dimension_semantics<arbitrary>], iteration_bounds = array<i64: 1, 1, 1>, scalar_prefetch = 0 : i64, scratch_operands = 1 : i64, tpu.core_type = #tpu.core_type<tc>, window_params = [{transform_indices = @transform_0, window_bounds = array<i64: 16, 128>}, {transform_indices = @transform_1, window_bounds = array<i64: 128, 256>}, {transform_indices = @transform_2, window_bounds = array<i64: 1, 128>}, {transform_indices = @transform_3, window_bounds = array<i64: 1, 128>}, {transform_indices = @transform_4, window_bounds = array<i64: 16, 256>}]} {
    %c0_i32 = arith.constant 0 : i32
    %0 = arith.cmpi eq, %arg2, %c0_i32 : i32
    %1 = arith.extui %0 : i1 to i32
    %c0_i32_0 = arith.constant 0 : i32
    %2 = arith.cmpi ne, %1, %c0_i32_0 : i32
    scf.if %2 {
      %cst_14 = arith.constant 0.000000e+00 : f32
      %20 = vector.broadcast %cst_14 : f32 to vector<16x256xf32>
      %c0_15 = arith.constant 0 : index
      %c0_16 = arith.constant 0 : index
      %21 = vector.load %arg8[%c0_15, %c0_16] : memref<16x256xf32, #tpu.memory_space<vmem>>, vector<16x256xf32>
      tpu.vector_store %arg8[%c0_15, %c0_16], %20 {strides = array<i32>} : memref<16x256xf32, #tpu.memory_space<vmem>>, vector<16x256xf32>,
    } else {
    }
    %c0 = arith.constant 0 : index
    %c0_1 = arith.constant 0 : index
    %3 = vector.load %arg3[%c0, %c0_1] : memref<16x128xbf16, #tpu.memory_space<vmem>>, vector<16x128xbf16>
    %4 = arith.extf %3 : vector<16x128xbf16> to vector<16x128xf32>
    %c0_2 = arith.constant 0 : index
    %c0_3 = arith.constant 0 : index
    %5 = vector.load %arg5[%c0_2, %c0_3] : memref<1x128xf32, #tpu.memory_space<vmem>>, vector<1x128xf32>
    %6 = vector.broadcast %5 : vector<1x128xf32> to vector<16x128xf32>
    %7 = arith.mulf %4, %6 : vector<16x128xf32>
    %c0_4 = arith.constant 0 : index
    %c0_5 = arith.constant 0 : index
    %8 = vector.load %arg6[%c0_4, %c0_5] : memref<1x128xf32, #tpu.memory_space<vmem>>, vector<1x128xf32>
    %9 = vector.broadcast %8 : vector<1x128xf32> to vector<16x128xf32>
    %10 = arith.addf %7, %9 : vector<16x128xf32>
    %11 = arith.truncf %10 : vector<16x128xf32> to vector<16x128xbf16>
    %c0_6 = arith.constant 0 : index
    %c0_7 = arith.constant 0 : index
    %12 = vector.load %arg8[%c0_6, %c0_7] : memref<16x256xf32, #tpu.memory_space<vmem>>, vector<16x256xf32>
    %c0_8 = arith.constant 0 : index
    %c0_9 = arith.constant 0 : index
    %13 = vector.load %arg4[%c0_8, %c0_9] : memref<128x256xbf16, #tpu.memory_space<vmem>>, vector<128x256xbf16>
    %cst = arith.constant dense<0.000000e+00> : vector<16x256xf32>
    %14 = tpu.matmul %11, %13, %cst {dimension_numbers = #tpu.dot_dimension_numbers<[1], [0], [0], [1], [0, 0, 1, 1], [], []>} : vector<16x128xbf16>, vector<128x256xbf16>, vector<16x256xf32> -> vector<16x256xf32>
    %15 = arith.addf %12, %14 : vector<16x256xf32>
    %c0_10 = arith.constant 0 : index
    %c0_11 = arith.constant 0 : index
    %16 = vector.load %arg8[%c0_10, %c0_11] : memref<16x256xf32, #tpu.memory_space<vmem>>, vector<16x256xf32>
    tpu.vector_store %arg8[%c0_10, %c0_11], %15 {strides = array<i32>} : memref<16x256xf32, #tpu.memory_space<vmem>>, vector<16x256xf32>,
    %c0_i32_12 = arith.constant 0 : i32
    %17 = arith.cmpi eq, %arg2, %c0_i32_12 : i32
    %18 = arith.extui %17 : i1 to i32
    %c0_i32_13 = arith.constant 0 : i32
    %19 = arith.cmpi ne, %18, %c0_i32_13 : i32
    scf.if %19 {
      %c0_14 = arith.constant 0 : index
      %c0_15 = arith.constant 0 : index
      %20 = vector.load %arg8[%c0_14, %c0_15] : memref<16x256xf32, #tpu.memory_space<vmem>>, vector<16x256xf32>
      %cst_16 = arith.constant 0.000000e+00 : f32
      %21 = vector.broadcast %cst_16 : f32 to vector<16x256xf32>
      %22 = arith.maximumf %20, %21 : vector<16x256xf32>
      %23 = arith.truncf %22 : vector<16x256xf32> to vector<16x256xbf16>
      %c0_17 = arith.constant 0 : index
      %c0_18 = arith.constant 0 : index
      %24 = vector.load %arg7[%c0_17, %c0_18] : memref<16x256xbf16, #tpu.memory_space<vmem>>, vector<16x256xbf16>
      tpu.vector_store %arg7[%c0_17, %c0_18], %23 {strides = array<i32>} : memref<16x256xbf16, #tpu.memory_space<vmem>>, vector<16x256xbf16>,
    } else {
    }
    return
  }
  func.func @transform_0(%arg0: i32, %arg1: i32, %arg2: i32) -> (i32, i32) {
    %c0_i32 = arith.constant 0 : i32
    return %arg0, %arg2 : i32, i32
  }
  func.func @transform_1(%arg0: i32, %arg1: i32, %arg2: i32) -> (i32, i32) {
    %c0_i32 = arith.constant 0 : i32
    return %arg2, %arg1 : i32, i32
  }
  func.func @transform_2(%arg0: i32, %arg1: i32, %arg2: i32) -> (i32, i32) {
    %c0_i32 = arith.constant 0 : i32
    %c0_i32_0 = arith.constant 0 : i32
    return %c0_i32, %arg2 : i32, i32
  }
  func.func @transform_3(%arg0: i32, %arg1: i32, %arg2: i32) -> (i32, i32) {
    %c0_i32 = arith.constant 0 : i32
    %c0_i32_0 = arith.constant 0 : i32
    return %c0_i32, %arg2 : i32, i32
  }
  func.func @transform_4(%arg0: i32, %arg1: i32, %arg2: i32) -> (i32, i32) {
    %c0_i32 = arith.constant 0 : i32
    return %arg0, %arg1 : i32, i32
  }
}

module attributes {stable_mosaic.version = 11 : i64} {
  func.func @_gemm_kernel(%arg0: i32, %arg1: i32, %arg2: i32, %arg3: memref<16x256xbf16, #tpu.memory_space<vmem>>, %arg4: memref<256x128xbf16, #tpu.memory_space<vmem>>, %arg5: memref<16x128xbf16, #tpu.memory_space<vmem>>, %arg6: memref<16x128xbf16, #tpu.memory_space<vmem>>, %arg7: memref<16x128xf32, #tpu.memory_space<vmem>>) attributes {dimension_semantics = [#tpu.dimension_semantics<parallel>, #tpu.dimension_semantics<parallel>, #tpu.dimension_semantics<arbitrary>], iteration_bounds = array<i64: 1, 1, 1>, scalar_prefetch = 0 : i64, scratch_operands = 1 : i64, tpu.core_type = #tpu.core_type<tc>, window_params = [{transform_indices = @transform_0, window_bounds = array<i64: 16, 256>}, {transform_indices = @transform_1, window_bounds = array<i64: 256, 128>}, {transform_indices = @transform_2, window_bounds = array<i64: 16, 128>}, {transform_indices = @transform_3, window_bounds = array<i64: 16, 128>}]} {
    %c0_i32 = arith.constant 0 : i32
    %0 = arith.cmpi eq, %arg2, %c0_i32 : i32
    %1 = arith.extui %0 : i1 to i32
    %c0_i32_0 = arith.constant 0 : i32
    %2 = arith.cmpi ne, %1, %c0_i32_0 : i32
    scf.if %2 {
      %cst_10 = arith.constant 0.000000e+00 : f32
      %12 = vector.broadcast %cst_10 : f32 to vector<16x128xf32>
      %c0_11 = arith.constant 0 : index
      %c0_12 = arith.constant 0 : index
      %13 = vector.load %arg7[%c0_11, %c0_12] : memref<16x128xf32, #tpu.memory_space<vmem>>, vector<16x128xf32>
      tpu.vector_store %arg7[%c0_11, %c0_12], %12 {strides = array<i32>} : memref<16x128xf32, #tpu.memory_space<vmem>>, vector<16x128xf32>,
    } else {
    }
    %c0 = arith.constant 0 : index
    %c0_1 = arith.constant 0 : index
    %3 = vector.load %arg3[%c0, %c0_1] : memref<16x256xbf16, #tpu.memory_space<vmem>>, vector<16x256xbf16>
    %c0_2 = arith.constant 0 : index
    %c0_3 = arith.constant 0 : index
    %4 = vector.load %arg7[%c0_2, %c0_3] : memref<16x128xf32, #tpu.memory_space<vmem>>, vector<16x128xf32>
    %c0_4 = arith.constant 0 : index
    %c0_5 = arith.constant 0 : index
    %5 = vector.load %arg4[%c0_4, %c0_5] : memref<256x128xbf16, #tpu.memory_space<vmem>>, vector<256x128xbf16>
    %cst = arith.constant dense<0.000000e+00> : vector<16x128xf32>
    %6 = tpu.matmul %3, %5, %cst {dimension_numbers = #tpu.dot_dimension_numbers<[1], [0], [0], [1], [0, 0, 1, 1], [], []>} : vector<16x256xbf16>, vector<256x128xbf16>, vector<16x128xf32> -> vector<16x128xf32>
    %7 = arith.addf %4, %6 : vector<16x128xf32>
    %c0_6 = arith.constant 0 : index
    %c0_7 = arith.constant 0 : index
    %8 = vector.load %arg7[%c0_6, %c0_7] : memref<16x128xf32, #tpu.memory_space<vmem>>, vector<16x128xf32>
    tpu.vector_store %arg7[%c0_6, %c0_7], %7 {strides = array<i32>} : memref<16x128xf32, #tpu.memory_space<vmem>>, vector<16x128xf32>,
    %c0_i32_8 = arith.constant 0 : i32
    %9 = arith.cmpi eq, %arg2, %c0_i32_8 : i32
    %10 = arith.extui %9 : i1 to i32
    %c0_i32_9 = arith.constant 0 : i32
    %11 = arith.cmpi ne, %10, %c0_i32_9 : i32
    scf.if %11 {
      %c0_10 = arith.constant 0 : index
      %c0_11 = arith.constant 0 : index
      %12 = vector.load %arg7[%c0_10, %c0_11] : memref<16x128xf32, #tpu.memory_space<vmem>>, vector<16x128xf32>
      %c0_12 = arith.constant 0 : index
      %c0_13 = arith.constant 0 : index
      %13 = vector.load %arg5[%c0_12, %c0_13] : memref<16x128xbf16, #tpu.memory_space<vmem>>, vector<16x128xbf16>
      %14 = arith.extf %13 : vector<16x128xbf16> to vector<16x128xf32>
      %15 = arith.addf %12, %14 : vector<16x128xf32>
      %16 = arith.truncf %15 : vector<16x128xf32> to vector<16x128xbf16>
      %c0_14 = arith.constant 0 : index
      %c0_15 = arith.constant 0 : index
      %17 = vector.load %arg6[%c0_14, %c0_15] : memref<16x128xbf16, #tpu.memory_space<vmem>>, vector<16x128xbf16>
      tpu.vector_store %arg6[%c0_14, %c0_15], %16 {strides = array<i32>} : memref<16x128xbf16, #tpu.memory_space<vmem>>, vector<16x128xbf16>,
    } else {
    }
    return
  }
  func.func @transform_0(%arg0: i32, %arg1: i32, %arg2: i32) -> (i32, i32) {
    %c0_i32 = arith.constant 0 : i32
    return %arg0, %arg2 : i32, i32
  }
  func.func @transform_1(%arg0: i32, %arg1: i32, %arg2: i32) -> (i32, i32) {
    %c0_i32 = arith.constant 0 : i32
    return %arg2, %arg1 : i32, i32
  }
  func.func @transform_2(%arg0: i32, %arg1: i32, %arg2: i32) -> (i32, i32) {
    %c0_i32 = arith.constant 0 : i32
    return %arg0, %arg1 : i32, i32
  }
  func.func @transform_3(%arg0: i32, %arg1: i32, %arg2: i32) -> (i32, i32) {
    %c0_i32 = arith.constant 0 : i32
    return %arg0, %arg1 : i32, i32
  }
}

module attributes {stable_mosaic.version = 11 : i64} {
  func.func @_gemm_kernel(%arg0: i32, %arg1: i32, %arg2: i32, %arg3: memref<16x512xbf16, #tpu.memory_space<vmem>>, %arg4: memref<512x128xbf16, #tpu.memory_space<vmem>>, %arg5: memref<1x128xf32, #tpu.memory_space<vmem>>, %arg6: memref<16x128xbf16, #tpu.memory_space<vmem>>, %arg7: memref<16x128xf32, #tpu.memory_space<vmem>>) attributes {dimension_semantics = [#tpu.dimension_semantics<parallel>, #tpu.dimension_semantics<parallel>, #tpu.dimension_semantics<arbitrary>], iteration_bounds = array<i64: 1, 1, 2>, scalar_prefetch = 0 : i64, scratch_operands = 1 : i64, tpu.core_type = #tpu.core_type<tc>, window_params = [{transform_indices = @transform_0, window_bounds = array<i64: 16, 512>}, {transform_indices = @transform_1, window_bounds = array<i64: 512, 128>}, {transform_indices = @transform_2, window_bounds = array<i64: 1, 128>}, {transform_indices = @transform_3, window_bounds = array<i64: 16, 128>}]} {
    %c0_i32 = arith.constant 0 : i32
    %0 = arith.cmpi eq, %arg2, %c0_i32 : i32
    %1 = arith.extui %0 : i1 to i32
    %c0_i32_0 = arith.constant 0 : i32
    %2 = arith.cmpi ne, %1, %c0_i32_0 : i32
    scf.if %2 {
      %cst_9 = arith.constant 0.000000e+00 : f32
      %12 = vector.broadcast %cst_9 : f32 to vector<16x128xf32>
      %c0_10 = arith.constant 0 : index
      %c0_11 = arith.constant 0 : index
      %13 = vector.load %arg7[%c0_10, %c0_11] : memref<16x128xf32, #tpu.memory_space<vmem>>, vector<16x128xf32>
      tpu.vector_store %arg7[%c0_10, %c0_11], %12 {strides = array<i32>} : memref<16x128xf32, #tpu.memory_space<vmem>>, vector<16x128xf32>,
    } else {
    }
    %c0 = arith.constant 0 : index
    %c0_1 = arith.constant 0 : index
    %3 = vector.load %arg3[%c0, %c0_1] : memref<16x512xbf16, #tpu.memory_space<vmem>>, vector<16x512xbf16>
    %c0_2 = arith.constant 0 : index
    %c0_3 = arith.constant 0 : index
    %4 = vector.load %arg7[%c0_2, %c0_3] : memref<16x128xf32, #tpu.memory_space<vmem>>, vector<16x128xf32>
    %c0_4 = arith.constant 0 : index
    %c0_5 = arith.constant 0 : index
    %5 = vector.load %arg4[%c0_4, %c0_5] : memref<512x128xbf16, #tpu.memory_space<vmem>>, vector<512x128xbf16>
    %cst = arith.constant dense<0.000000e+00> : vector<16x128xf32>
    %6 = tpu.matmul %3, %5, %cst {dimension_numbers = #tpu.dot_dimension_numbers<[1], [0], [0], [1], [0, 0, 1, 1], [], []>} : vector<16x512xbf16>, vector<512x128xbf16>, vector<16x128xf32> -> vector<16x128xf32>
    %7 = arith.addf %4, %6 : vector<16x128xf32>
    %c0_6 = arith.constant 0 : index
    %c0_7 = arith.constant 0 : index
    %8 = vector.load %arg7[%c0_6, %c0_7] : memref<16x128xf32, #tpu.memory_space<vmem>>, vector<16x128xf32>
    tpu.vector_store %arg7[%c0_6, %c0_7], %7 {strides = array<i32>} : memref<16x128xf32, #tpu.memory_space<vmem>>, vector<16x128xf32>,
    %c1_i32 = arith.constant 1 : i32
    %9 = arith.cmpi eq, %arg2, %c1_i32 : i32
    %10 = arith.extui %9 : i1 to i32
    %c0_i32_8 = arith.constant 0 : i32
    %11 = arith.cmpi ne, %10, %c0_i32_8 : i32
    scf.if %11 {
      %c0_9 = arith.constant 0 : index
      %c0_10 = arith.constant 0 : index
      %12 = vector.load %arg7[%c0_9, %c0_10] : memref<16x128xf32, #tpu.memory_space<vmem>>, vector<16x128xf32>
      %c0_11 = arith.constant 0 : index
      %c0_12 = arith.constant 0 : index
      %13 = vector.load %arg5[%c0_11, %c0_12] : memref<1x128xf32, #tpu.memory_space<vmem>>, vector<1x128xf32>
      %14 = vector.broadcast %13 : vector<1x128xf32> to vector<16x128xf32>
      %15 = arith.addf %12, %14 : vector<16x128xf32>
      %16 = arith.truncf %15 : vector<16x128xf32> to vector<16x128xbf16>
      %c0_13 = arith.constant 0 : index
      %c0_14 = arith.constant 0 : index
      %17 = vector.load %arg6[%c0_13, %c0_14] : memref<16x128xbf16, #tpu.memory_space<vmem>>, vector<16x128xbf16>
      tpu.vector_store %arg6[%c0_13, %c0_14], %16 {strides = array<i32>} : memref<16x128xbf16, #tpu.memory_space<vmem>>, vector<16x128xbf16>,
    } else {
    }
    return
  }
  func.func @transform_0(%arg0: i32, %arg1: i32, %arg2: i32) -> (i32, i32) {
    %c0_i32 = arith.constant 0 : i32
    return %arg0, %arg2 : i32, i32
  }
  func.func @transform_1(%arg0: i32, %arg1: i32, %arg2: i32) -> (i32, i32) {
    %c0_i32 = arith.constant 0 : i32
    return %arg2, %arg1 : i32, i32
  }
  func.func @transform_2(%arg0: i32, %arg1: i32, %arg2: i32) -> (i32, i32) {
    %c0_i32 = arith.constant 0 : i32
    %c0_i32_0 = arith.constant 0 : i32
    return %c0_i32, %arg1 : i32, i32
  }
  func.func @transform_3(%arg0: i32, %arg1: i32, %arg2: i32) -> (i32, i32) {
    %c0_i32 = arith.constant 0 : i32
    return %arg0, %arg1 : i32, i32
  }
}

module attributes {stable_mosaic.version = 11 : i64} {
  func.func @_bn_stats_kernel(%arg0: i32, %arg1: memref<16x128xbf16, #tpu.memory_space<vmem>>, %arg2: memref<1x128xf32, #tpu.memory_space<vmem>>, %arg3: memref<1x128xf32, #tpu.memory_space<vmem>>) attributes {dimension_semantics = [#tpu.dimension_semantics<arbitrary>], iteration_bounds = array<i64: 1>, scalar_prefetch = 0 : i64, scratch_operands = 0 : i64, tpu.core_type = #tpu.core_type<tc>, window_params = [{transform_indices = @transform_0, window_bounds = array<i64: 16, 128>}, {pipeline_mode = #tpu.pipeline_mode<synchronous>, transform_indices = @transform_1, window_bounds = array<i64: 1, 128>}, {pipeline_mode = #tpu.pipeline_mode<synchronous>, transform_indices = @transform_2, window_bounds = array<i64: 1, 128>}]} {
    %c0_i32 = arith.constant 0 : i32
    %0 = arith.cmpi eq, %arg0, %c0_i32 : i32
    %1 = arith.extui %0 : i1 to i32
    %c0_i32_0 = arith.constant 0 : i32
    %2 = arith.cmpi ne, %1, %c0_i32_0 : i32
    scf.if %2 {
      %cst_11 = arith.constant 0.000000e+00 : f32
      %16 = vector.broadcast %cst_11 : f32 to vector<1x128xf32>
      %c0_12 = arith.constant 0 : index
      %c0_13 = arith.constant 0 : index
      %17 = vector.load %arg2[%c0_12, %c0_13] : memref<1x128xf32, #tpu.memory_space<vmem>>, vector<1x128xf32>
      tpu.vector_store %arg2[%c0_12, %c0_13], %16 {strides = array<i32>} : memref<1x128xf32, #tpu.memory_space<vmem>>, vector<1x128xf32>,
      %cst_14 = arith.constant 0.000000e+00 : f32
      %18 = vector.broadcast %cst_14 : f32 to vector<1x128xf32>
      %c0_15 = arith.constant 0 : index
      %c0_16 = arith.constant 0 : index
      %19 = vector.load %arg3[%c0_15, %c0_16] : memref<1x128xf32, #tpu.memory_space<vmem>>, vector<1x128xf32>
      tpu.vector_store %arg3[%c0_15, %c0_16], %18 {strides = array<i32>} : memref<1x128xf32, #tpu.memory_space<vmem>>, vector<1x128xf32>,
    } else {
    }
    %c0 = arith.constant 0 : index
    %c0_1 = arith.constant 0 : index
    %3 = vector.load %arg1[%c0, %c0_1] : memref<16x128xbf16, #tpu.memory_space<vmem>>, vector<16x128xbf16>
    %4 = arith.extf %3 : vector<16x128xbf16> to vector<16x128xf32>
    %c0_2 = arith.constant 0 : index
    %c0_3 = arith.constant 0 : index
    %5 = vector.load %arg2[%c0_2, %c0_3] : memref<1x128xf32, #tpu.memory_space<vmem>>, vector<1x128xf32>
    %cst = arith.constant dense<0.000000e+00> : vector<128xf32>
    %6 = vector.multi_reduction <add>, %4, %cst [0] : vector<16x128xf32> to vector<128xf32>
    %7 = vector.shape_cast %6 : vector<128xf32> to vector<1x128xf32>
    %8 = arith.addf %5, %7 : vector<1x128xf32>
    %c0_4 = arith.constant 0 : index
    %c0_5 = arith.constant 0 : index
    %9 = vector.load %arg2[%c0_4, %c0_5] : memref<1x128xf32, #tpu.memory_space<vmem>>, vector<1x128xf32>
    tpu.vector_store %arg2[%c0_4, %c0_5], %8 {strides = array<i32>} : memref<1x128xf32, #tpu.memory_space<vmem>>, vector<1x128xf32>,
    %c0_6 = arith.constant 0 : index
    %c0_7 = arith.constant 0 : index
    %10 = vector.load %arg3[%c0_6, %c0_7] : memref<1x128xf32, #tpu.memory_space<vmem>>, vector<1x128xf32>
    %11 = arith.mulf %4, %4 : vector<16x128xf32>
    %cst_8 = arith.constant dense<0.000000e+00> : vector<128xf32>
    %12 = vector.multi_reduction <add>, %11, %cst_8 [0] : vector<16x128xf32> to vector<128xf32>
    %13 = vector.shape_cast %12 : vector<128xf32> to vector<1x128xf32>
    %14 = arith.addf %10, %13 : vector<1x128xf32>
    %c0_9 = arith.constant 0 : index
    %c0_10 = arith.constant 0 : index
    %15 = vector.load %arg3[%c0_9, %c0_10] : memref<1x128xf32, #tpu.memory_space<vmem>>, vector<1x128xf32>
    tpu.vector_store %arg3[%c0_9, %c0_10], %14 {strides = array<i32>} : memref<1x128xf32, #tpu.memory_space<vmem>>, vector<1x128xf32>,
    return
  }
  func.func @transform_0(%arg0: i32) -> (i32, i32) {
    %c0_i32 = arith.constant 0 : i32
    %c0_i32_0 = arith.constant 0 : i32
    return %arg0, %c0_i32 : i32, i32
  }
  func.func @transform_1(%arg0: i32) -> (i32, i32) {
    %c0_i32 = arith.constant 0 : i32
    %c0_i32_0 = arith.constant 0 : i32
    %c0_i32_1 = arith.constant 0 : i32
    return %c0_i32, %c0_i32_0 : i32, i32
  }
  func.func @transform_2(%arg0: i32) -> (i32, i32) {
    %c0_i32 = arith.constant 0 : i32
    %c0_i32_0 = arith.constant 0 : i32
    %c0_i32_1 = arith.constant 0 : i32
    return %c0_i32, %c0_i32_0 : i32, i32
  }
}

module attributes {stable_mosaic.version = 11 : i64} {
  func.func @_gemm_kernel(%arg0: i32, %arg1: i32, %arg2: i32, %arg3: memref<16x128xbf16, #tpu.memory_space<vmem>>, %arg4: memref<128x256xbf16, #tpu.memory_space<vmem>>, %arg5: memref<1x128xf32, #tpu.memory_space<vmem>>, %arg6: memref<1x128xf32, #tpu.memory_space<vmem>>, %arg7: memref<16x256xbf16, #tpu.memory_space<vmem>>, %arg8: memref<16x256xf32, #tpu.memory_space<vmem>>) attributes {dimension_semantics = [#tpu.dimension_semantics<parallel>, #tpu.dimension_semantics<parallel>, #tpu.dimension_semantics<arbitrary>], iteration_bounds = array<i64: 1, 2, 1>, scalar_prefetch = 0 : i64, scratch_operands = 1 : i64, tpu.core_type = #tpu.core_type<tc>, window_params = [{transform_indices = @transform_0, window_bounds = array<i64: 16, 128>}, {transform_indices = @transform_1, window_bounds = array<i64: 128, 256>}, {transform_indices = @transform_2, window_bounds = array<i64: 1, 128>}, {transform_indices = @transform_3, window_bounds = array<i64: 1, 128>}, {transform_indices = @transform_4, window_bounds = array<i64: 16, 256>}]} {
    %c0_i32 = arith.constant 0 : i32
    %0 = arith.cmpi eq, %arg2, %c0_i32 : i32
    %1 = arith.extui %0 : i1 to i32
    %c0_i32_0 = arith.constant 0 : i32
    %2 = arith.cmpi ne, %1, %c0_i32_0 : i32
    scf.if %2 {
      %cst_14 = arith.constant 0.000000e+00 : f32
      %20 = vector.broadcast %cst_14 : f32 to vector<16x256xf32>
      %c0_15 = arith.constant 0 : index
      %c0_16 = arith.constant 0 : index
      %21 = vector.load %arg8[%c0_15, %c0_16] : memref<16x256xf32, #tpu.memory_space<vmem>>, vector<16x256xf32>
      tpu.vector_store %arg8[%c0_15, %c0_16], %20 {strides = array<i32>} : memref<16x256xf32, #tpu.memory_space<vmem>>, vector<16x256xf32>,
    } else {
    }
    %c0 = arith.constant 0 : index
    %c0_1 = arith.constant 0 : index
    %3 = vector.load %arg3[%c0, %c0_1] : memref<16x128xbf16, #tpu.memory_space<vmem>>, vector<16x128xbf16>
    %4 = arith.extf %3 : vector<16x128xbf16> to vector<16x128xf32>
    %c0_2 = arith.constant 0 : index
    %c0_3 = arith.constant 0 : index
    %5 = vector.load %arg5[%c0_2, %c0_3] : memref<1x128xf32, #tpu.memory_space<vmem>>, vector<1x128xf32>
    %6 = vector.broadcast %5 : vector<1x128xf32> to vector<16x128xf32>
    %7 = arith.mulf %4, %6 : vector<16x128xf32>
    %c0_4 = arith.constant 0 : index
    %c0_5 = arith.constant 0 : index
    %8 = vector.load %arg6[%c0_4, %c0_5] : memref<1x128xf32, #tpu.memory_space<vmem>>, vector<1x128xf32>
    %9 = vector.broadcast %8 : vector<1x128xf32> to vector<16x128xf32>
    %10 = arith.addf %7, %9 : vector<16x128xf32>
    %11 = arith.truncf %10 : vector<16x128xf32> to vector<16x128xbf16>
    %c0_6 = arith.constant 0 : index
    %c0_7 = arith.constant 0 : index
    %12 = vector.load %arg8[%c0_6, %c0_7] : memref<16x256xf32, #tpu.memory_space<vmem>>, vector<16x256xf32>
    %c0_8 = arith.constant 0 : index
    %c0_9 = arith.constant 0 : index
    %13 = vector.load %arg4[%c0_8, %c0_9] : memref<128x256xbf16, #tpu.memory_space<vmem>>, vector<128x256xbf16>
    %cst = arith.constant dense<0.000000e+00> : vector<16x256xf32>
    %14 = tpu.matmul %11, %13, %cst {dimension_numbers = #tpu.dot_dimension_numbers<[1], [0], [0], [1], [0, 0, 1, 1], [], []>} : vector<16x128xbf16>, vector<128x256xbf16>, vector<16x256xf32> -> vector<16x256xf32>
    %15 = arith.addf %12, %14 : vector<16x256xf32>
    %c0_10 = arith.constant 0 : index
    %c0_11 = arith.constant 0 : index
    %16 = vector.load %arg8[%c0_10, %c0_11] : memref<16x256xf32, #tpu.memory_space<vmem>>, vector<16x256xf32>
    tpu.vector_store %arg8[%c0_10, %c0_11], %15 {strides = array<i32>} : memref<16x256xf32, #tpu.memory_space<vmem>>, vector<16x256xf32>,
    %c0_i32_12 = arith.constant 0 : i32
    %17 = arith.cmpi eq, %arg2, %c0_i32_12 : i32
    %18 = arith.extui %17 : i1 to i32
    %c0_i32_13 = arith.constant 0 : i32
    %19 = arith.cmpi ne, %18, %c0_i32_13 : i32
    scf.if %19 {
      %c0_14 = arith.constant 0 : index
      %c0_15 = arith.constant 0 : index
      %20 = vector.load %arg8[%c0_14, %c0_15] : memref<16x256xf32, #tpu.memory_space<vmem>>, vector<16x256xf32>
      %cst_16 = arith.constant 0.000000e+00 : f32
      %21 = vector.broadcast %cst_16 : f32 to vector<16x256xf32>
      %22 = arith.maximumf %20, %21 : vector<16x256xf32>
      %23 = arith.truncf %22 : vector<16x256xf32> to vector<16x256xbf16>
      %c0_17 = arith.constant 0 : index
      %c0_18 = arith.constant 0 : index
      %24 = vector.load %arg7[%c0_17, %c0_18] : memref<16x256xbf16, #tpu.memory_space<vmem>>, vector<16x256xbf16>
      tpu.vector_store %arg7[%c0_17, %c0_18], %23 {strides = array<i32>} : memref<16x256xbf16, #tpu.memory_space<vmem>>, vector<16x256xbf16>,
    } else {
    }
    return
  }
  func.func @transform_0(%arg0: i32, %arg1: i32, %arg2: i32) -> (i32, i32) {
    %c0_i32 = arith.constant 0 : i32
    return %arg0, %arg2 : i32, i32
  }
  func.func @transform_1(%arg0: i32, %arg1: i32, %arg2: i32) -> (i32, i32) {
    %c0_i32 = arith.constant 0 : i32
    return %arg2, %arg1 : i32, i32
  }
  func.func @transform_2(%arg0: i32, %arg1: i32, %arg2: i32) -> (i32, i32) {
    %c0_i32 = arith.constant 0 : i32
    %c0_i32_0 = arith.constant 0 : i32
    return %c0_i32, %arg2 : i32, i32
  }
  func.func @transform_3(%arg0: i32, %arg1: i32, %arg2: i32) -> (i32, i32) {
    %c0_i32 = arith.constant 0 : i32
    %c0_i32_0 = arith.constant 0 : i32
    return %c0_i32, %arg2 : i32, i32
  }
  func.func @transform_4(%arg0: i32, %arg1: i32, %arg2: i32) -> (i32, i32) {
    %c0_i32 = arith.constant 0 : i32
    return %arg0, %arg1 : i32, i32
  }
}

module attributes {stable_mosaic.version = 11 : i64} {
  func.func @_dwconv_kernel(%arg0: i32, %arg1: memref<1x7x7x256xbf16, #tpu.memory_space<vmem>>, %arg2: memref<49x256xf32, #tpu.memory_space<vmem>>, %arg3: memref<1x1x1x256xbf16, #tpu.memory_space<vmem>>) attributes {dimension_semantics = [#tpu.dimension_semantics<parallel>], iteration_bounds = array<i64: 2>, scalar_prefetch = 0 : i64, scratch_operands = 0 : i64, tpu.core_type = #tpu.core_type<tc>, window_params = [{transform_indices = @transform_0, window_bounds = array<i64: 1, 7, 7, 256>}, {pipeline_mode = #tpu.pipeline_mode<synchronous>, transform_indices = @transform_1, window_bounds = array<i64: 49, 256>}, {transform_indices = @transform_2, window_bounds = array<i64: 1, 1, 1, 256>}]} {
    %c0 = arith.constant 0 : index
    %c0_0 = arith.constant 0 : index
    %c0_1 = arith.constant 0 : index
    %c0_2 = arith.constant 0 : index
    %0 = vector.load %arg1[%c0, %c0_0, %c0_1, %c0_2] : memref<1x7x7x256xbf16, #tpu.memory_space<vmem>>, vector<1x7x7x256xbf16>
    %1 = arith.extf %0 : vector<1x7x7x256xbf16> to vector<1x7x7x256xf32>
    %c0_3 = arith.constant 0 : index
    %c0_4 = arith.constant 0 : index
    %2 = vector.load %arg2[%c0_3, %c0_4] : memref<49x256xf32, #tpu.memory_space<vmem>>, vector<49x256xf32>
    %cst = arith.constant 0.000000e+00 : f32
    %3 = vector.broadcast %cst : f32 to vector<1x1x1x256xf32>
    %4 = vector.extract_strided_slice %1 {offsets = [0, 0, 0, 0], sizes = [1, 1, 1, 256], strides = [1, 1, 1, 1]} : vector<1x7x7x256xf32> to vector<1x1x1x256xf32>
    %5 = vector.extract_strided_slice %2 {offsets = [0, 0], sizes = [1, 256], strides = [1, 1]} : vector<49x256xf32> to vector<1x256xf32>
    %6 = vector.shape_cast %5 : vector<1x256xf32> to vector<1x1x1x256xf32>
    %7 = arith.mulf %4, %6 : vector<1x1x1x256xf32>
    %8 = arith.addf %3, %7 : vector<1x1x1x256xf32>
    %9 = vector.extract_strided_slice %1 {offsets = [0, 0, 1, 0], sizes = [1, 1, 1, 256], strides = [1, 1, 1, 1]} : vector<1x7x7x256xf32> to vector<1x1x1x256xf32>
    %10 = vector.extract_strided_slice %2 {offsets = [1, 0], sizes = [1, 256], strides = [1, 1]} : vector<49x256xf32> to vector<1x256xf32>
    %11 = vector.shape_cast %10 : vector<1x256xf32> to vector<1x1x1x256xf32>
    %12 = arith.mulf %9, %11 : vector<1x1x1x256xf32>
    %13 = arith.addf %8, %12 : vector<1x1x1x256xf32>
    %14 = vector.extract_strided_slice %1 {offsets = [0, 0, 2, 0], sizes = [1, 1, 1, 256], strides = [1, 1, 1, 1]} : vector<1x7x7x256xf32> to vector<1x1x1x256xf32>
    %15 = vector.extract_strided_slice %2 {offsets = [2, 0], sizes = [1, 256], strides = [1, 1]} : vector<49x256xf32> to vector<1x256xf32>
    %16 = vector.shape_cast %15 : vector<1x256xf32> to vector<1x1x1x256xf32>
    %17 = arith.mulf %14, %16 : vector<1x1x1x256xf32>
    %18 = arith.addf %13, %17 : vector<1x1x1x256xf32>
    %19 = vector.extract_strided_slice %1 {offsets = [0, 0, 3, 0], sizes = [1, 1, 1, 256], strides = [1, 1, 1, 1]} : vector<1x7x7x256xf32> to vector<1x1x1x256xf32>
    %20 = vector.extract_strided_slice %2 {offsets = [3, 0], sizes = [1, 256], strides = [1, 1]} : vector<49x256xf32> to vector<1x256xf32>
    %21 = vector.shape_cast %20 : vector<1x256xf32> to vector<1x1x1x256xf32>
    %22 = arith.mulf %19, %21 : vector<1x1x1x256xf32>
    %23 = arith.addf %18, %22 : vector<1x1x1x256xf32>
    %24 = vector.extract_strided_slice %1 {offsets = [0, 0, 4, 0], sizes = [1, 1, 1, 256], strides = [1, 1, 1, 1]} : vector<1x7x7x256xf32> to vector<1x1x1x256xf32>
    %25 = vector.extract_strided_slice %2 {offsets = [4, 0], sizes = [1, 256], strides = [1, 1]} : vector<49x256xf32> to vector<1x256xf32>
    %26 = vector.shape_cast %25 : vector<1x256xf32> to vector<1x1x1x256xf32>
    %27 = arith.mulf %24, %26 : vector<1x1x1x256xf32>
    %28 = arith.addf %23, %27 : vector<1x1x1x256xf32>
    %29 = vector.extract_strided_slice %1 {offsets = [0, 0, 5, 0], sizes = [1, 1, 1, 256], strides = [1, 1, 1, 1]} : vector<1x7x7x256xf32> to vector<1x1x1x256xf32>
    %30 = vector.extract_strided_slice %2 {offsets = [5, 0], sizes = [1, 256], strides = [1, 1]} : vector<49x256xf32> to vector<1x256xf32>
    %31 = vector.shape_cast %30 : vector<1x256xf32> to vector<1x1x1x256xf32>
    %32 = arith.mulf %29, %31 : vector<1x1x1x256xf32>
    %33 = arith.addf %28, %32 : vector<1x1x1x256xf32>
    %34 = vector.extract_strided_slice %1 {offsets = [0, 0, 6, 0], sizes = [1, 1, 1, 256], strides = [1, 1, 1, 1]} : vector<1x7x7x256xf32> to vector<1x1x1x256xf32>
    %35 = vector.extract_strided_slice %2 {offsets = [6, 0], sizes = [1, 256], strides = [1, 1]} : vector<49x256xf32> to vector<1x256xf32>
    %36 = vector.shape_cast %35 : vector<1x256xf32> to vector<1x1x1x256xf32>
    %37 = arith.mulf %34, %36 : vector<1x1x1x256xf32>
    %38 = arith.addf %33, %37 : vector<1x1x1x256xf32>
    %39 = vector.extract_strided_slice %1 {offsets = [0, 1, 0, 0], sizes = [1, 1, 1, 256], strides = [1, 1, 1, 1]} : vector<1x7x7x256xf32> to vector<1x1x1x256xf32>
    %40 = vector.extract_strided_slice %2 {offsets = [7, 0], sizes = [1, 256], strides = [1, 1]} : vector<49x256xf32> to vector<1x256xf32>
    %41 = vector.shape_cast %40 : vector<1x256xf32> to vector<1x1x1x256xf32>
    %42 = arith.mulf %39, %41 : vector<1x1x1x256xf32>
    %43 = arith.addf %38, %42 : vector<1x1x1x256xf32>
    %44 = vector.extract_strided_slice %1 {offsets = [0, 1, 1, 0], sizes = [1, 1, 1, 256], strides = [1, 1, 1, 1]} : vector<1x7x7x256xf32> to vector<1x1x1x256xf32>
    %45 = vector.extract_strided_slice %2 {offsets = [8, 0], sizes = [1, 256], strides = [1, 1]} : vector<49x256xf32> to vector<1x256xf32>
    %46 = vector.shape_cast %45 : vector<1x256xf32> to vector<1x1x1x256xf32>
    %47 = arith.mulf %44, %46 : vector<1x1x1x256xf32>
    %48 = arith.addf %43, %47 : vector<1x1x1x256xf32>
    %49 = vector.extract_strided_slice %1 {offsets = [0, 1, 2, 0], sizes = [1, 1, 1, 256], strides = [1, 1, 1, 1]} : vector<1x7x7x256xf32> to vector<1x1x1x256xf32>
    %50 = vector.extract_strided_slice %2 {offsets = [9, 0], sizes = [1, 256], strides = [1, 1]} : vector<49x256xf32> to vector<1x256xf32>
    %51 = vector.shape_cast %50 : vector<1x256xf32> to vector<1x1x1x256xf32>
    %52 = arith.mulf %49, %51 : vector<1x1x1x256xf32>
    %53 = arith.addf %48, %52 : vector<1x1x1x256xf32>
    %54 = vector.extract_strided_slice %1 {offsets = [0, 1, 3, 0], sizes = [1, 1, 1, 256], strides = [1, 1, 1, 1]} : vector<1x7x7x256xf32> to vector<1x1x1x256xf32>
    %55 = vector.extract_strided_slice %2 {offsets = [10, 0], sizes = [1, 256], strides = [1, 1]} : vector<49x256xf32> to vector<1x256xf32>
    %56 = vector.shape_cast %55 : vector<1x256xf32> to vector<1x1x1x256xf32>
    %57 = arith.mulf %54, %56 : vector<1x1x1x256xf32>
    %58 = arith.addf %53, %57 : vector<1x1x1x256xf32>
    %59 = vector.extract_strided_slice %1 {offsets = [0, 1, 4, 0], sizes = [1, 1, 1, 256], strides = [1, 1, 1, 1]} : vector<1x7x7x256xf32> to vector<1x1x1x256xf32>
    %60 = vector.extract_strided_slice %2 {offsets = [11, 0], sizes = [1, 256], strides = [1, 1]} : vector<49x256xf32> to vector<1x256xf32>
    %61 = vector.shape_cast %60 : vector<1x256xf32> to vector<1x1x1x256xf32>
    %62 = arith.mulf %59, %61 : vector<1x1x1x256xf32>
    %63 = arith.addf %58, %62 : vector<1x1x1x256xf32>
    %64 = vector.extract_strided_slice %1 {offsets = [0, 1, 5, 0], sizes = [1, 1, 1, 256], strides = [1, 1, 1, 1]} : vector<1x7x7x256xf32> to vector<1x1x1x256xf32>
    %65 = vector.extract_strided_slice %2 {offsets = [12, 0], sizes = [1, 256], strides = [1, 1]} : vector<49x256xf32> to vector<1x256xf32>
    %66 = vector.shape_cast %65 : vector<1x256xf32> to vector<1x1x1x256xf32>
    %67 = arith.mulf %64, %66 : vector<1x1x1x256xf32>
    %68 = arith.addf %63, %67 : vector<1x1x1x256xf32>
    %69 = vector.extract_strided_slice %1 {offsets = [0, 1, 6, 0], sizes = [1, 1, 1, 256], strides = [1, 1, 1, 1]} : vector<1x7x7x256xf32> to vector<1x1x1x256xf32>
    %70 = vector.extract_strided_slice %2 {offsets = [13, 0], sizes = [1, 256], strides = [1, 1]} : vector<49x256xf32> to vector<1x256xf32>
    %71 = vector.shape_cast %70 : vector<1x256xf32> to vector<1x1x1x256xf32>
    %72 = arith.mulf %69, %71 : vector<1x1x1x256xf32>
    %73 = arith.addf %68, %72 : vector<1x1x1x256xf32>
    %74 = vector.extract_strided_slice %1 {offsets = [0, 2, 0, 0], sizes = [1, 1, 1, 256], strides = [1, 1, 1, 1]} : vector<1x7x7x256xf32> to vector<1x1x1x256xf32>
    %75 = vector.extract_strided_slice %2 {offsets = [14, 0], sizes = [1, 256], strides = [1, 1]} : vector<49x256xf32> to vector<1x256xf32>
    %76 = vector.shape_cast %75 : vector<1x256xf32> to vector<1x1x1x256xf32>
    %77 = arith.mulf %74, %76 : vector<1x1x1x256xf32>
    %78 = arith.addf %73, %77 : vector<1x1x1x256xf32>
    %79 = vector.extract_strided_slice %1 {offsets = [0, 2, 1, 0], sizes = [1, 1, 1, 256], strides = [1, 1, 1, 1]} : vector<1x7x7x256xf32> to vector<1x1x1x256xf32>
    %80 = vector.extract_strided_slice %2 {offsets = [15, 0], sizes = [1, 256], strides = [1, 1]} : vector<49x256xf32> to vector<1x256xf32>
    %81 = vector.shape_cast %80 : vector<1x256xf32> to vector<1x1x1x256xf32>
    %82 = arith.mulf %79, %81 : vector<1x1x1x256xf32>
    %83 = arith.addf %78, %82 : vector<1x1x1x256xf32>
    %84 = vector.extract_strided_slice %1 {offsets = [0, 2, 2, 0], sizes = [1, 1, 1, 256], strides = [1, 1, 1, 1]} : vector<1x7x7x256xf32> to vector<1x1x1x256xf32>
    %85 = vector.extract_strided_slice %2 {offsets = [16, 0], sizes = [1, 256], strides = [1, 1]} : vector<49x256xf32> to vector<1x256xf32>
    %86 = vector.shape_cast %85 : vector<1x256xf32> to vector<1x1x1x256xf32>
    %87 = arith.mulf %84, %86 : vector<1x1x1x256xf32>
    %88 = arith.addf %83, %87 : vector<1x1x1x256xf32>
    %89 = vector.extract_strided_slice %1 {offsets = [0, 2, 3, 0], sizes = [1, 1, 1, 256], strides = [1, 1, 1, 1]} : vector<1x7x7x256xf32> to vector<1x1x1x256xf32>
    %90 = vector.extract_strided_slice %2 {offsets = [17, 0], sizes = [1, 256], strides = [1, 1]} : vector<49x256xf32> to vector<1x256xf32>
    %91 = vector.shape_cast %90 : vector<1x256xf32> to vector<1x1x1x256xf32>
    %92 = arith.mulf %89, %91 : vector<1x1x1x256xf32>
    %93 = arith.addf %88, %92 : vector<1x1x1x256xf32>
    %94 = vector.extract_strided_slice %1 {offsets = [0, 2, 4, 0], sizes = [1, 1, 1, 256], strides = [1, 1, 1, 1]} : vector<1x7x7x256xf32> to vector<1x1x1x256xf32>
    %95 = vector.extract_strided_slice %2 {offsets = [18, 0], sizes = [1, 256], strides = [1, 1]} : vector<49x256xf32> to vector<1x256xf32>
    %96 = vector.shape_cast %95 : vector<1x256xf32> to vector<1x1x1x256xf32>
    %97 = arith.mulf %94, %96 : vector<1x1x1x256xf32>
    %98 = arith.addf %93, %97 : vector<1x1x1x256xf32>
    %99 = vector.extract_strided_slice %1 {offsets = [0, 2, 5, 0], sizes = [1, 1, 1, 256], strides = [1, 1, 1, 1]} : vector<1x7x7x256xf32> to vector<1x1x1x256xf32>
    %100 = vector.extract_strided_slice %2 {offsets = [19, 0], sizes = [1, 256], strides = [1, 1]} : vector<49x256xf32> to vector<1x256xf32>
    %101 = vector.shape_cast %100 : vector<1x256xf32> to vector<1x1x1x256xf32>
    %102 = arith.mulf %99, %101 : vector<1x1x1x256xf32>
    %103 = arith.addf %98, %102 : vector<1x1x1x256xf32>
    %104 = vector.extract_strided_slice %1 {offsets = [0, 2, 6, 0], sizes = [1, 1, 1, 256], strides = [1, 1, 1, 1]} : vector<1x7x7x256xf32> to vector<1x1x1x256xf32>
    %105 = vector.extract_strided_slice %2 {offsets = [20, 0], sizes = [1, 256], strides = [1, 1]} : vector<49x256xf32> to vector<1x256xf32>
    %106 = vector.shape_cast %105 : vector<1x256xf32> to vector<1x1x1x256xf32>
    %107 = arith.mulf %104, %106 : vector<1x1x1x256xf32>
    %108 = arith.addf %103, %107 : vector<1x1x1x256xf32>
    %109 = vector.extract_strided_slice %1 {offsets = [0, 3, 0, 0], sizes = [1, 1, 1, 256], strides = [1, 1, 1, 1]} : vector<1x7x7x256xf32> to vector<1x1x1x256xf32>
    %110 = vector.extract_strided_slice %2 {offsets = [21, 0], sizes = [1, 256], strides = [1, 1]} : vector<49x256xf32> to vector<1x256xf32>
    %111 = vector.shape_cast %110 : vector<1x256xf32> to vector<1x1x1x256xf32>
    %112 = arith.mulf %109, %111 : vector<1x1x1x256xf32>
    %113 = arith.addf %108, %112 : vector<1x1x1x256xf32>
    %114 = vector.extract_strided_slice %1 {offsets = [0, 3, 1, 0], sizes = [1, 1, 1, 256], strides = [1, 1, 1, 1]} : vector<1x7x7x256xf32> to vector<1x1x1x256xf32>
    %115 = vector.extract_strided_slice %2 {offsets = [22, 0], sizes = [1, 256], strides = [1, 1]} : vector<49x256xf32> to vector<1x256xf32>
    %116 = vector.shape_cast %115 : vector<1x256xf32> to vector<1x1x1x256xf32>
    %117 = arith.mulf %114, %116 : vector<1x1x1x256xf32>
    %118 = arith.addf %113, %117 : vector<1x1x1x256xf32>
    %119 = vector.extract_strided_slice %1 {offsets = [0, 3, 2, 0], sizes = [1, 1, 1, 256], strides = [1, 1, 1, 1]} : vector<1x7x7x256xf32> to vector<1x1x1x256xf32>
    %120 = vector.extract_strided_slice %2 {offsets = [23, 0], sizes = [1, 256], strides = [1, 1]} : vector<49x256xf32> to vector<1x256xf32>
    %121 = vector.shape_cast %120 : vector<1x256xf32> to vector<1x1x1x256xf32>
    %122 = arith.mulf %119, %121 : vector<1x1x1x256xf32>
    %123 = arith.addf %118, %122 : vector<1x1x1x256xf32>
    %124 = vector.extract_strided_slice %1 {offsets = [0, 3, 3, 0], sizes = [1, 1, 1, 256], strides = [1, 1, 1, 1]} : vector<1x7x7x256xf32> to vector<1x1x1x256xf32>
    %125 = vector.extract_strided_slice %2 {offsets = [24, 0], sizes = [1, 256], strides = [1, 1]} : vector<49x256xf32> to vector<1x256xf32>
    %126 = vector.shape_cast %125 : vector<1x256xf32> to vector<1x1x1x256xf32>
    %127 = arith.mulf %124, %126 : vector<1x1x1x256xf32>
    %128 = arith.addf %123, %127 : vector<1x1x1x256xf32>
    %129 = vector.extract_strided_slice %1 {offsets = [0, 3, 4, 0], sizes = [1, 1, 1, 256], strides = [1, 1, 1, 1]} : vector<1x7x7x256xf32> to vector<1x1x1x256xf32>
    %130 = vector.extract_strided_slice %2 {offsets = [25, 0], sizes = [1, 256], strides = [1, 1]} : vector<49x256xf32> to vector<1x256xf32>
    %131 = vector.shape_cast %130 : vector<1x256xf32> to vector<1x1x1x256xf32>
    %132 = arith.mulf %129, %131 : vector<1x1x1x256xf32>
    %133 = arith.addf %128, %132 : vector<1x1x1x256xf32>
    %134 = vector.extract_strided_slice %1 {offsets = [0, 3, 5, 0], sizes = [1, 1, 1, 256], strides = [1, 1, 1, 1]} : vector<1x7x7x256xf32> to vector<1x1x1x256xf32>
    %135 = vector.extract_strided_slice %2 {offsets = [26, 0], sizes = [1, 256], strides = [1, 1]} : vector<49x256xf32> to vector<1x256xf32>
    %136 = vector.shape_cast %135 : vector<1x256xf32> to vector<1x1x1x256xf32>
    %137 = arith.mulf %134, %136 : vector<1x1x1x256xf32>
    %138 = arith.addf %133, %137 : vector<1x1x1x256xf32>
    %139 = vector.extract_strided_slice %1 {offsets = [0, 3, 6, 0], sizes = [1, 1, 1, 256], strides = [1, 1, 1, 1]} : vector<1x7x7x256xf32> to vector<1x1x1x256xf32>
    %140 = vector.extract_strided_slice %2 {offsets = [27, 0], sizes = [1, 256], strides = [1, 1]} : vector<49x256xf32> to vector<1x256xf32>
    %141 = vector.shape_cast %140 : vector<1x256xf32> to vector<1x1x1x256xf32>
    %142 = arith.mulf %139, %141 : vector<1x1x1x256xf32>
    %143 = arith.addf %138, %142 : vector<1x1x1x256xf32>
    %144 = vector.extract_strided_slice %1 {offsets = [0, 4, 0, 0], sizes = [1, 1, 1, 256], strides = [1, 1, 1, 1]} : vector<1x7x7x256xf32> to vector<1x1x1x256xf32>
    %145 = vector.extract_strided_slice %2 {offsets = [28, 0], sizes = [1, 256], strides = [1, 1]} : vector<49x256xf32> to vector<1x256xf32>
    %146 = vector.shape_cast %145 : vector<1x256xf32> to vector<1x1x1x256xf32>
    %147 = arith.mulf %144, %146 : vector<1x1x1x256xf32>
    %148 = arith.addf %143, %147 : vector<1x1x1x256xf32>
    %149 = vector.extract_strided_slice %1 {offsets = [0, 4, 1, 0], sizes = [1, 1, 1, 256], strides = [1, 1, 1, 1]} : vector<1x7x7x256xf32> to vector<1x1x1x256xf32>
    %150 = vector.extract_strided_slice %2 {offsets = [29, 0], sizes = [1, 256], strides = [1, 1]} : vector<49x256xf32> to vector<1x256xf32>
    %151 = vector.shape_cast %150 : vector<1x256xf32> to vector<1x1x1x256xf32>
    %152 = arith.mulf %149, %151 : vector<1x1x1x256xf32>
    %153 = arith.addf %148, %152 : vector<1x1x1x256xf32>
    %154 = vector.extract_strided_slice %1 {offsets = [0, 4, 2, 0], sizes = [1, 1, 1, 256], strides = [1, 1, 1, 1]} : vector<1x7x7x256xf32> to vector<1x1x1x256xf32>
    %155 = vector.extract_strided_slice %2 {offsets = [30, 0], sizes = [1, 256], strides = [1, 1]} : vector<49x256xf32> to vector<1x256xf32>
    %156 = vector.shape_cast %155 : vector<1x256xf32> to vector<1x1x1x256xf32>
    %157 = arith.mulf %154, %156 : vector<1x1x1x256xf32>
    %158 = arith.addf %153, %157 : vector<1x1x1x256xf32>
    %159 = vector.extract_strided_slice %1 {offsets = [0, 4, 3, 0], sizes = [1, 1, 1, 256], strides = [1, 1, 1, 1]} : vector<1x7x7x256xf32> to vector<1x1x1x256xf32>
    %160 = vector.extract_strided_slice %2 {offsets = [31, 0], sizes = [1, 256], strides = [1, 1]} : vector<49x256xf32> to vector<1x256xf32>
    %161 = vector.shape_cast %160 : vector<1x256xf32> to vector<1x1x1x256xf32>
    %162 = arith.mulf %159, %161 : vector<1x1x1x256xf32>
    %163 = arith.addf %158, %162 : vector<1x1x1x256xf32>
    %164 = vector.extract_strided_slice %1 {offsets = [0, 4, 4, 0], sizes = [1, 1, 1, 256], strides = [1, 1, 1, 1]} : vector<1x7x7x256xf32> to vector<1x1x1x256xf32>
    %165 = vector.extract_strided_slice %2 {offsets = [32, 0], sizes = [1, 256], strides = [1, 1]} : vector<49x256xf32> to vector<1x256xf32>
    %166 = vector.shape_cast %165 : vector<1x256xf32> to vector<1x1x1x256xf32>
    %167 = arith.mulf %164, %166 : vector<1x1x1x256xf32>
    %168 = arith.addf %163, %167 : vector<1x1x1x256xf32>
    %169 = vector.extract_strided_slice %1 {offsets = [0, 4, 5, 0], sizes = [1, 1, 1, 256], strides = [1, 1, 1, 1]} : vector<1x7x7x256xf32> to vector<1x1x1x256xf32>
    %170 = vector.extract_strided_slice %2 {offsets = [33, 0], sizes = [1, 256], strides = [1, 1]} : vector<49x256xf32> to vector<1x256xf32>
    %171 = vector.shape_cast %170 : vector<1x256xf32> to vector<1x1x1x256xf32>
    %172 = arith.mulf %169, %171 : vector<1x1x1x256xf32>
    %173 = arith.addf %168, %172 : vector<1x1x1x256xf32>
    %174 = vector.extract_strided_slice %1 {offsets = [0, 4, 6, 0], sizes = [1, 1, 1, 256], strides = [1, 1, 1, 1]} : vector<1x7x7x256xf32> to vector<1x1x1x256xf32>
    %175 = vector.extract_strided_slice %2 {offsets = [34, 0], sizes = [1, 256], strides = [1, 1]} : vector<49x256xf32> to vector<1x256xf32>
    %176 = vector.shape_cast %175 : vector<1x256xf32> to vector<1x1x1x256xf32>
    %177 = arith.mulf %174, %176 : vector<1x1x1x256xf32>
    %178 = arith.addf %173, %177 : vector<1x1x1x256xf32>
    %179 = vector.extract_strided_slice %1 {offsets = [0, 5, 0, 0], sizes = [1, 1, 1, 256], strides = [1, 1, 1, 1]} : vector<1x7x7x256xf32> to vector<1x1x1x256xf32>
    %180 = vector.extract_strided_slice %2 {offsets = [35, 0], sizes = [1, 256], strides = [1, 1]} : vector<49x256xf32> to vector<1x256xf32>
    %181 = vector.shape_cast %180 : vector<1x256xf32> to vector<1x1x1x256xf32>
    %182 = arith.mulf %179, %181 : vector<1x1x1x256xf32>
    %183 = arith.addf %178, %182 : vector<1x1x1x256xf32>
    %184 = vector.extract_strided_slice %1 {offsets = [0, 5, 1, 0], sizes = [1, 1, 1, 256], strides = [1, 1, 1, 1]} : vector<1x7x7x256xf32> to vector<1x1x1x256xf32>
    %185 = vector.extract_strided_slice %2 {offsets = [36, 0], sizes = [1, 256], strides = [1, 1]} : vector<49x256xf32> to vector<1x256xf32>
    %186 = vector.shape_cast %185 : vector<1x256xf32> to vector<1x1x1x256xf32>
    %187 = arith.mulf %184, %186 : vector<1x1x1x256xf32>
    %188 = arith.addf %183, %187 : vector<1x1x1x256xf32>
    %189 = vector.extract_strided_slice %1 {offsets = [0, 5, 2, 0], sizes = [1, 1, 1, 256], strides = [1, 1, 1, 1]} : vector<1x7x7x256xf32> to vector<1x1x1x256xf32>
    %190 = vector.extract_strided_slice %2 {offsets = [37, 0], sizes = [1, 256], strides = [1, 1]} : vector<49x256xf32> to vector<1x256xf32>
    %191 = vector.shape_cast %190 : vector<1x256xf32> to vector<1x1x1x256xf32>
    %192 = arith.mulf %189, %191 : vector<1x1x1x256xf32>
    %193 = arith.addf %188, %192 : vector<1x1x1x256xf32>
    %194 = vector.extract_strided_slice %1 {offsets = [0, 5, 3, 0], sizes = [1, 1, 1, 256], strides = [1, 1, 1, 1]} : vector<1x7x7x256xf32> to vector<1x1x1x256xf32>
    %195 = vector.extract_strided_slice %2 {offsets = [38, 0], sizes = [1, 256], strides = [1, 1]} : vector<49x256xf32> to vector<1x256xf32>
    %196 = vector.shape_cast %195 : vector<1x256xf32> to vector<1x1x1x256xf32>
    %197 = arith.mulf %194, %196 : vector<1x1x1x256xf32>
    %198 = arith.addf %193, %197 : vector<1x1x1x256xf32>
    %199 = vector.extract_strided_slice %1 {offsets = [0, 5, 4, 0], sizes = [1, 1, 1, 256], strides = [1, 1, 1, 1]} : vector<1x7x7x256xf32> to vector<1x1x1x256xf32>
    %200 = vector.extract_strided_slice %2 {offsets = [39, 0], sizes = [1, 256], strides = [1, 1]} : vector<49x256xf32> to vector<1x256xf32>
    %201 = vector.shape_cast %200 : vector<1x256xf32> to vector<1x1x1x256xf32>
    %202 = arith.mulf %199, %201 : vector<1x1x1x256xf32>
    %203 = arith.addf %198, %202 : vector<1x1x1x256xf32>
    %204 = vector.extract_strided_slice %1 {offsets = [0, 5, 5, 0], sizes = [1, 1, 1, 256], strides = [1, 1, 1, 1]} : vector<1x7x7x256xf32> to vector<1x1x1x256xf32>
    %205 = vector.extract_strided_slice %2 {offsets = [40, 0], sizes = [1, 256], strides = [1, 1]} : vector<49x256xf32> to vector<1x256xf32>
    %206 = vector.shape_cast %205 : vector<1x256xf32> to vector<1x1x1x256xf32>
    %207 = arith.mulf %204, %206 : vector<1x1x1x256xf32>
    %208 = arith.addf %203, %207 : vector<1x1x1x256xf32>
    %209 = vector.extract_strided_slice %1 {offsets = [0, 5, 6, 0], sizes = [1, 1, 1, 256], strides = [1, 1, 1, 1]} : vector<1x7x7x256xf32> to vector<1x1x1x256xf32>
    %210 = vector.extract_strided_slice %2 {offsets = [41, 0], sizes = [1, 256], strides = [1, 1]} : vector<49x256xf32> to vector<1x256xf32>
    %211 = vector.shape_cast %210 : vector<1x256xf32> to vector<1x1x1x256xf32>
    %212 = arith.mulf %209, %211 : vector<1x1x1x256xf32>
    %213 = arith.addf %208, %212 : vector<1x1x1x256xf32>
    %214 = vector.extract_strided_slice %1 {offsets = [0, 6, 0, 0], sizes = [1, 1, 1, 256], strides = [1, 1, 1, 1]} : vector<1x7x7x256xf32> to vector<1x1x1x256xf32>
    %215 = vector.extract_strided_slice %2 {offsets = [42, 0], sizes = [1, 256], strides = [1, 1]} : vector<49x256xf32> to vector<1x256xf32>
    %216 = vector.shape_cast %215 : vector<1x256xf32> to vector<1x1x1x256xf32>
    %217 = arith.mulf %214, %216 : vector<1x1x1x256xf32>
    %218 = arith.addf %213, %217 : vector<1x1x1x256xf32>
    %219 = vector.extract_strided_slice %1 {offsets = [0, 6, 1, 0], sizes = [1, 1, 1, 256], strides = [1, 1, 1, 1]} : vector<1x7x7x256xf32> to vector<1x1x1x256xf32>
    %220 = vector.extract_strided_slice %2 {offsets = [43, 0], sizes = [1, 256], strides = [1, 1]} : vector<49x256xf32> to vector<1x256xf32>
    %221 = vector.shape_cast %220 : vector<1x256xf32> to vector<1x1x1x256xf32>
    %222 = arith.mulf %219, %221 : vector<1x1x1x256xf32>
    %223 = arith.addf %218, %222 : vector<1x1x1x256xf32>
    %224 = vector.extract_strided_slice %1 {offsets = [0, 6, 2, 0], sizes = [1, 1, 1, 256], strides = [1, 1, 1, 1]} : vector<1x7x7x256xf32> to vector<1x1x1x256xf32>
    %225 = vector.extract_strided_slice %2 {offsets = [44, 0], sizes = [1, 256], strides = [1, 1]} : vector<49x256xf32> to vector<1x256xf32>
    %226 = vector.shape_cast %225 : vector<1x256xf32> to vector<1x1x1x256xf32>
    %227 = arith.mulf %224, %226 : vector<1x1x1x256xf32>
    %228 = arith.addf %223, %227 : vector<1x1x1x256xf32>
    %229 = vector.extract_strided_slice %1 {offsets = [0, 6, 3, 0], sizes = [1, 1, 1, 256], strides = [1, 1, 1, 1]} : vector<1x7x7x256xf32> to vector<1x1x1x256xf32>
    %230 = vector.extract_strided_slice %2 {offsets = [45, 0], sizes = [1, 256], strides = [1, 1]} : vector<49x256xf32> to vector<1x256xf32>
    %231 = vector.shape_cast %230 : vector<1x256xf32> to vector<1x1x1x256xf32>
    %232 = arith.mulf %229, %231 : vector<1x1x1x256xf32>
    %233 = arith.addf %228, %232 : vector<1x1x1x256xf32>
    %234 = vector.extract_strided_slice %1 {offsets = [0, 6, 4, 0], sizes = [1, 1, 1, 256], strides = [1, 1, 1, 1]} : vector<1x7x7x256xf32> to vector<1x1x1x256xf32>
    %235 = vector.extract_strided_slice %2 {offsets = [46, 0], sizes = [1, 256], strides = [1, 1]} : vector<49x256xf32> to vector<1x256xf32>
    %236 = vector.shape_cast %235 : vector<1x256xf32> to vector<1x1x1x256xf32>
    %237 = arith.mulf %234, %236 : vector<1x1x1x256xf32>
    %238 = arith.addf %233, %237 : vector<1x1x1x256xf32>
    %239 = vector.extract_strided_slice %1 {offsets = [0, 6, 5, 0], sizes = [1, 1, 1, 256], strides = [1, 1, 1, 1]} : vector<1x7x7x256xf32> to vector<1x1x1x256xf32>
    %240 = vector.extract_strided_slice %2 {offsets = [47, 0], sizes = [1, 256], strides = [1, 1]} : vector<49x256xf32> to vector<1x256xf32>
    %241 = vector.shape_cast %240 : vector<1x256xf32> to vector<1x1x1x256xf32>
    %242 = arith.mulf %239, %241 : vector<1x1x1x256xf32>
    %243 = arith.addf %238, %242 : vector<1x1x1x256xf32>
    %244 = vector.extract_strided_slice %1 {offsets = [0, 6, 6, 0], sizes = [1, 1, 1, 256], strides = [1, 1, 1, 1]} : vector<1x7x7x256xf32> to vector<1x1x1x256xf32>
    %245 = vector.extract_strided_slice %2 {offsets = [48, 0], sizes = [1, 256], strides = [1, 1]} : vector<49x256xf32> to vector<1x256xf32>
    %246 = vector.shape_cast %245 : vector<1x256xf32> to vector<1x1x1x256xf32>
    %247 = arith.mulf %244, %246 : vector<1x1x1x256xf32>
    %248 = arith.addf %243, %247 : vector<1x1x1x256xf32>
    %249 = arith.truncf %248 : vector<1x1x1x256xf32> to vector<1x1x1x256xbf16>
    %c0_5 = arith.constant 0 : index
    %c0_6 = arith.constant 0 : index
    %c0_7 = arith.constant 0 : index
    %c0_8 = arith.constant 0 : index
    %250 = vector.load %arg3[%c0_5, %c0_6, %c0_7, %c0_8] : memref<1x1x1x256xbf16, #tpu.memory_space<vmem>>, vector<1x1x1x256xbf16>
    tpu.vector_store %arg3[%c0_5, %c0_6, %c0_7, %c0_8], %249 {strides = array<i32>} : memref<1x1x1x256xbf16, #tpu.memory_space<vmem>>, vector<1x1x1x256xbf16>,
    return
  }
  func.func @transform_0(%arg0: i32) -> (i32, i32, i32, i32) {
    %c0_i32 = arith.constant 0 : i32
    %c0_i32_0 = arith.constant 0 : i32
    %c0_i32_1 = arith.constant 0 : i32
    %c0_i32_2 = arith.constant 0 : i32
    return %arg0, %c0_i32, %c0_i32_0, %c0_i32_1 : i32, i32, i32, i32
  }
  func.func @transform_1(%arg0: i32) -> (i32, i32) {
    %c0_i32 = arith.constant 0 : i32
    %c0_i32_0 = arith.constant 0 : i32
    %c0_i32_1 = arith.constant 0 : i32
    return %c0_i32, %c0_i32_0 : i32, i32
  }
  func.func @transform_2(%arg0: i32) -> (i32, i32, i32, i32) {
    %c0_i32 = arith.constant 0 : i32
    %c0_i32_0 = arith.constant 0 : i32
    %c0_i32_1 = arith.constant 0 : i32
    %c0_i32_2 = arith.constant 0 : i32
    return %arg0, %c0_i32, %c0_i32_0, %c0_i32_1 : i32, i32, i32, i32
  }
}

module attributes {stable_mosaic.version = 11 : i64} {
  func.func @_gemm_kernel(%arg0: i32, %arg1: i32, %arg2: i32, %arg3: memref<16x512xbf16, #tpu.memory_space<vmem>>, %arg4: memref<512x128xbf16, #tpu.memory_space<vmem>>, %arg5: memref<16x128xbf16, #tpu.memory_space<vmem>>, %arg6: memref<16x128xbf16, #tpu.memory_space<vmem>>, %arg7: memref<16x128xf32, #tpu.memory_space<vmem>>) attributes {dimension_semantics = [#tpu.dimension_semantics<parallel>, #tpu.dimension_semantics<parallel>, #tpu.dimension_semantics<arbitrary>], iteration_bounds = array<i64: 1, 1, 1>, scalar_prefetch = 0 : i64, scratch_operands = 1 : i64, tpu.core_type = #tpu.core_type<tc>, window_params = [{transform_indices = @transform_0, window_bounds = array<i64: 16, 512>}, {transform_indices = @transform_1, window_bounds = array<i64: 512, 128>}, {transform_indices = @transform_2, window_bounds = array<i64: 16, 128>}, {transform_indices = @transform_3, window_bounds = array<i64: 16, 128>}]} {
    %c0_i32 = arith.constant 0 : i32
    %0 = arith.cmpi eq, %arg2, %c0_i32 : i32
    %1 = arith.extui %0 : i1 to i32
    %c0_i32_0 = arith.constant 0 : i32
    %2 = arith.cmpi ne, %1, %c0_i32_0 : i32
    scf.if %2 {
      %cst_10 = arith.constant 0.000000e+00 : f32
      %12 = vector.broadcast %cst_10 : f32 to vector<16x128xf32>
      %c0_11 = arith.constant 0 : index
      %c0_12 = arith.constant 0 : index
      %13 = vector.load %arg7[%c0_11, %c0_12] : memref<16x128xf32, #tpu.memory_space<vmem>>, vector<16x128xf32>
      tpu.vector_store %arg7[%c0_11, %c0_12], %12 {strides = array<i32>} : memref<16x128xf32, #tpu.memory_space<vmem>>, vector<16x128xf32>,
    } else {
    }
    %c0 = arith.constant 0 : index
    %c0_1 = arith.constant 0 : index
    %3 = vector.load %arg3[%c0, %c0_1] : memref<16x512xbf16, #tpu.memory_space<vmem>>, vector<16x512xbf16>
    %c0_2 = arith.constant 0 : index
    %c0_3 = arith.constant 0 : index
    %4 = vector.load %arg7[%c0_2, %c0_3] : memref<16x128xf32, #tpu.memory_space<vmem>>, vector<16x128xf32>
    %c0_4 = arith.constant 0 : index
    %c0_5 = arith.constant 0 : index
    %5 = vector.load %arg4[%c0_4, %c0_5] : memref<512x128xbf16, #tpu.memory_space<vmem>>, vector<512x128xbf16>
    %cst = arith.constant dense<0.000000e+00> : vector<16x128xf32>
    %6 = tpu.matmul %3, %5, %cst {dimension_numbers = #tpu.dot_dimension_numbers<[1], [0], [0], [1], [0, 0, 1, 1], [], []>} : vector<16x512xbf16>, vector<512x128xbf16>, vector<16x128xf32> -> vector<16x128xf32>
    %7 = arith.addf %4, %6 : vector<16x128xf32>
    %c0_6 = arith.constant 0 : index
    %c0_7 = arith.constant 0 : index
    %8 = vector.load %arg7[%c0_6, %c0_7] : memref<16x128xf32, #tpu.memory_space<vmem>>, vector<16x128xf32>
    tpu.vector_store %arg7[%c0_6, %c0_7], %7 {strides = array<i32>} : memref<16x128xf32, #tpu.memory_space<vmem>>, vector<16x128xf32>,
    %c0_i32_8 = arith.constant 0 : i32
    %9 = arith.cmpi eq, %arg2, %c0_i32_8 : i32
    %10 = arith.extui %9 : i1 to i32
    %c0_i32_9 = arith.constant 0 : i32
    %11 = arith.cmpi ne, %10, %c0_i32_9 : i32
    scf.if %11 {
      %c0_10 = arith.constant 0 : index
      %c0_11 = arith.constant 0 : index
      %12 = vector.load %arg7[%c0_10, %c0_11] : memref<16x128xf32, #tpu.memory_space<vmem>>, vector<16x128xf32>
      %c0_12 = arith.constant 0 : index
      %c0_13 = arith.constant 0 : index
      %13 = vector.load %arg5[%c0_12, %c0_13] : memref<16x128xbf16, #tpu.memory_space<vmem>>, vector<16x128xbf16>
      %14 = arith.extf %13 : vector<16x128xbf16> to vector<16x128xf32>
      %15 = arith.addf %12, %14 : vector<16x128xf32>
      %16 = arith.truncf %15 : vector<16x128xf32> to vector<16x128xbf16>
      %c0_14 = arith.constant 0 : index
      %c0_15 = arith.constant 0 : index
      %17 = vector.load %arg6[%c0_14, %c0_15] : memref<16x128xbf16, #tpu.memory_space<vmem>>, vector<16x128xbf16>
      tpu.vector_store %arg6[%c0_14, %c0_15], %16 {strides = array<i32>} : memref<16x128xbf16, #tpu.memory_space<vmem>>, vector<16x128xbf16>,
    } else {
    }
    return
  }
  func.func @transform_0(%arg0: i32, %arg1: i32, %arg2: i32) -> (i32, i32) {
    %c0_i32 = arith.constant 0 : i32
    return %arg0, %arg2 : i32, i32
  }
  func.func @transform_1(%arg0: i32, %arg1: i32, %arg2: i32) -> (i32, i32) {
    %c0_i32 = arith.constant 0 : i32
    return %arg2, %arg1 : i32, i32
  }
  func.func @transform_2(%arg0: i32, %arg1: i32, %arg2: i32) -> (i32, i32) {
    %c0_i32 = arith.constant 0 : i32
    return %arg0, %arg1 : i32, i32
  }
  func.func @transform_3(%arg0: i32, %arg1: i32, %arg2: i32) -> (i32, i32) {
    %c0_i32 = arith.constant 0 : i32
    return %arg0, %arg1 : i32, i32
  }
}

module attributes {stable_mosaic.version = 11 : i64} {
  func.func @_avgpool_kernel(%arg0: memref<2x1x128xbf16, #tpu.memory_space<vmem>>, %arg1: memref<2x128xf32, #tpu.memory_space<vmem>>) attributes {dimension_semantics = [], scalar_prefetch = 0 : i64, scratch_operands = 0 : i64, tpu.core_type = #tpu.core_type<tc>} {
    %c0 = arith.constant 0 : index
    %c0_0 = arith.constant 0 : index
    %c0_1 = arith.constant 0 : index
    %0 = vector.load %arg0[%c0, %c0_0, %c0_1] : memref<2x1x128xbf16, #tpu.memory_space<vmem>>, vector<2x1x128xbf16>
    %1 = arith.extf %0 : vector<2x1x128xbf16> to vector<2x1x128xf32>
    %cst = arith.constant dense<0.000000e+00> : vector<2x128xf32>
    %2 = vector.multi_reduction <add>, %1, %cst [1] : vector<2x1x128xf32> to vector<2x128xf32>
    %cst_2 = arith.constant 1.000000e+00 : f32
    %3 = vector.broadcast %cst_2 : f32 to vector<2x128xf32>
    %4 = arith.divf %2, %3 : vector<2x128xf32>
    %c0_3 = arith.constant 0 : index
    %c0_4 = arith.constant 0 : index
    %5 = vector.load %arg1[%c0_3, %c0_4] : memref<2x128xf32, #tpu.memory_space<vmem>>, vector<2x128xf32>
    tpu.vector_store %arg1[%c0_3, %c0_4], %4 {strides = array<i32>} : memref<2x128xf32, #tpu.memory_space<vmem>>, vector<2x128xf32>,
    return
  }
}

module attributes {stable_mosaic.version = 11 : i64} {
  func.func @_gemm_kernel(%arg0: i32, %arg1: i32, %arg2: i32, %arg3: memref<16x128xbf16, #tpu.memory_space<vmem>>, %arg4: memref<128x128xbf16, #tpu.memory_space<vmem>>, %arg5: memref<1x128xf32, #tpu.memory_space<vmem>>, %arg6: memref<16x128xf32, #tpu.memory_space<vmem>>, %arg7: memref<16x128xf32, #tpu.memory_space<vmem>>) attributes {dimension_semantics = [#tpu.dimension_semantics<parallel>, #tpu.dimension_semantics<parallel>, #tpu.dimension_semantics<arbitrary>], iteration_bounds = array<i64: 1, 1, 1>, scalar_prefetch = 0 : i64, scratch_operands = 1 : i64, tpu.core_type = #tpu.core_type<tc>, window_params = [{transform_indices = @transform_0, window_bounds = array<i64: 16, 128>}, {transform_indices = @transform_1, window_bounds = array<i64: 128, 128>}, {transform_indices = @transform_2, window_bounds = array<i64: 1, 128>}, {transform_indices = @transform_3, window_bounds = array<i64: 16, 128>}]} {
    %c0_i32 = arith.constant 0 : i32
    %0 = arith.cmpi eq, %arg2, %c0_i32 : i32
    %1 = arith.extui %0 : i1 to i32
    %c0_i32_0 = arith.constant 0 : i32
    %2 = arith.cmpi ne, %1, %c0_i32_0 : i32
    scf.if %2 {
      %cst_10 = arith.constant 0.000000e+00 : f32
      %12 = vector.broadcast %cst_10 : f32 to vector<16x128xf32>
      %c0_11 = arith.constant 0 : index
      %c0_12 = arith.constant 0 : index
      %13 = vector.load %arg7[%c0_11, %c0_12] : memref<16x128xf32, #tpu.memory_space<vmem>>, vector<16x128xf32>
      tpu.vector_store %arg7[%c0_11, %c0_12], %12 {strides = array<i32>} : memref<16x128xf32, #tpu.memory_space<vmem>>, vector<16x128xf32>,
    } else {
    }
    %c0 = arith.constant 0 : index
    %c0_1 = arith.constant 0 : index
    %3 = vector.load %arg3[%c0, %c0_1] : memref<16x128xbf16, #tpu.memory_space<vmem>>, vector<16x128xbf16>
    %c0_2 = arith.constant 0 : index
    %c0_3 = arith.constant 0 : index
    %4 = vector.load %arg7[%c0_2, %c0_3] : memref<16x128xf32, #tpu.memory_space<vmem>>, vector<16x128xf32>
    %c0_4 = arith.constant 0 : index
    %c0_5 = arith.constant 0 : index
    %5 = vector.load %arg4[%c0_4, %c0_5] : memref<128x128xbf16, #tpu.memory_space<vmem>>, vector<128x128xbf16>
    %cst = arith.constant dense<0.000000e+00> : vector<16x128xf32>
    %6 = tpu.matmul %3, %5, %cst {dimension_numbers = #tpu.dot_dimension_numbers<[1], [0], [0], [1], [0, 0, 1, 1], [], []>} : vector<16x128xbf16>, vector<128x128xbf16>, vector<16x128xf32> -> vector<16x128xf32>
    %7 = arith.addf %4, %6 : vector<16x128xf32>
    %c0_6 = arith.constant 0 : index
    %c0_7 = arith.constant 0 : index
    %8 = vector.load %arg7[%c0_6, %c0_7] : memref<16x128xf32, #tpu.memory_space<vmem>>, vector<16x128xf32>
    tpu.vector_store %arg7[%c0_6, %c0_7], %7 {strides = array<i32>} : memref<16x128xf32, #tpu.memory_space<vmem>>, vector<16x128xf32>,
    %c0_i32_8 = arith.constant 0 : i32
    %9 = arith.cmpi eq, %arg2, %c0_i32_8 : i32
    %10 = arith.extui %9 : i1 to i32
    %c0_i32_9 = arith.constant 0 : i32
    %11 = arith.cmpi ne, %10, %c0_i32_9 : i32
    scf.if %11 {
      %c0_10 = arith.constant 0 : index
      %c0_11 = arith.constant 0 : index
      %12 = vector.load %arg7[%c0_10, %c0_11] : memref<16x128xf32, #tpu.memory_space<vmem>>, vector<16x128xf32>
      %c0_12 = arith.constant 0 : index
      %c0_13 = arith.constant 0 : index
      %13 = vector.load %arg5[%c0_12, %c0_13] : memref<1x128xf32, #tpu.memory_space<vmem>>, vector<1x128xf32>
      %14 = vector.broadcast %13 : vector<1x128xf32> to vector<16x128xf32>
      %15 = arith.addf %12, %14 : vector<16x128xf32>
      %c0_14 = arith.constant 0 : index
      %c0_15 = arith.constant 0 : index
      %16 = vector.load %arg6[%c0_14, %c0_15] : memref<16x128xf32, #tpu.memory_space<vmem>>, vector<16x128xf32>
      tpu.vector_store %arg6[%c0_14, %c0_15], %15 {strides = array<i32>} : memref<16x128xf32, #tpu.memory_space<vmem>>, vector<16x128xf32>,
    } else {
    }
    return
  }
  func.func @transform_0(%arg0: i32, %arg1: i32, %arg2: i32) -> (i32, i32) {
    %c0_i32 = arith.constant 0 : i32
    return %arg0, %arg2 : i32, i32
  }
  func.func @transform_1(%arg0: i32, %arg1: i32, %arg2: i32) -> (i32, i32) {
    %c0_i32 = arith.constant 0 : i32
    return %arg2, %arg1 : i32, i32
  }
  func.func @transform_2(%arg0: i32, %arg1: i32, %arg2: i32) -> (i32, i32) {
    %c0_i32 = arith.constant 0 : i32
    %c0_i32_0 = arith.constant 0 : i32
    return %c0_i32, %arg1 : i32, i32
  }
  func.func @transform_3(%arg0: i32, %arg1: i32, %arg2: i32) -> (i32, i32) {
    %c0_i32 = arith.constant 0 : i32
    return %arg0, %arg1 : i32, i32
  }
}

</mosaic_0001>

<bundles_post_ra>
// kernel: metaformer_forward.51
= control target key start
LH: loop header
LB: loop body
LE: loop exit
PB: predicated region body
PF: predicated region fallthrough
CT: control target
= control target key end

     0   :  { %vm60_vm0 = vcmask 125952   ;;  %s132_s0 = inlined_call_operand.vmem [shape: bf16[32,16], index: 0, kind: input, shape index: {}]   ;;  %s133_s1 = inlined_call_operand.vmem [shape: f32[1,16], index: 1, kind: input, shape index: {}]   ;;  %s134_s2 = inlined_call_operand.vmem [shape: f32[1,16], index: 2, kind: input, shape index: {}]   ;;  %s135_s3 = inlined_call_operand.vmem [shape: bf16[32,16], index: 3, kind: output, shape index: {}]  }
   0x1   :  { %v80_v0 = vld [vmem:[%s132_s0] sm:$0xff]   ;;  %v87_v4 = vld [vmem:[%s132_s0 + $0x8] sm:$0xff]  }
   0x2   :  { %v69_v1 = vld [vmem:[%s133_s1] ss:$0 sm:$0xff]  ;;  %v81_v2 = vunpack.c.l.bf16 %v80_v0  ;;  %v82_v3 = vunpack.c.h.bf16 %v80_v0  ;;  %v85_v6 = vunpack.c.l.bf16 %v87_v4  ;;  %v86_v7 = vunpack.c.h.bf16 %v87_v4 }
   0x3   :  { %v70_v5 = vld [vmem:[%s134_s2] ss:$0 sm:$0xff] }
   0x4   :  { %v29_v8 = vmul.f32 %v81_v2, %v69_v1  ;;  %v30_v9 = vmul.f32 %v82_v3, %v69_v1  ;;  %v31_v10 = vmul.f32 %v85_v6, %v69_v1  ;;  %v32_v11 = vmul.f32 %v86_v7, %v69_v1 }
   0x6   :  { %v40_v12 = vadd.f32 %v70_v5, %v29_v8  ;;  %v41_v13 = vadd.f32 %v70_v5, %v30_v9  ;;  %v42_v14 = vadd.f32 %v70_v5, %v31_v10  ;;  %v43_v15 = vadd.f32 %v70_v5, %v32_v11 }
   0x8   :  { %v75_v16 = vpack.c.bf16 %v40_v12, %v40_v12  ;;  %v76_v17 = vpack.c.bf16 %v41_v13, %v41_v13  ;;  %v77_v18 = vpack.c.bf16 %v42_v14, %v42_v14  ;;  %v78_v19 = vpack.c.bf16 %v43_v15, %v43_v15 }
   0xa   :  { %61 = vst.msk [vmem:[%s135_s3] sm:$0xf] %vm60_vm0, %v75_v16  ;;  %62 = vst.msk [vmem:[%s135_s3 + $0x4] sm:$0xf] %vm60_vm0, %v76_v17 }
   0xb   :  { %63 = vst.msk [vmem:[%s135_s3 + $0x8] sm:$0xf] %vm60_vm0, %v77_v18  ;;  %64 = vst.msk [vmem:[%s135_s3 + $0xc] sm:$0xf] %vm60_vm0, %v78_v19 }

// kernel: metaformer_forward.50
= control target key start
LH: loop header
LB: loop body
LE: loop exit
PB: predicated region body
PF: predicated region fallthrough
CT: control target
= control target key end

     0   :  { %vm14_vm0 = vcmask 122880   ;;  %v81_v0 = vmov 0.0   ;;  %vm26_vm1 = vcmask 130048   ;;  %s133_s0 = inlined_call_operand.vmem [shape: bf16[32,16], index: 0, kind: input, shape index: {}]   ;;  %s134_s1 = inlined_call_operand.vmem [shape: f32[1,16], index: 1, kind: output, shape index: {0}]   ;;  %s135_s2 = inlined_call_operand.vmem [shape: f32[1,16], index: 2, kind: output, shape index: {1}]  }
   0x1   :  { %15 = vst.msk [vmem:[%s134_s1] sm:$0x1] %vm14_vm0, %v81_v0  ;;  %v72_v1 = vld [vmem:[%s133_s0] sm:$0xff]   ;;  %v79_v2 = vld [vmem:[%s133_s0 + $0x8] sm:$0xff]   ;;  %16 = vst.msk [vmem:[%s135_s2] sm:$0x1] %vm14_vm0, %v81_v0 }
   0x2   :  { %v73_v3 = vunpack.c.l.bf16 %v72_v1  ;;  %v74_v4 = vunpack.c.h.bf16 %v72_v1  ;;  %v77_v5 = vunpack.c.l.bf16 %v79_v2  ;;  %v78_v6 = vunpack.c.h.bf16 %v79_v2 }
   0x4   :  { %v27_v7 = vsel %vm26_vm1, %v73_v3, 0.0  ;;  %v28_v8 = vsel %vm26_vm1, %v74_v4, 0.0  ;;  %v30_v9 = vsel %vm26_vm1, %v77_v5, 0.0  ;;  %v44_v11 = vmul.f32 %v73_v3, %v73_v3 }
   0x5   :  { %v29_v10 = vadd.f32 %v28_v8, %v27_v7  ;;  %v45_v12 = vmul.f32 %v74_v4, %v74_v4  ;;  %v46_v13 = vmul.f32 %v77_v5, %v77_v5  ;;  %v32_v14 = vsel %vm26_vm1, %v78_v6, 0.0 }
   0x6   :  { %v47_v15 = vmul.f32 %v78_v6, %v78_v6  ;;  %v48_v17 = vsel %vm26_vm1, %v44_v11, 0.0 }
   0x7   :  { %v31_v16 = vadd.f32 %v30_v9, %v29_v10  ;;  %v49_v18 = vsel %vm26_vm1, %v45_v12, 0.0  ;;  %v51_v19 = vsel %vm26_vm1, %v46_v13, 0.0 }
   0x8   :  { %v50_v20 = vadd.f32 %v49_v18, %v48_v17  ;;  %v53_v22 = vsel %vm26_vm1, %v47_v15, 0.0  ;;  %v25_v33 = vld [vmem:[%s134_s1] sm:$0x1] }
   0x9   :  { %v33_v21 = vadd.f32 %v32_v14, %v31_v16  ;;  %v43_v38 = vld [vmem:[%s135_s2] sm:$0x1] }
   0xa   :  { %v52_v23 = vadd.f32 %v51_v19, %v50_v20 }
   0xb   :  { %v34_v24 = vrot.slane %v33_v21, 4 }
   0xc   :  { %v54_v25 = vadd.f32 %v53_v22, %v52_v23 }
   0xd   :  { %v35_v26 = vadd.f32 %v34_v24, %v33_v21 }
   0xe   :  { %v55_v27 = vrot.slane %v54_v25, 4 }
   0xf   :  { %v36_v28 = vrot.slane %v35_v26, 2 }
  0x10   :  { %v56_v29 = vadd.f32 %v55_v27, %v54_v25 }
  0x11   :  { %v37_v30 = vadd.f32 %v36_v28, %v35_v26 }
  0x12   :  { %v57_v31 = vrot.slane %v56_v29, 2 }
  0x13   :  { %v38_v32 = vrot.slane %v37_v30, 1 }
  0x14   :  { %v58_v34 = vadd.f32 %v57_v31, %v56_v29 }
  0x15   :  { %v39_v35 = vadd.f32 %v38_v32, %v37_v30 }
  0x16   :  { %v59_v36 = vrot.slane %v58_v34, 1 }
  0x17   :  { %v40_v37 = vadd.f32 %v39_v35, %v25_v33 }
  0x18   :  { %v60_v39 = vadd.f32 %v59_v36, %v58_v34 }
  0x19   :  { %42 = vst.msk [vmem:[%s134_s1] sm:$0x1] %vm14_vm0, %v40_v37 }
  0x1a   :  { %v61_v40 = vadd.f32 %v60_v39, %v43_v38 }
  0x1c   :  { %62 = vst.msk [vmem:[%s135_s2] sm:$0x1] %vm14_vm0, %v61_v40 }

// kernel: metaformer_forward.53
= control target key start
LH: loop header
LB: loop body
LE: loop exit
PB: predicated region body
PF: predicated region fallthrough
CT: control target
= control target key end

     0   :  { %s361_s1 = inlined_call_operand.vmem [shape: bf16[128,128], index: 1, kind: input, shape index: {}]   ;;  %s362_s0 = inlined_call_operand.vmem [shape: bf16[32,128], index: 0, kind: input, shape index: {}]   ;;  %s363_s2 = inlined_call_operand.vmem [shape: f32[1,128], index: 2, kind: input, shape index: {}]   ;;  %s364_s3 = inlined_call_operand.vmem [shape: f32[1,128], index: 3, kind: input, shape index: {}]   ;;  %s365_s4 = inlined_call_operand.vmem [shape: bf16[32,128], index: 4, kind: output, shape index: {}]  }
   0x1   :  { %v286_v0 = vld [vmem:[%s361_s1 + $0x38] sm:$0xff]   ;;  %v287_v1 = vld [vmem:[%s361_s1 + $0x30] sm:$0xff]   ;;  %v288_v2 = vld [vmem:[%s361_s1 + $0x28] sm:$0xff]  }
   0x2   :  { %266 = vmatprep.subr.bf16.mxu0 %v286_v0  ;;  %v289_v3 = vld [vmem:[%s361_s1 + $0x20] sm:$0xff]   ;;  %v290_v11 = vld [vmem:[%s361_s1 + $0x18] sm:$0xff]   ;;  %v254_v14 = vld [vmem:[%s362_s0 + $0x8] sm:$0xff]  }
   0x3   :  { %267 = vmatpush3.bf16.msra.mxu0 %v286_v0  ;;  %v237_v4 = vld [vmem:[%s362_s0] sm:$0xff]   ;;  %v291_v16 = vld [vmem:[%s361_s1 + $0x10] sm:$0xff]   ;;  %v242_v17 = vunpack.c.l.bf16 %v254_v14  ;;  %v243_v18 = vunpack.c.h.bf16 %v254_v14  ;;  %v292_v19 = vld [vmem:[%s361_s1 + $0x8] sm:$0xff]  }
   0x4   :  { %268 = vmatprep.subr.bf16.mxu0 %v287_v1  ;;  %v218_v5 = vld [vmem:[%s363_s2] ss:$0 sm:$0xff]  ;;  %v238_v6 = vunpack.c.l.bf16 %v237_v4  ;;  %v239_v7 = vunpack.c.h.bf16 %v237_v4 }
   0x5   :  { %v219_v8 = vld [vmem:[%s364_s3] ss:$0 sm:$0xff]  ;;  %v43_v20 = vmul.f32 %v242_v17, %v218_v5  ;;  %v44_v21 = vmul.f32 %v243_v18, %v218_v5 }
   0x6   :  { %v41_v9 = vmul.f32 %v238_v6, %v218_v5  ;;  %v42_v10 = vmul.f32 %v239_v7, %v218_v5  ;;  %v293_v22 = vld [vmem:[%s361_s1] sm:$0xff]  }
   0x7   :  { %269 = vmatpush3.bf16.msra.mxu0 %v287_v1  ;;  %v54_v23 = vadd.f32 %v219_v8, %v43_v20  ;;  %v55_v24 = vadd.f32 %v219_v8, %v44_v21 }
   0x8   :  { %270 = vmatprep.subr.bf16.mxu0 %v288_v2  ;;  %v52_v12 = vadd.f32 %v219_v8, %v41_v9  ;;  %v53_v13 = vadd.f32 %v219_v8, %v42_v10 }
   0x9   :  { %v57_v25 = vpack.c.bf16 %v55_v24, %v54_v23 }
   0xa   :  { %v56_v15 = vpack.c.bf16 %v53_v13, %v52_v12 }
   0xb   :  { %271 = vmatpush3.bf16.msra.mxu0 %v288_v2 }
   0xc   :  { %272 = vmatprep.subr.bf16.mxu0 %v289_v3  ;;  %282 = vmatprep.mubr.bf16.mxu0 %v56_v15 }
   0xf   :  { %273 = vmatpush3.bf16.msra.mxu0 %v289_v3 }
  0x10   :  { %274 = vmatprep.subr.bf16.mxu0 %v290_v11 }
  0x13   :  { %275 = vmatpush3.bf16.msra.mxu0 %v290_v11 }
  0x14   :  { %276 = vmatprep.subr.bf16.mxu0 %v291_v16 }
  0x17   :  { %277 = vmatpush3.bf16.msra.mxu0 %v291_v16 }
  0x18   :  { %278 = vmatprep.subr.bf16.mxu0 %v292_v19 }
  0x1b   :  { %279 = vmatpush3.bf16.msra.mxu0 %v292_v19 }
  0x1c   :  { %280 = vmatprep.subr.bf16.mxu0 %v293_v22 }
  0x1f   :  { %281 = vmatpush3.bf16.msra.mxu0 %v293_v22 }
  0x22   :  { %283 = vmatmul.mubr.bf16.vlgmr.msra.gmra.mxu0 %v57_v25 }
  0xe2   :  { %v284_v26 = vpop.f32.mrf.mxu0 }
  0xe3   :  { %v192_v29 = vmax.f32 %v284_v26, 0.0 }
  0xe4   :  { %v160_v27 = vpop.f32.mrf.mxu0 }
  0xe5   :  { %v190_v32 = vmax.f32 %v160_v27, 0.0 }
  0xe6   :  { %v285_v28 = vpop.f32.mrf.mxu0 }
  0xe7   :  { %v193_v30 = vmax.f32 %v285_v28, 0.0 }
  0xe8   :  { %v163_v31 = vpop.f32.mrf.mxu0 }
  0xe9   :  { %v252_v33 = vpack.c.bf16 %v193_v30, %v192_v29  ;;  %v191_v34 = vmax.f32 %v163_v31, 0.0 }
  0xeb   :  { %255 = vst [vmem:[%s365_s4 + $0x8] sm:$0xff] %v252_v33   ;;  %v247_v35 = vpack.c.bf16 %v191_v34, %v190_v32 }
  0xed   :  { %248 = vst [vmem:[%s365_s4] sm:$0xff] %v247_v35  }

// kernel: metaformer_forward.49
= control target key start
LH: loop header
LB: loop body
LE: loop exit
PB: predicated region body
PF: predicated region fallthrough
CT: control target
= control target key end

     0   :  { %s473_s1 = inlined_call_operand.vmem [shape: bf16[256,128], index: 1, kind: input, shape index: {}]   ;;  %s474_s0 = inlined_call_operand.vmem [shape: bf16[32,256], index: 0, kind: input, shape index: {}]   ;;  %s475_s2 = inlined_call_operand.vmem [shape: f32[1,128], index: 2, kind: input, shape index: {}]   ;;  %s476_s3 = inlined_call_operand.vmem [shape: bf16[32,128], index: 3, kind: output, shape index: {}]  }
   0x1   :  { %v362_v0 = vld [vmem:[%s473_s1 + $0x78] sm:$0xff]   ;;  %v364_v2 = vld [vmem:[%s473_s1 + $0x70] sm:$0xff]   ;;  %v366_v4 = vld [vmem:[%s473_s1 + $0x68] sm:$0xff]  }
   0x2   :  { %v363_v1 = vld [vmem:[%s473_s1 + $0x38] sm:$0xff]   ;;  %318 = vmatprep.subr.bf16.mxu0 %v362_v0  ;;  %346 = vmatprep.subr.bf16.mxu1 %v362_v0  ;;  %v365_v3 = vld [vmem:[%s473_s1 + $0x30] sm:$0xff]   ;;  %v367_v5 = vld [vmem:[%s473_s1 + $0x28] sm:$0xff]  }
   0x3   :  { %319 = vmatpush3.bf16.msra.mxu0 %v363_v1  ;;  %354 = vmatpush3.bf16.msra.mxu1 %v363_v1  ;;  %v368_v6 = vld [vmem:[%s473_s1 + $0x60] sm:$0xff]   ;;  %v370_v8 = vld [vmem:[%s473_s1 + $0x58] sm:$0xff]   ;;  %v372_v10 = vld [vmem:[%s473_s1 + $0x50] sm:$0xff]  }
   0x4   :  { %320 = vmatprep.subr.bf16.mxu0 %v364_v2  ;;  %347 = vmatprep.subr.bf16.mxu1 %v364_v2  ;;  %v369_v7 = vld [vmem:[%s473_s1 + $0x20] sm:$0xff]   ;;  %v371_v9 = vld [vmem:[%s473_s1 + $0x18] sm:$0xff]   ;;  %v373_v13 = vld [vmem:[%s473_s1 + $0x10] sm:$0xff]  }
   0x5   :  { %v380_v11 = vld [vmem:[%s474_s0 + $0x4] ss:$8 sps:$4 sm:$0xff]   ;;  %v383_v12 = vld [vmem:[%s474_s0 + $0x14] ss:$8 sps:$4 sm:$0xff]   ;;  %v378_v18 = vld [vmem:[%s474_s0] ss:$8 sps:$4 sm:$0xff]  }
   0x6   :  { %v374_v14 = vld [vmem:[%s473_s1 + $0x48] sm:$0xff]   ;;  %211 = vmatprep.mubr.bf16.mxu0 %v380_v11  ;;  %219 = vmatprep.mubr.bf16.mxu1 %v383_v12  ;;  %v376_v16 = vld [vmem:[%s473_s1 + $0x40] sm:$0xff]   ;;  %v381_v19 = vld [vmem:[%s474_s0 + $0x10] ss:$8 sps:$4 sm:$0xff]  }
   0x7   :  { %321 = vmatpush3.bf16.msra.mxu0 %v365_v3  ;;  %355 = vmatpush3.bf16.msra.mxu1 %v365_v3  ;;  %v375_v15 = vld [vmem:[%s473_s1 + $0x8] sm:$0xff]   ;;  %v377_v17 = vld [vmem:[%s473_s1] sm:$0xff]  }
   0x8   :  { %322 = vmatprep.subr.bf16.mxu0 %v366_v4  ;;  %348 = vmatprep.subr.bf16.mxu1 %v366_v4  ;;  %v298_v28 = vld [vmem:[%s475_s2] ss:$0 sm:$0xff] }
   0xb   :  { %323 = vmatpush3.bf16.msra.mxu0 %v367_v5  ;;  %356 = vmatpush3.bf16.msra.mxu1 %v367_v5 }
   0xc   :  { %324 = vmatprep.subr.bf16.mxu0 %v368_v6  ;;  %349 = vmatprep.subr.bf16.mxu1 %v368_v6 }
   0xf   :  { %325 = vmatpush3.bf16.msra.mxu0 %v369_v7  ;;  %357 = vmatpush3.bf16.msra.mxu1 %v369_v7 }
  0x10   :  { %326 = vmatprep.subr.bf16.mxu0 %v370_v8  ;;  %350 = vmatprep.subr.bf16.mxu1 %v370_v8 }
  0x13   :  { %327 = vmatpush3.bf16.msra.mxu0 %v371_v9  ;;  %358 = vmatpush3.bf16.msra.mxu1 %v371_v9 }
  0x14   :  { %328 = vmatprep.subr.bf16.mxu0 %v372_v10  ;;  %351 = vmatprep.subr.bf16.mxu1 %v372_v10 }
  0x17   :  { %329 = vmatpush3.bf16.msra.mxu0 %v373_v13  ;;  %359 = vmatpush3.bf16.msra.mxu1 %v373_v13 }
  0x18   :  { %330 = vmatprep.subr.bf16.mxu0 %v374_v14  ;;  %352 = vmatprep.subr.bf16.mxu1 %v374_v14 }
  0x1b   :  { %331 = vmatpush3.bf16.msra.mxu0 %v375_v15  ;;  %360 = vmatpush3.bf16.msra.mxu1 %v375_v15 }
  0x1c   :  { %332 = vmatprep.subr.bf16.mxu0 %v376_v16  ;;  %353 = vmatprep.subr.bf16.mxu1 %v376_v16 }
  0x1f   :  { %333 = vmatpush3.bf16.msra.mxu0 %v377_v17  ;;  %361 = vmatpush3.bf16.msra.mxu1 %v377_v17 }
  0x22   :  { %212 = vmatmul.mubr.bf16.vlgmr.msra.gmra.mxu0 %v378_v18  ;;  %220 = vmatmul.mubr.bf16.vlgmr.msra.gmra.mxu1 %v381_v19 }
  0xe2   :  { %v334_v20 = vpop.f32.mrf.mxu0  ;;  %v340_v21 = vpop.f32.mrf.mxu1 }
  0xe4   :  { %v335_v22 = vpop.f32.mrf.mxu0  ;;  %v341_v23 = vpop.f32.mrf.mxu1 }
  0xe5   :  { %v336_v26 = vadd.f32 %v335_v22, %v334_v20  ;;  %v342_v27 = vadd.f32 %v341_v23, %v340_v21 }
  0xe6   :  { %v337_v24 = vpop.f32.mrf.mxu0  ;;  %v343_v25 = vpop.f32.mrf.mxu1 }
  0xe7   :  { %v250_v33 = vadd.f32 %v336_v26, %v298_v28  ;;  %v252_v34 = vadd.f32 %v342_v27, %v298_v28 }
  0xe8   :  { %v338_v29 = vpop.f32.mrf.mxu0  ;;  %v344_v30 = vpop.f32.mrf.mxu1 }
  0xe9   :  { %v339_v31 = vadd.f32 %v338_v29, %v337_v24  ;;  %v345_v32 = vadd.f32 %v344_v30, %v343_v25 }
  0xeb   :  { %v251_v35 = vadd.f32 %v339_v31, %v298_v28  ;;  %v253_v36 = vadd.f32 %v345_v32, %v298_v28 }
  0xed   :  { %v310_v37 = vpack.c.bf16 %v251_v35, %v250_v33  ;;  %v315_v38 = vpack.c.bf16 %v253_v36, %v252_v34 }
  0xef   :  { %311 = vst [vmem:[%s476_s3] sm:$0xff] %v310_v37   ;;  %317 = vst [vmem:[%s476_s3 + $0x8] sm:$0xff] %v315_v38  }

// kernel: metaformer_forward.55
= control target key start
LH: loop header
LB: loop body
LE: loop exit
PB: predicated region body
PF: predicated region fallthrough
CT: control target
= control target key end

     0   :  { %s347_s1 = inlined_call_operand.vmem [shape: bf16[128,128], index: 1, kind: input, shape index: {}]   ;;  %s348_s0 = inlined_call_operand.vmem [shape: bf16[32,128], index: 0, kind: input, shape index: {}]   ;;  %s349_s2 = inlined_call_operand.vmem [shape: bf16[32,128], index: 2, kind: input, shape index: {}]   ;;  %s350_s3 = inlined_call_operand.vmem [shape: bf16[32,128], index: 3, kind: output, shape index: {}]  }
   0x1   :  { %v275_v0 = vld [vmem:[%s347_s1 + $0x38] sm:$0xff]   ;;  %v276_v1 = vld [vmem:[%s347_s1 + $0x30] sm:$0xff]   ;;  %v277_v2 = vld [vmem:[%s347_s1 + $0x28] sm:$0xff]  }
   0x2   :  { %255 = vmatprep.subr.bf16.mxu0 %v275_v0  ;;  %v278_v3 = vld [vmem:[%s347_s1 + $0x20] sm:$0xff]   ;;  %v279_v5 = vld [vmem:[%s347_s1 + $0x18] sm:$0xff]   ;;  %v280_v6 = vld [vmem:[%s347_s1 + $0x10] sm:$0xff]  }
   0x3   :  { %256 = vmatpush3.bf16.msra.mxu0 %v275_v0  ;;  %v283_v4 = vld [vmem:[%s348_s0] sm:$0xff]   ;;  %v281_v7 = vld [vmem:[%s347_s1 + $0x8] sm:$0xff]  }
   0x4   :  { %257 = vmatprep.subr.bf16.mxu0 %v276_v1  ;;  %271 = vmatprep.mubr.bf16.mxu0 %v283_v4  ;;  %v282_v8 = vld [vmem:[%s347_s1] sm:$0xff]   ;;  %v284_v9 = vld [vmem:[%s348_s0 + $0x8] sm:$0xff]  }
   0x5   :  { %v243_v10 = vld [vmem:[%s349_s2 + $0x8] sm:$0xff]   ;;  %v226_v12 = vld [vmem:[%s349_s2] sm:$0xff]  }
   0x6   :  { %v231_v13 = vunpack.c.l.bf16 %v243_v10  ;;  %v232_v14 = vunpack.c.h.bf16 %v243_v10  ;;  %v227_v16 = vunpack.c.l.bf16 %v226_v12  ;;  %v228_v17 = vunpack.c.h.bf16 %v226_v12 }
   0x7   :  { %258 = vmatpush3.bf16.msra.mxu0 %v276_v1 }
   0x8   :  { %259 = vmatprep.subr.bf16.mxu0 %v277_v2 }
   0xb   :  { %260 = vmatpush3.bf16.msra.mxu0 %v277_v2 }
   0xc   :  { %261 = vmatprep.subr.bf16.mxu0 %v278_v3 }
   0xf   :  { %262 = vmatpush3.bf16.msra.mxu0 %v278_v3 }
  0x10   :  { %263 = vmatprep.subr.bf16.mxu0 %v279_v5 }
  0x13   :  { %264 = vmatpush3.bf16.msra.mxu0 %v279_v5 }
  0x14   :  { %265 = vmatprep.subr.bf16.mxu0 %v280_v6 }
  0x17   :  { %266 = vmatpush3.bf16.msra.mxu0 %v280_v6 }
  0x18   :  { %267 = vmatprep.subr.bf16.mxu0 %v281_v7 }
  0x1b   :  { %268 = vmatpush3.bf16.msra.mxu0 %v281_v7 }
  0x1c   :  { %269 = vmatprep.subr.bf16.mxu0 %v282_v8 }
  0x1f   :  { %270 = vmatpush3.bf16.msra.mxu0 %v282_v8 }
  0x22   :  { %272 = vmatmul.mubr.bf16.vlgmr.msra.gmra.mxu0 %v284_v9 }
  0xe2   :  { %v273_v11 = vpop.f32.mrf.mxu0 }
  0xe3   :  { %v181_v19 = vadd.f32 %v273_v11, %v231_v13 }
  0xe4   :  { %v141_v15 = vpop.f32.mrf.mxu0 }
  0xe5   :  { %v179_v22 = vadd.f32 %v227_v16, %v141_v15 }
  0xe6   :  { %v274_v18 = vpop.f32.mrf.mxu0 }
  0xe7   :  { %v182_v20 = vadd.f32 %v274_v18, %v232_v14 }
  0xe8   :  { %v144_v21 = vpop.f32.mrf.mxu0 }
  0xe9   :  { %v241_v23 = vpack.c.bf16 %v182_v20, %v181_v19  ;;  %v180_v24 = vadd.f32 %v228_v17, %v144_v21 }
  0xeb   :  { %244 = vst [vmem:[%s350_s3 + $0x8] sm:$0xff] %v241_v23   ;;  %v236_v25 = vpack.c.bf16 %v180_v24, %v179_v22 }
  0xed   :  { %237 = vst [vmem:[%s350_s3] sm:$0xff] %v236_v25  }

// kernel: metaformer_forward.54
= control target key start
LH: loop header
LB: loop body
LE: loop exit
PB: predicated region body
PF: predicated region fallthrough
CT: control target
= control target key end

     0   :  { %s1617_s9 = smov 0   ;;  %s2200_s0 = inlined_call_operand.vmem [shape: bf16[2,10,10,32], index: 0, kind: input, shape index: {}]   ;;  %s2201_s1 = inlined_call_operand.vmem [shape: f32[49,32], index: 1, kind: input, shape index: {}]   ;;  %s2202_s2 = inlined_call_operand.vmem [shape: bf16[2,4,4,32], index: 2, kind: output, shape index: {}]  }
   0x1 LB: > { %s1573_s10 = sadd.s32 4294967295, %s1600_s9   ;;  %p1577_p0 = scmp.ge.s32.totalorder %s1600_s9, 1  ;;  %s1600_s9 = sphi %s1617_s9, %s12_s9  }
   0x2   : > { %p112_p1 = scmp.lt.s32.totalorder %s1600_s9, 3 }
   0x4   : > { %p113_p2 = pnand %p1577_p0, %p112_p1 }
   0x5   : > { %p134_p3 = scmp.lt.s32.totalorder (!%p113_p2), %s1573_s10, 1 }
   0x6   : > { %116 = sbr.rel (%p113_p2) target bundleno = 220 (0xdc), region = 28 }
   0xb   : > { %v191_v0 = vlaneseq  ;;  %s2204_s10 = smov (!%p134_p3, %s1573_s10), 1  ;;  %v184_v2 = vld [vmem:[%s2201_s1] sm:$0xff]  ;;  %vm319_vm0 = vcmask 1042432   ;;  %vm360_vm1 = vcmask 1041408   ;;  %vm1513_vm2 = vcmask 254976  }
   0xc   : > { %s1585_s13 = smul.u32 80, %s2204_s10  ;;  %s1584_s29 = sshll.u32 %s2204_s10, 3 }
   0xd   : > { %v192_v1 = vshrl.u32 %v191_v0, 7  ;;  %s143_s4 = scalar_lea.vmem %s2202_s2, %s1584_s29 }
   0xe   : > { %s1650_s16 = scalar_lea.vmem %s2200_s0, %s1585_s13 }
   0xf   : > { %v1631_v3 = vsub.s32 0, %v192_v1  ;;  %v1633_v4 = vsub.s32 1, %v192_v1  ;;  %v1635_v5 = vsub.s32 2, %v192_v1  ;;  %v1637_v6 = vsub.s32 3, %v192_v1  ;;  %v144_v15 = vld [vmem:[%s1650_s16] ss:$8 sps:$4 sm:$0xff]  }
  0x10   : > { %v1639_v7 = vsub.s32 4, %v192_v1  ;;  %v1641_v8 = vsub.s32 5, %v192_v1  ;;  %v1643_v9 = vsub.s32 6, %v192_v1  ;;  %v1645_v10 = vsub.s32 7, %v192_v1  ;;  %v1660_v16 = vld [vmem:[%s1650_s16 + $0x4] sm:$0x1] }
  0x11   : > { %v194_v11 = vrot.slane %v184_v2, %v1631_v3  ;;  %v206_v12 = vrot.slane %v184_v2, %v1633_v4  ;;  %v230_v13 = vrot.slane %v184_v2, %v1635_v5  ;;  %v1656_v14 = vrot.slane %v184_v2, %v1637_v6  ;;  %v147_v17 = vld [vmem:[%s1650_s16 + $0xc] sm:$0x1]  ;;  %v148_v22 = vld [vmem:[%s1650_s16 + $0x10] ss:$8 sps:$4 sm:$0xff]   ;;  %v149_v23 = vld [vmem:[%s1650_s16 + $0x14] sm:$0x1] }
  0x12   : > { %v1664_v18 = vrot.slane %v184_v2, %v1639_v7  ;;  %v1667_v19 = vrot.slane %v184_v2, %v1641_v8  ;;  %v1670_v20 = vrot.slane %v184_v2, %v1643_v9  ;;  %v1673_v21 = vrot.slane %v184_v2, %v1645_v10  ;;  %v151_v24 = vld [vmem:[%s1650_s16 + $0x1c] sm:$0x1]  ;;  %v152_v29 = vld [vmem:[%s1650_s16 + $0x20] ss:$8 sps:$4 sm:$0xff]   ;;  %v153_v30 = vld [vmem:[%s1650_s16 + $0x24] sm:$0x1] }
  0x13   : > { %v1678_v25 = vunpack.c.l.bf16 %v144_v15  ;;  %v165_v26 = vunpack.c.l.bf16 %v1660_v16  ;;  %v1681_v27 = vunpack.c.h.bf16 %v144_v15  ;;  %v1683_v28 = vunpack.c.l.bf16 %v147_v17  ;;  %v155_v31 = vld [vmem:[%s1650_s16 + $0x2c] sm:$0x1]  ;;  %v156_v36 = vld [vmem:[%s1650_s16 + $0x30] ss:$8 sps:$4 sm:$0xff]   ;;  %v157_v37 = vld [vmem:[%s1650_s16 + $0x34] sm:$0x1] }
  0x14   : > { %v1688_v32 = vunpack.c.l.bf16 %v148_v22  ;;  %v1690_v33 = vunpack.c.l.bf16 %v149_v23  ;;  %v1692_v34 = vunpack.c.h.bf16 %v148_v22  ;;  %v1694_v35 = vunpack.c.l.bf16 %v151_v24  ;;  %v159_v38 = vld [vmem:[%s1650_s16 + $0x3c] sm:$0x1]  ;;  %v160_v43 = vld [vmem:[%s1650_s16 + $0x40] ss:$8 sps:$4 sm:$0xff]   ;;  %v161_v44 = vld [vmem:[%s1650_s16 + $0x44] sm:$0x1] }
  0x15   : > { %v1699_v39 = vunpack.c.l.bf16 %v152_v29  ;;  %v1701_v40 = vunpack.c.l.bf16 %v153_v30  ;;  %v1703_v41 = vunpack.c.h.bf16 %v152_v29  ;;  %v1705_v42 = vunpack.c.l.bf16 %v155_v31  ;;  %v1710_v45 = vld [vmem:[%s1650_s16 + $0x4c] sm:$0x1] }
  0x16   : > { %v1712_v46 = vunpack.c.l.bf16 %v156_v36  ;;  %v1714_v47 = vunpack.c.l.bf16 %v157_v37  ;;  %v1716_v48 = vunpack.c.h.bf16 %v156_v36  ;;  %v1718_v49 = vunpack.c.l.bf16 %v159_v38 }
  0x17   : > { %v1720_v50 = vunpack.c.l.bf16 %v160_v43  ;;  %v1722_v51 = vunpack.c.l.bf16 %v161_v44  ;;  %v1724_v52 = vunpack.c.h.bf16 %v160_v43  ;;  %v183_v53 = vunpack.c.l.bf16 %v1710_v45 }
  0x18   : > { %v195_v54 = vmul.f32 %v194_v11, %v1678_v25  ;;  %v196_v55 = vmul.f32 %v194_v11, %v1681_v27  ;;  %v197_v56 = vmul.f32 %v194_v11, %v1688_v32  ;;  %v198_v57 = vmul.f32 %v194_v11, %v1692_v34 }
  0x19   : > { %v207_v58 = vmul.f32 %v206_v12, %v1678_v25  ;;  %v208_v59 = vmul.f32 %v206_v12, %v1681_v27  ;;  %v209_v60 = vmul.f32 %v206_v12, %v1688_v32  ;;  %v210_v61 = vmul.f32 %v206_v12, %v1692_v34 }
  0x1a   : > { %v231_v62 = vmul.f32 %v230_v13, %v1678_v25  ;;  %v232_v63 = vmul.f32 %v230_v13, %v1681_v27  ;;  %v233_v0 = vmul.f32 %v230_v13, %v1688_v32  ;;  %v234_v1 = vmul.f32 %v230_v13, %v1692_v34 }
  0x1b   : > { %v215_v2 = vrot.slane %v207_v58, 1  ;;  %v216_v15 = vrot.slane %v208_v59, 1  ;;  %v217_v17 = vrot.slane %v209_v60, 1  ;;  %v218_v11 = vrot.slane %v210_v61, 1 }
  0x1c   : > { %v239_v22 = vrot.slane %v231_v62, 2  ;;  %v240_v23 = vrot.slane %v232_v63, 2  ;;  %v241_v24 = vrot.slane %v233_v0, 2  ;;  %v242_v29 = vrot.slane %v234_v1, 2 }
  0x1d   : > { %v223_v30 = vadd.f32 %v215_v2, %v195_v54  ;;  %v224_v31 = vadd.f32 %v216_v15, %v196_v55  ;;  %v225_v36 = vadd.f32 %v217_v17, %v197_v56  ;;  %v226_v12 = vadd.f32 %v218_v11, %v198_v57 }
  0x1e   : > { %v255_v37 = vmul.f32 %v1656_v14, %v1678_v25  ;;  %v256_v38 = vmul.f32 %v1656_v14, %v1681_v27  ;;  %v257_v13 = vmul.f32 %v1656_v14, %v1688_v32  ;;  %v258_v43 = vmul.f32 %v1656_v14, %v1692_v34 }
  0x1f   : > { %v247_v44 = vadd.f32 %v239_v22, %v223_v30  ;;  %v248_v58 = vadd.f32 %v240_v23, %v224_v31  ;;  %v249_v59 = vadd.f32 %v241_v24, %v225_v36  ;;  %v250_v54 = vadd.f32 %v242_v29, %v226_v12 }
  0x20   : > { %v263_v55 = vrot.slane %v255_v37, 3  ;;  %v264_v56 = vrot.slane %v256_v38, 3  ;;  %v265_v57 = vrot.slane %v257_v13, 3  ;;  %v266_v60 = vrot.slane %v258_v43, 3 }
  0x21   : > { %v279_v61 = vmul.f32 %v1664_v18, %v1678_v25  ;;  %v280_v62 = vmul.f32 %v1664_v18, %v1681_v27  ;;  %v281_v63 = vmul.f32 %v1664_v18, %v1688_v32  ;;  %v282_v14 = vmul.f32 %v1664_v18, %v1692_v34 }
  0x22   : > { %v271_v0 = vadd.f32 %v263_v55, %v247_v44  ;;  %v272_v1 = vadd.f32 %v264_v56, %v248_v58  ;;  %v273_v2 = vadd.f32 %v265_v57, %v249_v59  ;;  %v274_v15 = vadd.f32 %v266_v60, %v250_v54 }
  0x23   : > { %v287_v17 = vrot.slane %v279_v61, 4  ;;  %v288_v11 = vrot.slane %v280_v62, 4  ;;  %v289_v22 = vrot.slane %v281_v63, 4  ;;  %v290_v23 = vrot.slane %v282_v14, 4 }
  0x24   : > { %v303_v24 = vmul.f32 %v1667_v19, %v1678_v25  ;;  %v304_v29 = vmul.f32 %v1667_v19, %v165_v26  ;;  %v305_v30 = vmul.f32 %v1667_v19, %v1681_v27  ;;  %v306_v18 = vmul.f32 %v1667_v19, %v1683_v28 }
  0x25   : > { %v295_v31 = vadd.f32 %v287_v17, %v271_v0  ;;  %v296_v36 = vadd.f32 %v288_v11, %v272_v1  ;;  %v297_v12 = vadd.f32 %v289_v22, %v273_v2  ;;  %v298_v37 = vadd.f32 %v290_v23, %v274_v15 }
  0x26   : > { %v307_v38 = vmul.f32 %v1667_v19, %v1688_v32  ;;  %v308_v13 = vmul.f32 %v1667_v19, %v1690_v33  ;;  %v309_v43 = vmul.f32 %v1667_v19, %v1692_v34  ;;  %v310_v44 = vmul.f32 %v1667_v19, %v1694_v35 }
  0x27   : > { %v320_v58 = vrot.slane %v303_v24, 5  ;;  %v321_v59 = vrot.slane %v304_v29, 5  ;;  %v323_v54 = vrot.slane %v305_v30, 5  ;;  %v324_v55 = vrot.slane %v306_v18, 5 }
  0x28   : > { %v326_v56 = vrot.slane %v307_v38, 5  ;;  %v327_v57 = vrot.slane %v308_v13, 5  ;;  %v329_v60 = vrot.slane %v309_v43, 5  ;;  %v330_v61 = vrot.slane %v310_v44, 5  ;;  %v1796_v13 = vld [vmem:[%s2201_s1 + $0x8] sm:$0xff] }
  0x29   : > { %v322_v62 = vsel %vm319_vm0, %v320_v58, %v321_v59  ;;  %v325_v63 = vsel %vm319_vm0, %v323_v54, %v324_v55  ;;  %v344_v14 = vmul.f32 %v1670_v20, %v1678_v25  ;;  %v345_v0 = vmul.f32 %v1670_v20, %v165_v26 }
  0x2a   : > { %v328_v19 = vsel %vm319_vm0, %v326_v56, %v327_v57  ;;  %v331_v1 = vsel %vm319_vm0, %v329_v60, %v330_v61  ;;  %v336_v2 = vadd.f32 %v322_v62, %v295_v31  ;;  %v337_v15 = vadd.f32 %v325_v63, %v296_v36 }
  0x2b   : > { %v338_v17 = vadd.f32 %v328_v19, %v297_v12  ;;  %v339_v11 = vadd.f32 %v331_v1, %v298_v37  ;;  %v346_v22 = vmul.f32 %v1670_v20, %v1681_v27  ;;  %v347_v23 = vmul.f32 %v1670_v20, %v1683_v28 }
  0x2c   : > { %v348_v25 = vmul.f32 %v1670_v20, %v1688_v32  ;;  %v349_v16 = vmul.f32 %v1670_v20, %v1690_v33  ;;  %v350_v26 = vmul.f32 %v1670_v20, %v1692_v34  ;;  %v351_v24 = vmul.f32 %v1670_v20, %v1694_v35 }
  0x2d   : > { %v361_v29 = vrot.slane %v344_v14, 6  ;;  %v362_v30 = vrot.slane %v345_v0, 6  ;;  %v364_v18 = vrot.slane %v346_v22, 6  ;;  %v365_v31 = vrot.slane %v347_v23, 6 }
  0x2e   : > { %v367_v36 = vrot.slane %v348_v25, 6  ;;  %v368_v12 = vrot.slane %v349_v16, 6  ;;  %v370_v37 = vrot.slane %v350_v26, 6  ;;  %v371_v38 = vrot.slane %v351_v24, 6 }
  0x2f   : > { %v363_v43 = vsel %vm360_vm1, %v361_v29, %v362_v30  ;;  %v366_v44 = vsel %vm360_vm1, %v364_v18, %v365_v31  ;;  %v385_v20 = vmul.f32 %v1673_v21, %v1681_v27  ;;  %v386_v58 = vmul.f32 %v1673_v21, %v1688_v32 }
  0x30   : > { %v369_v59 = vsel %vm360_vm1, %v367_v36, %v368_v12  ;;  %v372_v54 = vsel %vm360_vm1, %v370_v37, %v371_v38  ;;  %v377_v55 = vadd.f32 %v363_v43, %v336_v2  ;;  %v378_v56 = vadd.f32 %v366_v44, %v337_v15 }
  0x31   : > { %v379_v57 = vadd.f32 %v369_v59, %v338_v17  ;;  %v380_v60 = vadd.f32 %v372_v54, %v339_v11  ;;  %v387_v61 = vmul.f32 %v1673_v21, %v1692_v34  ;;  %v388_v62 = vmul.f32 %v1673_v21, %v1699_v39 }
  0x32   : > { %v389_v63 = vadd.f32 %v385_v20, %v377_v55  ;;  %v390_v14 = vadd.f32 %v386_v58, %v378_v56  ;;  %v396_v0 = vrot.slane %v1796_v13, %v1631_v3  ;;  %v420_v19 = vrot.slane %v1796_v13, %v1633_v4 }
  0x33   : > { %v391_v1 = vadd.f32 %v387_v61, %v379_v57  ;;  %v392_v22 = vadd.f32 %v388_v62, %v380_v60  ;;  %v444_v2 = vrot.slane %v1796_v13, %v1635_v5  ;;  %v468_v15 = vrot.slane %v1796_v13, %v1637_v6 }
  0x34   : > { %v397_v17 = vmul.f32 %v396_v0, %v1681_v27  ;;  %v398_v21 = vmul.f32 %v396_v0, %v1688_v32  ;;  %v399_v11 = vmul.f32 %v396_v0, %v1692_v34  ;;  %v400_v23 = vmul.f32 %v396_v0, %v1699_v39 }
  0x35   : > { %v421_v25 = vmul.f32 %v420_v19, %v1681_v27  ;;  %v422_v16 = vmul.f32 %v420_v19, %v1688_v32  ;;  %v423_v26 = vmul.f32 %v420_v19, %v1692_v34  ;;  %v424_v24 = vmul.f32 %v420_v19, %v1699_v39 }
  0x36   : > { %v405_v29 = vrot.slane %v397_v17, 1  ;;  %v406_v30 = vrot.slane %v398_v21, 1  ;;  %v407_v18 = vrot.slane %v399_v11, 1  ;;  %v408_v31 = vrot.slane %v400_v23, 1 }
  0x37   : > { %v429_v36 = vrot.slane %v421_v25, 2  ;;  %v430_v12 = vrot.slane %v422_v16, 2  ;;  %v431_v37 = vrot.slane %v423_v26, 2  ;;  %v432_v38 = vrot.slane %v424_v24, 2 }
  0x38   : > { %v413_v43 = vadd.f32 %v405_v29, %v389_v63  ;;  %v414_v44 = vadd.f32 %v406_v30, %v390_v14  ;;  %v415_v20 = vadd.f32 %v407_v18, %v391_v1  ;;  %v416_v58 = vadd.f32 %v408_v31, %v392_v22 }
  0x39   : > { %v445_v59 = vmul.f32 %v444_v2, %v1681_v27  ;;  %v446_v54 = vmul.f32 %v444_v2, %v1688_v32  ;;  %v447_v55 = vmul.f32 %v444_v2, %v1692_v34  ;;  %v448_v56 = vmul.f32 %v444_v2, %v1699_v39 }
  0x3a   : > { %v437_v57 = vadd.f32 %v429_v36, %v413_v43  ;;  %v438_v60 = vadd.f32 %v430_v12, %v414_v44  ;;  %v439_v61 = vadd.f32 %v431_v37, %v415_v20  ;;  %v440_v62 = vadd.f32 %v432_v38, %v416_v58 }
  0x3b   : > { %v453_v0 = vrot.slane %v445_v59, 3  ;;  %v454_v19 = vrot.slane %v446_v54, 3  ;;  %v455_v17 = vrot.slane %v447_v55, 3  ;;  %v456_v21 = vrot.slane %v448_v56, 3 }
  0x3c   : > { %v469_v63 = vmul.f32 %v468_v15, %v1681_v27  ;;  %v470_v14 = vmul.f32 %v468_v15, %v1688_v32  ;;  %v471_v1 = vmul.f32 %v468_v15, %v1692_v34  ;;  %v472_v22 = vmul.f32 %v468_v15, %v1699_v39 }
  0x3d   : > { %v461_v11 = vadd.f32 %v453_v0, %v437_v57  ;;  %v462_v23 = vadd.f32 %v454_v19, %v438_v60  ;;  %v463_v25 = vadd.f32 %v455_v17, %v439_v61  ;;  %v464_v2 = vadd.f32 %v456_v21, %v440_v62 }
  0x3e   : > { %v477_v16 = vrot.slane %v469_v63, 4  ;;  %v478_v26 = vrot.slane %v470_v14, 4  ;;  %v479_v24 = vrot.slane %v471_v1, 4  ;;  %v480_v29 = vrot.slane %v472_v22, 4 }
  0x3f   : > { %v492_v30 = vrot.slane %v1796_v13, %v1639_v7  ;;  %v532_v18 = vrot.slane %v1796_v13, %v1641_v8  ;;  %v572_v31 = vrot.slane %v1796_v13, %v1643_v9  ;;  %v1842_v15 = vrot.slane %v1796_v13, %v1645_v10 }
  0x40   : > { %v485_v36 = vadd.f32 %v477_v16, %v461_v11  ;;  %v486_v12 = vadd.f32 %v478_v26, %v462_v23  ;;  %v487_v37 = vadd.f32 %v479_v24, %v463_v25  ;;  %v488_v38 = vadd.f32 %v480_v29, %v464_v2 }
  0x41   : > { %v493_v43 = vmul.f32 %v492_v30, %v1681_v27  ;;  %v494_v44 = vmul.f32 %v492_v30, %v1683_v28  ;;  %v495_v20 = vmul.f32 %v492_v30, %v1688_v32  ;;  %v496_v58 = vmul.f32 %v492_v30, %v1690_v33 }
  0x42   : > { %v497_v59 = vmul.f32 %v492_v30, %v1692_v34  ;;  %v498_v54 = vmul.f32 %v492_v30, %v1694_v35  ;;  %v499_v55 = vmul.f32 %v492_v30, %v1699_v39  ;;  %v500_v13 = vmul.f32 %v492_v30, %v1701_v40 }
  0x43   : > { %v509_v56 = vrot.slane %v493_v43, 5  ;;  %v510_v57 = vrot.slane %v494_v44, 5  ;;  %v512_v60 = vrot.slane %v495_v20, 5  ;;  %v513_v61 = vrot.slane %v496_v58, 5 }
  0x44   : > { %v515_v62 = vrot.slane %v497_v59, 5  ;;  %v516_v0 = vrot.slane %v498_v54, 5  ;;  %v518_v19 = vrot.slane %v499_v55, 5  ;;  %v519_v17 = vrot.slane %v500_v13, 5 }
  0x45   : > { %v511_v21 = vsel %vm319_vm0, %v509_v56, %v510_v57  ;;  %v514_v63 = vsel %vm319_vm0, %v512_v60, %v513_v61  ;;  %v533_v14 = vmul.f32 %v532_v18, %v1681_v27  ;;  %v534_v1 = vmul.f32 %v532_v18, %v1683_v28  ;;  %v1873_v61 = vld [vmem:[%s2201_s1 + $0x10] sm:$0xff] }
  0x46   : > { %v517_v22 = vsel %vm319_vm0, %v515_v62, %v516_v0  ;;  %v520_v11 = vsel %vm319_vm0, %v518_v19, %v519_v17  ;;  %v525_v23 = vadd.f32 %v511_v21, %v485_v36  ;;  %v526_v25 = vadd.f32 %v514_v63, %v486_v12 }
  0x47   : > { %v527_v2 = vadd.f32 %v517_v22, %v487_v37  ;;  %v528_v16 = vadd.f32 %v520_v11, %v488_v38  ;;  %v535_v26 = vmul.f32 %v532_v18, %v1688_v32  ;;  %v536_v24 = vmul.f32 %v532_v18, %v1690_v33 }
  0x48   : > { %v537_v29 = vmul.f32 %v532_v18, %v1692_v34  ;;  %v538_v30 = vmul.f32 %v532_v18, %v1694_v35  ;;  %v539_v27 = vmul.f32 %v532_v18, %v1699_v39  ;;  %v540_v28 = vmul.f32 %v532_v18, %v1701_v40 }
  0x49   : > { %v549_v43 = vrot.slane %v533_v14, 6  ;;  %v550_v44 = vrot.slane %v534_v1, 6  ;;  %v552_v20 = vrot.slane %v535_v26, 6  ;;  %v553_v58 = vrot.slane %v536_v24, 6 }
  0x4a   : > { %v555_v36 = vrot.slane %v537_v29, 6  ;;  %v556_v12 = vrot.slane %v538_v30, 6  ;;  %v558_v37 = vrot.slane %v539_v27, 6  ;;  %v559_v38 = vrot.slane %v540_v28, 6 }
  0x4b   : > { %v551_v59 = vsel %vm360_vm1, %v549_v43, %v550_v44  ;;  %v554_v54 = vsel %vm360_vm1, %v552_v20, %v553_v58  ;;  %v573_v55 = vmul.f32 %v572_v31, %v1688_v32  ;;  %v574_v13 = vmul.f32 %v572_v31, %v1692_v34 }
  0x4c   : > { %v557_v56 = vsel %vm360_vm1, %v555_v36, %v556_v12  ;;  %v560_v18 = vsel %vm360_vm1, %v558_v37, %v559_v38  ;;  %v565_v57 = vadd.f32 %v551_v59, %v525_v23  ;;  %v566_v60 = vadd.f32 %v554_v54, %v526_v25 }
  0x4d   : > { %v567_v62 = vadd.f32 %v557_v56, %v527_v2  ;;  %v568_v0 = vadd.f32 %v560_v18, %v528_v16  ;;  %v575_v19 = vmul.f32 %v572_v31, %v1699_v39  ;;  %v576_v17 = vmul.f32 %v572_v31, %v1703_v41 }
  0x4e   : > { %v577_v21 = vadd.f32 %v573_v55, %v565_v57  ;;  %v578_v63 = vadd.f32 %v574_v13, %v566_v60  ;;  %v585_v14 = vmul.f32 %v1842_v15, %v1688_v32  ;;  %v586_v1 = vmul.f32 %v1842_v15, %v1692_v34 }
  0x4f   : > { %v579_v22 = vadd.f32 %v575_v19, %v567_v62  ;;  %v580_v11 = vadd.f32 %v576_v17, %v568_v0  ;;  %v587_v23 = vmul.f32 %v1842_v15, %v1699_v39  ;;  %v588_v25 = vmul.f32 %v1842_v15, %v1703_v41 }
  0x50   : > { %v593_v2 = vrot.slane %v585_v14, 1  ;;  %v594_v16 = vrot.slane %v586_v1, 1  ;;  %v608_v31 = vrot.slane %v1873_v61, %v1631_v3  ;;  %v632_v26 = vrot.slane %v1873_v61, %v1633_v4 }
  0x51   : > { %v595_v24 = vrot.slane %v587_v23, 1  ;;  %v596_v29 = vrot.slane %v588_v25, 1  ;;  %v656_v30 = vrot.slane %v1873_v61, %v1635_v5  ;;  %v680_v27 = vrot.slane %v1873_v61, %v1637_v6 }
  0x52   : > { %v601_v28 = vadd.f32 %v593_v2, %v577_v21  ;;  %v602_v43 = vadd.f32 %v594_v16, %v578_v63  ;;  %v609_v15 = vmul.f32 %v608_v31, %v1688_v32  ;;  %v610_v44 = vmul.f32 %v608_v31, %v1692_v34 }
  0x53   : > { %v603_v20 = vadd.f32 %v595_v24, %v579_v22  ;;  %v604_v58 = vadd.f32 %v596_v29, %v580_v11  ;;  %v611_v36 = vmul.f32 %v608_v31, %v1699_v39  ;;  %v612_v12 = vmul.f32 %v608_v31, %v1703_v41 }
  0x54   : > { %v617_v37 = vrot.slane %v609_v15, 2  ;;  %v618_v38 = vrot.slane %v610_v44, 2  ;;  %v633_v59 = vmul.f32 %v632_v26, %v1688_v32  ;;  %v634_v54 = vmul.f32 %v632_v26, %v1692_v34 }
  0x55   : > { %v619_v55 = vrot.slane %v611_v36, 2  ;;  %v620_v13 = vrot.slane %v612_v12, 2  ;;  %v635_v56 = vmul.f32 %v632_v26, %v1699_v39  ;;  %v636_v18 = vmul.f32 %v632_v26, %v1703_v41 }
  0x56   : > { %v625_v57 = vadd.f32 %v617_v37, %v601_v28  ;;  %v626_v60 = vadd.f32 %v618_v38, %v602_v43  ;;  %v641_v62 = vrot.slane %v633_v59, 3  ;;  %v642_v0 = vrot.slane %v634_v54, 3 }
  0x57   : > { %v627_v19 = vadd.f32 %v619_v55, %v603_v20  ;;  %v628_v17 = vadd.f32 %v620_v13, %v604_v58  ;;  %v643_v21 = vrot.slane %v635_v56, 3  ;;  %v644_v63 = vrot.slane %v636_v18, 3 }
  0x58   : > { %v649_v14 = vadd.f32 %v641_v62, %v625_v57  ;;  %v650_v1 = vadd.f32 %v642_v0, %v626_v60  ;;  %v657_v22 = vmul.f32 %v656_v30, %v1688_v32  ;;  %v658_v11 = vmul.f32 %v656_v30, %v1692_v34 }
  0x59   : > { %v651_v23 = vadd.f32 %v643_v21, %v627_v19  ;;  %v652_v25 = vadd.f32 %v644_v63, %v628_v17  ;;  %v659_v2 = vmul.f32 %v656_v30, %v1699_v39  ;;  %v660_v16 = vmul.f32 %v656_v30, %v1703_v41 }
  0x5a   : > { %v665_v31 = vrot.slane %v657_v22, 4  ;;  %v666_v26 = vrot.slane %v658_v11, 4  ;;  %v681_v24 = vmul.f32 %v680_v27, %v1688_v32  ;;  %v682_v29 = vmul.f32 %v680_v27, %v1690_v33 }
  0x5b   : > { %v667_v28 = vrot.slane %v659_v2, 4  ;;  %v668_v43 = vrot.slane %v660_v16, 4  ;;  %v683_v15 = vmul.f32 %v680_v27, %v1692_v34  ;;  %v684_v44 = vmul.f32 %v680_v27, %v1694_v35 }
  0x5c   : > { %v673_v20 = vadd.f32 %v665_v31, %v649_v14  ;;  %v674_v58 = vadd.f32 %v666_v26, %v650_v1  ;;  %v685_v36 = vmul.f32 %v680_v27, %v1699_v39  ;;  %v686_v12 = vmul.f32 %v680_v27, %v1701_v40 }
  0x5d   : > { %v675_v37 = vadd.f32 %v667_v28, %v651_v23  ;;  %v676_v30 = vadd.f32 %v668_v43, %v652_v25  ;;  %v687_v38 = vmul.f32 %v680_v27, %v1703_v41  ;;  %v688_v59 = vmul.f32 %v680_v27, %v1705_v42 }
  0x5e   : > { %v697_v54 = vrot.slane %v681_v24, 5  ;;  %v698_v55 = vrot.slane %v682_v29, 5  ;;  %v700_v13 = vrot.slane %v683_v15, 5  ;;  %v701_v56 = vrot.slane %v684_v44, 5 }
  0x5f   : > { %v703_v18 = vrot.slane %v685_v36, 5  ;;  %v704_v57 = vrot.slane %v686_v12, 5  ;;  %v706_v60 = vrot.slane %v687_v38, 5  ;;  %v707_v62 = vrot.slane %v688_v59, 5 }
  0x60   : > { %v699_v0 = vsel %vm319_vm0, %v697_v54, %v698_v55  ;;  %v702_v19 = vsel %vm319_vm0, %v700_v13, %v701_v56  ;;  %v720_v17 = vrot.slane %v1873_v61, %v1639_v7  ;;  %v760_v21 = vrot.slane %v1873_v61, %v1641_v8 }
  0x61   : > { %v705_v27 = vsel %vm319_vm0, %v703_v18, %v704_v57  ;;  %v708_v63 = vsel %vm319_vm0, %v706_v60, %v707_v62  ;;  %v713_v14 = vadd.f32 %v699_v0, %v673_v20  ;;  %v714_v1 = vadd.f32 %v702_v19, %v674_v58 }
  0x62   : > { %v715_v22 = vadd.f32 %v705_v27, %v675_v37  ;;  %v716_v11 = vadd.f32 %v708_v63, %v676_v30  ;;  %v721_v23 = vmul.f32 %v720_v17, %v1688_v32  ;;  %v722_v25 = vmul.f32 %v720_v17, %v1690_v33  ;;  %v1934_v37 = vld [vmem:[%s2201_s1 + $0x18] sm:$0xff] }
  0x63   : > { %v723_v2 = vmul.f32 %v720_v17, %v1692_v34  ;;  %v724_v16 = vmul.f32 %v720_v17, %v1694_v35  ;;  %v725_v31 = vmul.f32 %v720_v17, %v1699_v39  ;;  %v726_v26 = vmul.f32 %v720_v17, %v1701_v40 }
  0x64   : > { %v727_v24 = vmul.f32 %v720_v17, %v1703_v41  ;;  %v728_v29 = vmul.f32 %v720_v17, %v1705_v42  ;;  %v737_v28 = vrot.slane %v721_v23, 6  ;;  %v738_v43 = vrot.slane %v722_v25, 6 }
  0x65   : > { %v740_v15 = vrot.slane %v723_v2, 6  ;;  %v741_v44 = vrot.slane %v724_v16, 6  ;;  %v743_v20 = vrot.slane %v725_v31, 6  ;;  %v744_v32 = vrot.slane %v726_v26, 6 }
  0x66   : > { %v739_v33 = vsel %vm360_vm1, %v737_v28, %v738_v43  ;;  %v746_v58 = vrot.slane %v727_v24, 6  ;;  %v747_v36 = vrot.slane %v728_v29, 6  ;;  %v761_v12 = vmul.f32 %v760_v21, %v1692_v34 }
  0x67   : > { %v742_v30 = vsel %vm360_vm1, %v740_v15, %v741_v44  ;;  %v745_v38 = vsel %vm360_vm1, %v743_v20, %v744_v32  ;;  %v753_v59 = vadd.f32 %v739_v33, %v713_v14  ;;  %v762_v54 = vmul.f32 %v760_v21, %v1699_v39 }
  0x68   : > { %v748_v55 = vsel %vm360_vm1, %v746_v58, %v747_v36  ;;  %v754_v13 = vadd.f32 %v742_v30, %v714_v1  ;;  %v755_v56 = vadd.f32 %v745_v38, %v715_v22  ;;  %v763_v18 = vmul.f32 %v760_v21, %v1703_v41 }
  0x69   : > { %v756_v57 = vadd.f32 %v748_v55, %v716_v11  ;;  %v764_v60 = vmul.f32 %v760_v21, %v1712_v46  ;;  %v765_v62 = vadd.f32 %v761_v12, %v753_v59  ;;  %v772_v0 = vrot.slane %v1873_v61, %v1643_v9 }
  0x6a   : > { %v766_v19 = vadd.f32 %v762_v54, %v754_v13  ;;  %v767_v17 = vadd.f32 %v763_v18, %v755_v56  ;;  %v796_v27 = vrot.slane %v1873_v61, %v1645_v10  ;;  %v820_v63 = vrot.slane %v1934_v37, %v1631_v3 }
  0x6b   : > { %v768_v14 = vadd.f32 %v764_v60, %v756_v57  ;;  %v773_v1 = vmul.f32 %v772_v0, %v1692_v34  ;;  %v774_v22 = vmul.f32 %v772_v0, %v1699_v39  ;;  %v775_v11 = vmul.f32 %v772_v0, %v1703_v41 }
  0x6c   : > { %v776_v21 = vmul.f32 %v772_v0, %v1712_v46  ;;  %v797_v23 = vmul.f32 %v796_v27, %v1692_v34  ;;  %v798_v25 = vmul.f32 %v796_v27, %v1699_v39  ;;  %v799_v2 = vmul.f32 %v796_v27, %v1703_v41 }
  0x6d   : > { %v781_v16 = vrot.slane %v773_v1, 1  ;;  %v782_v61 = vrot.slane %v774_v22, 1  ;;  %v783_v31 = vrot.slane %v775_v11, 1  ;;  %v800_v26 = vmul.f32 %v796_v27, %v1712_v46 }
  0x6e   : > { %v784_v24 = vrot.slane %v776_v21, 1  ;;  %v805_v29 = vrot.slane %v797_v23, 2  ;;  %v806_v28 = vrot.slane %v798_v25, 2  ;;  %v807_v43 = vrot.slane %v799_v2, 2 }
  0x6f   : > { %v789_v15 = vadd.f32 %v781_v16, %v765_v62  ;;  %v790_v44 = vadd.f32 %v782_v61, %v766_v19  ;;  %v791_v20 = vadd.f32 %v783_v31, %v767_v17  ;;  %v808_v32 = vrot.slane %v800_v26, 2 }
  0x70   : > { %v792_v33 = vadd.f32 %v784_v24, %v768_v14  ;;  %v821_v58 = vmul.f32 %v820_v63, %v1692_v34  ;;  %v822_v36 = vmul.f32 %v820_v63, %v1699_v39  ;;  %v823_v12 = vmul.f32 %v820_v63, %v1703_v41 }
  0x71   : > { %v813_v30 = vadd.f32 %v805_v29, %v789_v15  ;;  %v814_v38 = vadd.f32 %v806_v28, %v790_v44  ;;  %v815_v59 = vadd.f32 %v807_v43, %v791_v20  ;;  %v824_v54 = vmul.f32 %v820_v63, %v1712_v46 }
  0x72   : > { %v816_v55 = vadd.f32 %v808_v32, %v792_v33  ;;  %v829_v13 = vrot.slane %v821_v58, 3  ;;  %v830_v56 = vrot.slane %v822_v36, 3  ;;  %v831_v18 = vrot.slane %v823_v12, 3 }
  0x73   : > { %v832_v57 = vrot.slane %v824_v54, 3  ;;  %v844_v60 = vrot.slane %v1934_v37, %v1633_v4  ;;  %v868_v62 = vrot.slane %v1934_v37, %v1635_v5  ;;  %v908_v0 = vrot.slane %v1934_v37, %v1637_v6 }
  0x74   : > { %v837_v19 = vadd.f32 %v829_v13, %v813_v30  ;;  %v838_v17 = vadd.f32 %v830_v56, %v814_v38  ;;  %v839_v27 = vadd.f32 %v831_v18, %v815_v59  ;;  %v1968_v63 = vrot.slane %v1934_v37, %v1639_v7 }
  0x75   : > { %v840_v14 = vadd.f32 %v832_v57, %v816_v55  ;;  %v845_v1 = vmul.f32 %v844_v60, %v1692_v34  ;;  %v846_v22 = vmul.f32 %v844_v60, %v1699_v39  ;;  %v847_v11 = vmul.f32 %v844_v60, %v1703_v41 }
  0x76   : > { %v848_v21 = vmul.f32 %v844_v60, %v1712_v46  ;;  %v869_v23 = vmul.f32 %v868_v62, %v1692_v34  ;;  %v870_v25 = vmul.f32 %v868_v62, %v1694_v35  ;;  %v871_v2 = vmul.f32 %v868_v62, %v1699_v39 }
  0x77   : > { %v853_v16 = vrot.slane %v845_v1, 4  ;;  %v854_v61 = vrot.slane %v846_v22, 4  ;;  %v855_v31 = vrot.slane %v847_v11, 4  ;;  %v872_v26 = vmul.f32 %v868_v62, %v1701_v40 }
  0x78   : > { %v856_v24 = vrot.slane %v848_v21, 4  ;;  %v873_v29 = vmul.f32 %v868_v62, %v1703_v41  ;;  %v874_v28 = vmul.f32 %v868_v62, %v1705_v42  ;;  %v875_v43 = vmul.f32 %v868_v62, %v1712_v46 }
  0x79   : > { %v861_v15 = vadd.f32 %v853_v16, %v837_v19  ;;  %v862_v44 = vadd.f32 %v854_v61, %v838_v17  ;;  %v863_v20 = vadd.f32 %v855_v31, %v839_v27  ;;  %v876_v32 = vmul.f32 %v868_v62, %v1714_v47 }
  0x7a   : > { %v864_v33 = vadd.f32 %v856_v24, %v840_v14  ;;  %v885_v58 = vrot.slane %v869_v23, 5  ;;  %v886_v36 = vrot.slane %v870_v25, 5  ;;  %v888_v12 = vrot.slane %v871_v2, 5 }
  0x7b   : > { %v889_v30 = vrot.slane %v872_v26, 5  ;;  %v891_v38 = vrot.slane %v873_v29, 5  ;;  %v892_v59 = vrot.slane %v874_v28, 5  ;;  %v894_v54 = vrot.slane %v875_v43, 5 }
  0x7c   : > { %v887_v55 = vsel %vm319_vm0, %v885_v58, %v886_v36  ;;  %v895_v13 = vrot.slane %v876_v32, 5  ;;  %v909_v56 = vmul.f32 %v908_v0, %v1692_v34  ;;  %v910_v18 = vmul.f32 %v908_v0, %v1694_v35 }
  0x7d   : > { %v890_v57 = vsel %vm319_vm0, %v888_v12, %v889_v30  ;;  %v893_v60 = vsel %vm319_vm0, %v891_v38, %v892_v59  ;;  %v901_v62 = vadd.f32 %v887_v55, %v861_v15  ;;  %v911_v19 = vmul.f32 %v908_v0, %v1699_v39 }
  0x7e   : > { %v896_v17 = vsel %vm319_vm0, %v894_v54, %v895_v13  ;;  %v902_v27 = vadd.f32 %v890_v57, %v862_v44  ;;  %v903_v14 = vadd.f32 %v893_v60, %v863_v20  ;;  %v912_v1 = vmul.f32 %v908_v0, %v1701_v40 }
  0x7f   : > { %v904_v22 = vadd.f32 %v896_v17, %v864_v33  ;;  %v913_v11 = vmul.f32 %v908_v0, %v1703_v41  ;;  %v914_v34 = vmul.f32 %v908_v0, %v1705_v42  ;;  %v915_v35 = vmul.f32 %v908_v0, %v1712_v46 }
  0x80   : > { %v916_v21 = vmul.f32 %v908_v0, %v1714_v47  ;;  %v925_v23 = vrot.slane %v909_v56, 6  ;;  %v926_v25 = vrot.slane %v910_v18, 6  ;;  %v928_v2 = vrot.slane %v911_v19, 6  ;;  %v2002_v0 = vld [vmem:[%s2201_s1 + $0x20] sm:$0xff] }
  0x81   : > { %v929_v16 = vrot.slane %v912_v1, 6  ;;  %v931_v61 = vrot.slane %v913_v11, 6  ;;  %v932_v31 = vrot.slane %v914_v34, 6  ;;  %v934_v26 = vrot.slane %v915_v35, 6 }
  0x82   : > { %v927_v24 = vsel %vm360_vm1, %v925_v23, %v926_v25  ;;  %v935_v29 = vrot.slane %v916_v21, 6  ;;  %v949_v28 = vmul.f32 %v1968_v63, %v1699_v39  ;;  %v950_v43 = vmul.f32 %v1968_v63, %v1703_v41 }
  0x83   : > { %v930_v15 = vsel %vm360_vm1, %v928_v2, %v929_v16  ;;  %v933_v44 = vsel %vm360_vm1, %v931_v61, %v932_v31  ;;  %v941_v20 = vadd.f32 %v927_v24, %v901_v62  ;;  %v951_v32 = vmul.f32 %v1968_v63, %v1712_v46 }
  0x84   : > { %v936_v33 = vsel %vm360_vm1, %v934_v26, %v935_v29  ;;  %v942_v58 = vadd.f32 %v930_v15, %v902_v27  ;;  %v943_v36 = vadd.f32 %v933_v44, %v903_v14  ;;  %v952_v12 = vmul.f32 %v1968_v63, %v1716_v48 }
  0x85   : > { %v944_v30 = vadd.f32 %v936_v33, %v904_v22  ;;  %v953_v38 = vadd.f32 %v949_v28, %v941_v20  ;;  %v960_v59 = vrot.slane %v1934_v37, %v1641_v8  ;;  %v984_v54 = vrot.slane %v1934_v37, %v1643_v9 }
  0x86   : > { %v954_v55 = vadd.f32 %v950_v43, %v942_v58  ;;  %v955_v13 = vadd.f32 %v951_v32, %v943_v36  ;;  %v1008_v56 = vrot.slane %v1934_v37, %v1645_v10  ;;  %v1032_v18 = vrot.slane %v2002_v0, %v1631_v3 }
  0x87   : > { %v956_v57 = vadd.f32 %v952_v12, %v944_v30  ;;  %v961_v60 = vmul.f32 %v960_v59, %v1699_v39  ;;  %v962_v63 = vmul.f32 %v960_v59, %v1703_v41  ;;  %v963_v62 = vmul.f32 %v960_v59, %v1712_v46 }
  0x88   : > { %v964_v19 = vmul.f32 %v960_v59, %v1716_v48  ;;  %v985_v17 = vmul.f32 %v984_v54, %v1699_v39  ;;  %v986_v27 = vmul.f32 %v984_v54, %v1703_v41  ;;  %v987_v14 = vmul.f32 %v984_v54, %v1712_v46 }
  0x89   : > { %v969_v1 = vrot.slane %v961_v60, 1  ;;  %v970_v37 = vrot.slane %v962_v63, 1  ;;  %v971_v22 = vrot.slane %v963_v62, 1  ;;  %v988_v11 = vmul.f32 %v984_v54, %v1716_v48 }
  0x8a   : > { %v972_v34 = vrot.slane %v964_v19, 1  ;;  %v993_v35 = vrot.slane %v985_v17, 2  ;;  %v994_v21 = vrot.slane %v986_v27, 2  ;;  %v995_v23 = vrot.slane %v987_v14, 2 }
  0x8b   : > { %v977_v25 = vadd.f32 %v969_v1, %v953_v38  ;;  %v978_v2 = vadd.f32 %v970_v37, %v954_v55  ;;  %v979_v16 = vadd.f32 %v971_v22, %v955_v13  ;;  %v996_v61 = vrot.slane %v988_v11, 2 }
  0x8c   : > { %v980_v31 = vadd.f32 %v972_v34, %v956_v57  ;;  %v1009_v26 = vmul.f32 %v1008_v56, %v1699_v39  ;;  %v1010_v24 = vmul.f32 %v1008_v56, %v1703_v41  ;;  %v1011_v29 = vmul.f32 %v1008_v56, %v1712_v46 }
  0x8d   : > { %v1001_v28 = vadd.f32 %v993_v35, %v977_v25  ;;  %v1002_v43 = vadd.f32 %v994_v21, %v978_v2  ;;  %v1003_v15 = vadd.f32 %v995_v23, %v979_v16  ;;  %v1012_v44 = vmul.f32 %v1008_v56, %v1716_v48 }
  0x8e   : > { %v1004_v20 = vadd.f32 %v996_v61, %v980_v31  ;;  %v1017_v32 = vrot.slane %v1009_v26, 3  ;;  %v1018_v33 = vrot.slane %v1010_v24, 3  ;;  %v1019_v58 = vrot.slane %v1011_v29, 3 }
  0x8f   : > { %v1020_v36 = vrot.slane %v1012_v44, 3  ;;  %v1033_v12 = vmul.f32 %v1032_v18, %v1699_v39  ;;  %v1034_v30 = vmul.f32 %v1032_v18, %v1703_v41  ;;  %v1035_v38 = vmul.f32 %v1032_v18, %v1712_v46 }
  0x90   : > { %v1025_v59 = vadd.f32 %v1017_v32, %v1001_v28  ;;  %v1026_v54 = vadd.f32 %v1018_v33, %v1002_v43  ;;  %v1027_v55 = vadd.f32 %v1019_v58, %v1003_v15  ;;  %v1036_v13 = vmul.f32 %v1032_v18, %v1716_v48 }
  0x91   : > { %v1028_v57 = vadd.f32 %v1020_v36, %v1004_v20  ;;  %v1041_v60 = vrot.slane %v1033_v12, 4  ;;  %v1042_v63 = vrot.slane %v1034_v30, 4  ;;  %v1043_v56 = vrot.slane %v1035_v38, 4 }
  0x92   : > { %v1044_v62 = vrot.slane %v1036_v13, 4  ;;  %v1056_v19 = vrot.slane %v2002_v0, %v1633_v4  ;;  %v1096_v17 = vrot.slane %v2002_v0, %v1635_v5  ;;  %v1136_v27 = vrot.slane %v2002_v0, %v1637_v6 }
  0x93   : > { %v1049_v14 = vadd.f32 %v1041_v60, %v1025_v59  ;;  %v1050_v1 = vadd.f32 %v1042_v63, %v1026_v54  ;;  %v1051_v37 = vadd.f32 %v1043_v56, %v1027_v55  ;;  %v1148_v18 = vrot.slane %v2002_v0, %v1639_v7 }
  0x94   : > { %v1052_v22 = vadd.f32 %v1044_v62, %v1028_v57  ;;  %v1057_v11 = vmul.f32 %v1056_v19, %v1699_v39  ;;  %v1058_v34 = vmul.f32 %v1056_v19, %v1701_v40  ;;  %v1059_v35 = vmul.f32 %v1056_v19, %v1703_v41 }
  0x95   : > { %v1060_v21 = vmul.f32 %v1056_v19, %v1705_v42  ;;  %v1061_v23 = vmul.f32 %v1056_v19, %v1712_v46  ;;  %v1062_v25 = vmul.f32 %v1056_v19, %v1714_v47  ;;  %v1063_v2 = vmul.f32 %v1056_v19, %v1716_v48 }
  0x96   : > { %v1064_v16 = vmul.f32 %v1056_v19, %v1718_v49  ;;  %v1073_v61 = vrot.slane %v1057_v11, 5  ;;  %v1074_v31 = vrot.slane %v1058_v34, 5  ;;  %v1076_v26 = vrot.slane %v1059_v35, 5 }
  0x97   : > { %v1077_v24 = vrot.slane %v1060_v21, 5  ;;  %v1079_v29 = vrot.slane %v1061_v23, 5  ;;  %v1080_v28 = vrot.slane %v1062_v25, 5  ;;  %v1082_v43 = vrot.slane %v1063_v2, 5 }
  0x98   : > { %v1075_v15 = vsel %vm319_vm0, %v1073_v61, %v1074_v31  ;;  %v1083_v44 = vrot.slane %v1064_v16, 5  ;;  %v1097_v20 = vmul.f32 %v1096_v17, %v1699_v39  ;;  %v1098_v32 = vmul.f32 %v1096_v17, %v1701_v40 }
  0x99   : > { %v1078_v33 = vsel %vm319_vm0, %v1076_v26, %v1077_v24  ;;  %v1081_v58 = vsel %vm319_vm0, %v1079_v29, %v1080_v28  ;;  %v1089_v36 = vadd.f32 %v1075_v15, %v1049_v14  ;;  %v1099_v12 = vmul.f32 %v1096_v17, %v1703_v41 }
  0x9a   : > { %v1084_v30 = vsel %vm319_vm0, %v1082_v43, %v1083_v44  ;;  %v1090_v38 = vadd.f32 %v1078_v33, %v1050_v1  ;;  %v1091_v59 = vadd.f32 %v1081_v58, %v1051_v37  ;;  %v1100_v54 = vmul.f32 %v1096_v17, %v1705_v42 }
  0x9b   : > { %v1092_v55 = vadd.f32 %v1084_v30, %v1052_v22  ;;  %v1101_v13 = vmul.f32 %v1096_v17, %v1712_v46  ;;  %v1102_v39 = vmul.f32 %v1096_v17, %v1714_v47  ;;  %v1103_v40 = vmul.f32 %v1096_v17, %v1716_v48 }
  0x9c   : > { %v1104_v57 = vmul.f32 %v1096_v17, %v1718_v49  ;;  %v1113_v60 = vrot.slane %v1097_v20, 6  ;;  %v1114_v63 = vrot.slane %v1098_v32, 6  ;;  %v1116_v56 = vrot.slane %v1099_v12, 6 }
  0x9d   : > { %v1117_v62 = vrot.slane %v1100_v54, 6  ;;  %v1119_v19 = vrot.slane %v1101_v13, 6  ;;  %v1120_v14 = vrot.slane %v1102_v39, 6  ;;  %v1122_v11 = vrot.slane %v1103_v40, 6 }
  0x9e   : > { %v1115_v1 = vsel %vm360_vm1, %v1113_v60, %v1114_v63  ;;  %v1123_v37 = vrot.slane %v1104_v57, 6  ;;  %v1137_v22 = vmul.f32 %v1136_v27, %v1703_v41  ;;  %v1138_v34 = vmul.f32 %v1136_v27, %v1712_v46 }
  0x9f   : > { %v1118_v35 = vsel %vm360_vm1, %v1116_v56, %v1117_v62  ;;  %v1121_v21 = vsel %vm360_vm1, %v1119_v19, %v1120_v14  ;;  %v1129_v23 = vadd.f32 %v1115_v1, %v1089_v36  ;;  %v1139_v17 = vmul.f32 %v1136_v27, %v1716_v48 }
  0xa0   : > { %v1124_v25 = vsel %vm360_vm1, %v1122_v11, %v1123_v37  ;;  %v1130_v2 = vadd.f32 %v1118_v35, %v1090_v38  ;;  %v1131_v16 = vadd.f32 %v1121_v21, %v1091_v59  ;;  %v1140_v61 = vmul.f32 %v1136_v27, %v1720_v50 }
  0xa1   : > { %v1132_v31 = vadd.f32 %v1124_v25, %v1092_v55  ;;  %v1141_v26 = vadd.f32 %v1137_v22, %v1129_v23  ;;  %v1149_v24 = vmul.f32 %v1148_v18, %v1703_v41  ;;  %v1150_v29 = vmul.f32 %v1148_v18, %v1712_v46 }
  0xa2   : > { %v1142_v28 = vadd.f32 %v1138_v34, %v1130_v2  ;;  %v1143_v43 = vadd.f32 %v1139_v17, %v1131_v16  ;;  %v1151_v15 = vmul.f32 %v1148_v18, %v1716_v48  ;;  %v1152_v44 = vmul.f32 %v1148_v18, %v1720_v50  ;;  %v2092_v34 = vld [vmem:[%s2201_s1 + $0x28] sm:$0xff] }
  0xa3   : > { %v1144_v20 = vadd.f32 %v1140_v61, %v1132_v31  ;;  %v1157_v32 = vrot.slane %v1149_v24, 1  ;;  %v1158_v33 = vrot.slane %v1150_v29, 1  ;;  %v1172_v58 = vrot.slane %v2002_v0, %v1641_v8 }
  0xa4   : > { %v1159_v36 = vrot.slane %v1151_v15, 1  ;;  %v1160_v27 = vrot.slane %v1152_v44, 1  ;;  %v1196_v12 = vrot.slane %v2002_v0, %v1643_v9  ;;  %v1220_v30 = vrot.slane %v2002_v0, %v1645_v10 }
  0xa5   : > { %v1165_v38 = vadd.f32 %v1157_v32, %v1141_v26  ;;  %v1166_v59 = vadd.f32 %v1158_v33, %v1142_v28  ;;  %v1173_v54 = vmul.f32 %v1172_v58, %v1703_v41  ;;  %v1174_v18 = vmul.f32 %v1172_v58, %v1712_v46 }
  0xa6   : > { %v1167_v55 = vadd.f32 %v1159_v36, %v1143_v43  ;;  %v1168_v13 = vadd.f32 %v1160_v27, %v1144_v20  ;;  %v1175_v39 = vmul.f32 %v1172_v58, %v1716_v48  ;;  %v1176_v40 = vmul.f32 %v1172_v58, %v1720_v50 }
  0xa7   : > { %v1181_v57 = vrot.slane %v1173_v54, 2  ;;  %v1182_v60 = vrot.slane %v1174_v18, 2  ;;  %v1197_v63 = vmul.f32 %v1196_v12, %v1703_v41  ;;  %v1198_v56 = vmul.f32 %v1196_v12, %v1712_v46 }
  0xa8   : > { %v1183_v62 = vrot.slane %v1175_v39, 2  ;;  %v1184_v0 = vrot.slane %v1176_v40, 2  ;;  %v1199_v19 = vmul.f32 %v1196_v12, %v1716_v48  ;;  %v1200_v14 = vmul.f32 %v1196_v12, %v1720_v50 }
  0xa9   : > { %v1189_v11 = vadd.f32 %v1181_v57, %v1165_v38  ;;  %v1190_v1 = vadd.f32 %v1182_v60, %v1166_v59  ;;  %v1205_v37 = vrot.slane %v1197_v63, 3  ;;  %v1206_v22 = vrot.slane %v1198_v56, 3 }
  0xaa   : > { %v1191_v35 = vadd.f32 %v1183_v62, %v1167_v55  ;;  %v1192_v21 = vadd.f32 %v1184_v0, %v1168_v13  ;;  %v1207_v23 = vrot.slane %v1199_v19, 3  ;;  %v1208_v17 = vrot.slane %v1200_v14, 3 }
  0xab   : > { %v1213_v25 = vadd.f32 %v1205_v37, %v1189_v11  ;;  %v1214_v2 = vadd.f32 %v1206_v22, %v1190_v1  ;;  %v1221_v16 = vmul.f32 %v1220_v30, %v1703_v41  ;;  %v1222_v61 = vmul.f32 %v1220_v30, %v1712_v46 }
  0xac   : > { %v1215_v31 = vadd.f32 %v1207_v23, %v1191_v35  ;;  %v1216_v26 = vadd.f32 %v1208_v17, %v1192_v21  ;;  %v1223_v24 = vmul.f32 %v1220_v30, %v1716_v48  ;;  %v1224_v29 = vmul.f32 %v1220_v30, %v1720_v50 }
  0xad   : > { %v1229_v28 = vrot.slane %v1221_v16, 4  ;;  %v1230_v43 = vrot.slane %v1222_v61, 4  ;;  %v1244_v15 = vrot.slane %v2092_v34, %v1631_v3  ;;  %v1284_v44 = vrot.slane %v2092_v34, %v1633_v4 }
  0xae   : > { %v1231_v20 = vrot.slane %v1223_v24, 4  ;;  %v1232_v32 = vrot.slane %v1224_v29, 4  ;;  %v1324_v33 = vrot.slane %v2092_v34, %v1635_v5  ;;  %v2106_v58 = vrot.slane %v2092_v34, %v1637_v6 }
  0xaf   : > { %v1237_v36 = vadd.f32 %v1229_v28, %v1213_v25  ;;  %v1238_v27 = vadd.f32 %v1230_v43, %v1214_v2  ;;  %v1245_v12 = vmul.f32 %v1244_v15, %v1703_v41  ;;  %v1246_v30 = vmul.f32 %v1244_v15, %v1705_v42 }
  0xb0   : > { %v1239_v38 = vadd.f32 %v1231_v20, %v1215_v31  ;;  %v1240_v3 = vadd.f32 %v1232_v32, %v1216_v26  ;;  %v1247_v59 = vmul.f32 %v1244_v15, %v1712_v46  ;;  %v1248_v4 = vmul.f32 %v1244_v15, %v1714_v47 }
  0xb1   : > { %v1249_v54 = vmul.f32 %v1244_v15, %v1716_v48  ;;  %v1250_v5 = vmul.f32 %v1244_v15, %v1718_v49  ;;  %v1251_v18 = vmul.f32 %v1244_v15, %v1720_v50  ;;  %v1252_v6 = vmul.f32 %v1244_v15, %v1722_v51 }
  0xb2   : > { %v1261_v55 = vrot.slane %v1245_v12, 5  ;;  %v1262_v13 = vrot.slane %v1246_v30, 5  ;;  %v1264_v39 = vrot.slane %v1247_v59, 5  ;;  %v1265_v40 = vrot.slane %v1248_v4, 5 }
  0xb3   : > { %v1267_v57 = vrot.slane %v1249_v54, 5  ;;  %v1268_v60 = vrot.slane %v1250_v5, 5  ;;  %v1270_v63 = vrot.slane %v1251_v18, 5  ;;  %v1271_v56 = vrot.slane %v1252_v6, 5 }
  0xb4   : > { %v1263_v62 = vsel %vm319_vm0, %v1261_v55, %v1262_v13  ;;  %v1266_v0 = vsel %vm319_vm0, %v1264_v39, %v1265_v40  ;;  %v1285_v19 = vmul.f32 %v1284_v44, %v1703_v41  ;;  %v1286_v14 = vmul.f32 %v1284_v44, %v1705_v42 }
  0xb5   : > { %v1269_v11 = vsel %vm319_vm0, %v1267_v57, %v1268_v60  ;;  %v1272_v1 = vsel %vm319_vm0, %v1270_v63, %v1271_v56  ;;  %v1277_v37 = vadd.f32 %v1263_v62, %v1237_v36  ;;  %v1278_v22 = vadd.f32 %v1266_v0, %v1238_v27 }
  0xb6   : > { %v1279_v35 = vadd.f32 %v1269_v11, %v1239_v38  ;;  %v1280_v21 = vadd.f32 %v1272_v1, %v1240_v3  ;;  %v1287_v23 = vmul.f32 %v1284_v44, %v1712_v46  ;;  %v1288_v17 = vmul.f32 %v1284_v44, %v1714_v47 }
  0xb7   : > { %v1289_v25 = vmul.f32 %v1284_v44, %v1716_v48  ;;  %v1290_v2 = vmul.f32 %v1284_v44, %v1718_v49  ;;  %v1291_v41 = vmul.f32 %v1284_v44, %v1720_v50  ;;  %v1292_v42 = vmul.f32 %v1284_v44, %v1722_v51 }
  0xb8   : > { %v1301_v16 = vrot.slane %v1285_v19, 6  ;;  %v1302_v61 = vrot.slane %v1286_v14, 6  ;;  %v1304_v31 = vrot.slane %v1287_v23, 6  ;;  %v1305_v26 = vrot.slane %v1288_v17, 6 }
  0xb9   : > { %v1307_v24 = vrot.slane %v1289_v25, 6  ;;  %v1308_v29 = vrot.slane %v1290_v2, 6  ;;  %v1310_v28 = vrot.slane %v1291_v41, 6  ;;  %v1311_v43 = vrot.slane %v1292_v42, 6 }
  0xba   : > { %v1303_v15 = vsel %vm360_vm1, %v1301_v16, %v1302_v61  ;;  %v1306_v20 = vsel %vm360_vm1, %v1304_v31, %v1305_v26  ;;  %v1325_v32 = vmul.f32 %v1324_v33, %v1712_v46  ;;  %v1326_v36 = vmul.f32 %v1324_v33, %v1716_v48 }
  0xbb   : > { %v1309_v27 = vsel %vm360_vm1, %v1307_v24, %v1308_v29  ;;  %v1312_v44 = vsel %vm360_vm1, %v1310_v28, %v1311_v43  ;;  %v1317_v12 = vadd.f32 %v1303_v15, %v1277_v37  ;;  %v1318_v30 = vadd.f32 %v1306_v20, %v1278_v22 }
  0xbc   : > { %v1319_v38 = vadd.f32 %v1309_v27, %v1279_v35  ;;  %v1320_v3 = vadd.f32 %v1312_v44, %v1280_v21  ;;  %v1327_v59 = vmul.f32 %v1324_v33, %v1720_v50  ;;  %v1328_v4 = vmul.f32 %v1324_v33, %v1724_v52 }
  0xbd   : > { %v1329_v54 = vadd.f32 %v1325_v32, %v1317_v12  ;;  %v1330_v5 = vadd.f32 %v1326_v36, %v1318_v30  ;;  %v1337_v18 = vmul.f32 %v2106_v58, %v1712_v46  ;;  %v1338_v6 = vmul.f32 %v2106_v58, %v1716_v48 }
  0xbe   : > { %v1331_v55 = vadd.f32 %v1327_v59, %v1319_v38  ;;  %v1332_v13 = vadd.f32 %v1328_v4, %v1320_v3  ;;  %v1339_v39 = vmul.f32 %v2106_v58, %v1720_v50  ;;  %v1340_v40 = vmul.f32 %v2106_v58, %v1724_v52 }
  0xbf   : > { %v1345_v57 = vrot.slane %v1337_v18, 1  ;;  %v1346_v60 = vrot.slane %v1338_v6, 1  ;;  %v1360_v33 = vrot.slane %v2092_v34, %v1639_v7  ;;  %v1384_v63 = vrot.slane %v2092_v34, %v1641_v8 }
  0xc0   : > { %v1347_v56 = vrot.slane %v1339_v39, 1  ;;  %v1348_v62 = vrot.slane %v1340_v40, 1  ;;  %v1408_v0 = vrot.slane %v2092_v34, %v1643_v9  ;;  %v1432_v19 = vrot.slane %v2092_v34, %v1645_v10 }
  0xc1   : > { %v1353_v14 = vadd.f32 %v1345_v57, %v1329_v54  ;;  %v1354_v11 = vadd.f32 %v1346_v60, %v1330_v5  ;;  %v1361_v58 = vmul.f32 %v1360_v33, %v1712_v46  ;;  %v1362_v1 = vmul.f32 %v1360_v33, %v1716_v48 }
  0xc2   : > { %v1355_v37 = vadd.f32 %v1347_v56, %v1331_v55  ;;  %v1356_v22 = vadd.f32 %v1348_v62, %v1332_v13  ;;  %v1363_v7 = vmul.f32 %v1360_v33, %v1720_v50  ;;  %v1364_v8 = vmul.f32 %v1360_v33, %v1724_v52  ;;  %v1581_v13 = vld [vmem:[%s2201_s1 + $0x30] ss:$0 sm:$0xff] }
  0xc3   : > { %v1369_v35 = vrot.slane %v1361_v58, 2  ;;  %v1370_v21 = vrot.slane %v1362_v1, 2  ;;  %v1385_v23 = vmul.f32 %v1384_v63, %v1712_v46  ;;  %v1386_v9 = vmul.f32 %v1384_v63, %v1716_v48 }
  0xc4   : > { %v1371_v17 = vrot.slane %v1363_v7, 2  ;;  %v1372_v10 = vrot.slane %v1364_v8, 2  ;;  %v1387_v34 = vmul.f32 %v1384_v63, %v1720_v50  ;;  %v1388_v25 = vmul.f32 %v1384_v63, %v1724_v52 }
  0xc5   : > { %v1377_v2 = vadd.f32 %v1369_v35, %v1353_v14  ;;  %v1378_v41 = vadd.f32 %v1370_v21, %v1354_v11  ;;  %v1393_v42 = vrot.slane %v1385_v23, 3  ;;  %v1394_v16 = vrot.slane %v1386_v9, 3 }
  0xc6   : > { %v1379_v61 = vadd.f32 %v1371_v17, %v1355_v37  ;;  %v1380_v31 = vadd.f32 %v1372_v10, %v1356_v22  ;;  %v1395_v26 = vrot.slane %v1387_v34, 3  ;;  %v1396_v24 = vrot.slane %v1388_v25, 3 }
  0xc7   : > { %v1401_v29 = vadd.f32 %v1393_v42, %v1377_v2  ;;  %v1402_v28 = vadd.f32 %v1394_v16, %v1378_v41  ;;  %v1409_v43 = vmul.f32 %v1408_v0, %v1712_v46  ;;  %v1410_v15 = vmul.f32 %v1408_v0, %v1716_v48 }
  0xc8   : > { %v1403_v20 = vadd.f32 %v1395_v26, %v1379_v61  ;;  %v1404_v32 = vadd.f32 %v1396_v24, %v1380_v31  ;;  %v1411_v36 = vmul.f32 %v1408_v0, %v1720_v50  ;;  %v1412_v27 = vmul.f32 %v1408_v0, %v1724_v52 }
  0xc9   : > { %v1417_v44 = vrot.slane %v1409_v43, 4  ;;  %v1418_v12 = vrot.slane %v1410_v15, 4  ;;  %v1433_v30 = vmul.f32 %v1432_v19, %v1712_v46  ;;  %v1434_v38 = vmul.f32 %v1432_v19, %v1714_v47 }
  0xca   : > { %v1419_v3 = vrot.slane %v1411_v36, 4  ;;  %v1420_v59 = vrot.slane %v1412_v27, 4  ;;  %v1435_v4 = vmul.f32 %v1432_v19, %v1716_v48  ;;  %v1436_v54 = vmul.f32 %v1432_v19, %v1718_v49 }
  0xcb   : > { %v1425_v5 = vadd.f32 %v1417_v44, %v1401_v29  ;;  %v1426_v18 = vadd.f32 %v1418_v12, %v1402_v28  ;;  %v1437_v6 = vmul.f32 %v1432_v19, %v1720_v50  ;;  %v1438_v55 = vmul.f32 %v1432_v19, %v1722_v51 }
  0xcc   : > { %v1427_v39 = vadd.f32 %v1419_v3, %v1403_v20  ;;  %v1428_v40 = vadd.f32 %v1420_v59, %v1404_v32  ;;  %v1439_v57 = vmul.f32 %v1432_v19, %v1724_v52  ;;  %v1440_v60 = vmul.f32 %v1432_v19, %v183_v53 }
  0xcd   : > { %v1449_v33 = vrot.slane %v1433_v30, 5  ;;  %v1450_v63 = vrot.slane %v1434_v38, 5  ;;  %v1452_v56 = vrot.slane %v1435_v4, 5  ;;  %v1453_v62 = vrot.slane %v1436_v54, 5 }
  0xce   : > { %v1455_v0 = vrot.slane %v1437_v6, 5  ;;  %v1456_v14 = vrot.slane %v1438_v55, 5  ;;  %v1458_v11 = vrot.slane %v1439_v57, 5  ;;  %v1459_v58 = vrot.slane %v1440_v60, 5 }
  0xcf   : > { %v1451_v1 = vsel %vm319_vm0, %v1449_v33, %v1450_v63  ;;  %v1454_v37 = vsel %vm319_vm0, %v1452_v56, %v1453_v62  ;;  %v1473_v22 = vmul.f32 %v1581_v13, %v1712_v46  ;;  %v1474_v7 = vmul.f32 %v1581_v13, %v1714_v47 }
  0xd0   : > { %v1457_v8 = vsel %vm319_vm0, %v1455_v0, %v1456_v14  ;;  %v1460_v19 = vsel %vm319_vm0, %v1458_v11, %v1459_v58  ;;  %v1465_v35 = vadd.f32 %v1451_v1, %v1425_v5  ;;  %v1466_v21 = vadd.f32 %v1454_v37, %v1426_v18 }
  0xd1   : > { %v1467_v23 = vadd.f32 %v1457_v8, %v1427_v39  ;;  %v1468_v9 = vadd.f32 %v1460_v19, %v1428_v40  ;;  %v1475_v17 = vmul.f32 %v1581_v13, %v1716_v48  ;;  %v1476_v10 = vmul.f32 %v1581_v13, %v1718_v49 }
  0xd2   : > { %v1477_v34 = vmul.f32 %v1581_v13, %v1720_v50  ;;  %v1478_v25 = vmul.f32 %v1581_v13, %v1722_v51  ;;  %v1479_v46 = vmul.f32 %v1581_v13, %v1724_v52  ;;  %v1480_v47 = vmul.f32 %v1581_v13, %v183_v53 }
  0xd3   : > { %v1489_v2 = vrot.slane %v1473_v22, 6  ;;  %v1490_v41 = vrot.slane %v1474_v7, 6  ;;  %v1492_v42 = vrot.slane %v1475_v17, 6  ;;  %v1493_v16 = vrot.slane %v1476_v10, 6 }
  0xd4   : > { %v1495_v61 = vrot.slane %v1477_v34, 6  ;;  %v1496_v31 = vrot.slane %v1478_v25, 6  ;;  %v1498_v26 = vrot.slane %v1479_v46, 6  ;;  %v1499_v48 = vrot.slane %v1480_v47, 6 }
  0xd5   : > { %v1491_v49 = vsel %vm360_vm1, %v1489_v2, %v1490_v41  ;;  %v1494_v50 = vsel %vm360_vm1, %v1492_v42, %v1493_v16 }
  0xd6   : > { %v1497_v51 = vsel %vm360_vm1, %v1495_v61, %v1496_v31  ;;  %v1500_v52 = vsel %vm360_vm1, %v1498_v26, %v1499_v48  ;;  %v1505_v24 = vadd.f32 %v1491_v49, %v1465_v35  ;;  %v1506_v45 = vadd.f32 %v1494_v50, %v1466_v21 }
  0xd7   : > { %v1507_v53 = vadd.f32 %v1497_v51, %v1467_v23  ;;  %v1508_v29 = vadd.f32 %v1500_v52, %v1468_v9 }
  0xd8   : > { %v1509_v28 = vpack.c.bf16 %v1505_v24, %v1505_v24  ;;  %v1510_v43 = vpack.c.bf16 %v1506_v45, %v1506_v45 }
  0xd9   : > { %v1511_v15 = vpack.c.bf16 %v1507_v53, %v1507_v53  ;;  %v1512_v20 = vpack.c.bf16 %v1508_v29, %v1508_v29 }
  0xda   : > { %1514 = vst.msk [vmem:[%s143_s4] sm:$0x3] %vm1513_vm2, %v1509_v28  ;;  %1515 = vst.msk [vmem:[%s143_s4 + $0x2] sm:$0x3] %vm1513_vm2, %v1510_v43 }
  0xdb   : > { %1516 = vst.msk [vmem:[%s143_s4 + $0x4] sm:$0x3] %vm1513_vm2, %v1511_v15  ;;  %1517 = vst.msk [vmem:[%s143_s4 + $0x6] sm:$0x3] %vm1513_vm2, %v1512_v20 }
  0xdc PF: > { %s12_s9 = sadd.s32 1, %s1600_s9  }
  0xdd   : > { %p9_p4 = scmp.ge.s32.totalorder %s12_s9, 4  }
  0xdf   :  { %11 = sbr.rel (!%p9_p4) target bundleno = 1 (0x1), region = 58 }

// kernel: metaformer_forward.61
= control target key start
LH: loop header
LB: loop body
LE: loop exit
PB: predicated region body
PF: predicated region fallthrough
CT: control target
= control target key end

     0   :  { %s385_s1 = inlined_call_operand.vmem [shape: bf16[256,128], index: 1, kind: input, shape index: {}]   ;;  %s386_s0 = inlined_call_operand.vmem [shape: bf16[16,256], index: 0, kind: input, shape index: {}]   ;;  %s387_s2 = inlined_call_operand.vmem [shape: f32[1,128], index: 2, kind: input, shape index: {}]   ;;  %s388_s3 = inlined_call_operand.vmem [shape: bf16[16,128], index: 3, kind: output, shape index: {}]  }
   0x1   :  { %v286_v0 = vld [vmem:[%s385_s1 + $0x78] sm:$0xff]   ;;  %v288_v2 = vld [vmem:[%s385_s1 + $0x70] sm:$0xff]   ;;  %v290_v4 = vld [vmem:[%s385_s1 + $0x68] sm:$0xff]  }
   0x2   :  { %v287_v1 = vld [vmem:[%s385_s1 + $0x38] sm:$0xff]   ;;  %264 = vmatprep.subr.bf16.mxu0 %v286_v0  ;;  %v289_v3 = vld [vmem:[%s385_s1 + $0x30] sm:$0xff]   ;;  %v291_v5 = vld [vmem:[%s385_s1 + $0x28] sm:$0xff]  }
   0x3   :  { %265 = vmatpush3.bf16.msra.mxu0 %v287_v1  ;;  %v292_v6 = vld [vmem:[%s385_s1 + $0x60] sm:$0xff]   ;;  %v294_v8 = vld [vmem:[%s385_s1 + $0x58] sm:$0xff]   ;;  %v296_v10 = vld [vmem:[%s385_s1 + $0x50] sm:$0xff]  }
   0x4   :  { %266 = vmatprep.subr.bf16.mxu0 %v288_v2  ;;  %v293_v7 = vld [vmem:[%s385_s1 + $0x20] sm:$0xff]   ;;  %v295_v9 = vld [vmem:[%s385_s1 + $0x18] sm:$0xff]   ;;  %v297_v12 = vld [vmem:[%s385_s1 + $0x10] sm:$0xff]  }
   0x5   :  { %v304_v11 = vld [vmem:[%s386_s0 + $0x4] ss:$8 sps:$4 sm:$0xff]   ;;  %v302_v17 = vld [vmem:[%s386_s0] ss:$8 sps:$4 sm:$0xff]  }
   0x6   :  { %195 = vmatprep.mubr.bf16.mxu0 %v304_v11  ;;  %v298_v13 = vld [vmem:[%s385_s1 + $0x48] sm:$0xff]   ;;  %v300_v15 = vld [vmem:[%s385_s1 + $0x40] sm:$0xff]  }
   0x7   :  { %267 = vmatpush3.bf16.msra.mxu0 %v289_v3  ;;  %v299_v14 = vld [vmem:[%s385_s1 + $0x8] sm:$0xff]   ;;  %v301_v16 = vld [vmem:[%s385_s1] sm:$0xff]  }
   0x8   :  { %268 = vmatprep.subr.bf16.mxu0 %v290_v4  ;;  %v254_v22 = vld [vmem:[%s387_s2] ss:$0 sm:$0xff] }
   0xb   :  { %269 = vmatpush3.bf16.msra.mxu0 %v291_v5 }
   0xc   :  { %270 = vmatprep.subr.bf16.mxu0 %v292_v6 }
   0xf   :  { %271 = vmatpush3.bf16.msra.mxu0 %v293_v7 }
  0x10   :  { %272 = vmatprep.subr.bf16.mxu0 %v294_v8 }
  0x13   :  { %273 = vmatpush3.bf16.msra.mxu0 %v295_v9 }
  0x14   :  { %274 = vmatprep.subr.bf16.mxu0 %v296_v10 }
  0x17   :  { %275 = vmatpush3.bf16.msra.mxu0 %v297_v12 }
  0x18   :  { %276 = vmatprep.subr.bf16.mxu0 %v298_v13 }
  0x1b   :  { %277 = vmatpush3.bf16.msra.mxu0 %v299_v14 }
  0x1c   :  { %278 = vmatprep.subr.bf16.mxu0 %v300_v15 }
  0x1f   :  { %279 = vmatpush3.bf16.msra.mxu0 %v301_v16 }
  0x22   :  { %196 = vmatmul.mubr.bf16.vlgmr.msra.gmra.mxu0 %v302_v17 }
  0xe2   :  { %v280_v18 = vpop.f32.mrf.mxu0 }
  0xe4   :  { %v281_v19 = vpop.f32.mrf.mxu0 }
  0xe5   :  { %v282_v21 = vadd.f32 %v281_v19, %v280_v18 }
  0xe6   :  { %v283_v20 = vpop.f32.mrf.mxu0 }
  0xe7   :  { %v220_v25 = vadd.f32 %v282_v21, %v254_v22 }
  0xe8   :  { %v284_v23 = vpop.f32.mrf.mxu0 }
  0xe9   :  { %v285_v24 = vadd.f32 %v284_v23, %v283_v20 }
  0xeb   :  { %v221_v26 = vadd.f32 %v285_v24, %v254_v22 }
  0xed   :  { %v262_v27 = vpack.c.bf16 %v221_v26, %v220_v25 }
  0xef   :  { %263 = vst [vmem:[%s388_s3] sm:$0xff] %v262_v27  }

// kernel: metaformer_forward.62
= control target key start
LH: loop header
LB: loop body
LE: loop exit
PB: predicated region body
PF: predicated region fallthrough
CT: control target
= control target key end

     0   :  { %vm14_vm0 = vcmask 253952   ;;  %v62_v0 = vmov 0.0   ;;  %vm22_vm1 = vcmask 261120   ;;  %s103_s0 = inlined_call_operand.vmem [shape: bf16[16,32], index: 0, kind: input, shape index: {}]   ;;  %s104_s1 = inlined_call_operand.vmem [shape: f32[1,32], index: 1, kind: output, shape index: {0}]   ;;  %s105_s2 = inlined_call_operand.vmem [shape: f32[1,32], index: 2, kind: output, shape index: {1}]  }
   0x1   :  { %15 = vst.msk [vmem:[%s104_s1] sm:$0x1] %vm14_vm0, %v62_v0  ;;  %v58_v1 = vld [vmem:[%s103_s0] sm:$0xff]   ;;  %16 = vst.msk [vmem:[%s105_s2] sm:$0x1] %vm14_vm0, %v62_v0 }
   0x2   :  { %v59_v2 = vunpack.c.l.bf16 %v58_v1  ;;  %v60_v3 = vunpack.c.h.bf16 %v58_v1 }
   0x4   :  { %v23_v4 = vsel %vm22_vm1, %v59_v2, 0.0  ;;  %v24_v5 = vsel %vm22_vm1, %v60_v3, 0.0  ;;  %v36_v6 = vmul.f32 %v59_v2, %v59_v2  ;;  %v37_v7 = vmul.f32 %v60_v3, %v60_v3 }
   0x5   :  { %v25_v8 = vadd.f32 %v24_v5, %v23_v4 }
   0x6   :  { %v38_v9 = vsel %vm22_vm1, %v36_v6, 0.0  ;;  %v39_v10 = vsel %vm22_vm1, %v37_v7, 0.0 }
   0x7   :  { %v26_v11 = vrot.slane %v25_v8, 4  ;;  %v40_v12 = vadd.f32 %v39_v10, %v38_v9 }
   0x8   :  { %v21_v21 = vld [vmem:[%s104_s1] sm:$0x1] }
   0x9   :  { %v27_v13 = vadd.f32 %v26_v11, %v25_v8  ;;  %v41_v14 = vrot.slane %v40_v12, 4  ;;  %v35_v24 = vld [vmem:[%s105_s2] sm:$0x1] }
   0xb   :  { %v28_v15 = vrot.slane %v27_v13, 2  ;;  %v42_v16 = vadd.f32 %v41_v14, %v40_v12 }
   0xd   :  { %v29_v17 = vadd.f32 %v28_v15, %v27_v13  ;;  %v43_v18 = vrot.slane %v42_v16, 2 }
   0xf   :  { %v30_v19 = vrot.slane %v29_v17, 1  ;;  %v44_v20 = vadd.f32 %v43_v18, %v42_v16 }
  0x11   :  { %v31_v22 = vadd.f32 %v30_v19, %v29_v17  ;;  %v45_v23 = vrot.slane %v44_v20, 1 }
  0x13   :  { %v32_v25 = vadd.f32 %v31_v22, %v21_v21  ;;  %v46_v26 = vadd.f32 %v45_v23, %v44_v20 }
  0x15   :  { %34 = vst.msk [vmem:[%s104_s1] sm:$0x1] %vm14_vm0, %v32_v25  ;;  %v47_v27 = vadd.f32 %v46_v26, %v35_v24 }
  0x17   :  { %48 = vst.msk [vmem:[%s105_s2] sm:$0x1] %vm14_vm0, %v47_v27 }

// kernel: metaformer_forward.63
= control target key start
LH: loop header
LB: loop body
LE: loop exit
PB: predicated region body
PF: predicated region fallthrough
CT: control target
= control target key end

     0   :  { %v241_v0 = vmov 0.0   ;;  %vm242_vm0 = vmmov 0   ;;  %s304_s1 = inlined_call_operand.vmem [shape: bf16[128,128], index: 1, kind: input, shape index: {}]   ;;  %s305_s0 = inlined_call_operand.vmem [shape: bf16[16,128], index: 0, kind: input, shape index: {}]   ;;  %s306_s2 = inlined_call_operand.vmem [shape: f32[1,128], index: 2, kind: input, shape index: {}]   ;;  %s307_s3 = inlined_call_operand.vmem [shape: f32[1,128], index: 3, kind: input, shape index: {}]   ;;  %s308_s4 = inlined_call_operand.vmem [shape: bf16[16,128], index: 4, kind: output, shape index: {}]  }
   0x1   :  { %211 = vmatprep.subr.bf16.mxu0 %v241_v0  ;;  %v233_v1 = vld [vmem:[%s304_s1 + $0x38] sm:$0xff]   ;;  %227 = vmatprep.mubr.msk.bf16.mxu0 %vm242_vm0, %v241_v0  ;;  %v234_v2 = vld [vmem:[%s304_s1 + $0x30] sm:$0xff]   ;;  %v235_v3 = vld [vmem:[%s304_s1 + $0x28] sm:$0xff]  }
   0x2   :  { %212 = vmatpush3.bf16.msra.mxu0 %v233_v1  ;;  %v236_v4 = vld [vmem:[%s304_s1 + $0x20] sm:$0xff]   ;;  %v237_v5 = vld [vmem:[%s304_s1 + $0x18] sm:$0xff]   ;;  %v238_v9 = vld [vmem:[%s304_s1 + $0x10] sm:$0xff]  }
   0x3   :  { %213 = vmatprep.subr.bf16.mxu0 %v241_v0  ;;  %v194_v6 = vld [vmem:[%s305_s0] sm:$0xff]   ;;  %v239_v13 = vld [vmem:[%s304_s1 + $0x8] sm:$0xff]  }
   0x4   :  { %v195_v7 = vunpack.c.l.bf16 %v194_v6  ;;  %v196_v8 = vunpack.c.h.bf16 %v194_v6  ;;  %v179_v10 = vld [vmem:[%s306_s2] ss:$0 sm:$0xff] }
   0x5   :  { %v180_v14 = vld [vmem:[%s307_s3] ss:$0 sm:$0xff] }
   0x6   :  { %214 = vmatpush3.bf16.msra.mxu0 %v234_v2  ;;  %v35_v11 = vmul.f32 %v195_v7, %v179_v10  ;;  %v36_v12 = vmul.f32 %v196_v8, %v179_v10  ;;  %v240_v17 = vld [vmem:[%s304_s1] sm:$0xff]  }
   0x7   :  { %215 = vmatprep.subr.bf16.mxu0 %v241_v0 }
   0x8   :  { %v44_v15 = vadd.f32 %v180_v14, %v35_v11  ;;  %v45_v16 = vadd.f32 %v180_v14, %v36_v12 }
   0xa   :  { %216 = vmatpush3.bf16.msra.mxu0 %v235_v3  ;;  %v46_v18 = vpack.c.bf16 %v45_v16, %v44_v15 }
   0xb   :  { %217 = vmatprep.subr.bf16.mxu0 %v241_v0 }
   0xe   :  { %218 = vmatpush3.bf16.msra.mxu0 %v236_v4 }
   0xf   :  { %219 = vmatprep.subr.bf16.mxu0 %v241_v0 }
  0x12   :  { %220 = vmatpush3.bf16.msra.mxu0 %v237_v5 }
  0x13   :  { %221 = vmatprep.subr.bf16.mxu0 %v241_v0 }
  0x16   :  { %222 = vmatpush3.bf16.msra.mxu0 %v238_v9 }
  0x17   :  { %223 = vmatprep.subr.bf16.mxu0 %v241_v0 }
  0x1a   :  { %224 = vmatpush3.bf16.msra.mxu0 %v239_v13 }
  0x1b   :  { %225 = vmatprep.subr.bf16.mxu0 %v241_v0 }
  0x1e   :  { %226 = vmatpush3.bf16.msra.mxu0 %v240_v17 }
  0x21   :  { %228 = vmatmul.mubr.bf16.vlgmr.msra.gmra.mxu0 %v46_v18 }
  0xe1   :  { %v147_v19 = vpop.f32.mrf.mxu0 }
  0xe2   :  { %v163_v22 = vmax.f32 %v147_v19, 0.0 }
  0xe3   :  { %v229_v20 = vpop.f32.mrf.mxu0 }
  0xe5   :  { %v150_v21 = vpop.f32.mrf.mxu0 }
  0xe6   :  { %v164_v23 = vmax.f32 %v150_v21, 0.0 }
  0xe7   :  { %v230_v24 = vpop.f32.mrf.mxu0 }
  0xe8   :  { %v200_v25 = vpack.c.bf16 %v164_v23, %v163_v22 }
  0xea   :  { %201 = vst [vmem:[%s308_s4] sm:$0xff] %v200_v25  }

// kernel: metaformer_forward.70
= control target key start
LH: loop header
LB: loop body
LE: loop exit
PB: predicated region body
PF: predicated region fallthrough
CT: control target
= control target key end

     0   :  { %vm44_vm0 = vcmask 257024   ;;  %s96_s0 = inlined_call_operand.vmem [shape: bf16[16,32], index: 0, kind: input, shape index: {}]   ;;  %s97_s1 = inlined_call_operand.vmem [shape: f32[1,32], index: 1, kind: input, shape index: {}]   ;;  %s98_s2 = inlined_call_operand.vmem [shape: f32[1,32], index: 2, kind: input, shape index: {}]   ;;  %s99_s3 = inlined_call_operand.vmem [shape: bf16[16,32], index: 3, kind: output, shape index: {}]  }
   0x1   :  { %v58_v0 = vld [vmem:[%s96_s0] sm:$0xff]  }
   0x2   :  { %v51_v1 = vld [vmem:[%s97_s1] ss:$0 sm:$0xff]  ;;  %v59_v2 = vunpack.c.l.bf16 %v58_v0  ;;  %v60_v3 = vunpack.c.h.bf16 %v58_v0 }
   0x3   :  { %v52_v4 = vld [vmem:[%s98_s2] ss:$0 sm:$0xff] }
   0x4   :  { %v25_v5 = vmul.f32 %v59_v2, %v51_v1  ;;  %v26_v6 = vmul.f32 %v60_v3, %v51_v1 }
   0x6   :  { %v34_v7 = vadd.f32 %v52_v4, %v25_v5  ;;  %v35_v8 = vadd.f32 %v52_v4, %v26_v6 }
   0x8   :  { %v55_v9 = vpack.c.bf16 %v34_v7, %v34_v7  ;;  %v56_v10 = vpack.c.bf16 %v35_v8, %v35_v8 }
   0xa   :  { %45 = vst.msk [vmem:[%s99_s3] sm:$0xf] %vm44_vm0, %v55_v9  ;;  %46 = vst.msk [vmem:[%s99_s3 + $0x4] sm:$0xf] %vm44_vm0, %v56_v10 }

// kernel: metaformer_forward.65
= control target key start
LH: loop header
LB: loop body
LE: loop exit
PB: predicated region body
PF: predicated region fallthrough
CT: control target
= control target key end

     0   :  { %v227_v0 = vmov 0.0   ;;  %vm228_vm0 = vmmov 0   ;;  %s282_s1 = inlined_call_operand.vmem [shape: bf16[128,128], index: 1, kind: input, shape index: {}]   ;;  %s283_s0 = inlined_call_operand.vmem [shape: bf16[16,128], index: 0, kind: input, shape index: {}]   ;;  %s284_s2 = inlined_call_operand.vmem [shape: bf16[16,128], index: 2, kind: input, shape index: {}]   ;;  %s285_s3 = inlined_call_operand.vmem [shape: bf16[16,128], index: 3, kind: output, shape index: {}]  }
   0x1   :  { %196 = vmatprep.subr.bf16.mxu0 %v227_v0  ;;  %v218_v1 = vld [vmem:[%s282_s1 + $0x38] sm:$0xff]   ;;  %212 = vmatprep.mubr.msk.bf16.mxu0 %vm228_vm0, %v227_v0  ;;  %v219_v2 = vld [vmem:[%s282_s1 + $0x30] sm:$0xff]   ;;  %v220_v3 = vld [vmem:[%s282_s1 + $0x28] sm:$0xff]  }
   0x2   :  { %197 = vmatpush3.bf16.msra.mxu0 %v218_v1  ;;  %v221_v4 = vld [vmem:[%s282_s1 + $0x20] sm:$0xff]   ;;  %v222_v5 = vld [vmem:[%s282_s1 + $0x18] sm:$0xff]   ;;  %v223_v6 = vld [vmem:[%s282_s1 + $0x10] sm:$0xff]  }
   0x3   :  { %198 = vmatprep.subr.bf16.mxu0 %v227_v0  ;;  %v224_v7 = vld [vmem:[%s282_s1 + $0x8] sm:$0xff]   ;;  %v225_v8 = vld [vmem:[%s282_s1] sm:$0xff]  }
   0x4   :  { %v226_v9 = vld [vmem:[%s283_s0] sm:$0xff]  }
   0x5   :  { %v179_v10 = vld [vmem:[%s284_s2] sm:$0xff]  }
   0x6   :  { %199 = vmatpush3.bf16.msra.mxu0 %v219_v2  ;;  %v180_v12 = vunpack.c.l.bf16 %v179_v10  ;;  %v181_v13 = vunpack.c.h.bf16 %v179_v10 }
   0x7   :  { %200 = vmatprep.subr.bf16.mxu0 %v227_v0 }
   0xa   :  { %201 = vmatpush3.bf16.msra.mxu0 %v220_v3 }
   0xb   :  { %202 = vmatprep.subr.bf16.mxu0 %v227_v0 }
   0xe   :  { %203 = vmatpush3.bf16.msra.mxu0 %v221_v4 }
   0xf   :  { %204 = vmatprep.subr.bf16.mxu0 %v227_v0 }
  0x12   :  { %205 = vmatpush3.bf16.msra.mxu0 %v222_v5 }
  0x13   :  { %206 = vmatprep.subr.bf16.mxu0 %v227_v0 }
  0x16   :  { %207 = vmatpush3.bf16.msra.mxu0 %v223_v6 }
  0x17   :  { %208 = vmatprep.subr.bf16.mxu0 %v227_v0 }
  0x1a   :  { %209 = vmatpush3.bf16.msra.mxu0 %v224_v7 }
  0x1b   :  { %210 = vmatprep.subr.bf16.mxu0 %v227_v0 }
  0x1e   :  { %211 = vmatpush3.bf16.msra.mxu0 %v225_v8 }
  0x21   :  { %213 = vmatmul.mubr.bf16.vlgmr.msra.gmra.mxu0 %v226_v9 }
  0xe1   :  { %v129_v11 = vpop.f32.mrf.mxu0 }
  0xe2   :  { %v149_v16 = vadd.f32 %v180_v12, %v129_v11 }
  0xe3   :  { %v214_v14 = vpop.f32.mrf.mxu0 }
  0xe5   :  { %v132_v15 = vpop.f32.mrf.mxu0 }
  0xe6   :  { %v150_v17 = vadd.f32 %v181_v13, %v132_v15 }
  0xe7   :  { %v215_v18 = vpop.f32.mrf.mxu0 }
  0xe8   :  { %v185_v19 = vpack.c.bf16 %v150_v17, %v149_v16 }
  0xea   :  { %186 = vst [vmem:[%s285_s3] sm:$0xff] %v185_v19  }

// kernel: metaformer_forward.64
= control target key start
LH: loop header
LB: loop body
LE: loop exit
PB: predicated region body
PF: predicated region fallthrough
CT: control target
= control target key end

     0   :  { %s929_s9 = smov 0   ;;  %s1181_s0 = inlined_call_operand.vmem [shape: bf16[2,8,8,64], index: 0, kind: input, shape index: {}]   ;;  %s1182_s1 = inlined_call_operand.vmem [shape: f32[49,64], index: 1, kind: input, shape index: {}]   ;;  %s1183_s2 = inlined_call_operand.vmem [shape: bf16[2,2,2,64], index: 2, kind: output, shape index: {}]  }
   0x1 LB: > { %s867_s10 = sadd.s32 4294967295, %s912_s9   ;;  %p871_p0 = scmp.ge.s32.totalorder %s912_s9, 1  ;;  %s912_s9 = sphi %s929_s9, %s12_s9  }
   0x2   : > { %p112_p1 = scmp.lt.s32.totalorder %s912_s9, 3 }
   0x4   : > { %p113_p2 = pnand %p871_p0, %p112_p1 }
   0x5   : > { %p133_p3 = scmp.lt.s32.totalorder (!%p113_p2), %s867_s10, 1 }
   0x6   : > { %116 = sbr.rel (%p113_p2) target bundleno = 122 (0x7a), region = 28 }
   0xb   : > { %v165_v0 = vlaneseq  ;;  %s1185_s10 = smov (!%p133_p3, %s867_s10), 1  ;;  %v158_v2 = vld [vmem:[%s1182_s1] sm:$0xff]  ;;  %v159_v43 = vld [vmem:[%s1182_s1 + $0x8] sm:$0xff]  ;;  %vm811_vm0 = vcmask 516096  }
   0xc   : > { %s878_s13 = sshll.u32 %s1185_s10, 5  ;;  %s874_s29 = sshll.u32 %s1185_s10, 1 }
   0xd   : > { %v166_v1 = vshrl.u32 %v165_v0, 7  ;;  %s954_s16 = scalar_lea.vmem %s1181_s0, %s878_s13  ;;  %s141_s4 = scalar_lea.vmem %s1183_s2, %s874_s29 }
   0xe   : > { %v880_v7 = vld [vmem:[%s954_s16] sm:$0xff]   ;;  %v895_v34 = vld [vmem:[%s954_s16 + $0x8] sm:$0xff]  }
   0xf   : > { %v943_v3 = vsub.s32 0, %v166_v1  ;;  %v945_v4 = vsub.s32 1, %v166_v1  ;;  %v947_v5 = vsub.s32 2, %v166_v1  ;;  %v949_v6 = vsub.s32 3, %v166_v1 }
  0x10   : > { %v881_v12 = vunpack.c.l.bf16 %v880_v7  ;;  %v961_v13 = vunpack.c.h.bf16 %v880_v7  ;;  %v963_v14 = vsub.s32 4, %v166_v1  ;;  %v965_v15 = vsub.s32 5, %v166_v1 }
  0x11   : > { %v168_v8 = vrot.slane %v158_v2, %v943_v3  ;;  %v176_v9 = vrot.slane %v158_v2, %v945_v4  ;;  %v190_v10 = vrot.slane %v158_v2, %v947_v5  ;;  %v204_v11 = vrot.slane %v158_v2, %v949_v6 }
  0x12   : > { %v967_v16 = vsub.s32 6, %v166_v1  ;;  %v969_v17 = vsub.s32 7, %v166_v1  ;;  %v218_v28 = vrot.slane %v158_v2, %v963_v14  ;;  %v232_v29 = vrot.slane %v158_v2, %v965_v15 }
  0x13   : > { %v169_v18 = vmul.f32 %v881_v12, %v168_v8  ;;  %v170_v19 = vmul.f32 %v961_v13, %v168_v8  ;;  %v177_v20 = vmul.f32 %v881_v12, %v176_v9  ;;  %v178_v21 = vmul.f32 %v961_v13, %v176_v9 }
  0x14   : > { %v191_v22 = vmul.f32 %v881_v12, %v190_v10  ;;  %v192_v23 = vmul.f32 %v961_v13, %v190_v10  ;;  %v205_v24 = vmul.f32 %v881_v12, %v204_v11  ;;  %v206_v25 = vmul.f32 %v961_v13, %v204_v11 }
  0x15   : > { %v181_v26 = vrot.slane %v177_v20, 1  ;;  %v182_v27 = vrot.slane %v178_v21, 1  ;;  %v219_v37 = vmul.f32 %v881_v12, %v218_v28  ;;  %v220_v38 = vmul.f32 %v961_v13, %v218_v28 }
  0x16   : > { %v195_v30 = vrot.slane %v191_v22, 2  ;;  %v196_v31 = vrot.slane %v192_v23, 2  ;;  %v209_v32 = vrot.slane %v205_v24, 3  ;;  %v210_v33 = vrot.slane %v206_v25, 3 }
  0x17   : > { %v185_v35 = vadd.f32 %v181_v26, %v169_v18  ;;  %v186_v36 = vadd.f32 %v182_v27, %v170_v19  ;;  %v233_v39 = vmul.f32 %v881_v12, %v232_v29  ;;  %v234_v40 = vmul.f32 %v961_v13, %v232_v29 }
  0x18   : > { %v246_v41 = vrot.slane %v158_v2, %v967_v16  ;;  %v260_v42 = vrot.slane %v158_v2, %v969_v17  ;;  %v223_v46 = vrot.slane %v219_v37, 4  ;;  %v224_v47 = vrot.slane %v220_v38, 4 }
  0x19   : > { %v199_v44 = vadd.f32 %v195_v30, %v185_v35  ;;  %v200_v45 = vadd.f32 %v196_v31, %v186_v36  ;;  %v985_v48 = vunpack.c.l.bf16 %v895_v34  ;;  %v237_v53 = vrot.slane %v233_v39, 5 }
  0x1a   : > { %v247_v49 = vmul.f32 %v881_v12, %v246_v41  ;;  %v248_v50 = vmul.f32 %v961_v13, %v246_v41  ;;  %v238_v54 = vrot.slane %v234_v40, 5  ;;  %v261_v56 = vmul.f32 %v961_v13, %v260_v42 }
  0x1b   : > { %v213_v51 = vadd.f32 %v209_v32, %v199_v44  ;;  %v214_v52 = vadd.f32 %v210_v33, %v200_v45  ;;  %v268_v57 = vrot.slane %v159_v43, %v943_v3  ;;  %v282_v58 = vrot.slane %v159_v43, %v945_v4  ;;  %v1007_v32 = vld [vmem:[%s1182_s1 + $0x10] sm:$0xff] }
  0x1c   : > { %v251_v55 = vrot.slane %v247_v49, 6  ;;  %v252_v61 = vrot.slane %v248_v50, 6  ;;  %v296_v62 = vrot.slane %v159_v43, %v947_v5  ;;  %v262_v9 = vmul.f32 %v985_v48, %v260_v42 }
  0x1d   : > { %v227_v59 = vadd.f32 %v223_v46, %v213_v51  ;;  %v228_v60 = vadd.f32 %v224_v47, %v214_v52  ;;  %v269_v63 = vmul.f32 %v961_v13, %v268_v57  ;;  %v270_v0 = vmul.f32 %v985_v48, %v268_v57 }
  0x1e   : > { %v283_v1 = vmul.f32 %v961_v13, %v282_v58  ;;  %v284_v2 = vmul.f32 %v985_v48, %v282_v58  ;;  %v310_v10 = vrot.slane %v159_v43, %v949_v6  ;;  %v297_v11 = vmul.f32 %v961_v13, %v296_v62 }
  0x1f   : > { %v241_v7 = vadd.f32 %v237_v53, %v227_v59  ;;  %v242_v8 = vadd.f32 %v238_v54, %v228_v60  ;;  %v298_v12 = vmul.f32 %v985_v48, %v296_v62  ;;  %v273_v20 = vrot.slane %v269_v63, 1 }
  0x20   : > { %v274_v21 = vrot.slane %v270_v0, 1  ;;  %v287_v22 = vrot.slane %v283_v1, 2  ;;  %v288_v23 = vrot.slane %v284_v2, 2  ;;  %v324_v24 = vrot.slane %v159_v43, %v963_v14 }
  0x21   : > { %v255_v18 = vadd.f32 %v251_v55, %v241_v7  ;;  %v256_v19 = vadd.f32 %v252_v61, %v242_v8  ;;  %v338_v25 = vrot.slane %v159_v43, %v965_v15  ;;  %v311_v28 = vmul.f32 %v961_v13, %v310_v10 }
  0x22   : > { %v312_v29 = vmul.f32 %v985_v48, %v310_v10  ;;  %v301_v30 = vrot.slane %v297_v11, 3  ;;  %v302_v31 = vrot.slane %v298_v12, 3  ;;  %v325_v36 = vmul.f32 %v961_v13, %v324_v24 }
  0x23   : > { %v263_v26 = vadd.f32 %v261_v56, %v255_v18  ;;  %v264_v27 = vadd.f32 %v262_v9, %v256_v19  ;;  %v326_v37 = vmul.f32 %v985_v48, %v324_v24  ;;  %v1011_v38 = vunpack.c.h.bf16 %v895_v34 }
  0x24   : > { %v339_v39 = vmul.f32 %v961_v13, %v338_v25  ;;  %v340_v40 = vmul.f32 %v985_v48, %v338_v25  ;;  %v360_v41 = vrot.slane %v159_v43, %v969_v17  ;;  %v315_v45 = vrot.slane %v311_v28, 4 }
  0x25   : > { %v277_v33 = vadd.f32 %v273_v20, %v263_v26  ;;  %v278_v35 = vadd.f32 %v274_v21, %v264_v27  ;;  %v316_v46 = vrot.slane %v312_v29, 4  ;;  %v352_v47 = vrot.slane %v159_v43, %v967_v16  ;;  %v896_v20 = vld [vmem:[%s954_s16 + $0x10] sm:$0xff]   ;;  %v897_v27 = vld [vmem:[%s954_s16 + $0x18] sm:$0xff]  }
  0x26   : > { %v374_v49 = vrot.slane %v1007_v32, %v943_v3  ;;  %v329_v52 = vrot.slane %v325_v36, 5  ;;  %v330_v34 = vrot.slane %v326_v37, 5  ;;  %v343_v53 = vrot.slane %v339_v39, 6  ;;  %v161_v39 = vld [vmem:[%s1182_s1 + $0x18] sm:$0xff] }
  0x27   : > { %v291_v42 = vadd.f32 %v287_v22, %v277_v33  ;;  %v292_v44 = vadd.f32 %v288_v23, %v278_v35  ;;  %v344_v54 = vrot.slane %v340_v40, 6  ;;  %v388_v13 = vrot.slane %v1007_v32, %v945_v4 }
  0x28   : > { %v361_v57 = vmul.f32 %v985_v48, %v360_v41  ;;  %v362_v58 = vmul.f32 %v1011_v38, %v360_v41  ;;  %v353_v43 = vmul.f32 %v985_v48, %v352_v47  ;;  %v375_v59 = vmul.f32 %v985_v48, %v374_v49 }
  0x29   : > { %v305_v50 = vadd.f32 %v301_v30, %v291_v42  ;;  %v306_v51 = vadd.f32 %v302_v31, %v292_v44  ;;  %v402_v60 = vrot.slane %v1007_v32, %v947_v5  ;;  %v354_v63 = vmul.f32 %v1011_v38, %v352_v47 }
  0x2a   : > { %v376_v0 = vmul.f32 %v1011_v38, %v374_v49  ;;  %v389_v1 = vmul.f32 %v985_v48, %v388_v13  ;;  %v390_v2 = vmul.f32 %v1011_v38, %v388_v13  ;;  %v416_v7 = vrot.slane %v1007_v32, %v949_v6 }
  0x2b   : > { %v319_v55 = vadd.f32 %v315_v45, %v305_v50  ;;  %v320_v56 = vadd.f32 %v316_v46, %v306_v51  ;;  %v365_v10 = vrot.slane %v361_v57, 1  ;;  %v366_v11 = vrot.slane %v362_v58, 1 }
  0x2c   : > { %v379_v12 = vrot.slane %v375_v59, 2  ;;  %v403_v18 = vmul.f32 %v985_v48, %v402_v60  ;;  %v430_v19 = vrot.slane %v1007_v32, %v963_v14  ;;  %v380_v23 = vrot.slane %v376_v0, 2 }
  0x2d   : > { %v333_v61 = vadd.f32 %v329_v52, %v319_v55  ;;  %v334_v62 = vadd.f32 %v330_v34, %v320_v56  ;;  %v404_v24 = vmul.f32 %v1011_v38, %v402_v60  ;;  %v393_v25 = vrot.slane %v389_v1, 3 }
  0x2e   : > { %v394_v26 = vrot.slane %v390_v2, 3  ;;  %v417_v30 = vmul.f32 %v985_v48, %v416_v7  ;;  %v418_v31 = vmul.f32 %v1011_v38, %v416_v7  ;;  %v1041_v33 = vunpack.c.l.bf16 %v896_v20 }
  0x2f   : > { %v347_v8 = vadd.f32 %v343_v53, %v333_v61  ;;  %v348_v9 = vadd.f32 %v344_v54, %v334_v62  ;;  %v407_v35 = vrot.slane %v403_v18, 4  ;;  %v431_v36 = vmul.f32 %v985_v48, %v430_v19 }
  0x30   : > { %v452_v37 = vrot.slane %v1007_v32, %v967_v16  ;;  %v408_v42 = vrot.slane %v404_v24, 4  ;;  %v432_v44 = vmul.f32 %v1011_v38, %v430_v19  ;;  %v1050_v45 = vunpack.c.h.bf16 %v896_v20 }
  0x31   : > { %v355_v21 = vadd.f32 %v353_v43, %v347_v8  ;;  %v356_v22 = vadd.f32 %v354_v63, %v348_v9  ;;  %v1052_v46 = vunpack.c.l.bf16 %v897_v27  ;;  %v444_v47 = vrot.slane %v1007_v32, %v965_v15 }
  0x32   : > { %v466_v48 = vrot.slane %v1007_v32, %v969_v17  ;;  %v421_v51 = vrot.slane %v417_v30, 5  ;;  %v422_v52 = vrot.slane %v418_v31, 5  ;;  %v435_v34 = vrot.slane %v431_v36, 6 }
  0x33   : > { %v369_v28 = vadd.f32 %v365_v10, %v355_v21  ;;  %v370_v29 = vadd.f32 %v366_v11, %v356_v22  ;;  %v453_v53 = vmul.f32 %v1011_v38, %v452_v37  ;;  %v454_v54 = vmul.f32 %v1041_v33, %v452_v37 }
  0x34   : > { %v480_v13 = vrot.slane %v161_v39, %v943_v3  ;;  %v436_v57 = vrot.slane %v432_v44, 6  ;;  %v494_v58 = vrot.slane %v161_v39, %v945_v4  ;;  %v1062_v43 = vunpack.c.h.bf16 %v897_v27  ;;  %v1086_v44 = vld [vmem:[%s1182_s1 + $0x20] sm:$0xff] }
  0x35   : > { %v383_v40 = vadd.f32 %v379_v12, %v369_v28  ;;  %v384_v41 = vadd.f32 %v380_v23, %v370_v29  ;;  %v445_v32 = vmul.f32 %v1011_v38, %v444_v47  ;;  %v467_v59 = vmul.f32 %v1011_v38, %v466_v48 }
  0x36   : > { %v468_v60 = vmul.f32 %v1041_v33, %v466_v48  ;;  %v446_v63 = vmul.f32 %v1041_v33, %v444_v47  ;;  %v508_v0 = vrot.slane %v161_v39, %v947_v5  ;;  %v457_v1 = vrot.slane %v453_v53, 1 }
  0x37   : > { %v397_v49 = vadd.f32 %v393_v25, %v383_v40  ;;  %v398_v50 = vadd.f32 %v394_v26, %v384_v41  ;;  %v481_v2 = vmul.f32 %v1011_v38, %v480_v13  ;;  %v482_v7 = vmul.f32 %v1041_v33, %v480_v13 }
  0x38   : > { %v522_v8 = vrot.slane %v161_v39, %v949_v6  ;;  %v458_v11 = vrot.slane %v454_v54, 1  ;;  %v495_v12 = vmul.f32 %v1011_v38, %v494_v58  ;;  %v471_v18 = vrot.slane %v467_v59, 2 }
  0x39   : > { %v411_v55 = vadd.f32 %v407_v35, %v397_v49  ;;  %v412_v56 = vadd.f32 %v408_v42, %v398_v50  ;;  %v472_v19 = vrot.slane %v468_v60, 2  ;;  %v496_v20 = vmul.f32 %v1041_v33, %v494_v58 }
  0x3a   : > { %v544_v21 = vrot.slane %v161_v39, %v965_v15  ;;  %v509_v24 = vmul.f32 %v1011_v38, %v508_v0  ;;  %v510_v25 = vmul.f32 %v1041_v33, %v508_v0  ;;  %v485_v26 = vrot.slane %v481_v2, 3 }
  0x3b   : > { %v425_v61 = vadd.f32 %v421_v51, %v411_v55  ;;  %v426_v62 = vadd.f32 %v422_v52, %v412_v56  ;;  %v486_v27 = vrot.slane %v482_v7, 3  ;;  %v523_v28 = vmul.f32 %v1011_v38, %v522_v8 }
  0x3c   : > { %v524_v29 = vmul.f32 %v1041_v33, %v522_v8  ;;  %v499_v35 = vrot.slane %v495_v12, 4  ;;  %v536_v36 = vrot.slane %v161_v39, %v963_v14  ;;  %v500_v37 = vrot.slane %v496_v20, 4 }
  0x3d   : > { %v439_v9 = vadd.f32 %v435_v34, %v425_v61  ;;  %v440_v10 = vadd.f32 %v436_v57, %v426_v62  ;;  %v545_v40 = vmul.f32 %v1041_v33, %v544_v21  ;;  %v546_v41 = vmul.f32 %v1050_v45, %v544_v21 }
  0x3e   : > { %v558_v42 = vrot.slane %v161_v39, %v967_v16  ;;  %v513_v48 = vrot.slane %v509_v24, 5  ;;  %v572_v49 = vrot.slane %v161_v39, %v969_v17  ;;  %v514_v50 = vrot.slane %v510_v25, 5 }
  0x3f   : > { %v447_v22 = vadd.f32 %v445_v32, %v439_v9  ;;  %v448_v23 = vadd.f32 %v446_v63, %v440_v10  ;;  %v527_v51 = vrot.slane %v523_v28, 6  ;;  %v528_v52 = vrot.slane %v524_v29, 6 }
  0x40   : > { %v628_v34 = vrot.slane %v1086_v44, %v949_v6  ;;  %v537_v13 = vmul.f32 %v1041_v33, %v536_v36  ;;  %v538_v55 = vmul.f32 %v1050_v45, %v536_v36  ;;  %v549_v56 = vrot.slane %v545_v40, 1 }
  0x41   : > { %v461_v30 = vadd.f32 %v457_v1, %v447_v22  ;;  %v462_v31 = vadd.f32 %v458_v11, %v448_v23  ;;  %v550_v57 = vrot.slane %v546_v41, 1  ;;  %v559_v58 = vmul.f32 %v1041_v33, %v558_v42 }
  0x42   : > { %v560_v32 = vmul.f32 %v1050_v45, %v558_v42  ;;  %v573_v60 = vmul.f32 %v1041_v33, %v572_v49  ;;  %v586_v61 = vrot.slane %v1086_v44, %v943_v3  ;;  %v600_v62 = vrot.slane %v1086_v44, %v945_v4 }
  0x43   : > { %v475_v38 = vadd.f32 %v471_v18, %v461_v30  ;;  %v476_v47 = vadd.f32 %v472_v19, %v462_v31  ;;  %v1101_v63 = vmul.f32 %v1052_v46, %v628_v34  ;;  %v636_v0 = vrot.slane %v1086_v44, %v963_v14  ;;  %v163_v19 = vld [vmem:[%s1182_s1 + $0x28] sm:$0xff] }
  0x44   : > { %v650_v1 = vrot.slane %v1086_v44, %v965_v15  ;;  %v574_v8 = vmul.f32 %v1050_v45, %v572_v49  ;;  %v664_v9 = vrot.slane %v1086_v44, %v967_v16  ;;  %v563_v10 = vrot.slane %v559_v58, 2 }
  0x45   : > { %v489_v53 = vadd.f32 %v485_v26, %v475_v38  ;;  %v490_v54 = vadd.f32 %v486_v27, %v476_v47  ;;  %v614_v11 = vrot.slane %v1086_v44, %v947_v5  ;;  %v1113_v12 = vmul.f32 %v1052_v46, %v636_v0 }
  0x46   : > { %v1116_v18 = vmul.f32 %v1052_v46, %v650_v1  ;;  %v587_v22 = vmul.f32 %v1041_v33, %v586_v61  ;;  %v1123_v23 = vmul.f32 %v1052_v46, %v664_v9  ;;  %v564_v24 = vrot.slane %v560_v32, 2 }
  0x47   : > { %v503_v59 = vadd.f32 %v499_v35, %v489_v53  ;;  %v504_v39 = vadd.f32 %v500_v37, %v490_v54  ;;  %v577_v25 = vrot.slane %v573_v60, 3  ;;  %v588_v26 = vmul.f32 %v1050_v45, %v586_v61 }
  0x48   : > { %v601_v27 = vmul.f32 %v1041_v33, %v600_v62  ;;  %v578_v30 = vrot.slane %v574_v8, 3  ;;  %v602_v31 = vmul.f32 %v1050_v45, %v600_v62  ;;  %v615_v35 = vmul.f32 %v1041_v33, %v614_v11 }
  0x49   : > { %v517_v2 = vadd.f32 %v513_v48, %v503_v59  ;;  %v518_v7 = vadd.f32 %v514_v50, %v504_v39  ;;  %v616_v36 = vmul.f32 %v1050_v45, %v614_v11  ;;  %v692_v37 = vrot.slane %v163_v19, %v943_v3 }
  0x4a   : > { %v706_v40 = vrot.slane %v163_v19, %v945_v4  ;;  %v591_v38 = vrot.slane %v587_v22, 4  ;;  %v720_v47 = vrot.slane %v163_v19, %v947_v5  ;;  %v592_v48 = vrot.slane %v588_v26, 4 }
  0x4b   : > { %v531_v20 = vadd.f32 %v527_v51, %v517_v2  ;;  %v532_v21 = vadd.f32 %v528_v52, %v518_v7  ;;  %v605_v49 = vrot.slane %v601_v27, 5  ;;  %v1134_v50 = vmul.f32 %v1052_v46, %v692_v37 }
  0x4c   : > { %v728_v51 = vrot.slane %v163_v19, %v949_v6  ;;  %v606_v53 = vrot.slane %v602_v31, 5  ;;  %v708_v54 = vmul.f32 %v1052_v46, %v706_v40  ;;  %v619_v3 = vrot.slane %v615_v35, 6 }
  0x4d   : > { %v539_v28 = vadd.f32 %v537_v13, %v531_v20  ;;  %v540_v29 = vadd.f32 %v538_v55, %v532_v21  ;;  %v620_v13 = vrot.slane %v616_v36, 6  ;;  %v721_v4 = vmul.f32 %v1052_v46, %v720_v47 }
  0x4e   : > { %v722_v55 = vmul.f32 %v1062_v43, %v720_v47  ;;  %v678_v58 = vrot.slane %v1086_v44, %v969_v17  ;;  %v729_v6 = vmul.f32 %v1052_v46, %v728_v51  ;;  %v730_v32 = vmul.f32 %v1062_v43, %v728_v51 }
  0x4f   : > { %v553_v41 = vadd.f32 %v549_v56, %v539_v28  ;;  %v554_v42 = vadd.f32 %v550_v57, %v540_v29  ;;  %v629_v57 = vmul.f32 %v1050_v45, %v628_v34  ;;  %v742_v59 = vrot.slane %v163_v19, %v963_v14 }
  0x50   : > { %v756_v39 = vrot.slane %v163_v19, %v965_v15  ;;  %v637_v62 = vmul.f32 %v1050_v45, %v636_v0  ;;  %v770_v2 = vrot.slane %v163_v19, %v967_v16  ;;  %v651_v7 = vmul.f32 %v1050_v45, %v650_v1 }
  0x51   : > { %v567_v52 = vadd.f32 %v563_v10, %v553_v41  ;;  %v568_v33 = vadd.f32 %v564_v24, %v554_v42  ;;  %v743_v34 = vmul.f32 %v1052_v46, %v742_v59  ;;  %v744_v44 = vmul.f32 %v1062_v43, %v742_v59 }
  0x52   : > { %v784_v8 = vrot.slane %v163_v19, %v969_v17  ;;  %v757_v14 = vmul.f32 %v1052_v46, %v756_v39  ;;  %v758_v15 = vmul.f32 %v1062_v43, %v756_v39  ;;  %v665_v20 = vmul.f32 %v1050_v45, %v664_v9 }
  0x53   : > { %v581_v56 = vadd.f32 %v577_v25, %v567_v52  ;;  %v582_v5 = vadd.f32 %v578_v30, %v568_v33  ;;  %v771_v0 = vmul.f32 %v1052_v46, %v770_v2  ;;  %v772_v16 = vmul.f32 %v1062_v43, %v770_v2 }
  0x54   : > { %v641_v22 = vrot.slane %v637_v62, 1  ;;  %v642_v24 = vrot.slane %v1113_v12, 1  ;;  %v655_v25 = vrot.slane %v651_v7, 2  ;;  %v679_v17 = vmul.f32 %v1050_v45, %v678_v58 }
  0x55   : > { %v595_v60 = vadd.f32 %v591_v38, %v581_v56  ;;  %v596_v61 = vadd.f32 %v592_v48, %v582_v5  ;;  %v785_v19 = vmul.f32 %v1052_v46, %v784_v8  ;;  %v786_v26 = vmul.f32 %v1062_v43, %v784_v8 }
  0x56   : > { %v656_v9 = vrot.slane %v1116_v18, 2  ;;  %v680_v29 = vmul.f32 %v1052_v46, %v678_v58  ;;  %v669_v30 = vrot.slane %v665_v20, 3  ;;  %v670_v36 = vrot.slane %v1123_v23, 3 }
  0x57   : > { %v609_v10 = vadd.f32 %v605_v49, %v595_v60  ;;  %v610_v11 = vadd.f32 %v606_v53, %v596_v61  ;;  %v693_v12 = vmul.f32 %v1050_v45, %v692_v37  ;;  %v683_v41 = vrot.slane %v679_v17, 4 }
  0x58   : > { %v684_v47 = vrot.slane %v680_v29, 4  ;;  %v707_v48 = vmul.f32 %v1050_v45, %v706_v40  ;;  %v698_v18 = vrot.slane %v1134_v50, 5  ;;  %v733_v37 = vrot.slane %v729_v6, 1  ;;  %v875_v45 = vld [vmem:[%s1182_s1 + $0x30] ss:$0 sm:$0xff] }
  0x59   : > { %v623_v21 = vadd.f32 %v619_v3, %v609_v10  ;;  %v624_v1 = vadd.f32 %v620_v13, %v610_v11  ;;  %v712_v3 = vrot.slane %v708_v54, 6  ;;  %v747_v39 = vrot.slane %v743_v34, 2 }
  0x5a   : > { %v711_v53 = vrot.slane %v707_v48, 6  ;;  %v748_v60 = vrot.slane %v744_v44, 2  ;;  %v761_v61 = vrot.slane %v757_v14, 3  ;;  %v762_v62 = vrot.slane %v758_v15, 3 }
  0x5b   : > { %v631_v27 = vadd.f32 %v629_v57, %v623_v21  ;;  %v632_v28 = vadd.f32 %v1101_v63, %v624_v1  ;;  %v697_v63 = vrot.slane %v693_v12, 5  ;;  %v734_v57 = vrot.slane %v730_v32, 1 }
  0x5c   : > { %v775_v54 = vrot.slane %v771_v0, 4  ;;  %v776_v2 = vrot.slane %v772_v16, 4  ;;  %v799_v6 = vmul.f32 %v1052_v46, %v875_v45  ;;  %v789_v34 = vrot.slane %v785_v19, 5 }
  0x5d   : > { %v645_v31 = vadd.f32 %v641_v22, %v631_v27  ;;  %v646_v35 = vadd.f32 %v642_v24, %v632_v28  ;;  %v790_v44 = vrot.slane %v786_v26, 5 }
  0x5e   : > { %v803_v20 = vrot.slane %v799_v6, 6 }
  0x5f   : > { %v659_v42 = vadd.f32 %v655_v25, %v645_v31  ;;  %v660_v38 = vadd.f32 %v656_v9, %v646_v35 }
  0x61   : > { %v673_v49 = vadd.f32 %v669_v30, %v659_v42  ;;  %v674_v51 = vadd.f32 %v670_v36, %v660_v38 }
  0x63   : > { %v687_v52 = vadd.f32 %v683_v41, %v673_v49  ;;  %v688_v33 = vadd.f32 %v684_v47, %v674_v51 }
  0x65   : > { %v701_v13 = vadd.f32 %v697_v63, %v687_v52  ;;  %v702_v56 = vadd.f32 %v698_v18, %v688_v33 }
  0x67   : > { %v715_v23 = vadd.f32 %v711_v53, %v701_v13  ;;  %v716_v5 = vadd.f32 %v712_v3, %v702_v56 }
  0x69   : > { %v723_v58 = vadd.f32 %v721_v4, %v715_v23  ;;  %v724_v59 = vadd.f32 %v722_v55, %v716_v5  ;;  %v800_v4 = vmul.f32 %v1062_v43, %v875_v45 }
  0x6b   : > { %v737_v40 = vadd.f32 %v733_v37, %v723_v58  ;;  %v738_v50 = vadd.f32 %v734_v57, %v724_v59  ;;  %v804_v21 = vrot.slane %v800_v4, 6 }
  0x6d   : > { %v751_v7 = vadd.f32 %v747_v39, %v737_v40  ;;  %v752_v8 = vadd.f32 %v748_v60, %v738_v50 }
  0x6f   : > { %v765_v55 = vadd.f32 %v761_v61, %v751_v7  ;;  %v766_v32 = vadd.f32 %v762_v62, %v752_v8 }
  0x71   : > { %v779_v10 = vadd.f32 %v775_v54, %v765_v55  ;;  %v780_v11 = vadd.f32 %v776_v2, %v766_v32 }
  0x73   : > { %v793_v14 = vadd.f32 %v789_v34, %v779_v10  ;;  %v794_v1 = vadd.f32 %v790_v44, %v780_v11 }
  0x75   : > { %v807_v15 = vadd.f32 %v803_v20, %v793_v14  ;;  %v808_v0 = vadd.f32 %v804_v21, %v794_v1 }
  0x77   : > { %v809_v46 = vpack.c.bf16 %v807_v15, %v807_v15  ;;  %v810_v43 = vpack.c.bf16 %v808_v0, %v808_v0 }
  0x79   : > { %812 = vst.msk [vmem:[%s141_s4] sm:$0x1] %vm811_vm0, %v809_v46  ;;  %813 = vst.msk [vmem:[%s141_s4 + $0x1] sm:$0x1] %vm811_vm0, %v810_v43 }
  0x7a PF: > { %s12_s9 = sadd.s32 1, %s912_s9  }
  0x7b   : > { %p9_p4 = scmp.ge.s32.totalorder %s12_s9, 4  }
  0x7d   :  { %11 = sbr.rel (!%p9_p4) target bundleno = 1 (0x1), region = 58 }

// kernel: metaformer_forward.71
= control target key start
LH: loop header
LB: loop body
LE: loop exit
PB: predicated region body
PF: predicated region fallthrough
CT: control target
= control target key end

     0   :  { %v467_v0 = vmov 0.0   ;;  %vm468_vm0 = vmmov 0   ;;  %s576_s1 = inlined_call_operand.vmem [shape: bf16[384,128], index: 1, kind: input, shape index: {}]   ;;  %s577_s0 = inlined_call_operand.vmem [shape: bf16[16,384], index: 0, kind: input, shape index: {}]   ;;  %s578_s2 = inlined_call_operand.vmem [shape: f32[1,128], index: 2, kind: input, shape index: {}]   ;;  %s579_s3 = inlined_call_operand.vmem [shape: bf16[16,128], index: 3, kind: output, shape index: {}]  }
   0x1   :  { %417 = vmatprep.subr.bf16.mxu1 %v467_v0  ;;  %v439_v1 = vld [vmem:[%s576_s1 + $0x78] sm:$0xff]   ;;  %433 = vmatprep.mubr.msk.bf16.mxu1 %vm468_vm0, %v467_v0  ;;  %v442_v4 = vld [vmem:[%s576_s1 + $0x70] sm:$0xff]   ;;  %v445_v7 = vld [vmem:[%s576_s1 + $0x68] sm:$0xff]  }
   0x2   :  { %v440_v2 = vld [vmem:[%s576_s1 + $0xb8] sm:$0xff]   ;;  %386 = vmatprep.subr.bf16.mxu0 %v439_v1  ;;  %v443_v5 = vld [vmem:[%s576_s1 + $0xb0] sm:$0xff]   ;;  %v446_v8 = vld [vmem:[%s576_s1 + $0xa8] sm:$0xff]  }
   0x3   :  { %v441_v3 = vld [vmem:[%s576_s1 + $0x38] sm:$0xff]   ;;  %418 = vmatpush3.bf16.msra.mxu1 %v440_v2  ;;  %v444_v6 = vld [vmem:[%s576_s1 + $0x30] sm:$0xff]   ;;  %v447_v9 = vld [vmem:[%s576_s1 + $0x28] sm:$0xff]  }
   0x4   :  { %387 = vmatpush3.bf16.msra.mxu0 %v441_v3  ;;  %419 = vmatprep.subr.bf16.mxu1 %v467_v0  ;;  %v448_v10 = vld [vmem:[%s576_s1 + $0x60] sm:$0xff]   ;;  %v451_v13 = vld [vmem:[%s576_s1 + $0x58] sm:$0xff]   ;;  %v454_v16 = vld [vmem:[%s576_s1 + $0x50] sm:$0xff]  }
   0x5   :  { %388 = vmatprep.subr.bf16.mxu0 %v442_v4  ;;  %v449_v11 = vld [vmem:[%s576_s1 + $0xa0] sm:$0xff]   ;;  %v452_v14 = vld [vmem:[%s576_s1 + $0x98] sm:$0xff]   ;;  %v455_v17 = vld [vmem:[%s576_s1 + $0x90] sm:$0xff]  }
   0x6   :  { %v450_v12 = vld [vmem:[%s576_s1 + $0x20] sm:$0xff]   ;;  %v453_v15 = vld [vmem:[%s576_s1 + $0x18] sm:$0xff]   ;;  %v456_v18 = vld [vmem:[%s576_s1 + $0x10] sm:$0xff]  }
   0x7   :  { %420 = vmatpush3.bf16.msra.mxu1 %v443_v5  ;;  %v457_v19 = vld [vmem:[%s576_s1 + $0x48] sm:$0xff]   ;;  %v460_v22 = vld [vmem:[%s576_s1 + $0x40] sm:$0xff]  }
   0x8   :  { %389 = vmatpush3.bf16.msra.mxu0 %v444_v6  ;;  %421 = vmatprep.subr.bf16.mxu1 %v467_v0  ;;  %v458_v20 = vld [vmem:[%s576_s1 + $0x88] sm:$0xff]   ;;  %v465_v23 = vld [vmem:[%s577_s0 + $0x4] ss:$12 sps:$4 sm:$0xff]   ;;  %v376_v39 = vld [vmem:[%s578_s2] ss:$0 sm:$0xff] }
   0x9   :  { %390 = vmatprep.subr.bf16.mxu0 %v445_v7  ;;  %v459_v21 = vld [vmem:[%s576_s1 + $0x8] sm:$0xff]   ;;  %v461_v24 = vld [vmem:[%s576_s1 + $0x80] sm:$0xff]   ;;  %267 = vmatprep.mubr.bf16.mxu0 %v465_v23 }
   0xa   :  { %v462_v25 = vld [vmem:[%s576_s1] sm:$0xff]   ;;  %v466_v26 = vld [vmem:[%s577_s0 + $0x8] ss:$12 sps:$4 sm:$0xff]  }
   0xb   :  { %422 = vmatpush3.bf16.msra.mxu1 %v446_v8  ;;  %v463_v27 = vld [vmem:[%s577_s0] ss:$12 sps:$4 sm:$0xff]  }
   0xc   :  { %391 = vmatpush3.bf16.msra.mxu0 %v447_v9  ;;  %423 = vmatprep.subr.bf16.mxu1 %v467_v0 }
   0xd   :  { %392 = vmatprep.subr.bf16.mxu0 %v448_v10 }
   0xf   :  { %424 = vmatpush3.bf16.msra.mxu1 %v449_v11 }
  0x10   :  { %393 = vmatpush3.bf16.msra.mxu0 %v450_v12  ;;  %425 = vmatprep.subr.bf16.mxu1 %v467_v0 }
  0x11   :  { %394 = vmatprep.subr.bf16.mxu0 %v451_v13 }
  0x13   :  { %426 = vmatpush3.bf16.msra.mxu1 %v452_v14 }
  0x14   :  { %395 = vmatpush3.bf16.msra.mxu0 %v453_v15  ;;  %427 = vmatprep.subr.bf16.mxu1 %v467_v0 }
  0x15   :  { %396 = vmatprep.subr.bf16.mxu0 %v454_v16 }
  0x17   :  { %428 = vmatpush3.bf16.msra.mxu1 %v455_v17 }
  0x18   :  { %397 = vmatpush3.bf16.msra.mxu0 %v456_v18  ;;  %429 = vmatprep.subr.bf16.mxu1 %v467_v0 }
  0x19   :  { %398 = vmatprep.subr.bf16.mxu0 %v457_v19 }
  0x1b   :  { %430 = vmatpush3.bf16.msra.mxu1 %v458_v20 }
  0x1c   :  { %399 = vmatpush3.bf16.msra.mxu0 %v459_v21  ;;  %431 = vmatprep.subr.bf16.mxu1 %v467_v0 }
  0x1d   :  { %400 = vmatprep.subr.bf16.mxu0 %v460_v22 }
  0x1f   :  { %432 = vmatpush3.bf16.msra.mxu1 %v461_v24 }
  0x20   :  { %401 = vmatpush3.bf16.msra.mxu0 %v462_v25 }
  0x22   :  { %434 = vmatmul.mubr.bf16.vlgmr.msra.gmra.mxu1 %v466_v26 }
  0x23   :  { %268 = vmatmul.mubr.bf16.vlgmr.msra.gmra.mxu0 %v463_v27 }
  0xe2   :  { %v310_v28 = vpop.f32.mrf.mxu1 }
  0xe3   :  { %v402_v29 = vpop.f32.mrf.mxu0 }
  0xe4   :  { %v435_v30 = vpop.f32.mrf.mxu1 }
  0xe5   :  { %v403_v31 = vpop.f32.mrf.mxu0 }
  0xe6   :  { %v404_v32 = vadd.f32 %v403_v31, %v402_v29  ;;  %v313_v33 = vpop.f32.mrf.mxu1 }
  0xe7   :  { %v405_v34 = vpop.f32.mrf.mxu0 }
  0xe8   :  { %v436_v35 = vpop.f32.mrf.mxu1  ;;  %v311_v37 = vadd.f32 %v404_v32, %v310_v28 }
  0xe9   :  { %v406_v36 = vpop.f32.mrf.mxu0 }
  0xea   :  { %v407_v38 = vadd.f32 %v406_v36, %v405_v34  ;;  %v333_v41 = vadd.f32 %v376_v39, %v311_v37 }
  0xec   :  { %v314_v40 = vadd.f32 %v407_v38, %v313_v33 }
  0xee   :  { %v334_v42 = vadd.f32 %v376_v39, %v314_v40 }
  0xf0   :  { %v384_v43 = vpack.c.bf16 %v334_v42, %v333_v41 }
  0xf2   :  { %385 = vst [vmem:[%s579_s3] sm:$0xff] %v384_v43  }

// kernel: metaformer_forward.72
= control target key start
LH: loop header
LB: loop body
LE: loop exit
PB: predicated region body
PF: predicated region fallthrough
CT: control target
= control target key end

     0   :  { %vm14_vm0 = vcmask 516096   ;;  %v62_v0 = vmov 0.0   ;;  %vm22_vm1 = vcmask 523264   ;;  %s103_s0 = inlined_call_operand.vmem [shape: bf16[16,64], index: 0, kind: input, shape index: {}]   ;;  %s104_s1 = inlined_call_operand.vmem [shape: f32[1,64], index: 1, kind: output, shape index: {0}]   ;;  %s105_s2 = inlined_call_operand.vmem [shape: f32[1,64], index: 2, kind: output, shape index: {1}]  }
   0x1   :  { %15 = vst.msk [vmem:[%s104_s1] sm:$0x1] %vm14_vm0, %v62_v0  ;;  %v58_v1 = vld [vmem:[%s103_s0] sm:$0xff]   ;;  %16 = vst.msk [vmem:[%s105_s2] sm:$0x1] %vm14_vm0, %v62_v0 }
   0x2   :  { %v59_v2 = vunpack.c.l.bf16 %v58_v1  ;;  %v60_v3 = vunpack.c.h.bf16 %v58_v1 }
   0x4   :  { %v23_v4 = vsel %vm22_vm1, %v59_v2, 0.0  ;;  %v24_v5 = vsel %vm22_vm1, %v60_v3, 0.0  ;;  %v36_v6 = vmul.f32 %v59_v2, %v59_v2  ;;  %v37_v7 = vmul.f32 %v60_v3, %v60_v3 }
   0x5   :  { %v25_v8 = vadd.f32 %v24_v5, %v23_v4 }
   0x6   :  { %v38_v9 = vsel %vm22_vm1, %v36_v6, 0.0  ;;  %v39_v10 = vsel %vm22_vm1, %v37_v7, 0.0 }
   0x7   :  { %v26_v11 = vrot.slane %v25_v8, 4  ;;  %v40_v12 = vadd.f32 %v39_v10, %v38_v9 }
   0x8   :  { %v21_v21 = vld [vmem:[%s104_s1] sm:$0x1] }
   0x9   :  { %v27_v13 = vadd.f32 %v26_v11, %v25_v8  ;;  %v41_v14 = vrot.slane %v40_v12, 4  ;;  %v35_v24 = vld [vmem:[%s105_s2] sm:$0x1] }
   0xb   :  { %v28_v15 = vrot.slane %v27_v13, 2  ;;  %v42_v16 = vadd.f32 %v41_v14, %v40_v12 }
   0xd   :  { %v29_v17 = vadd.f32 %v28_v15, %v27_v13  ;;  %v43_v18 = vrot.slane %v42_v16, 2 }
   0xf   :  { %v30_v19 = vrot.slane %v29_v17, 1  ;;  %v44_v20 = vadd.f32 %v43_v18, %v42_v16 }
  0x11   :  { %v31_v22 = vadd.f32 %v30_v19, %v29_v17  ;;  %v45_v23 = vrot.slane %v44_v20, 1 }
  0x13   :  { %v32_v25 = vadd.f32 %v31_v22, %v21_v21  ;;  %v46_v26 = vadd.f32 %v45_v23, %v44_v20 }
  0x15   :  { %34 = vst.msk [vmem:[%s104_s1] sm:$0x1] %vm14_vm0, %v32_v25  ;;  %v47_v27 = vadd.f32 %v46_v26, %v35_v24 }
  0x17   :  { %48 = vst.msk [vmem:[%s105_s2] sm:$0x1] %vm14_vm0, %v47_v27 }

// kernel: metaformer_forward.87
= control target key start
LH: loop header
LB: loop body
LE: loop exit
PB: predicated region body
PF: predicated region fallthrough
CT: control target
= control target key end

     0   :  { %vm44_vm0 = vcmask 519168   ;;  %s96_s0 = inlined_call_operand.vmem [shape: bf16[16,64], index: 0, kind: input, shape index: {}]   ;;  %s97_s1 = inlined_call_operand.vmem [shape: f32[1,64], index: 1, kind: input, shape index: {}]   ;;  %s98_s2 = inlined_call_operand.vmem [shape: f32[1,64], index: 2, kind: input, shape index: {}]   ;;  %s99_s3 = inlined_call_operand.vmem [shape: bf16[16,64], index: 3, kind: output, shape index: {}]  }
   0x1   :  { %v58_v0 = vld [vmem:[%s96_s0] sm:$0xff]  }
   0x2   :  { %v51_v1 = vld [vmem:[%s97_s1] ss:$0 sm:$0xff]  ;;  %v59_v2 = vunpack.c.l.bf16 %v58_v0  ;;  %v60_v3 = vunpack.c.h.bf16 %v58_v0 }
   0x3   :  { %v52_v4 = vld [vmem:[%s98_s2] ss:$0 sm:$0xff] }
   0x4   :  { %v25_v5 = vmul.f32 %v59_v2, %v51_v1  ;;  %v26_v6 = vmul.f32 %v60_v3, %v51_v1 }
   0x6   :  { %v34_v7 = vadd.f32 %v52_v4, %v25_v5  ;;  %v35_v8 = vadd.f32 %v52_v4, %v26_v6 }
   0x8   :  { %v55_v9 = vpack.c.bf16 %v34_v7, %v34_v7  ;;  %v56_v10 = vpack.c.bf16 %v35_v8, %v35_v8 }
   0xa   :  { %45 = vst.msk [vmem:[%s99_s3] sm:$0xf] %vm44_vm0, %v55_v9  ;;  %46 = vst.msk [vmem:[%s99_s3 + $0x4] sm:$0xf] %vm44_vm0, %v56_v10 }

// kernel: metaformer_forward.74
= control target key start
LH: loop header
LB: loop body
LE: loop exit
PB: predicated region body
PF: predicated region fallthrough
CT: control target
= control target key end

     0   :  { %s458_s9 = smov 0   ;;  %s506_s0 = inlined_call_operand.vmem [shape: bf16[2,7,7,128], index: 0, kind: input, shape index: {}]   ;;  %s507_s1 = inlined_call_operand.vmem [shape: f32[49,128], index: 1, kind: input, shape index: {}]   ;;  %s508_s2 = inlined_call_operand.vmem [shape: bf16[2,1,1,128], index: 2, kind: output, shape index: {}]  }
   0x1 LB: > { %s404_s10 = sadd.s32 4294967295, %s441_s9   ;;  %p408_p0 = scmp.ge.s32.totalorder %s441_s9, 1  ;;  %s441_s9 = sphi %s458_s9, %s12_s9  }
   0x2   : > { %p112_p1 = scmp.lt.s32.totalorder %s441_s9, 3 }
   0x4   : > { %p113_p2 = pnand %p408_p0, %p112_p1 }
   0x5   : > { %p132_p3 = scmp.lt.s32.totalorder (!%p113_p2), %s404_s10, 1 }
   0x6   : > { %116 = sbr.rel (%p113_p2) target bundleno = 122 (0x7a), region = 28 }
   0xb   : > { %s510_s10 = smov (!%p132_p3, %s404_s10), 1  ;;  %v154_v1 = vld [vmem:[%s507_s1] sm:$0xff]  ;;  %v155_v6 = vld [vmem:[%s507_s1 + $0x8] sm:$0xff]  ;;  %v156_v28 = vld [vmem:[%s507_s1 + $0x10] sm:$0xff]  ;;  %vm351_vm0 = vcmask 1040384  }
   0xc   : > { %s426_s11 = smul.u32 28, %s510_s10  ;;  %v188_v12 = vrot.slane %v155_v6, 7  ;;  %v183_v15 = vrot.slane %v154_v1, 7  ;;  %v210_v32 = vrot.slane %v155_v6, 6  ;;  %v219_v35 = vrot.slane %v156_v28, 6  ;;  %v157_v51 = vld [vmem:[%s507_s1 + $0x18] sm:$0xff]  ;;  %s139_s3 = scalar_lea.vmem %s508_s2, %s510_s10 }
   0xd   : > { %v238_v50 = vrot.slane %v156_v28, 5  ;;  %v250_v57 = vrot.slane %v157_v51, 5  ;;  %v266_v6 = vrot.slane %v157_v51, 4  ;;  %vm352_vm1 = vsmask.f32 256 }
   0xe   : > { %s472_s14 = scalar_lea.vmem %s506_s0, %s426_s11  ;;  %vm353_vm2 = vmand %vm351_vm0, %vm352_vm1 }
   0xf   : > { %v413_v0 = vld [vmem:[%s472_s14] sm:$0xff]   ;;  %v424_v25 = vld [vmem:[%s472_s14 + $0x8] sm:$0xff]  }
  0x10   : > { %v414_v2 = vunpack.c.l.bf16 %v413_v0  ;;  %v415_v9 = vunpack.c.h.bf16 %v413_v0  ;;  %v418_v29 = vunpack.c.l.bf16 %v424_v25  ;;  %v419_v47 = vunpack.c.h.bf16 %v424_v25  ;;  %v425_v0 = vld [vmem:[%s472_s14 + $0x10] sm:$0xff]  }
  0x12   : > { %v161_v3 = vmul.f32 %v414_v2, %v154_v1  ;;  %v190_v18 = vmul.f32 %v415_v9, %v188_v12  ;;  %v185_v20 = vmul.f32 %v415_v9, %v183_v15  ;;  %v212_v38 = vmul.f32 %v418_v29, %v210_v32  ;;  %v158_v9 = vld [vmem:[%s507_s1 + $0x20] sm:$0xff] }
  0x13   : > { %v221_v40 = vmul.f32 %v418_v29, %v219_v35  ;;  %v240_v56 = vmul.f32 %v419_v47, %v238_v50  ;;  %v252_v61 = vmul.f32 %v419_v47, %v250_v57  ;;  %v294_v25 = vrot.slane %v158_v9, 3 }
  0x14   : > { %v164_v4 = vrot.slane %v161_v3, 1  ;;  %v167_v5 = vrot.slane %v161_v3, 2  ;;  %v170_v8 = vrot.slane %v161_v3, 3  ;;  %v173_v11 = vrot.slane %v161_v3, 4 }
  0x15   : > { %v176_v14 = vrot.slane %v161_v3, 5  ;;  %v179_v17 = vrot.slane %v161_v3, 6  ;;  %v192_v22 = vrot.slane %v190_v18, 1  ;;  %v195_v24 = vrot.slane %v190_v18, 2 }
  0x16   : > { %v166_v7 = vadd.f32 %v164_v4, %v161_v3  ;;  %v198_v27 = vrot.slane %v190_v18, 3  ;;  %v201_v31 = vrot.slane %v190_v18, 4  ;;  %v204_v34 = vrot.slane %v190_v18, 5 }
  0x17   : > { %v207_v37 = vrot.slane %v190_v18, 6  ;;  %v215_v42 = vrot.slane %v212_v38, 1  ;;  %v223_v44 = vrot.slane %v221_v40, 2  ;;  %v226_v46 = vrot.slane %v221_v40, 3 }
  0x18   : > { %v169_v10 = vadd.f32 %v167_v5, %v166_v7  ;;  %v229_v49 = vrot.slane %v221_v40, 4  ;;  %v232_v53 = vrot.slane %v221_v40, 5  ;;  %v235_v55 = vrot.slane %v221_v40, 6 }
  0x19   : > { %v243_v60 = vrot.slane %v240_v56, 1  ;;  %v246_v63 = vrot.slane %v240_v56, 2  ;;  %v254_v2 = vrot.slane %v252_v61, 3  ;;  %v422_v3 = vunpack.c.l.bf16 %v425_v0 }
  0x1a   : > { %v172_v13 = vadd.f32 %v170_v8, %v169_v10  ;;  %v257_v5 = vrot.slane %v252_v61, 4  ;;  %v260_v8 = vrot.slane %v252_v61, 5 }
  0x1b   : > { %v268_v12 = vmul.f32 %v422_v3, %v266_v6 }
  0x1c   : > { %v175_v16 = vadd.f32 %v173_v11, %v172_v13  ;;  %v263_v11 = vrot.slane %v252_v61, 6 }
  0x1d   : > { %v274_v18 = vrot.slane %v268_v12, 2 }
  0x1e   : > { %v178_v19 = vadd.f32 %v176_v14, %v175_v16  ;;  %v281_v14 = vrot.slane %v158_v9, 4  ;;  %v271_v16 = vrot.slane %v268_v12, 1 }
  0x20   : > { %v181_v21 = vadd.f32 %v179_v17, %v178_v19  ;;  %v283_v19 = vmul.f32 %v422_v3, %v281_v14 }
  0x22   : > { %v186_v23 = vadd.f32 %v185_v20, %v181_v21  ;;  %v277_v21 = vrot.slane %v268_v12, 3  ;;  %v291_v29 = vrot.slane %v283_v19, 6 }
  0x24   : > { %v194_v26 = vadd.f32 %v192_v22, %v186_v23  ;;  %v423_v22 = vunpack.c.h.bf16 %v425_v0 }
  0x26   : > { %v197_v30 = vadd.f32 %v195_v24, %v194_v26  ;;  %v285_v24 = vrot.slane %v283_v19, 4 }
  0x28   : > { %v200_v33 = vadd.f32 %v198_v27, %v197_v30  ;;  %v288_v27 = vrot.slane %v283_v19, 5  ;;  %v296_v30 = vmul.f32 %v423_v22, %v294_v25 }
  0x2a   : > { %v203_v36 = vadd.f32 %v201_v31, %v200_v33  ;;  %v159_v31 = vld [vmem:[%s507_s1 + $0x28] sm:$0xff]  ;;  %v305_v40 = vrot.slane %v296_v30, 3 }
  0x2b   : > { %v312_v35 = vrot.slane %v159_v31, 3 }
  0x2c   : > { %v206_v39 = vadd.f32 %v204_v34, %v203_v36  ;;  %v299_v34 = vrot.slane %v296_v30, 1 }
  0x2e   : > { %v209_v41 = vadd.f32 %v207_v37, %v206_v39  ;;  %v302_v37 = vrot.slane %v296_v30, 2 }
  0x30   : > { %v213_v43 = vadd.f32 %v212_v38, %v209_v41  ;;  %v146_v38 = vld [vmem:[%s472_s14 + $0x18] sm:$0xf]  ;;  %v314_v41 = vmul.f32 %v423_v22, %v312_v35 }
  0x32   : > { %v217_v45 = vadd.f32 %v215_v42, %v213_v43  ;;  %v153_v42 = vunpack.c.l.bf16 %v146_v38  ;;  %v316_v47 = vrot.slane %v314_v41, 5 }
  0x34   : > { %v225_v48 = vadd.f32 %v223_v44, %v217_v45  ;;  %v308_v44 = vrot.slane %v296_v30, 4  ;;  %v322_v45 = vrot.slane %v159_v31, 2 }
  0x36   : > { %v228_v52 = vadd.f32 %v226_v46, %v225_v48  ;;  %v324_v50 = vmul.f32 %v322_v45, %v153_v42 }
  0x38   : > { %v231_v54 = vadd.f32 %v229_v49, %v228_v52  ;;  %v319_v49 = vrot.slane %v314_v41, 6  ;;  %v160_v52 = vld [vmem:[%s507_s1 + $0x30] sm:$0x1]  ;;  %v336_v61 = vrot.slane %v324_v50, 4  ;;  %v339_v0 = vrot.slane %v324_v50, 5 }
  0x39   : > { %v343_v57 = vrot.slane %v160_v52, 2 }
  0x3a   : > { %v234_v58 = vadd.f32 %v232_v53, %v231_v54  ;;  %v327_v54 = vrot.slane %v324_v50, 1 }
  0x3c   : > { %v237_v59 = vadd.f32 %v235_v55, %v234_v58 }
  0x3e   : > { %v241_v62 = vadd.f32 %v240_v56, %v237_v59  ;;  %v330_v56 = vrot.slane %v324_v50, 2  ;;  %v333_v59 = vrot.slane %v324_v50, 3 }
  0x40   : > { %v245_v1 = vadd.f32 %v243_v60, %v241_v62  ;;  %v345_v62 = vmul.f32 %v343_v57, %v153_v42 }
  0x42   : > { %v248_v4 = vadd.f32 %v246_v63, %v245_v1 }
  0x44   : > { %v256_v7 = vadd.f32 %v254_v2, %v248_v4  ;;  %v347_v2 = vrot.slane %v345_v62, 6 }
  0x46   : > { %v259_v10 = vadd.f32 %v257_v5, %v256_v7  ;;  %v354_v5 = vld [vmem:[%s139_s3] sm:$0x1] }
  0x48   : > { %v262_v13 = vadd.f32 %v260_v8, %v259_v10 }
  0x4a   : > { %v265_v15 = vadd.f32 %v263_v11, %v262_v13 }
  0x4c   : > { %v269_v17 = vadd.f32 %v268_v12, %v265_v15 }
  0x4e   : > { %v273_v20 = vadd.f32 %v271_v16, %v269_v17 }
  0x50   : > { %v276_v23 = vadd.f32 %v274_v18, %v273_v20 }
  0x52   : > { %v279_v26 = vadd.f32 %v277_v21, %v276_v23 }
  0x54   : > { %v287_v28 = vadd.f32 %v285_v24, %v279_v26 }
  0x56   : > { %v290_v32 = vadd.f32 %v288_v27, %v287_v28 }
  0x58   : > { %v293_v33 = vadd.f32 %v291_v29, %v290_v32 }
  0x5a   : > { %v297_v36 = vadd.f32 %v296_v30, %v293_v33 }
  0x5c   : > { %v301_v39 = vadd.f32 %v299_v34, %v297_v36 }
  0x5e   : > { %v304_v43 = vadd.f32 %v302_v37, %v301_v39 }
  0x60   : > { %v307_v46 = vadd.f32 %v305_v40, %v304_v43 }
  0x62   : > { %v310_v48 = vadd.f32 %v308_v44, %v307_v46 }
  0x64   : > { %v318_v51 = vadd.f32 %v316_v47, %v310_v48 }
  0x66   : > { %v321_v53 = vadd.f32 %v319_v49, %v318_v51 }
  0x68   : > { %v325_v55 = vadd.f32 %v324_v50, %v321_v53 }
  0x6a   : > { %v329_v58 = vadd.f32 %v327_v54, %v325_v55 }
  0x6c   : > { %v332_v60 = vadd.f32 %v330_v56, %v329_v58 }
  0x6e   : > { %v335_v63 = vadd.f32 %v333_v59, %v332_v60 }
  0x70   : > { %v338_v1 = vadd.f32 %v336_v61, %v335_v63 }
  0x72   : > { %v341_v3 = vadd.f32 %v339_v0, %v338_v1 }
  0x74   : > { %v349_v4 = vadd.f32 %v347_v2, %v341_v3 }
  0x76   : > { %v350_v6 = vpack.c.bf16 %v349_v4, %v349_v4 }
  0x78   : > { %v355_v7 = vsel %vm353_vm2, %v350_v6, %v354_v5 }
  0x79   : > { %356 = vst [vmem:[%s139_s3] sm:$0x1] %v355_v7 }
  0x7a PF: > { %s12_s9 = sadd.s32 1, %s441_s9  }
  0x7b   : > { %p9_p4 = scmp.ge.s32.totalorder %s12_s9, 4  }
  0x7d   :  { %11 = sbr.rel (!%p9_p4) target bundleno = 1 (0x1), region = 58 }

// kernel: metaformer_forward.77
= control target key start
LH: loop header
LB: loop body
LE: loop exit
PB: predicated region body
PF: predicated region fallthrough
CT: control target
= control target key end

     0   :  { %v280_v1 = vmov 0   ;;  %s369_s1 = inlined_call_operand.vmem [shape: bf16[128,256], index: 1, kind: input, shape index: {}]   ;;  %s370_s0 = inlined_call_operand.vmem [shape: bf16[16,128], index: 0, kind: input, shape index: {}]   ;;  %s371_s2 = inlined_call_operand.vmem [shape: f32[1,128], index: 2, kind: input, shape index: {}]   ;;  %s372_s3 = inlined_call_operand.vmem [shape: f32[1,128], index: 3, kind: input, shape index: {}]   ;;  %s373_s4 = inlined_call_operand.vmem [shape: bf16[16,256], index: 4, kind: output, shape index: {}]  }
   0x1   :  { %v256_v0 = vld [vmem:[%s369_s1 + $0x74] ss:$8 sps:$4 sm:$0xff]   ;;  %181 = vmatprep.mubr.bf16.mxu0 %v280_v1  ;;  %v258_v2 = vld [vmem:[%s369_s1 + $0x70] ss:$8 sps:$4 sm:$0xff]   ;;  %v259_v3 = vld [vmem:[%s369_s1 + $0x64] ss:$8 sps:$4 sm:$0xff]  }
   0x2   :  { %149 = vmatprep.subr.bf16.mxu0 %v256_v0  ;;  %v261_v4 = vld [vmem:[%s369_s1 + $0x60] ss:$8 sps:$4 sm:$0xff]   ;;  %v262_v5 = vld [vmem:[%s369_s1 + $0x54] ss:$8 sps:$4 sm:$0xff]   ;;  %v264_v6 = vld [vmem:[%s369_s1 + $0x50] ss:$8 sps:$4 sm:$0xff]  }
   0x3   :  { %150 = vmatpush1.bf16.msra.mxu0 %v258_v2  ;;  %v265_v7 = vld [vmem:[%s369_s1 + $0x44] ss:$8 sps:$4 sm:$0xff]   ;;  %v267_v8 = vld [vmem:[%s369_s1 + $0x40] ss:$8 sps:$4 sm:$0xff]   ;;  %v268_v9 = vld [vmem:[%s369_s1 + $0x34] ss:$8 sps:$4 sm:$0xff]  }
   0x4   :  { %151 = vmatprep.subr.bf16.mxu0 %v259_v3  ;;  %v270_v10 = vld [vmem:[%s369_s1 + $0x30] ss:$8 sps:$4 sm:$0xff]   ;;  %v252_v11 = vld [vmem:[%s370_s0] sm:$0xff]   ;;  %v274_v17 = vld [vmem:[%s369_s1 + $0x14] ss:$8 sps:$4 sm:$0xff]  }
   0x5   :  { %v271_v12 = vld [vmem:[%s369_s1 + $0x24] ss:$8 sps:$4 sm:$0xff]   ;;  %v253_v13 = vunpack.c.l.bf16 %v252_v11  ;;  %v254_v14 = vunpack.c.h.bf16 %v252_v11  ;;  %v273_v15 = vld [vmem:[%s369_s1 + $0x20] ss:$8 sps:$4 sm:$0xff]   ;;  %v276_v20 = vld [vmem:[%s369_s1 + $0x10] ss:$8 sps:$4 sm:$0xff]  }
   0x6   :  { %v229_v16 = vld [vmem:[%s371_s2] ss:$0 sm:$0xff]  ;;  %v277_v22 = vld [vmem:[%s369_s1 + $0x4] ss:$8 sps:$4 sm:$0xff]  }
   0x7   :  { %152 = vmatpush1.bf16.msra.mxu0 %v261_v4  ;;  %v37_v18 = vmul.f32 %v253_v13, %v229_v16  ;;  %v38_v19 = vmul.f32 %v254_v14, %v229_v16  ;;  %v230_v21 = vld [vmem:[%s372_s3] ss:$0 sm:$0xff] }
   0x8   :  { %153 = vmatprep.subr.bf16.mxu0 %v262_v5  ;;  %v279_v25 = vld [vmem:[%s369_s1] ss:$8 sps:$4 sm:$0xff]  }
   0x9   :  { %v46_v23 = vadd.f32 %v230_v21, %v37_v18  ;;  %v47_v24 = vadd.f32 %v230_v21, %v38_v19 }
   0xb   :  { %154 = vmatpush1.bf16.msra.mxu0 %v264_v6  ;;  %v48_v26 = vpack.c.bf16 %v47_v24, %v46_v23 }
   0xc   :  { %155 = vmatprep.subr.bf16.mxu0 %v265_v7 }
   0xf   :  { %156 = vmatpush1.bf16.msra.mxu0 %v267_v8 }
  0x10   :  { %157 = vmatprep.subr.bf16.mxu0 %v268_v9 }
  0x13   :  { %158 = vmatpush1.bf16.msra.mxu0 %v270_v10 }
  0x14   :  { %159 = vmatprep.subr.bf16.mxu0 %v271_v12 }
  0x17   :  { %160 = vmatpush1.bf16.msra.mxu0 %v273_v15 }
  0x18   :  { %161 = vmatprep.subr.bf16.mxu0 %v274_v17 }
  0x1b   :  { %162 = vmatpush1.bf16.msra.mxu0 %v276_v20 }
  0x1c   :  { %163 = vmatprep.subr.bf16.mxu0 %v277_v22 }
  0x1f   :  { %164 = vmatpush1.bf16.msra.mxu0 %v279_v25 }
  0x22   :  { %182 = vmatmul.mubr.bf16.vlgmr.msra.gmra.mxu0 %v48_v26 }
  0xe2   :  { %v183_v27 = vpop.f32.mrf.mxu0 }
  0xe3   :  { %v207_v29 = vmax.f32 %v183_v27, 0.0 }
  0xe4   :  { %v185_v28 = vpop.f32.mrf.mxu0 }
  0xe5   :  { %v208_v30 = vmax.f32 %v185_v28, 0.0 }
  0xe6   :  { %v187_v31 = vpop.f32.mrf.mxu0 }
  0xe7   :  { %v249_v32 = vpack.c.bf16 %v208_v30, %v207_v29  ;;  %v209_v34 = vmax.f32 %v187_v31, 0.0 }
  0xe8   :  { %v189_v33 = vpop.f32.mrf.mxu0 }
  0xe9   :  { %223 = vst [vmem:[%s373_s4] sm:$0xff] %v249_v32  ;;  %v210_v35 = vmax.f32 %v189_v33, 0.0 }
  0xeb   :  { %v250_v36 = vpack.c.bf16 %v210_v35, %v209_v34 }
  0xed   :  { %224 = vst [vmem:[%s373_s4 + $0x8] sm:$0xff] %v250_v36 }

// kernel: metaformer_forward.78
= control target key start
LH: loop header
LB: loop body
LE: loop exit
PB: predicated region body
PF: predicated region fallthrough
CT: control target
= control target key end

     0   :  { %s385_s1 = inlined_call_operand.vmem [shape: bf16[256,128], index: 1, kind: input, shape index: {}]   ;;  %s386_s0 = inlined_call_operand.vmem [shape: bf16[16,256], index: 0, kind: input, shape index: {}]   ;;  %s387_s2 = inlined_call_operand.vmem [shape: bf16[16,128], index: 2, kind: input, shape index: {}]   ;;  %s388_s3 = inlined_call_operand.vmem [shape: bf16[16,128], index: 3, kind: output, shape index: {}]  }
   0x1   :  { %v286_v0 = vld [vmem:[%s385_s1 + $0x78] sm:$0xff]   ;;  %v288_v2 = vld [vmem:[%s385_s1 + $0x70] sm:$0xff]   ;;  %v290_v4 = vld [vmem:[%s385_s1 + $0x68] sm:$0xff]  }
   0x2   :  { %v287_v1 = vld [vmem:[%s385_s1 + $0x38] sm:$0xff]   ;;  %264 = vmatprep.subr.bf16.mxu0 %v286_v0  ;;  %v289_v3 = vld [vmem:[%s385_s1 + $0x30] sm:$0xff]   ;;  %v291_v5 = vld [vmem:[%s385_s1 + $0x28] sm:$0xff]  }
   0x3   :  { %265 = vmatpush3.bf16.msra.mxu0 %v287_v1  ;;  %v292_v6 = vld [vmem:[%s385_s1 + $0x60] sm:$0xff]   ;;  %v294_v8 = vld [vmem:[%s385_s1 + $0x58] sm:$0xff]   ;;  %v296_v10 = vld [vmem:[%s385_s1 + $0x50] sm:$0xff]  }
   0x4   :  { %266 = vmatprep.subr.bf16.mxu0 %v288_v2  ;;  %v293_v7 = vld [vmem:[%s385_s1 + $0x20] sm:$0xff]   ;;  %v295_v9 = vld [vmem:[%s385_s1 + $0x18] sm:$0xff]   ;;  %v297_v12 = vld [vmem:[%s385_s1 + $0x10] sm:$0xff]  }
   0x5   :  { %v304_v11 = vld [vmem:[%s386_s0 + $0x4] ss:$8 sps:$4 sm:$0xff]   ;;  %v302_v17 = vld [vmem:[%s386_s0] ss:$8 sps:$4 sm:$0xff]  }
   0x6   :  { %195 = vmatprep.mubr.bf16.mxu0 %v304_v11  ;;  %v298_v13 = vld [vmem:[%s385_s1 + $0x48] sm:$0xff]   ;;  %v300_v15 = vld [vmem:[%s385_s1 + $0x40] sm:$0xff]  }
   0x7   :  { %267 = vmatpush3.bf16.msra.mxu0 %v289_v3  ;;  %v299_v14 = vld [vmem:[%s385_s1 + $0x8] sm:$0xff]   ;;  %v301_v16 = vld [vmem:[%s385_s1] sm:$0xff]  }
   0x8   :  { %268 = vmatprep.subr.bf16.mxu0 %v290_v4  ;;  %v256_v20 = vld [vmem:[%s387_s2] sm:$0xff]  }
   0x9   :  { %v257_v23 = vunpack.c.l.bf16 %v256_v20  ;;  %v258_v24 = vunpack.c.h.bf16 %v256_v20 }
   0xb   :  { %269 = vmatpush3.bf16.msra.mxu0 %v291_v5 }
   0xc   :  { %270 = vmatprep.subr.bf16.mxu0 %v292_v6 }
   0xf   :  { %271 = vmatpush3.bf16.msra.mxu0 %v293_v7 }
  0x10   :  { %272 = vmatprep.subr.bf16.mxu0 %v294_v8 }
  0x13   :  { %273 = vmatpush3.bf16.msra.mxu0 %v295_v9 }
  0x14   :  { %274 = vmatprep.subr.bf16.mxu0 %v296_v10 }
  0x17   :  { %275 = vmatpush3.bf16.msra.mxu0 %v297_v12 }
  0x18   :  { %276 = vmatprep.subr.bf16.mxu0 %v298_v13 }
  0x1b   :  { %277 = vmatpush3.bf16.msra.mxu0 %v299_v14 }
  0x1c   :  { %278 = vmatprep.subr.bf16.mxu0 %v300_v15 }
  0x1f   :  { %279 = vmatpush3.bf16.msra.mxu0 %v301_v16 }
  0x22   :  { %196 = vmatmul.mubr.bf16.vlgmr.msra.gmra.mxu0 %v302_v17 }
  0xe2   :  { %v280_v18 = vpop.f32.mrf.mxu0 }
  0xe4   :  { %v281_v19 = vpop.f32.mrf.mxu0 }
  0xe5   :  { %v282_v22 = vadd.f32 %v281_v19, %v280_v18 }
  0xe6   :  { %v283_v21 = vpop.f32.mrf.mxu0 }
  0xe7   :  { %v217_v27 = vadd.f32 %v282_v22, %v257_v23 }
  0xe8   :  { %v284_v25 = vpop.f32.mrf.mxu0 }
  0xe9   :  { %v285_v26 = vadd.f32 %v284_v25, %v283_v21 }
  0xeb   :  { %v218_v28 = vadd.f32 %v285_v26, %v258_v24 }
  0xed   :  { %v262_v29 = vpack.c.bf16 %v218_v28, %v217_v27 }
  0xef   :  { %263 = vst [vmem:[%s388_s3] sm:$0xff] %v262_v29  }

// kernel: metaformer_forward.89
= control target key start
LH: loop header
LB: loop body
LE: loop exit
PB: predicated region body
PF: predicated region fallthrough
CT: control target
= control target key end

     0   :  { %v55_v0 = vmov 0.0   ;;  %s92_s1 = inlined_call_operand.vmem [shape: f32[1,128], index: 1, kind: output, shape index: {0}]   ;;  %s93_s2 = inlined_call_operand.vmem [shape: f32[1,128], index: 2, kind: output, shape index: {1}]   ;;  %s94_s0 = inlined_call_operand.vmem [shape: bf16[16,128], index: 0, kind: input, shape index: {}]  }
   0x1   :  { %14 = vst [vmem:[%s92_s1] sm:$0x1] %v55_v0  ;;  %15 = vst [vmem:[%s93_s2] sm:$0x1] %v55_v0  ;;  %v51_v1 = vld [vmem:[%s94_s0] sm:$0xff]  }
   0x2   :  { %v52_v2 = vunpack.c.l.bf16 %v51_v1  ;;  %v53_v3 = vunpack.c.h.bf16 %v51_v1 }
   0x4   :  { %v21_v4 = vadd.f32 %v53_v3, %v52_v2  ;;  %v31_v5 = vmul.f32 %v52_v2, %v52_v2  ;;  %v32_v6 = vmul.f32 %v53_v3, %v53_v3 }
   0x6   :  { %v22_v7 = vrot.slane %v21_v4, 4  ;;  %v33_v8 = vadd.f32 %v32_v6, %v31_v5 }
   0x8   :  { %v23_v9 = vadd.f32 %v22_v7, %v21_v4  ;;  %v34_v10 = vrot.slane %v33_v8, 4  ;;  %v20_v17 = vld [vmem:[%s92_s1] sm:$0x1] }
   0x9   :  { %v30_v20 = vld [vmem:[%s93_s2] sm:$0x1] }
   0xa   :  { %v24_v11 = vrot.slane %v23_v9, 2  ;;  %v35_v12 = vadd.f32 %v34_v10, %v33_v8 }
   0xc   :  { %v25_v13 = vadd.f32 %v24_v11, %v23_v9  ;;  %v36_v14 = vrot.slane %v35_v12, 2 }
   0xe   :  { %v26_v15 = vrot.slane %v25_v13, 1  ;;  %v37_v16 = vadd.f32 %v36_v14, %v35_v12 }
  0x10   :  { %v27_v18 = vadd.f32 %v26_v15, %v25_v13  ;;  %v38_v19 = vrot.slane %v37_v16, 1 }
  0x12   :  { %v28_v21 = vadd.f32 %v27_v18, %v20_v17  ;;  %v39_v22 = vadd.f32 %v38_v19, %v37_v16 }
  0x14   :  { %29 = vst [vmem:[%s92_s1] sm:$0x1] %v28_v21  ;;  %v40_v23 = vadd.f32 %v39_v22, %v30_v20 }
  0x16   :  { %41 = vst [vmem:[%s93_s2] sm:$0x1] %v40_v23 }

// kernel: metaformer_forward.88
= control target key start
LH: loop header
LB: loop body
LE: loop exit
PB: predicated region body
PF: predicated region fallthrough
CT: control target
= control target key end

     0   :  { %s1038_s12 = smov 0   ;;  %s1040_s13 = smov 0   ;;  %s1151_s0 = inlined_call_operand.vmem [shape: bf16[16,1024], index: 0, kind: input, shape index: {}]   ;;  %s1152_s1 = inlined_call_operand.vmem [shape: bf16[1024,128], index: 1, kind: input, shape index: {}]   ;;  %s1153_s2 = inlined_call_operand.vmem [shape: f32[1,128], index: 2, kind: input, shape index: {}]   ;;  %s1154_s3 = inlined_call_operand.vmem [shape: bf16[16,128], index: 3, kind: output, shape index: {}]  }
   0x1   :  { %s1042_s14 = smov 0   ;;  %s1044_s15 = smov 0  }
   0x2   :  { %s1046_s16 = smov 0  }
   0x3 LB: > { %s25_s17 = sadd.s32 1, %s1011_s15  ;;  %p48_p1 = scmp.ne.s32.totalorder %s1003_s13, %s999_s12  ;;  %s1015_s16 = sphi %s1046_s16, %s13_s16   ;;  %s1011_s15 = sphi %s1044_s15, %s1158_s15   ;;  %s1007_s14 = sphi %s1042_s14, %s1157_s14   ;;  %s1003_s13 = sphi %s1040_s13, %s1156_s13   ;;  %s999_s12 = sphi %s1038_s12, %s1155_s12  }
   0x4   : > { %p26_p0 = scmp.ge.s32.totalorder %s25_s17, 2  ;;  %p49_p2 = scmp.eq.s32.totalorder %s1015_s16, 0 }
   0x5   : > { %s41_s19 = sadd.s32 1, %s1003_s13  ;;  %p793_p5 = scmp.ge.s32.totalorder %s1015_s16, 2 }
   0x6   : > { %s1160_s17 = smov (%p26_p0, %s25_s17), 0  ;;  %p50_p3 = por %p49_p2, %p48_p1 }
   0x7   : > { %s37_s18 = ssub.s32 %s1011_s15, %s1160_s17  ;;  %162 = sbr.rel (%p793_p5) target bundleno = 18 (0x12), region = 20 }
   0x8   : > { %p39_p4 = scmp.eq.s32.totalorder %s37_s18, 0 }
   0xa   : > { %s1073_s20 = scalar_select %p39_p4, %s1003_s13, %s41_s19  }
   0xc   : > { %165 = sbr.rel (!%p50_p3) target bundleno = 18 (0x12), region = 24  ;;  %s167_s21 = sand.u32 (%p50_p3), 1, %s1003_s13  }
   0xd   : > { %s846_s22 = sshll.u32 (%p50_p3), %s1011_s15, 4  ;;  %s794_s23 = sshll.u32 (%p50_p3), %s167_s21, 5 }
   0xe   : > { %s175_s26 = scalar_lea.vmem (%p50_p3), %s1151_s0, %s846_s22  ;;  %s169_s27 = scalar_lea.vmem (%p50_p3), [#allocation3], %s794_s23 }
   0xf   : > { %v188_v0 = vld [vmem:[%s175_s26] sm:$0xff] (%p50_p3)  ;;  %v190_v1 = vld [vmem:[%s175_s26 + $0x8] sm:$0xff] (%p50_p3) }
  0x10   : > { %v192_v2 = vld [vmem:[%s175_s26 + $0x20] sm:$0xff] (%p50_p3)  ;;  %189 = vst [vmem:[%s169_s27] sm:$0xff] (%p50_p3), %v188_v0  ;;  %191 = vst [vmem:[%s169_s27 + $0x8] sm:$0xff] (%p50_p3), %v190_v1  ;;  %v194_v3 = vld [vmem:[%s175_s26 + $0x28] sm:$0xff] (%p50_p3) }
  0x11   : > { %193 = vst [vmem:[%s169_s27 + $0x10] sm:$0xff] %v192_v2  ;;  %195 = vst [vmem:[%s169_s27 + $0x18] sm:$0xff] %v194_v3 }
  0x12 PF: > { %p797_p6 = scmp.ge.s32.totalorder %s1015_s16, 1  ;;  %p212_p7 = scmp.lt.s32.totalorder %s1015_s16, 3 }
  0x14   : > { %p213_p8 = pnand %p797_p6, %p212_p7 }
  0x15   : > { %s219_s28 = sand.u32 (!%p213_p8), 1, %s999_s12   ;;  %s799_s29 = sshll.u32 (!%p213_p8), %s1007_s14, 6 }
  0x16   : > { %216 = sbr.rel (%p213_p8) target bundleno = 287 (0x11f), region = 51  ;;  %s798_s30 = sshll.u32 (!%p213_p8), %s219_s28, 5 }
  0x17   : > { %p259_p9 = scmp.lt.s32.totalorder (!%p213_p8), %s799_s29, 127  ;;  %s1090_s8 = scalar_lea.vmem (!%p213_p8), [#allocation3], %s798_s30 }
  0x18   : > { %p801_p10 = scmp.ne.s32.totalorder (!%p213_p8), %s1007_s14, 0 }
  0x1b   : > { %s1162_s29 = smov (!%p259_p9, %s799_s29), 127  ;;  %283 = sbr.rel (%p801_p10) target bundleno = 34 (0x22), region = 59 }
  0x1c   : > { %s800_s4 = sshll.u32 %s1162_s29, 2 }
  0x1d   : > { %s1088_s7 = scalar_lea.vmem %s1152_s1, %s800_s4 }
  0x20   : > { %v1017_v4 = vmov 0.0  }
  0x21   : > { %284 = vst [vmem:[#allocation2] sm:$0xff] %v1017_v4  ;;  %285 = vst [vmem:[#allocation2 + $0x8] sm:$0xff] %v1017_v4 }
  0x22 PF: > { %v939_v5 = vld [vmem:[%s1088_s7 + $0x78] sm:$0xff]   ;;  %v943_v9 = vld [vmem:[%s1088_s7 + $0x70] sm:$0xff]   ;;  %v947_v13 = vld [vmem:[%s1088_s7 + $0x68] sm:$0xff]   ;;  %p838_p11 = scmp.ne.s32.totalorder %s1007_s14, 1 }
  0x23   : > { %v940_v6 = vld [vmem:[%s1088_s7 + $0xf8] sm:$0xff]   ;;  %854 = vmatprep.subr.bf16.mxu0 %v939_v5  ;;  %v944_v10 = vld [vmem:[%s1088_s7 + $0xf0] sm:$0xff]   ;;  %v948_v14 = vld [vmem:[%s1088_s7 + $0xe8] sm:$0xff]  }
  0x24   : > { %v941_v7 = vld [vmem:[%s1088_s7 + $0x38] sm:$0xff]   ;;  %876 = vmatprep.subr.bf16.mxu1 %v940_v6  ;;  %v945_v11 = vld [vmem:[%s1088_s7 + $0x30] sm:$0xff]   ;;  %v949_v15 = vld [vmem:[%s1088_s7 + $0x28] sm:$0xff]  }
  0x25   : > { %v942_v8 = vld [vmem:[%s1088_s7 + $0xb8] sm:$0xff]   ;;  %855 = vmatpush3.bf16.msra.mxu0 %v941_v7  ;;  %v946_v12 = vld [vmem:[%s1088_s7 + $0xb0] sm:$0xff]   ;;  %v950_v16 = vld [vmem:[%s1088_s7 + $0xa8] sm:$0xff]  }
  0x26   : > { %877 = vmatpush3.bf16.msra.mxu1 %v942_v8  ;;  %856 = vmatprep.subr.bf16.mxu0 %v943_v9  ;;  %v951_v17 = vld [vmem:[%s1088_s7 + $0x60] sm:$0xff]   ;;  %v955_v21 = vld [vmem:[%s1088_s7 + $0x58] sm:$0xff]   ;;  %v959_v25 = vld [vmem:[%s1088_s7 + $0x50] sm:$0xff]  }
  0x27   : > { %878 = vmatprep.subr.bf16.mxu1 %v944_v10  ;;  %v952_v18 = vld [vmem:[%s1088_s7 + $0xe0] sm:$0xff]   ;;  %v956_v22 = vld [vmem:[%s1088_s7 + $0xd8] sm:$0xff]   ;;  %v960_v26 = vld [vmem:[%s1088_s7 + $0xd0] sm:$0xff]  }
  0x28   : > { %v953_v19 = vld [vmem:[%s1088_s7 + $0x20] sm:$0xff]   ;;  %v957_v23 = vld [vmem:[%s1088_s7 + $0x18] sm:$0xff]   ;;  %v961_v27 = vld [vmem:[%s1088_s7 + $0x10] sm:$0xff]  }
  0x29   : > { %857 = vmatpush3.bf16.msra.mxu0 %v945_v11  ;;  %v954_v20 = vld [vmem:[%s1088_s7 + $0xa0] sm:$0xff]   ;;  %v958_v24 = vld [vmem:[%s1088_s7 + $0x98] sm:$0xff]   ;;  %v962_v28 = vld [vmem:[%s1088_s7 + $0x90] sm:$0xff]  }
  0x2a   : > { %879 = vmatpush3.bf16.msra.mxu1 %v946_v12  ;;  %858 = vmatprep.subr.bf16.mxu0 %v947_v13  ;;  %v963_v29 = vld [vmem:[%s1088_s7 + $0x48] sm:$0xff]   ;;  %v967_v33 = vld [vmem:[%s1088_s7 + $0x40] sm:$0xff]  }
  0x2b   : > { %880 = vmatprep.subr.bf16.mxu1 %v948_v14  ;;  %v964_v30 = vld [vmem:[%s1088_s7 + $0xc8] sm:$0xff]   ;;  %v968_v34 = vld [vmem:[%s1088_s7 + $0xc0] sm:$0xff]  }
  0x2c   : > { %v965_v31 = vld [vmem:[%s1088_s7 + $0x8] sm:$0xff]   ;;  %v969_v35 = vld [vmem:[%s1088_s7] sm:$0xff]  }
  0x2d   : > { %859 = vmatpush3.bf16.msra.mxu0 %v949_v15  ;;  %v966_v32 = vld [vmem:[%s1088_s7 + $0x88] sm:$0xff]   ;;  %v970_v36 = vld [vmem:[%s1088_s7 + $0x80] sm:$0xff]  }
  0x2e   : > { %881 = vmatpush3.bf16.msra.mxu1 %v950_v16  ;;  %860 = vmatprep.subr.bf16.mxu0 %v951_v17  ;;  %v971_v37 = vld [vmem:[%s1090_s8] ss:$16 sps:$4 sm:$0xff]   ;;  %v973_v38 = vld [vmem:[%s1090_s8 + $0x4] ss:$16 sps:$4 sm:$0xff]   ;;  %v974_v39 = vld [vmem:[%s1090_s8 + $0x8] ss:$16 sps:$4 sm:$0xff]  }
  0x2f   : > { %882 = vmatprep.subr.bf16.mxu1 %v952_v18  ;;  %v976_v40 = vld [vmem:[%s1090_s8 + $0xc] ss:$16 sps:$4 sm:$0xff]   ;;  %600 = vmatprep.mubr.bf16.mxu0 %v973_v38  ;;  %v290_v48 = vld [vmem:[#allocation2] sm:$0xff] }
  0x30   : > { %641 = vmatprep.mubr.bf16.mxu1 %v976_v40  ;;  %v291_v56 = vld [vmem:[#allocation2 + $0x8] sm:$0xff] }
  0x31   : > { %861 = vmatpush3.bf16.msra.mxu0 %v953_v19 }
  0x32   : > { %883 = vmatpush3.bf16.msra.mxu1 %v954_v20  ;;  %862 = vmatprep.subr.bf16.mxu0 %v955_v21 }
  0x33   : > { %884 = vmatprep.subr.bf16.mxu1 %v956_v22 }
  0x35   : > { %863 = vmatpush3.bf16.msra.mxu0 %v957_v23 }
  0x36   : > { %885 = vmatpush3.bf16.msra.mxu1 %v958_v24  ;;  %864 = vmatprep.subr.bf16.mxu0 %v959_v25 }
  0x37   : > { %886 = vmatprep.subr.bf16.mxu1 %v960_v26 }
  0x39   : > { %865 = vmatpush3.bf16.msra.mxu0 %v961_v27 }
  0x3a   : > { %887 = vmatpush3.bf16.msra.mxu1 %v962_v28  ;;  %866 = vmatprep.subr.bf16.mxu0 %v963_v29 }
  0x3b   : > { %888 = vmatprep.subr.bf16.mxu1 %v964_v30 }
  0x3d   : > { %867 = vmatpush3.bf16.msra.mxu0 %v965_v31 }
  0x3e   : > { %889 = vmatpush3.bf16.msra.mxu1 %v966_v32  ;;  %868 = vmatprep.subr.bf16.mxu0 %v967_v33 }
  0x3f   : > { %890 = vmatprep.subr.bf16.mxu1 %v968_v34 }
  0x41   : > { %869 = vmatpush3.bf16.msra.mxu0 %v969_v35 }
  0x42   : > { %891 = vmatpush3.bf16.msra.mxu1 %v970_v36 }
  0x44   : > { %601 = vmatmul.mubr.bf16.vlgmr.msra.gmra.mxu0 %v971_v37 }
  0x45   : > { %642 = vmatmul.mubr.bf16.vlgmr.msra.gmra.mxu1 %v974_v39 }
 0x104   : > { %v870_v41 = vpop.f32.mrf.mxu0 }
 0x105   : > { %v892_v42 = vpop.f32.mrf.mxu1 }
 0x106   : > { %v871_v43 = vpop.f32.mrf.mxu0 }
 0x107   : > { %v872_v44 = vadd.f32 %v871_v43, %v870_v41  ;;  %v893_v45 = vpop.f32.mrf.mxu1 }
 0x108   : > { %v894_v46 = vadd.f32 %v893_v45, %v892_v42  ;;  %v873_v47 = vpop.f32.mrf.mxu0 }
 0x109   : > { %v895_v49 = vpop.f32.mrf.mxu1 }
 0x10a   : > { %v644_v50 = vadd.f32 %v894_v46, %v872_v44  ;;  %v874_v51 = vpop.f32.mrf.mxu0 }
 0x10b   : > { %v875_v52 = vadd.f32 %v874_v51, %v873_v47  ;;  %v896_v53 = vpop.f32.mrf.mxu1 }
 0x10c   : > { %v650_v54 = vadd.f32 %v644_v50, %v290_v48  ;;  %v897_v55 = vadd.f32 %v896_v53, %v895_v49 }
 0x10e   : > { %652 = vst [vmem:[#allocation2] sm:$0xff] %v650_v54  ;;  %v647_v57 = vadd.f32 %v897_v55, %v875_v52  ;;  %657 = sbr.rel (%p838_p11) target bundleno = 287 (0x11f), region = 63 }
 0x110   : > { %v651_v58 = vadd.f32 %v647_v57, %v291_v56 }
 0x112   : > { %653 = vst [vmem:[#allocation2 + $0x8] sm:$0xff] %v651_v58 }
 0x113   : > { %v839_v61 = vld [vmem:[%s1153_s2] ss:$0 sm:$0xff] }
 0x115   : > { %v658_v59 = vld [vmem:[#allocation2] sm:$0xff] }
 0x116   : > { %v667_v62 = vadd.f32 %v839_v61, %v658_v59 }
 0x119   : > { %v659_v60 = vld [vmem:[#allocation2 + $0x8] sm:$0xff] }
 0x11a   : > { %v668_v63 = vadd.f32 %v839_v61, %v659_v60 }
 0x11c   : > { %v852_v0 = vpack.c.bf16 %v668_v63, %v667_v62 }
 0x11e   : > { %853 = vst [vmem:[%s1154_s3] sm:$0xff] %v852_v0  }
 0x11f PF: > { %s13_s16 = sadd.s32 1, %s1015_s16   ;;  %s1155_s12 = smov %s1003_s13 }
 0x120   : > { %p10_p12 = scmp.ge.s32.totalorder %s13_s16, 4   ;;  %s1156_s13 = smov %s1073_s20 }
 0x121   : > { %s1157_s14 = smov %s1011_s15  ;;  %s1158_s15 = smov %s1160_s17 }
 0x122   :  { %12 = sbr.rel (!%p10_p12) target bundleno = 3 (0x3), region = 104 }

// kernel: metaformer_forward.94
= control target key start
LH: loop header
LB: loop body
LE: loop exit
PB: predicated region body
PF: predicated region fallthrough
CT: control target
= control target key end

     0   :  { %s930_s15 = smov 0   ;;  %s932_s16 = smov 0   ;;  %s1051_s0 = inlined_call_operand.vmem [shape: bf16[16,128], index: 0, kind: input, shape index: {}]   ;;  %s1052_s1 = inlined_call_operand.vmem [shape: bf16[128,512], index: 1, kind: input, shape index: {}]   ;;  %s1053_s2 = inlined_call_operand.vmem [shape: f32[1,128], index: 2, kind: input, shape index: {}]   ;;  %s1054_s3 = inlined_call_operand.vmem [shape: f32[1,128], index: 3, kind: input, shape index: {}]   ;;  %s1055_s4 = inlined_call_operand.vmem [shape: bf16[16,512], index: 4, kind: output, shape index: {}]  }
   0x1   :  { %s934_s17 = smov 0   ;;  %s936_s18 = smov 0  }
   0x2   :  { %s938_s19 = smov 0  }
   0x3 LB: > { %s29_s20 = sadd.s32 1, %s898_s18  ;;  %s753_s21 = sadd.s32 4294967295, %s902_s19   ;;  %s902_s19 = sphi %s938_s19, %s14_s19   ;;  %s898_s18 = sphi %s936_s18, %s1060_s18   ;;  %s894_s17 = sphi %s934_s17, %s1059_s17   ;;  %s890_s16 = sphi %s932_s16, %s1058_s16   ;;  %s886_s15 = sphi %s930_s15, %s1057_s15  }
   0x4   : > { %p31_p0 = scmp.ge.s32.totalorder %s29_s20, 2  ;;  %p77_p1 = scmp.ne.s32.totalorder %s890_s16, %s886_s15 }
   0x5   : > { %p78_p2 = scmp.eq.s32.totalorder %s902_s19, 0  ;;  %p161_p4 = scmp.eq.s32.totalorder %s753_s21, 1 }
   0x6   : > { %s1062_s20 = smov (%p31_p0, %s29_s20), 0  ;;  %s70_s23 = sadd.s32 1, %s890_s16 }
   0x7   : > { %p79_p3 = por %p78_p2, %p77_p1  ;;  %s66_s22 = ssub.s32 %s898_s18, %s1062_s20 }
   0x8   : > { %p68_p5 = scmp.eq.s32.totalorder %s66_s22, 0  ;;  %p965_p6 = por %p161_p4, %p77_p1 }
   0x9   : > { %p759_p7 = scmp.ge.s32.totalorder %s902_s19, 2 }
   0xa   : > { %s970_s25 = scalar_select %p68_p5, %s890_s16, %s70_s23  }
   0xb   : > { %207 = sbr.rel (%p759_p7) target bundleno = 28 (0x1c), region = 28 }
  0x10   : > { %210 = sbr.rel (!%p79_p3) target bundleno = 28 (0x1c), region = 32  ;;  %s212_s26 = sand.u32 (%p79_p3), 1, %s890_s16  }
  0x11   : > { %s791_s27 = sshll.u32 (%p79_p3), %s898_s18, 3  ;;  %s760_s28 = sshll.u32 (%p79_p3), %s212_s26, 7 }
  0x12   : > { %s978_s5 = scalar_lea.vmem (%p79_p3), %s1052_s1, %s791_s27  ;;  %s214_s6 = scalar_lea.vmem (%p79_p3), [#allocation3], %s760_s28 }
  0x13   : > { %v279_v0 = vld [vmem:[%s978_s5] sm:$0xff] (%p79_p3)  ;;  %v281_v1 = vld [vmem:[%s978_s5 + $0x10] sm:$0xff] (%p79_p3) }
  0x14   : > { %v283_v2 = vld [vmem:[%s978_s5 + $0x20] sm:$0xff] (%p79_p3)  ;;  %280 = vst [vmem:[%s214_s6] sm:$0xff] (%p79_p3), %v279_v0  ;;  %282 = vst [vmem:[%s214_s6 + $0x8] sm:$0xff] (%p79_p3), %v281_v1  ;;  %v285_v3 = vld [vmem:[%s978_s5 + $0x30] sm:$0xff] (%p79_p3) }
  0x15   : > { %284 = vst [vmem:[%s214_s6 + $0x10] sm:$0xff] %v283_v2  ;;  %v287_v4 = vld [vmem:[%s978_s5 + $0x40] sm:$0xff]  ;;  %v289_v5 = vld [vmem:[%s978_s5 + $0x50] sm:$0xff]  ;;  %286 = vst [vmem:[%s214_s6 + $0x18] sm:$0xff] %v285_v3 }
  0x16   : > { %288 = vst [vmem:[%s214_s6 + $0x20] sm:$0xff] %v287_v4  ;;  %290 = vst [vmem:[%s214_s6 + $0x28] sm:$0xff] %v289_v5  ;;  %v291_v6 = vld [vmem:[%s978_s5 + $0x60] sm:$0xff]  ;;  %v293_v7 = vld [vmem:[%s978_s5 + $0x70] sm:$0xff] }
  0x17   : > { %v295_v8 = vld [vmem:[%s978_s5 + $0x80] sm:$0xff]  ;;  %292 = vst [vmem:[%s214_s6 + $0x30] sm:$0xff] %v291_v6  ;;  %294 = vst [vmem:[%s214_s6 + $0x38] sm:$0xff] %v293_v7  ;;  %v297_v9 = vld [vmem:[%s978_s5 + $0x90] sm:$0xff] }
  0x18   : > { %296 = vst [vmem:[%s214_s6 + $0x40] sm:$0xff] %v295_v8  ;;  %v299_v10 = vld [vmem:[%s978_s5 + $0xa0] sm:$0xff]  ;;  %v301_v11 = vld [vmem:[%s978_s5 + $0xb0] sm:$0xff]  ;;  %298 = vst [vmem:[%s214_s6 + $0x48] sm:$0xff] %v297_v9 }
  0x19   : > { %300 = vst [vmem:[%s214_s6 + $0x50] sm:$0xff] %v299_v10  ;;  %302 = vst [vmem:[%s214_s6 + $0x58] sm:$0xff] %v301_v11  ;;  %v303_v12 = vld [vmem:[%s978_s5 + $0xc0] sm:$0xff]  ;;  %v305_v13 = vld [vmem:[%s978_s5 + $0xd0] sm:$0xff] }
  0x1a   : > { %v307_v14 = vld [vmem:[%s978_s5 + $0xe0] sm:$0xff]  ;;  %304 = vst [vmem:[%s214_s6 + $0x60] sm:$0xff] %v303_v12  ;;  %306 = vst [vmem:[%s214_s6 + $0x68] sm:$0xff] %v305_v13  ;;  %v309_v15 = vld [vmem:[%s978_s5 + $0xf0] sm:$0xff] }
  0x1b   : > { %308 = vst [vmem:[%s214_s6 + $0x70] sm:$0xff] %v307_v14  ;;  %310 = vst [vmem:[%s214_s6 + $0x78] sm:$0xff] %v309_v15 }
  0x1c PF: > { %p763_p8 = scmp.ge.s32.totalorder %s902_s19, 1  ;;  %p315_p9 = scmp.lt.s32.totalorder %s902_s19, 3 }
  0x1e   : > { %p316_p10 = pnand %p763_p8, %p315_p9 }
  0x1f   : > { %s322_s7 = sand.u32 (!%p316_p10), 1, %s886_s15  }
  0x20   : > { %319 = sbr.rel (%p316_p10) target bundleno = 282 (0x11a), region = 70  ;;  %s764_s8 = sshll.u32 (!%p316_p10), %s322_s7, 7 }
  0x21   : > { %s1001_s9 = scalar_lea.vmem (!%p316_p10), [#allocation3], %s764_s8  ;;  %s765_s22 = sshll.u32 (!%p316_p10), %s322_s7, 4 }
  0x22   : > { %s359_s23 = scalar_lea.vmem (!%p316_p10), [#allocation4], %s765_s22 }
  0x25   : > { %v904_v16 = vmov 0   ;;  %v840_v17 = vld [vmem:[%s1001_s9 + $0x74] ss:$8 sps:$4 sm:$0xff]   ;;  %v842_v18 = vld [vmem:[%s1001_s9 + $0x70] ss:$8 sps:$4 sm:$0xff]   ;;  %v796_v27 = vld [vmem:[%s1051_s0] sm:$0xff]  }
  0x26   : > { %543 = vmatprep.mubr.bf16.mxu0 %v904_v16  ;;  %511 = vmatprep.subr.bf16.mxu0 %v840_v17  ;;  %v843_v19 = vld [vmem:[%s1001_s9 + $0x64] ss:$8 sps:$4 sm:$0xff]   ;;  %v845_v20 = vld [vmem:[%s1001_s9 + $0x60] ss:$8 sps:$4 sm:$0xff]   ;;  %v846_v21 = vld [vmem:[%s1001_s9 + $0x54] ss:$8 sps:$4 sm:$0xff]   ;;  %v797_v29 = vunpack.c.l.bf16 %v796_v27  ;;  %v798_v30 = vunpack.c.h.bf16 %v796_v27 }
  0x27   : > { %512 = vmatpush1.bf16.msra.mxu0 %v842_v18  ;;  %v848_v22 = vld [vmem:[%s1001_s9 + $0x50] ss:$8 sps:$4 sm:$0xff]   ;;  %v849_v23 = vld [vmem:[%s1001_s9 + $0x44] ss:$8 sps:$4 sm:$0xff]   ;;  %v851_v24 = vld [vmem:[%s1001_s9 + $0x40] ss:$8 sps:$4 sm:$0xff]  }
  0x28   : > { %513 = vmatprep.subr.bf16.mxu0 %v843_v19  ;;  %v852_v25 = vld [vmem:[%s1001_s9 + $0x34] ss:$8 sps:$4 sm:$0xff]   ;;  %v854_v26 = vld [vmem:[%s1001_s9 + $0x30] ss:$8 sps:$4 sm:$0xff]   ;;  %v855_v28 = vld [vmem:[%s1001_s9 + $0x24] ss:$8 sps:$4 sm:$0xff]  }
  0x29   : > { %v857_v31 = vld [vmem:[%s1001_s9 + $0x20] ss:$8 sps:$4 sm:$0xff]   ;;  %v858_v33 = vld [vmem:[%s1001_s9 + $0x14] ss:$8 sps:$4 sm:$0xff]   ;;  %v860_v36 = vld [vmem:[%s1001_s9 + $0x10] ss:$8 sps:$4 sm:$0xff]  }
  0x2a   : > { %v766_v32 = vld [vmem:[%s1053_s2] ss:$0 sm:$0xff]  ;;  %v861_v38 = vld [vmem:[%s1001_s9 + $0x4] ss:$8 sps:$4 sm:$0xff]   ;;  %s794_s26 = sshll.u32 (%p965_p6), %s894_s17, 3 }
  0x2b   : > { %514 = vmatpush1.bf16.msra.mxu0 %v845_v20  ;;  %v399_v34 = vmul.f32 %v797_v29, %v766_v32  ;;  %v400_v35 = vmul.f32 %v798_v30, %v766_v32  ;;  %v767_v37 = vld [vmem:[%s1054_s3] ss:$0 sm:$0xff]  ;;  %s599_s28 = scalar_lea.vmem (%p965_p6), %s1055_s4, %s794_s26 }
  0x2c   : > { %515 = vmatprep.subr.bf16.mxu0 %v846_v21  ;;  %v863_v41 = vld [vmem:[%s1001_s9] ss:$8 sps:$4 sm:$0xff]  }
  0x2d   : > { %v408_v39 = vadd.f32 %v767_v37, %v399_v34  ;;  %v409_v40 = vadd.f32 %v767_v37, %v400_v35 }
  0x2f   : > { %516 = vmatpush1.bf16.msra.mxu0 %v848_v22  ;;  %v410_v42 = vpack.c.bf16 %v409_v40, %v408_v39 }
  0x30   : > { %517 = vmatprep.subr.bf16.mxu0 %v849_v23 }
  0x33   : > { %518 = vmatpush1.bf16.msra.mxu0 %v851_v24 }
  0x34   : > { %519 = vmatprep.subr.bf16.mxu0 %v852_v25 }
  0x37   : > { %520 = vmatpush1.bf16.msra.mxu0 %v854_v26 }
  0x38   : > { %521 = vmatprep.subr.bf16.mxu0 %v855_v28 }
  0x3b   : > { %522 = vmatpush1.bf16.msra.mxu0 %v857_v31 }
  0x3c   : > { %523 = vmatprep.subr.bf16.mxu0 %v858_v33 }
  0x3f   : > { %524 = vmatpush1.bf16.msra.mxu0 %v860_v36 }
  0x40   : > { %525 = vmatprep.subr.bf16.mxu0 %v861_v38 }
  0x43   : > { %526 = vmatpush1.bf16.msra.mxu0 %v863_v41 }
  0x46   : > { %544 = vmatmul.mubr.bf16.vlgmr.msra.gmra.mxu0 %v410_v42 }
 0x106   : > { %v545_v43 = vpop.f32.mrf.mxu0 }
 0x107   : > { %v569_v45 = vmax.f32 %v545_v43, 0.0 }
 0x108   : > { %v547_v44 = vpop.f32.mrf.mxu0 }
 0x109   : > { %v570_v46 = vmax.f32 %v547_v44, 0.0 }
 0x10a   : > { %v549_v47 = vpop.f32.mrf.mxu0 }
 0x10b   : > { %v792_v48 = vpack.c.bf16 %v570_v46, %v569_v45  ;;  %v571_v50 = vmax.f32 %v549_v47, 0.0 }
 0x10c   : > { %v551_v49 = vpop.f32.mrf.mxu0 }
 0x10d   : > { %585 = vst [vmem:[%s359_s23] sm:$0xff] %v792_v48  ;;  %v572_v51 = vmax.f32 %v551_v49, 0.0  ;;  %593 = sbr.rel (!%p965_p6) target bundleno = 282 (0x11a), region = 86 }
 0x10f   : > { %v793_v52 = vpack.c.bf16 %v572_v51, %v571_v50 }
 0x111   : > { %586 = vst [vmem:[%s359_s23 + $0x8] sm:$0xff] %v793_v52 }
 0x114   : > { %v630_v53 = vld [vmem:[%s359_s23] sm:$0xff] }
 0x115   : > { %631 = vst [vmem:[%s599_s28] sm:$0xff] %v630_v53 }
 0x118   : > { %v632_v54 = vld [vmem:[%s359_s23 + $0x8] sm:$0xff] }
 0x119   : > { %633 = vst [vmem:[%s599_s28 + $0x10] sm:$0xff] %v632_v54 }
 0x11a PF: > { %s14_s19 = sadd.s32 1, %s902_s19   ;;  %s1057_s15 = smov %s890_s16 }
 0x11b   : > { %p11_p11 = scmp.ge.s32.totalorder %s14_s19, 4   ;;  %s1058_s16 = smov %s970_s25 }
 0x11c   : > { %s1059_s17 = smov %s898_s18  ;;  %s1060_s18 = smov %s1062_s20 }
 0x11d   :  { %13 = sbr.rel (!%p11_p11) target bundleno = 3 (0x3), region = 164 }

// kernel: metaformer_forward.96
= control target key start
LH: loop header
LB: loop body
LE: loop exit
PB: predicated region body
PF: predicated region fallthrough
CT: control target
= control target key end

     0   :  { %v16_v0 = vlaneseq  ;;  %vm24_vm0 = vcmask 1041409   ;;  %s51_s0 = inlined_call_operand.vmem [shape: bf16[2,1,128], index: 0, kind: input, shape index: {}]   ;;  %s52_s1 = inlined_call_operand.vmem [shape: f32[2,128], index: 1, kind: output, shape index: {}]  }
   0x1   :  { %v8_v1 = vld [vmem:[%s51_s0] sm:$0x1]  ;;  %v9_v2 = vld [vmem:[%s51_s0 + $0x1] sm:$0x1] }
   0x2   :  { %v10_v3 = vunpack.c.l.bf16 %v8_v1  ;;  %v11_v4 = vunpack.c.l.bf16 %v9_v2  ;;  %v17_v5 = vshrl.u32 %v16_v0, 7 }
   0x4   :  { %v18_v6 = vsub.s32 0, %v17_v5 }
   0x6   :  { %v19_v7 = vrot.slane %v10_v3, %v18_v6  ;;  %v23_v8 = vrot.slane %v11_v4, %v18_v6 }
   0x8   :  { %v25_v9 = vsel %vm24_vm0, %v23_v8, %v19_v7 }
   0x9   :  { %27 = vst [vmem:[%s52_s1] sm:$0x3] %v25_v9 }

// kernel: metaformer_forward.95
= control target key start
LH: loop header
LB: loop body
LE: loop exit
PB: predicated region body
PF: predicated region fallthrough
CT: control target
= control target key end

     0   :  { %s679_s1 = inlined_call_operand.vmem [shape: bf16[512,128], index: 1, kind: input, shape index: {}]   ;;  %s680_s0 = inlined_call_operand.vmem [shape: bf16[16,512], index: 0, kind: input, shape index: {}]   ;;  %s681_s2 = inlined_call_operand.vmem [shape: bf16[16,128], index: 2, kind: input, shape index: {}]   ;;  %s682_s3 = inlined_call_operand.vmem [shape: bf16[16,128], index: 3, kind: output, shape index: {}]  }
   0x1   :  { %v507_v0 = vld [vmem:[%s679_s1 + $0x78] sm:$0xff]   ;;  %v511_v4 = vld [vmem:[%s679_s1 + $0x70] sm:$0xff]   ;;  %v515_v8 = vld [vmem:[%s679_s1 + $0x68] sm:$0xff]  }
   0x2   :  { %v508_v1 = vld [vmem:[%s679_s1 + $0xf8] sm:$0xff]   ;;  %463 = vmatprep.subr.bf16.mxu0 %v507_v0  ;;  %v512_v5 = vld [vmem:[%s679_s1 + $0xf0] sm:$0xff]   ;;  %v516_v9 = vld [vmem:[%s679_s1 + $0xe8] sm:$0xff]  }
   0x3   :  { %v509_v2 = vld [vmem:[%s679_s1 + $0x38] sm:$0xff]   ;;  %485 = vmatprep.subr.bf16.mxu1 %v508_v1  ;;  %v513_v6 = vld [vmem:[%s679_s1 + $0x30] sm:$0xff]   ;;  %v517_v10 = vld [vmem:[%s679_s1 + $0x28] sm:$0xff]  }
   0x4   :  { %v510_v3 = vld [vmem:[%s679_s1 + $0xb8] sm:$0xff]   ;;  %464 = vmatpush3.bf16.msra.mxu0 %v509_v2  ;;  %v514_v7 = vld [vmem:[%s679_s1 + $0xb0] sm:$0xff]   ;;  %v518_v11 = vld [vmem:[%s679_s1 + $0xa8] sm:$0xff]  }
   0x5   :  { %486 = vmatpush3.bf16.msra.mxu1 %v510_v3  ;;  %465 = vmatprep.subr.bf16.mxu0 %v511_v4  ;;  %v519_v12 = vld [vmem:[%s679_s1 + $0x60] sm:$0xff]   ;;  %v523_v16 = vld [vmem:[%s679_s1 + $0x58] sm:$0xff]   ;;  %v527_v20 = vld [vmem:[%s679_s1 + $0x50] sm:$0xff]  }
   0x6   :  { %487 = vmatprep.subr.bf16.mxu1 %v512_v5  ;;  %v520_v13 = vld [vmem:[%s679_s1 + $0xe0] sm:$0xff]   ;;  %v524_v17 = vld [vmem:[%s679_s1 + $0xd8] sm:$0xff]   ;;  %v528_v21 = vld [vmem:[%s679_s1 + $0xd0] sm:$0xff]  }
   0x7   :  { %v521_v14 = vld [vmem:[%s679_s1 + $0x20] sm:$0xff]   ;;  %v525_v18 = vld [vmem:[%s679_s1 + $0x18] sm:$0xff]   ;;  %v529_v22 = vld [vmem:[%s679_s1 + $0x10] sm:$0xff]  }
   0x8   :  { %466 = vmatpush3.bf16.msra.mxu0 %v513_v6  ;;  %v522_v15 = vld [vmem:[%s679_s1 + $0xa0] sm:$0xff]   ;;  %v526_v19 = vld [vmem:[%s679_s1 + $0x98] sm:$0xff]   ;;  %v530_v23 = vld [vmem:[%s679_s1 + $0x90] sm:$0xff]  }
   0x9   :  { %488 = vmatpush3.bf16.msra.mxu1 %v514_v7  ;;  %467 = vmatprep.subr.bf16.mxu0 %v515_v8  ;;  %v531_v24 = vld [vmem:[%s679_s1 + $0x48] sm:$0xff]   ;;  %v535_v28 = vld [vmem:[%s679_s1 + $0x40] sm:$0xff]  }
   0xa   :  { %489 = vmatprep.subr.bf16.mxu1 %v516_v9  ;;  %v532_v25 = vld [vmem:[%s679_s1 + $0xc8] sm:$0xff]   ;;  %v536_v29 = vld [vmem:[%s679_s1 + $0xc0] sm:$0xff]  }
   0xb   :  { %v533_v26 = vld [vmem:[%s679_s1 + $0x8] sm:$0xff]   ;;  %v537_v30 = vld [vmem:[%s679_s1] sm:$0xff]  }
   0xc   :  { %468 = vmatpush3.bf16.msra.mxu0 %v517_v10  ;;  %v534_v27 = vld [vmem:[%s679_s1 + $0x88] sm:$0xff]   ;;  %v538_v31 = vld [vmem:[%s679_s1 + $0x80] sm:$0xff]  }
   0xd   :  { %490 = vmatpush3.bf16.msra.mxu1 %v518_v11  ;;  %469 = vmatprep.subr.bf16.mxu0 %v519_v12  ;;  %v539_v32 = vld [vmem:[%s680_s0] ss:$16 sps:$4 sm:$0xff]   ;;  %v541_v33 = vld [vmem:[%s680_s0 + $0x4] ss:$16 sps:$4 sm:$0xff]   ;;  %v542_v34 = vld [vmem:[%s680_s0 + $0x8] ss:$16 sps:$4 sm:$0xff]  }
   0xe   :  { %491 = vmatprep.subr.bf16.mxu1 %v520_v13  ;;  %v544_v35 = vld [vmem:[%s680_s0 + $0xc] ss:$16 sps:$4 sm:$0xff]   ;;  %335 = vmatprep.mubr.bf16.mxu0 %v541_v33  ;;  %v455_v43 = vld [vmem:[%s681_s2] sm:$0xff]  }
   0xf   :  { %376 = vmatprep.mubr.bf16.mxu1 %v544_v35  ;;  %v456_v49 = vunpack.c.l.bf16 %v455_v43  ;;  %v457_v51 = vunpack.c.h.bf16 %v455_v43 }
  0x10   :  { %470 = vmatpush3.bf16.msra.mxu0 %v521_v14 }
  0x11   :  { %492 = vmatpush3.bf16.msra.mxu1 %v522_v15  ;;  %471 = vmatprep.subr.bf16.mxu0 %v523_v16 }
  0x12   :  { %493 = vmatprep.subr.bf16.mxu1 %v524_v17 }
  0x14   :  { %472 = vmatpush3.bf16.msra.mxu0 %v525_v18 }
  0x15   :  { %494 = vmatpush3.bf16.msra.mxu1 %v526_v19  ;;  %473 = vmatprep.subr.bf16.mxu0 %v527_v20 }
  0x16   :  { %495 = vmatprep.subr.bf16.mxu1 %v528_v21 }
  0x18   :  { %474 = vmatpush3.bf16.msra.mxu0 %v529_v22 }
  0x19   :  { %496 = vmatpush3.bf16.msra.mxu1 %v530_v23  ;;  %475 = vmatprep.subr.bf16.mxu0 %v531_v24 }
  0x1a   :  { %497 = vmatprep.subr.bf16.mxu1 %v532_v25 }
  0x1c   :  { %476 = vmatpush3.bf16.msra.mxu0 %v533_v26 }
  0x1d   :  { %498 = vmatpush3.bf16.msra.mxu1 %v534_v27  ;;  %477 = vmatprep.subr.bf16.mxu0 %v535_v28 }
  0x1e   :  { %499 = vmatprep.subr.bf16.mxu1 %v536_v29 }
  0x20   :  { %478 = vmatpush3.bf16.msra.mxu0 %v537_v30 }
  0x21   :  { %500 = vmatpush3.bf16.msra.mxu1 %v538_v31 }
  0x23   :  { %336 = vmatmul.mubr.bf16.vlgmr.msra.gmra.mxu0 %v539_v32 }
  0x24   :  { %377 = vmatmul.mubr.bf16.vlgmr.msra.gmra.mxu1 %v542_v34 }
  0xe3   :  { %v479_v36 = vpop.f32.mrf.mxu0 }
  0xe4   :  { %v501_v37 = vpop.f32.mrf.mxu1 }
  0xe5   :  { %v480_v38 = vpop.f32.mrf.mxu0 }
  0xe6   :  { %v502_v39 = vpop.f32.mrf.mxu1  ;;  %v481_v40 = vadd.f32 %v480_v38, %v479_v36 }
  0xe7   :  { %v503_v41 = vadd.f32 %v502_v39, %v501_v37  ;;  %v482_v42 = vpop.f32.mrf.mxu0 }
  0xe8   :  { %v504_v44 = vpop.f32.mrf.mxu1 }
  0xe9   :  { %v483_v45 = vpop.f32.mrf.mxu0  ;;  %v379_v48 = vadd.f32 %v503_v41, %v481_v40 }
  0xea   :  { %v484_v46 = vadd.f32 %v483_v45, %v482_v42  ;;  %v505_v47 = vpop.f32.mrf.mxu1 }
  0xeb   :  { %v506_v50 = vadd.f32 %v505_v47, %v504_v44  ;;  %v398_v53 = vadd.f32 %v456_v49, %v379_v48 }
  0xed   :  { %v382_v52 = vadd.f32 %v506_v50, %v484_v46 }
  0xef   :  { %v399_v54 = vadd.f32 %v457_v51, %v382_v52 }
  0xf1   :  { %v461_v55 = vpack.c.bf16 %v399_v54, %v398_v53 }
  0xf3   :  { %462 = vst [vmem:[%s682_s3] sm:$0xff] %v461_v55  }

// kernel: metaformer_forward.91
= control target key start
LH: loop header
LB: loop body
LE: loop exit
PB: predicated region body
PF: predicated region fallthrough
CT: control target
= control target key end

     0   :  { %s682_s9 = smov 0   ;;  %s762_s0 = inlined_call_operand.vmem [shape: bf16[2,7,7,256], index: 0, kind: input, shape index: {}]   ;;  %s763_s1 = inlined_call_operand.vmem [shape: f32[49,256], index: 1, kind: input, shape index: {}]   ;;  %s764_s2 = inlined_call_operand.vmem [shape: bf16[2,1,1,256], index: 2, kind: output, shape index: {}]  }
   0x1 LB: > { %s638_s10 = sadd.s32 4294967295, %s664_s9   ;;  %p642_p0 = scmp.ge.s32.totalorder %s664_s9, 1  ;;  %s664_s9 = sphi %s682_s9, %s12_s9  }
   0x2   : > { %p112_p1 = scmp.lt.s32.totalorder %s664_s9, 3 }
   0x4   : > { %p113_p2 = pnand %p642_p0, %p112_p1 }
   0x5   : > { %p133_p3 = scmp.lt.s32.totalorder (!%p113_p2), %s638_s10, 1 }
   0x6   : > { %116 = sbr.rel (%p113_p2) target bundleno = 126 (0x7e), region = 28 }
   0xb   : > { %s766_s10 = smov (!%p133_p3, %s638_s10), 1  ;;  %v163_v3 = vld [vmem:[%s763_s1] sm:$0xff]  ;;  %v164_v4 = vld [vmem:[%s763_s1 + $0x8] sm:$0xff]  ;;  %v708_v7 = vld [vmem:[%s763_s1 + $0x10] sm:$0xff]  ;;  %vm575_vm0 = vcmask 1040384   ;;  %vm578_vm2 = vcmask 1041409  }
   0xc   : > { %s648_s11 = smul.u32 56, %s766_s10  ;;  %v714_v9 = vld [vmem:[%s763_s1 + $0x18] sm:$0xff]  ;;  %v231_v20 = vrot.slane %v708_v7, 7  ;;  %v221_v26 = vrot.slane %v163_v3, 7  ;;  %v222_v27 = vrot.slane %v164_v4, 7  ;;  %v167_v51 = vld [vmem:[%s763_s1 + $0x20] sm:$0xff] }
   0xd   : > { %v232_v21 = vrot.slane %v714_v9, 7  ;;  %v168_v52 = vld [vmem:[%s763_s1 + $0x28] sm:$0xff]  ;;  %v275_v59 = vrot.slane %v708_v7, 6  ;;  %v276_v60 = vrot.slane %v714_v9, 6  ;;  %vm576_vm1 = vsmask.f32 256 }
   0xe   : > { %s696_s14 = scalar_lea.vmem %s762_s0, %s648_s11  ;;  %s644_s17 = sshll.u32 %s766_s10, 1  ;;  %vm579_vm3 = vsmask.f32 1280  ;;  %vm577_vm4 = vmand %vm575_vm0, %vm576_vm1 }
   0xf   : > { %v142_v0 = vld [vmem:[%s696_s14] sm:$0xff]  ;;  %v143_v8 = vld [vmem:[%s696_s14 + $0x8] sm:$0xff]  ;;  %v144_v46 = vld [vmem:[%s696_s14 + $0x10] sm:$0xff]  ;;  %s141_s20 = scalar_lea.vmem %s764_s2, %s644_s17 }
  0x10   : > { %v149_v1 = vunpack.c.l.bf16 %v142_v0  ;;  %v150_v2 = vunpack.c.h.bf16 %v142_v0  ;;  %v151_v18 = vunpack.c.l.bf16 %v143_v8  ;;  %v152_v19 = vunpack.c.h.bf16 %v143_v8  ;;  %vm580_vm5 = vmand %vm578_vm2, %vm579_vm3 }
  0x11   : > { %v153_v57 = vunpack.c.l.bf16 %v144_v46  ;;  %v154_v58 = vunpack.c.h.bf16 %v144_v46  ;;  %vm581_vm6 = vmor %vm580_vm5, %vm577_vm4 }
  0x12   : > { %v177_v5 = vmul.f32 %v163_v3, %v149_v1  ;;  %v178_v6 = vmul.f32 %v164_v4, %v150_v2  ;;  %v235_v32 = vmul.f32 %v231_v20, %v151_v18  ;;  %v236_v33 = vmul.f32 %v232_v21, %v152_v19  ;;  %v145_v21 = vld [vmem:[%s696_s14 + $0x18] sm:$0xff] }
  0x13   : > { %v225_v40 = vmul.f32 %v221_v26, %v151_v18  ;;  %v226_v41 = vmul.f32 %v222_v27, %v152_v19  ;;  %v293_v1 = vrot.slane %v167_v51, 6  ;;  %v294_v2 = vrot.slane %v168_v52, 6 }
  0x14   : > { %v183_v10 = vrot.slane %v177_v5, 1  ;;  %v184_v11 = vrot.slane %v178_v6, 1  ;;  %v189_v12 = vrot.slane %v177_v5, 2  ;;  %v190_v13 = vrot.slane %v178_v6, 2 }
  0x15   : > { %v195_v16 = vrot.slane %v177_v5, 3  ;;  %v196_v17 = vrot.slane %v178_v6, 3  ;;  %v201_v24 = vrot.slane %v177_v5, 4  ;;  %v202_v25 = vrot.slane %v178_v6, 4 }
  0x16   : > { %v187_v14 = vadd.f32 %v183_v10, %v177_v5  ;;  %v188_v15 = vadd.f32 %v184_v11, %v178_v6  ;;  %v207_v30 = vrot.slane %v177_v5, 5  ;;  %v208_v31 = vrot.slane %v178_v6, 5 }
  0x17   : > { %v213_v36 = vrot.slane %v177_v5, 6  ;;  %v214_v37 = vrot.slane %v178_v6, 6  ;;  %v239_v44 = vrot.slane %v235_v32, 1  ;;  %v240_v45 = vrot.slane %v236_v33, 1 }
  0x18   : > { %v193_v22 = vadd.f32 %v189_v12, %v187_v14  ;;  %v194_v23 = vadd.f32 %v190_v13, %v188_v15  ;;  %v245_v49 = vrot.slane %v235_v32, 2  ;;  %v246_v50 = vrot.slane %v236_v33, 2 }
  0x19   : > { %v251_v55 = vrot.slane %v235_v32, 3  ;;  %v252_v56 = vrot.slane %v236_v33, 3  ;;  %v257_v63 = vrot.slane %v235_v32, 4  ;;  %v258_v0 = vrot.slane %v236_v33, 4 }
  0x1a   : > { %v199_v28 = vadd.f32 %v195_v16, %v193_v22  ;;  %v200_v29 = vadd.f32 %v196_v17, %v194_v23  ;;  %v263_v5 = vrot.slane %v235_v32, 5  ;;  %v264_v6 = vrot.slane %v236_v33, 5 }
  0x1b   : > { %v269_v8 = vrot.slane %v235_v32, 6  ;;  %v270_v10 = vrot.slane %v236_v33, 6  ;;  %v279_v13 = vmul.f32 %v275_v59, %v153_v57  ;;  %v280_v14 = vmul.f32 %v276_v60, %v154_v58  ;;  %v146_v60 = vld [vmem:[%s696_s14 + $0x20] sm:$0xff] }
  0x1c   : > { %v205_v34 = vadd.f32 %v201_v24, %v199_v28  ;;  %v206_v35 = vadd.f32 %v202_v25, %v200_v29  ;;  %v297_v9 = vmul.f32 %v293_v1, %v153_v57  ;;  %v298_v16 = vmul.f32 %v294_v2, %v154_v58 }
  0x1d   : > { %v285_v19 = vrot.slane %v279_v13, 1  ;;  %v286_v20 = vrot.slane %v280_v14, 1  ;;  %v331_v32 = vrot.slane %v167_v51, 5  ;;  %v332_v33 = vrot.slane %v168_v52, 5 }
  0x1e   : > { %v211_v38 = vadd.f32 %v207_v30, %v205_v34  ;;  %v212_v39 = vadd.f32 %v208_v31, %v206_v35  ;;  %v301_v24 = vrot.slane %v297_v9, 2  ;;  %v302_v25 = vrot.slane %v298_v16, 2  ;;  %v169_v34 = vld [vmem:[%s763_s1 + $0x30] sm:$0xff]  ;;  %v170_v35 = vld [vmem:[%s763_s1 + $0x38] sm:$0xff] }
  0x1f   : > { %v307_v28 = vrot.slane %v297_v9, 3  ;;  %v308_v29 = vrot.slane %v298_v16, 3  ;;  %v155_v30 = vunpack.c.l.bf16 %v145_v21  ;;  %v156_v31 = vunpack.c.h.bf16 %v145_v21 }
  0x20   : > { %v217_v42 = vadd.f32 %v213_v36, %v211_v38  ;;  %v218_v43 = vadd.f32 %v214_v37, %v212_v39  ;;  %v313_v38 = vrot.slane %v297_v9, 4  ;;  %v314_v39 = vrot.slane %v298_v16, 4 }
  0x21   : > { %v355_v46 = vrot.slane %v169_v34, 5  ;;  %v326_v51 = vrot.slane %v298_v16, 6 }
  0x22   : > { %v227_v47 = vadd.f32 %v225_v40, %v217_v42  ;;  %v228_v48 = vadd.f32 %v226_v41, %v218_v43  ;;  %v319_v42 = vrot.slane %v297_v9, 5  ;;  %v320_v43 = vrot.slane %v298_v16, 5 }
  0x23   : > { %v359_v58 = vmul.f32 %v355_v46, %v155_v30 }
  0x24   : > { %v243_v53 = vadd.f32 %v239_v44, %v227_v47  ;;  %v244_v54 = vadd.f32 %v240_v45, %v228_v48  ;;  %v335_v44 = vmul.f32 %v331_v32, %v155_v30  ;;  %v336_v45 = vmul.f32 %v332_v33, %v156_v31 }
  0x25   : > { %v356_v47 = vrot.slane %v170_v35, 5 }
  0x26   : > { %v249_v61 = vadd.f32 %v245_v49, %v243_v53  ;;  %v250_v62 = vadd.f32 %v246_v50, %v244_v54  ;;  %v325_v50 = vrot.slane %v297_v9, 6  ;;  %v341_v54 = vrot.slane %v335_v44, 1 }
  0x27   : > { %v360_v59 = vmul.f32 %v356_v47, %v156_v31 }
  0x28   : > { %v255_v3 = vadd.f32 %v251_v55, %v249_v61  ;;  %v256_v4 = vadd.f32 %v252_v56, %v250_v62  ;;  %v342_v55 = vrot.slane %v336_v45, 1 }
  0x2a   : > { %v261_v11 = vadd.f32 %v257_v63, %v255_v3  ;;  %v262_v12 = vadd.f32 %v258_v0, %v256_v4  ;;  %v347_v63 = vrot.slane %v335_v44, 2  ;;  %v348_v0 = vrot.slane %v336_v45, 2 }
  0x2b   : > { %v363_v3 = vrot.slane %v359_v58, 3  ;;  %v364_v4 = vrot.slane %v360_v59, 3 }
  0x2c   : > { %v267_v7 = vadd.f32 %v263_v5, %v261_v11  ;;  %v268_v15 = vadd.f32 %v264_v6, %v262_v12  ;;  %v157_v5 = vunpack.c.l.bf16 %v146_v60  ;;  %v158_v6 = vunpack.c.h.bf16 %v146_v60 }
  0x2e   : > { %v273_v17 = vadd.f32 %v269_v8, %v267_v7  ;;  %v274_v18 = vadd.f32 %v270_v10, %v268_v15  ;;  %v387_v8 = vrot.slane %v169_v34, 4  ;;  %v388_v10 = vrot.slane %v170_v35, 4  ;;  %v171_v7 = vld [vmem:[%s763_s1 + $0x40] sm:$0xff]  ;;  %v172_v15 = vld [vmem:[%s763_s1 + $0x48] sm:$0xff] }
  0x2f   : > { %v147_v35 = vld [vmem:[%s696_s14 + $0x28] sm:$0xff]  ;;  %v443_v46 = vrot.slane %v171_v7, 3  ;;  %v444_v47 = vrot.slane %v172_v15, 3 }
  0x30   : > { %v281_v22 = vadd.f32 %v279_v13, %v273_v17  ;;  %v282_v23 = vadd.f32 %v280_v14, %v274_v18  ;;  %v369_v13 = vrot.slane %v359_v58, 4  ;;  %v370_v14 = vrot.slane %v360_v59, 4 }
  0x31   : > { %v375_v17 = vrot.slane %v359_v58, 5  ;;  %v376_v18 = vrot.slane %v360_v59, 5 }
  0x32   : > { %v289_v26 = vadd.f32 %v285_v19, %v281_v22  ;;  %v290_v27 = vadd.f32 %v286_v20, %v282_v23  ;;  %v391_v19 = vmul.f32 %v387_v8, %v157_v5  ;;  %v392_v20 = vmul.f32 %v388_v10, %v158_v6  ;;  %v148_v10 = vld [vmem:[%s696_s14 + $0x30] sm:$0xff] }
  0x33   : > { %v381_v23 = vrot.slane %v359_v58, 6  ;;  %v173_v58 = vld [vmem:[%s763_s1 + $0x50] sm:$0xff] }
  0x34   : > { %v305_v36 = vadd.f32 %v301_v24, %v289_v26  ;;  %v306_v37 = vadd.f32 %v302_v25, %v290_v27  ;;  %v382_v24 = vrot.slane %v360_v59, 6  ;;  %v417_v25 = vrot.slane %v171_v7, 4  ;;  %v174_v59 = vld [vmem:[%s763_s1 + $0x58] sm:$0xff] }
  0x35   : > { %v418_v26 = vrot.slane %v172_v15, 4  ;;  %v397_v31 = vrot.slane %v391_v19, 1  ;;  %v398_v32 = vrot.slane %v392_v20, 1 }
  0x36   : > { %v311_v40 = vadd.f32 %v307_v28, %v305_v36  ;;  %v312_v41 = vadd.f32 %v308_v29, %v306_v37  ;;  %v421_v33 = vmul.f32 %v417_v25, %v157_v5  ;;  %v499_v25 = vrot.slane %v173_v58, 2 }
  0x37   : > { %v422_v34 = vmul.f32 %v418_v26, %v158_v6  ;;  %v500_v26 = vrot.slane %v174_v59, 2 }
  0x38   : > { %v317_v48 = vadd.f32 %v313_v38, %v311_v40  ;;  %v318_v49 = vadd.f32 %v314_v39, %v312_v41  ;;  %v403_v38 = vrot.slane %v391_v19, 2  ;;  %v404_v39 = vrot.slane %v392_v20, 2 }
  0x3a   : > { %v323_v52 = vadd.f32 %v319_v42, %v317_v48  ;;  %v324_v53 = vadd.f32 %v320_v43, %v318_v49  ;;  %v409_v42 = vrot.slane %v391_v19, 3  ;;  %v410_v43 = vrot.slane %v392_v20, 3 }
  0x3c   : > { %v329_v56 = vadd.f32 %v325_v50, %v323_v52  ;;  %v330_v57 = vadd.f32 %v326_v51, %v324_v53  ;;  %v425_v50 = vrot.slane %v421_v33, 4  ;;  %v426_v51 = vrot.slane %v422_v34, 4 }
  0x3e   : > { %v337_v61 = vadd.f32 %v335_v44, %v329_v56  ;;  %v338_v62 = vadd.f32 %v336_v45, %v330_v57  ;;  %v159_v44 = vunpack.c.l.bf16 %v147_v35  ;;  %v160_v45 = vunpack.c.h.bf16 %v147_v35 }
  0x3f   : > { %v437_v56 = vrot.slane %v421_v33, 6  ;;  %v438_v57 = vrot.slane %v422_v34, 6 }
  0x40   : > { %v345_v1 = vadd.f32 %v341_v54, %v337_v61  ;;  %v346_v2 = vadd.f32 %v342_v55, %v338_v62  ;;  %v431_v54 = vrot.slane %v421_v33, 5  ;;  %v432_v55 = vrot.slane %v422_v34, 5 }
  0x41   : > { %v447_v62 = vmul.f32 %v443_v46, %v159_v44 }
  0x42   : > { %v351_v11 = vadd.f32 %v347_v63, %v345_v1  ;;  %v352_v12 = vadd.f32 %v348_v0, %v346_v2  ;;  %v448_v63 = vmul.f32 %v444_v47, %v160_v45  ;;  %v479_v2 = vrot.slane %v173_v58, 3 }
  0x43   : > { %v453_v6 = vrot.slane %v447_v62, 1  ;;  %v465_v7 = vrot.slane %v447_v62, 3 }
  0x44   : > { %v367_v9 = vadd.f32 %v363_v3, %v351_v11  ;;  %v368_v16 = vadd.f32 %v364_v4, %v352_v12  ;;  %v480_v3 = vrot.slane %v174_v59, 3  ;;  %v454_v8 = vrot.slane %v448_v63, 1 }
  0x45   : > { %v483_v15 = vmul.f32 %v479_v2, %v159_v44  ;;  %v563_v59 = vlaneseq }
  0x46   : > { %v373_v21 = vadd.f32 %v369_v13, %v367_v9  ;;  %v374_v22 = vadd.f32 %v370_v14, %v368_v16  ;;  %v459_v13 = vrot.slane %v447_v62, 2  ;;  %v460_v14 = vrot.slane %v448_v63, 2 }
  0x48   : > { %v379_v27 = vadd.f32 %v375_v17, %v373_v21  ;;  %v380_v28 = vadd.f32 %v376_v18, %v374_v22  ;;  %v466_v17 = vrot.slane %v448_v63, 3  ;;  %v484_v18 = vmul.f32 %v480_v3, %v160_v45 }
  0x49   : > { %v471_v21 = vrot.slane %v447_v62, 4  ;;  %v472_v22 = vrot.slane %v448_v63, 4 }
  0x4a   : > { %v385_v29 = vadd.f32 %v381_v23, %v379_v27  ;;  %v386_v30 = vadd.f32 %v382_v24, %v380_v28 }
  0x4c   : > { %v393_v36 = vadd.f32 %v391_v19, %v385_v29  ;;  %v394_v37 = vadd.f32 %v392_v20, %v386_v30  ;;  %v161_v19 = vunpack.c.l.bf16 %v148_v10  ;;  %v162_v20 = vunpack.c.h.bf16 %v148_v10 }
  0x4d   : > { %v487_v29 = vrot.slane %v483_v15, 5  ;;  %v488_v30 = vrot.slane %v484_v18, 5 }
  0x4e   : > { %v401_v40 = vadd.f32 %v397_v31, %v393_v36  ;;  %v402_v41 = vadd.f32 %v398_v32, %v394_v37  ;;  %v493_v31 = vrot.slane %v483_v15, 6  ;;  %v494_v32 = vrot.slane %v484_v18, 6  ;;  %v175_v37 = vld [vmem:[%s763_s1 + $0x60] sm:$0x1] }
  0x4f   : > { %v503_v35 = vmul.f32 %v499_v25, %v161_v19  ;;  %v504_v36 = vmul.f32 %v500_v26, %v162_v20  ;;  %v541_v45 = vrot.slane %v175_v37, 2 }
  0x50   : > { %v407_v48 = vadd.f32 %v403_v38, %v401_v40  ;;  %v408_v49 = vadd.f32 %v404_v39, %v402_v41  ;;  %v176_v38 = vld [vmem:[%s763_s1 + $0x68] sm:$0x1] }
  0x51   : > { %v510_v44 = vrot.slane %v504_v36, 1  ;;  %v542_v46 = vrot.slane %v176_v38, 2  ;;  %v533_v2 = vrot.slane %v503_v35, 5  ;;  %v534_v3 = vrot.slane %v504_v36, 5 }
  0x52   : > { %v413_v52 = vadd.f32 %v409_v42, %v407_v48  ;;  %v414_v53 = vadd.f32 %v410_v43, %v408_v49  ;;  %v509_v43 = vrot.slane %v503_v35, 1  ;;  %v515_v49 = vrot.slane %v503_v35, 2 }
  0x54   : > { %v429_v60 = vadd.f32 %v425_v50, %v413_v52  ;;  %v430_v61 = vadd.f32 %v426_v51, %v414_v53  ;;  %v516_v50 = vrot.slane %v504_v36, 2  ;;  %v521_v53 = vrot.slane %v503_v35, 3 }
  0x56   : > { %v435_v0 = vadd.f32 %v431_v54, %v429_v60  ;;  %v436_v1 = vadd.f32 %v432_v55, %v430_v61  ;;  %v522_v54 = vrot.slane %v504_v36, 3  ;;  %v527_v55 = vrot.slane %v503_v35, 4 }
  0x58   : > { %v441_v4 = vadd.f32 %v437_v56, %v435_v0  ;;  %v442_v5 = vadd.f32 %v438_v57, %v436_v1  ;;  %v545_v56 = vmul.f32 %v541_v45, %v161_v19  ;;  %v666_v57 = vmov 1966171168  }
  0x59   : > { %v561_v58 = vunpack.c.l.s4 %v666_v57 }
  0x5a   : > { %v449_v11 = vadd.f32 %v447_v62, %v441_v4  ;;  %v450_v12 = vadd.f32 %v448_v63, %v442_v5  ;;  %v528_v62 = vrot.slane %v504_v36, 4  ;;  %v546_v63 = vmul.f32 %v542_v46, %v162_v20 }
  0x5b   : > { %v562_v4 = vunpack.c.0.s8 %v561_v58  ;;  %v564_v5 = vshrl.u32 %v563_v59, 7  ;;  %v549_v10 = vrot.slane %v545_v56, 6 }
  0x5c   : > { %v457_v9 = vadd.f32 %v453_v6, %v449_v11  ;;  %v458_v16 = vadd.f32 %v454_v8, %v450_v12  ;;  %v550_v11 = vrot.slane %v546_v63, 6 }
  0x5d   : > { %v565_v15 = vsub.s32 %v562_v4, %v564_v5 }
  0x5e   : > { %v463_v23 = vadd.f32 %v459_v13, %v457_v9  ;;  %v464_v24 = vadd.f32 %v460_v14, %v458_v16 }
  0x60   : > { %v469_v27 = vadd.f32 %v465_v7, %v463_v23  ;;  %v470_v28 = vadd.f32 %v466_v17, %v464_v24  ;;  %v582_v17 = vld [vmem:[%s141_s20] sm:$0x3] }
  0x62   : > { %v475_v33 = vadd.f32 %v471_v21, %v469_v27  ;;  %v476_v34 = vadd.f32 %v472_v22, %v470_v28 }
  0x64   : > { %v491_v39 = vadd.f32 %v487_v29, %v475_v33  ;;  %v492_v40 = vadd.f32 %v488_v30, %v476_v34 }
  0x66   : > { %v497_v41 = vadd.f32 %v493_v31, %v491_v39  ;;  %v498_v42 = vadd.f32 %v494_v32, %v492_v40 }
  0x68   : > { %v505_v47 = vadd.f32 %v503_v35, %v497_v41  ;;  %v506_v48 = vadd.f32 %v504_v36, %v498_v42 }
  0x6a   : > { %v513_v51 = vadd.f32 %v509_v43, %v505_v47  ;;  %v514_v52 = vadd.f32 %v510_v44, %v506_v48 }
  0x6c   : > { %v519_v60 = vadd.f32 %v515_v49, %v513_v51  ;;  %v520_v61 = vadd.f32 %v516_v50, %v514_v52 }
  0x6e   : > { %v525_v0 = vadd.f32 %v521_v53, %v519_v60  ;;  %v526_v1 = vadd.f32 %v522_v54, %v520_v61 }
  0x70   : > { %v531_v6 = vadd.f32 %v527_v55, %v525_v0  ;;  %v532_v8 = vadd.f32 %v528_v62, %v526_v1 }
  0x72   : > { %v537_v12 = vadd.f32 %v533_v2, %v531_v6  ;;  %v538_v13 = vadd.f32 %v534_v3, %v532_v8 }
  0x74   : > { %v553_v14 = vadd.f32 %v549_v10, %v537_v12  ;;  %v554_v7 = vadd.f32 %v550_v11, %v538_v13 }
  0x76   : > { %v645_v9 = vpack.c.bf16 %v554_v7, %v553_v14 }
  0x78   : > { %v566_v16 = vrot.slane %v645_v9, %v565_v15 }
  0x7a   : > { %v573_v18 = vrot.slane %v566_v16, %v565_v15 }
  0x7c   : > { %v583_v19 = vsel %vm581_vm6, %v573_v18, %v582_v17 }
  0x7d   : > { %584 = vst [vmem:[%s141_s20] sm:$0x3] %v583_v19 }
  0x7e PF: > { %s12_s9 = sadd.s32 1, %s664_s9  }
  0x7f   : > { %p9_p4 = scmp.ge.s32.totalorder %s12_s9, 4  }
  0x81   :  { %11 = sbr.rel (!%p9_p4) target bundleno = 1 (0x1), region = 58 }

// kernel: metaformer_forward.97
= control target key start
LH: loop header
LB: loop body
LE: loop exit
PB: predicated region body
PF: predicated region fallthrough
CT: control target
= control target key end

     0   :  { %v210_v0 = vmov 0.0   ;;  %vm211_vm0 = vmmov 0   ;;  %s268_s1 = inlined_call_operand.vmem [shape: bf16[128,128], index: 1, kind: input, shape index: {}]   ;;  %s269_s0 = inlined_call_operand.vmem [shape: bf16[16,128], index: 0, kind: input, shape index: {}]   ;;  %s270_s2 = inlined_call_operand.vmem [shape: f32[1,128], index: 2, kind: input, shape index: {}]   ;;  %s271_s3 = inlined_call_operand.vmem [shape: f32[16,128], index: 3, kind: output, shape index: {}]  }
   0x1   :  { %179 = vmatprep.subr.bf16.mxu0 %v210_v0  ;;  %v201_v1 = vld [vmem:[%s268_s1 + $0x38] sm:$0xff]   ;;  %195 = vmatprep.mubr.msk.bf16.mxu0 %vm211_vm0, %v210_v0  ;;  %v202_v2 = vld [vmem:[%s268_s1 + $0x30] sm:$0xff]   ;;  %v203_v3 = vld [vmem:[%s268_s1 + $0x28] sm:$0xff]  }
   0x2   :  { %180 = vmatpush3.bf16.msra.mxu0 %v201_v1  ;;  %v204_v4 = vld [vmem:[%s268_s1 + $0x20] sm:$0xff]   ;;  %v205_v5 = vld [vmem:[%s268_s1 + $0x18] sm:$0xff]   ;;  %v206_v6 = vld [vmem:[%s268_s1 + $0x10] sm:$0xff]  }
   0x3   :  { %181 = vmatprep.subr.bf16.mxu0 %v210_v0  ;;  %v207_v7 = vld [vmem:[%s268_s1 + $0x8] sm:$0xff]   ;;  %v208_v8 = vld [vmem:[%s268_s1] sm:$0xff]  }
   0x4   :  { %v209_v9 = vld [vmem:[%s269_s0] sm:$0xff]  }
   0x5   :  { %v169_v10 = vld [vmem:[%s270_s2] ss:$0 sm:$0xff] }
   0x6   :  { %182 = vmatpush3.bf16.msra.mxu0 %v202_v2 }
   0x7   :  { %183 = vmatprep.subr.bf16.mxu0 %v210_v0 }
   0xa   :  { %184 = vmatpush3.bf16.msra.mxu0 %v203_v3 }
   0xb   :  { %185 = vmatprep.subr.bf16.mxu0 %v210_v0 }
   0xe   :  { %186 = vmatpush3.bf16.msra.mxu0 %v204_v4 }
   0xf   :  { %187 = vmatprep.subr.bf16.mxu0 %v210_v0 }
  0x12   :  { %188 = vmatpush3.bf16.msra.mxu0 %v205_v5 }
  0x13   :  { %189 = vmatprep.subr.bf16.mxu0 %v210_v0 }
  0x16   :  { %190 = vmatpush3.bf16.msra.mxu0 %v206_v6 }
  0x17   :  { %191 = vmatprep.subr.bf16.mxu0 %v210_v0 }
  0x1a   :  { %192 = vmatpush3.bf16.msra.mxu0 %v207_v7 }
  0x1b   :  { %193 = vmatprep.subr.bf16.mxu0 %v210_v0 }
  0x1e   :  { %194 = vmatpush3.bf16.msra.mxu0 %v208_v8 }
  0x21   :  { %196 = vmatmul.mubr.bf16.vlgmr.msra.gmra.mxu0 %v209_v9 }
  0xe1   :  { %v129_v11 = vpop.f32.mrf.mxu0 }
  0xe2   :  { %v152_v12 = vadd.f32 %v169_v10, %v129_v11 }
  0xe3   :  { %v197_v13 = vpop.f32.mrf.mxu0 }
  0xe4   :  { %154 = vst [vmem:[%s271_s3] sm:$0xff] %v152_v12 }
  0xe5   :  { %v132_v14 = vpop.f32.mrf.mxu0 }
  0xe6   :  { %v153_v15 = vadd.f32 %v169_v10, %v132_v14 }
  0xe7   :  { %v198_v16 = vpop.f32.mrf.mxu0 }
  0xe8   :  { %155 = vst [vmem:[%s271_s3 + $0x8] sm:$0xff] %v153_v15 }

</bundles_post_ra>
